<compile_context>
chip_gen: v7x
topology: tpu7x:2x2x1
jax: 0.10.0
libtpu: 0.0.40
codegen_flags: <defaults>
</compile_context>

<pallas_src>
import numpy as np
import jax
import jax.numpy as jnp
from jax import lax
from jax.experimental import pallas as pl
from jax.experimental.pallas import tpu as pltpu  # noqa: F401

# ----------------------------- config (small) -------------------------------
IMAGE_SIZE = (16, 16)
PATCH_SIZE = (8, 8)
WIDTH = 32          # must be multiple of 4 for sincos posemb
NUM_HEADS = 2
LRU_WIDTH = 32
DEPTH = 2

_SQRT1_2 = 0.7071067811865476


# ------------------------------ posemb (numpy) ------------------------------
def posemb_sincos_2d(h, w, width, temperature=10000.0, dtype=np.float32):
  y, x = np.mgrid[:h, :w]
  assert width % 4 == 0, 'Width must be mult of 4 for sincos posemb'
  omega = np.arange(width // 4) / (width // 4 - 1)
  omega = 1.0 / temperature ** omega
  y = np.einsum('m,d->md', y.flatten(), omega)
  x = np.einsum('m,d->md', x.flatten(), omega)
  pe = np.concatenate([np.sin(x), np.cos(x), np.sin(y), np.cos(y)], axis=1)
  return np.asarray(pe, dtype)[None, :, :]


# ----------------- elementwise helpers (safe inside kernels) -----------------
def _k_layernorm(x, g, b, eps=1e-5):
  mu = jnp.mean(x, axis=-1, keepdims=True)
  var = jnp.mean(jnp.square(x - mu), axis=-1, keepdims=True)
  return (x - mu) * lax.rsqrt(var + eps) * g + b


def _k_rmsnorm(x, scale, eps=1e-6):
  var = jnp.mean(jnp.square(x), axis=-1, keepdims=True)
  return x * lax.rsqrt(var + eps) * (1.0 + scale)


def _k_sigmoid(x):
  return 1.0 / (1.0 + jnp.exp(-x))


def _k_softplus(x):
  return jnp.maximum(x, 0.0) + jnp.log(1.0 + jnp.exp(-jnp.abs(x)))


def _k_erf(x):
  # Abramowitz & Stegun 7.1.26 polynomial (|err| < 1.5e-7); exp/mul/div only.
  a1, a2, a3, a4, a5 = (0.254829592, -0.284496736, 1.421413741,
                        -1.453152027, 1.061405429)
  p = 0.3275911
  sgn = jnp.where(x >= 0.0, 1.0, -1.0)
  ax = jnp.abs(x)
  t = 1.0 / (1.0 + p * ax)
  poly = ((((a5 * t + a4) * t + a3) * t + a2) * t + a1) * t
  return sgn * (1.0 - poly * jnp.exp(-ax * ax))


def _k_gelu(x):
  # exact (erf-based) GELU, matching nn.GELU()
  return 0.5 * x * (1.0 + _k_erf(x * _SQRT1_2))


# ------------------------- fused Pallas kernels ------------------------------
def patch_embed_fused(video, params):
  """Conv2d(3, width, k=stride=patch) as flatten + matmul, + bias + pos-emb."""
  b, t, H, W, C3 = video.shape
  ph, pw = PATCH_SIZE
  h, w = H // ph, W // pw
  hw = h * w
  x = video.reshape(b * t, h, ph, w, pw, C3)
  x = x.transpose(0, 1, 3, 5, 2, 4).reshape(b * t * hw, C3 * ph * pw)
  x = x.astype(jnp.float32)
  wmat = params['conv_w'].reshape(WIDTH, C3 * ph * pw).T
  bias = params['conv_b'].reshape(1, WIDTH)
  pos = jnp.tile(params['image_pos_emb'], (b * t, 1))          # (M, WIDTH)
  M = x.shape[0]

  def kernel(p_ref, w_ref, b_ref, pos_ref, o_ref):
    o_ref[...] = (jnp.dot(p_ref[...], w_ref[...],
                          preferred_element_type=jnp.float32)
                  + b_ref[...] + pos_ref[...])

  out = pl.pallas_call(
      kernel, out_shape=jax.ShapeDtypeStruct((M, WIDTH), jnp.float32),
  )(x, wmat, bias, pos)
  return out.reshape(b, t, hw, WIDTH)


def ssm_block_fused(x2d, p, T):
  """Fused Griffin-style residual block.  x2d: (B*N*T, C), rows ordered (bn, t)."""
  M, C = x2d.shape
  L = p['w_y'].shape[1]
  K = p['conv_w'].shape[0]
  Hm = p['mlp_gate_w'].shape[1]          # MLP hidden (4*C, a multiple of 128)

  # lane-dense fused MLP in-projection (gate | up), split at 128-aligned offset
  mlp_in_w = jnp.concatenate([p['mlp_gate_w'], p['mlp_up_w']], axis=1)
  mlp_in_b = jnp.concatenate([p['mlp_gate_b'], p['mlp_up_b']]).reshape(1, 2 * Hm)

  # per-row time index (as f32) and causal "shift by s within a time group"
  # matrices: S_s[r, c] = 1 iff c == r - s and (r % T) >= s.  S_0 = identity.
  rows = np.arange(M)
  rt = jnp.asarray((rows % T).reshape(M, 1), dtype=jnp.float32)
  mats = []
  for s in range(K):
    mat = np.zeros((M, M), np.float32)
    valid = rows[(rows % T) >= s]
    mat[valid, valid - s] = 1.0
    mats.append(mat)
  shift_mats = jnp.asarray(np.concatenate(mats, axis=0))        # (K*M, M)

  def kernel(x_ref, rt_ref, shift_ref, tnorm_ref,
             wy_ref, by_ref, wx_ref, bx_ref,
             convw_ref, convb_ref,
             gxw_ref, gxb_ref, gaw_ref, gab_ref, aparam_ref,
             wout_ref, bout_ref,
             cnorm_ref, mlpw_ref, mlpb_ref, downw_ref, downb_ref,
             xout_ref, h_out_ref):
    x = x_ref[...]
    rrt = rt_ref[...]                                           # (M, 1) f32

    # --- temporal (recurrent) sub-block -------------------------------------
    xn = _k_rmsnorm(x, tnorm_ref[...])
    y = _k_gelu(jnp.dot(xn, wy_ref[...],
                        preferred_element_type=jnp.float32) + by_ref[...])
    xb = jnp.dot(xn, wx_ref[...],
                 preferred_element_type=jnp.float32) + bx_ref[...]

    # causal depthwise temporal conv (width K) via shift matrices on the MXU
    conv = jnp.zeros_like(xb) + convb_ref[...]
    for k in range(K):
      s = K - 1 - k
      if s >= T:
        continue
      S = shift_ref[s * M:(s + 1) * M, :]
      shifted = jnp.dot(S, xb, preferred_element_type=jnp.float32)
      conv = conv + shifted * convw_ref[k:k + 1, :]

    gate_x = _k_sigmoid(jnp.dot(conv, gxw_ref[...],
                                preferred_element_type=jnp.float32)
                        + gxb_ref[...])
    gate_a = _k_sigmoid(jnp.dot(conv, gaw_ref[...],
                                preferred_element_type=jnp.float32)
                        + gab_ref[...])
    log_a = -8.0 * gate_a * _k_softplus(aparam_ref[...])
    a = jnp.exp(log_a)
    mult = jnp.sqrt(jnp.maximum(1.0 - jnp.exp(2.0 * log_a), 0.0))
    mult = jnp.where(rrt == 0.0, 1.0, mult)
    nx = conv * gate_x * mult

    # RG-LRU linear scan h_t = a_t * h_{t-1} + nx_t (h_{-1}=0), unrolled over T
    h = nx
    for tt in range(1, T):
      S1 = shift_ref[M:2 * M, :]
      prev = jnp.dot(S1, h, preferred_element_type=jnp.float32)
      h = jnp.where(rrt == float(tt), a * prev + nx, h)
    h_out_ref[...] = h

    o = jnp.dot(h * y, wout_ref[...],
                preferred_element_type=jnp.float32) + bout_ref[...]
    x1 = x + o

    # --- channel (gated-GELU MLP) sub-block ----------------------------------
    xn2 = _k_rmsnorm(x1, cnorm_ref[...])
    gu = jnp.dot(xn2, mlpw_ref[...],
                 preferred_element_type=jnp.float32) + mlpb_ref[...]
    g = _k_gelu(gu[:, :Hm])
    u = gu[:, Hm:]
    mlp = jnp.dot(g * u, downw_ref[...],
                  preferred_element_type=jnp.float32) + downb_ref[...]
    xout_ref[...] = x1 + mlp

  out, h_full = pl.pallas_call(
      kernel,
      out_shape=(jax.ShapeDtypeStruct((M, C), jnp.float32),
                 jax.ShapeDtypeStruct((M, L), jnp.float32)),
  )(x2d, rt, shift_mats, p['temporal_norm_scale'].reshape(1, C),
    p['w_y'], p['b_y'].reshape(1, L), p['w_x'], p['b_x'].reshape(1, L),
    p['conv_w'], p['conv_b'].reshape(1, L),
    p['gate_x_w'], p['gate_x_b'].reshape(1, L),
    p['gate_a_w'], p['gate_a_b'].reshape(1, L),
    p['a_param'].reshape(1, L),
    p['w_out'], p['b_out'].reshape(1, C),
    p['channel_norm_scale'].reshape(1, C),
    mlp_in_w, mlp_in_b, p['mlp_down_w'], p['mlp_down_b'].reshape(1, C))
  return out, h_full


def vit_block_fused(x2d, p, BT, N):
  """Fused torchvision EncoderBlock.  x2d: (BT*N, C), rows ordered (bt, n)."""
  M, C = x2d.shape
  Hh = NUM_HEADS
  Dh = C // Hh
  scale = 1.0 / float(np.sqrt(Dh))

  # per-head Q/K/V weights stacked along rows so in-kernel slices are
  # sublane-aligned; biases stacked as (Hh, Dh).
  in_w, in_b = p['in_proj_w'], p['in_proj_b']

  def stack_heads(wm, bb):
    w_s = jnp.concatenate([wm[:, h * Dh:(h + 1) * Dh] for h in range(Hh)],
                          axis=0)                               # (Hh*C, Dh)
    return w_s, bb.reshape(Hh, Dh)

  qws, qbs = stack_heads(in_w[:, :C], in_b[:C])
  kws, kbs = stack_heads(in_w[:, C:2 * C], in_b[C:2 * C])
  vws, vbs = stack_heads(in_w[:, 2 * C:], in_b[2 * C:])

  # block-diagonal additive attention bias: tokens only attend within their
  # own (batch, time) group.
  bt_idx = np.arange(M) // N
  attn_bias = jnp.asarray(
      np.where(bt_idx[:, None] == bt_idx[None, :], 0.0, -1e30).astype(np.float32))

  def kernel(x_ref, bias_ref, g1_ref, b1_ref,
             qws_ref, qbs_ref, kws_ref, kbs_ref, vws_ref, vbs_ref,
             ow_ref, ob_ref, g2_ref, b2_ref,
             w1_ref, bm1_ref, w2_ref, bm2_ref, o_ref):
    x = x_ref[...]
    xn = _k_layernorm(x, g1_ref[...], b1_ref[...])
    bias = bias_ref[...]
    heads = []
    for hh in range(Hh):
      r0 = hh * C
      qh = jnp.dot(xn, qws_ref[r0:r0 + C, :],
                   preferred_element_type=jnp.float32) + qbs_ref[hh:hh + 1, :]
      kh = jnp.dot(xn, kws_ref[r0:r0 + C, :],
                   preferred_element_type=jnp.float32) + kbs_ref[hh:hh + 1, :]
      vh = jnp.dot(xn, vws_ref[r0:r0 + C, :],
                   preferred_element_type=jnp.float32) + vbs_ref[hh:hh + 1, :]
      s = lax.dot_general(qh, kh, (((1,), (1,)), ((), ())),
                          preferred_element_type=jnp.float32) * scale + bias
      s = s - jnp.max(s, axis=-1, keepdims=True)
      e = jnp.exp(s)
      pr = e / jnp.sum(e, axis=-1, keepdims=True)
      heads.append(jnp.dot(pr, vh, preferred_element_type=jnp.float32))
    attn = jnp.concatenate(heads, axis=-1)                      # (M, C)
    o = jnp.dot(attn, ow_ref[...],
                preferred_element_type=jnp.float32) + ob_ref[...]
    x1 = x + o
    y = _k_layernorm(x1, g2_ref[...], b2_ref[...])
    y = _k_gelu(jnp.dot(y, w1_ref[...],
                        preferred_element_type=jnp.float32) + bm1_ref[...])
    y = jnp.dot(y, w2_ref[...],
                preferred_element_type=jnp.float32) + bm2_ref[...]
    o_ref[...] = x1 + y

  return pl.pallas_call(
      kernel, out_shape=jax.ShapeDtypeStruct((M, C), jnp.float32),
  )(x2d, attn_bias, p['ln1_g'].reshape(1, C), p['ln1_b'].reshape(1, C),
    qws, qbs, kws, kbs, vws, vbs,
    p['out_proj_w'], p['out_proj_b'].reshape(1, C),
    p['ln2_g'].reshape(1, C), p['ln2_b'].reshape(1, C),
    p['mlp_w1'], p['mlp_b1'].reshape(1, -1),
    p['mlp_w2'], p['mlp_b2'].reshape(1, C))


def heads_fused(pt2d, params, soft_argmax_threshold=20.0,
                softmax_temperature=0.5):
  """encoder LayerNorm + coordinate head + soft-argmax + visible head."""
  M, C = pt2d.shape
  ch = params['coord_head']
  vh = params['vis_head']
  Lc = ch['w3'].shape[1]                 # 512
  half = Lc // 2

  def mlp(x, w1, b1, g1, be1, w2, b2, g2, be2, w3, b3):
    h = jnp.dot(x, w1, preferred_element_type=jnp.float32) + b1
    h = _k_gelu(_k_layernorm(h, g1, be1))
    h = jnp.dot(h, w2, preferred_element_type=jnp.float32) + b2
    h = _k_gelu(_k_layernorm(h, g2, be2))
    return jnp.dot(h, w3, preferred_element_type=jnp.float32) + b3

  def soft_argmax(l):
    n = l.shape[-1]
    idx = lax.broadcasted_iota(jnp.int32, l.shape, 1).astype(jnp.float32)
    m = jnp.max(l, axis=-1, keepdims=True)
    amax = jnp.min(jnp.where(l == m, idx, float(n)), axis=-1, keepdims=True)
    mask = (jnp.abs(amax - idx) <= soft_argmax_threshold).astype(jnp.float32)
    z = l * softmax_temperature
    z = z - jnp.max(z, axis=-1, keepdims=True)
    e = jnp.exp(z)
    pr = e / jnp.sum(e, axis=-1, keepdims=True)
    pr = pr * mask
    pr = pr / jnp.sum(pr, axis=-1, keepdims=True)
    return jnp.sum(pr * idx, axis=-1, keepdims=True)

  def kernel(x_ref, eg_ref, eb_ref,
             cw1, cb1, cg1, cbe1, cw2, cb2, cg2, cbe2, cw3, cb3,
             vw1, vb1, vg1, vbe1, vw2, vb2, vg2, vbe2, vw3, vb3,
             tracks_ref, logits_ref, vis_ref):
    x = _k_layernorm(x_ref[...], eg_ref[...], eb_ref[...])
    logits = mlp(x, cw1[...], cb1[...], cg1[...], cbe1[...],
                 cw2[...], cb2[...], cg2[...], cbe2[...], cw3[...], cb3[...])
    logits_ref[...] = logits
    tx = soft_argmax(logits[:, :half])
    ty = soft_argmax(logits[:, half:])
    tracks_ref[...] = jnp.concatenate([tx, ty], axis=-1) + 0.5
    vis_ref[...] = mlp(x, vw1[...], vb1[...], vg1[...], vbe1[...],
                       vw2[...], vb2[...], vg2[...], vbe2[...],
                       vw3[...], vb3[...])

  return pl.pallas_call(
      kernel,
      out_shape=(jax.ShapeDtypeStruct((M, 2), jnp.float32),
                 jax.ShapeDtypeStruct((M, Lc), jnp.float32),
                 jax.ShapeDtypeStruct((M, 1), jnp.float32)),
  )(pt2d, params['enc_norm_g'].reshape(1, C), params['enc_norm_b'].reshape(1, C),
    ch['w1'], ch['b1'].reshape(1, -1),
    ch['ln1_g'].reshape(1, -1), ch['ln1_b'].reshape(1, -1),
    ch['w2'], ch['b2'].reshape(1, -1),
    ch['ln2_g'].reshape(1, -1), ch['ln2_b'].reshape(1, -1),
    ch['w3'], ch['b3'].reshape(1, -1),
    vh['w1'], vh['b1'].reshape(1, -1),
    vh['ln1_g'].reshape(1, -1), vh['ln1_b'].reshape(1, -1),
    vh['w2'], vh['b2'].reshape(1, -1),
    vh['ln2_g'].reshape(1, -1), vh['ln2_b'].reshape(1, -1),
    vh['w3'], vh['b3'].reshape(1, -1))


# ------------------------------- glue (JAX) ---------------------------------
def bilinear_sample(pe, y, x):
  """Bilinear sample pe (H, W, C) at float indices y, x (zero padding)."""
  H, W, _ = pe.shape
  y0 = jnp.floor(y)
  x0 = jnp.floor(x)
  wy1 = y - y0
  wx1 = x - x0
  wy0 = 1.0 - wy1
  wx0 = 1.0 - wx1

  def gather(yi, xi):
    valid = (yi >= 0) & (yi <= H - 1) & (xi >= 0) & (xi <= W - 1)
    yc = jnp.clip(yi, 0, H - 1).astype(jnp.int32)
    xc = jnp.clip(xi, 0, W - 1).astype(jnp.int32)
    return pe[yc, xc] * valid[:, None].astype(pe.dtype)

  return (gather(y0, x0) * (wy0 * wx0)[:, None]
          + gather(y0, x0 + 1) * (wy0 * wx1)[:, None]
          + gather(y0 + 1, x0) * (wy1 * wx0)[:, None]
          + gather(y0 + 1, x0 + 1) * (wy1 * wx1)[:, None])


def embed_queries(params, t, query_points):
  # TODO(synk): grid_sample-style query sampling / time scatter kept in plain
  # JAX (tiny gather glue over a handful of points).
  b, q, _ = query_points.shape
  c = WIDTH
  H, W = IMAGE_SIZE
  qp_t = query_points[..., :1]                     # (b, q, 1)
  qp_pos = query_points[..., 1:]                   # (b, q, 2)

  pe = params['query_pos_embed'].reshape(H, W, c)
  iy = qp_pos[..., 0] - 0.5                        # index into H axis
  ix = qp_pos[..., 1] - 0.5                        # index into W axis
  sampled = jax.vmap(lambda yy, xx: bilinear_sample(pe, yy, xx))(iy, ix)
  point_query_tokens = (params['point_query_token'][None, None, None, :]
                        + sampled[:, None])        # (b, 1, q, c)

  mask_tokens = jnp.broadcast_to(params['mask_token'], (b, t, q, c))
  unknown_tokens = jnp.broadcast_to(params['unknown_token'], (b, t, q, c))

  if t == 1:
    mq = jnp.where(qp_t[:, None] == 0, point_query_tokens, mask_tokens)
  else:
    tt = jnp.clip(qp_t[..., 0], 0, t - 1).astype(jnp.int32)      # (b, q)
    onehot = jnp.arange(t)[None, :, None] == tt[:, None, :]      # (b, t, q)
    mq = jnp.where(onehot[..., None], point_query_tokens, mask_tokens)
    late_or_early = (qp_t >= t) | (qp_t < 0)                     # (b, q, 1)
    mq = jnp.where(late_or_early[:, None], mask_tokens, mq)

  is_unknown = (jnp.arange(t, dtype=jnp.float32)[None, :, None, None]
                < qp_t[:, None])                                 # (b, t, q, 1)
  mq = jnp.where(is_unknown, unknown_tokens, mq)
  return mq


# ------------------------------ full forward ---------------------------------
def tapnext_forward(params, video, query_points):
  b, t, H, W, _ = video.shape
  hw = (H // PATCH_SIZE[0]) * (W // PATCH_SIZE[1])

  video_tokens = patch_embed_fused(video, params)          # (b, t, hw, c)
  point_tokens = embed_queries(params, t, query_points)    # (b, t, q, c)
  x = jnp.concatenate([video_tokens, point_tokens], axis=2)
  n, c = x.shape[2], x.shape[3]

  caches = []
  for p_blk in params['blocks']:
    # temporal (SSM) sub-block over rows ordered (b, n, t)
    xs = x.transpose(0, 2, 1, 3).reshape(b * n * t, c)
    xs, h_full = ssm_block_fused(xs, p_blk['ssm'], T=t)
    caches.append(h_full.reshape(b * n, t, -1)[:, -1])
    x = xs.reshape(b, n, t, c).transpose(0, 2, 1, 3)
    # spatial (ViT) sub-block over rows ordered (b, t, n)
    xv = x.reshape(b * t * n, c)
    xv = vit_block_fused(xv, p_blk['vit'], BT=b * t, N=n)
    x = xv.reshape(b, t, n, c)

  q = query_points.shape[1]
  # encoder_norm is per-token, so applying it only to the point tokens (the
  # only tokens consumed downstream) gives identical outputs.
  pt = x[:, :, hw:, :].reshape(b * t * q, c)
  tracks, track_logits, visible_logits = heads_fused(pt, params)
  tracks = tracks.reshape(b, t, q, 2)
  track_logits = track_logits.reshape(b, t, q, -1)
  visible_logits = visible_logits.reshape(b, t, q, 1)

  state = dict(step=jnp.int32(t), query_points=query_points,
               hidden_state=caches)
  return tracks, track_logits, visible_logits, state


# ------------------------------ init params ---------------------------------
def _block_diag(blocks):
  H, d, _ = blocks.shape
  out = jnp.zeros((H * d, H * d), jnp.float32)
  for h in range(H):
    out = out.at[h * d:(h + 1) * d, h * d:(h + 1) * d].set(blocks[h])
  return out


def init_params(key):
  H, W = IMAGE_SIZE
  ph, pw = PATCH_SIZE
  hw = (H // ph) * (W // pw)
  dh = LRU_WIDTH // NUM_HEADS
  keys = iter(jax.random.split(key, 256))

  def rnd(shape, scale=0.02):
    return scale * jax.random.normal(next(keys), shape, jnp.float32)

  def block_params():
    ssm = dict(
        temporal_norm_scale=jnp.zeros((WIDTH,), jnp.float32),
        w_y=rnd((WIDTH, LRU_WIDTH)), b_y=rnd((LRU_WIDTH,)),
        w_x=rnd((WIDTH, LRU_WIDTH)), b_x=rnd((LRU_WIDTH,)),
        conv_w=rnd((4, LRU_WIDTH)), conv_b=rnd((LRU_WIDTH,)),
        gate_x_w=_block_diag(rnd((NUM_HEADS, dh, dh))),
        gate_x_b=rnd((LRU_WIDTH,)),
        gate_a_w=_block_diag(rnd((NUM_HEADS, dh, dh))),
        gate_a_b=rnd((LRU_WIDTH,)),
        a_param=1.0 + rnd((LRU_WIDTH,)),
        w_out=rnd((LRU_WIDTH, WIDTH)), b_out=rnd((WIDTH,)),
        channel_norm_scale=jnp.zeros((WIDTH,), jnp.float32),
        mlp_gate_w=rnd((WIDTH, 4 * WIDTH)), mlp_gate_b=rnd((4 * WIDTH,)),
        mlp_up_w=rnd((WIDTH, 4 * WIDTH)), mlp_up_b=rnd((4 * WIDTH,)),
        mlp_down_w=rnd((4 * WIDTH, WIDTH)), mlp_down_b=rnd((WIDTH,)),
    )
    vit = dict(
        ln1_g=jnp.ones((WIDTH,), jnp.float32),
        ln1_b=jnp.zeros((WIDTH,), jnp.float32),
        in_proj_w=rnd((WIDTH, 3 * WIDTH)), in_proj_b=rnd((3 * WIDTH,)),
        out_proj_w=rnd((WIDTH, WIDTH)), out_proj_b=rnd((WIDTH,)),
        ln2_g=jnp.ones((WIDTH,), jnp.float32),
        ln2_b=jnp.zeros((WIDTH,), jnp.float32),
        mlp_w1=rnd((WIDTH, 4 * WIDTH)), mlp_b1=rnd((4 * WIDTH,)),
        mlp_w2=rnd((4 * WIDTH, WIDTH)), mlp_b2=rnd((WIDTH,)),
    )
    return dict(ssm=ssm, vit=vit)

  def head_params(out_dim):
    return dict(
        w1=rnd((WIDTH, 256)), b1=rnd((256,)),
        ln1_g=jnp.ones((256,), jnp.float32), ln1_b=jnp.zeros((256,), jnp.float32),
        w2=rnd((256, 256)), b2=rnd((256,)),
        ln2_g=jnp.ones((256,), jnp.float32), ln2_b=jnp.zeros((256,), jnp.float32),
        w3=rnd((256, out_dim)), b3=rnd((out_dim,)),
    )

  params = dict(
      conv_w=rnd((WIDTH, 3, ph, pw)), conv_b=rnd((WIDTH,)),
      image_pos_emb=rnd((hw, WIDTH)),
      mask_token=rnd((WIDTH,)),
      unknown_token=rnd((WIDTH,)),
      point_query_token=rnd((WIDTH,)),
      query_pos_embed=jnp.asarray(posemb_sincos_2d(H, W, WIDTH)[0]),
      enc_norm_g=jnp.ones((WIDTH,), jnp.float32),
      enc_norm_b=jnp.zeros((WIDTH,), jnp.float32),
      blocks=[block_params() for _ in range(DEPTH)],
      coord_head=head_params(512),
      vis_head=head_params(1),
  )
  return params


# ---------------------------------- main -------------------------------------
if __name__ == "__main__":
  key = jax.random.PRNGKey(0)
  pkey, vkey = jax.random.split(key)
  params = init_params(pkey)

  b, t, q = 1, 2, 4
  video = jax.random.uniform(
      vkey, (b, t, IMAGE_SIZE[0], IMAGE_SIZE[1], 3), dtype=jnp.float32)
  query_points = jnp.array(
      [[[0.0, 4.0, 5.0],
        [1.0, 8.0, 2.5],
        [0.0, 12.5, 7.5],
        [1.0, 3.0, 10.0]]], dtype=jnp.float32)

  fwd = jax.jit(tapnext_forward)
  tracks, track_logits, visible_logits, state = fwd(params, video, query_points)
  jax.block_until_ready((tracks, track_logits, visible_logits))

  assert tracks.shape == (b, t, q, 2)
  assert track_logits.shape == (b, t, q, 512)
  assert visible_logits.shape == (b, t, q, 1)
  assert bool(jnp.all(jnp.isfinite(tracks)))
  assert bool(jnp.all(jnp.isfinite(track_logits)))
  assert bool(jnp.all(jnp.isfinite(visible_logits)))
  print("KERNEL_OK")
</pallas_src>

<mosaic_0001>
module attributes {stable_mosaic.version = 11 : i64} {
  func.func @kernel(%arg0: memref<8x192xf32, #tpu.memory_space<vmem>>, %arg1: memref<192x32xf32, #tpu.memory_space<vmem>>, %arg2: memref<1x32xf32, #tpu.memory_space<vmem>>, %arg3: memref<8x32xf32, #tpu.memory_space<vmem>>, %arg4: memref<8x32xf32, #tpu.memory_space<vmem>>) attributes {dimension_semantics = [], scalar_prefetch = 0 : i64, scratch_operands = 0 : i64, tpu.core_type = #tpu.core_type<tc>} {
    %c0 = arith.constant 0 : index
    %c0_0 = arith.constant 0 : index
    %0 = vector.load %arg0[%c0, %c0_0] : memref<8x192xf32, #tpu.memory_space<vmem>>, vector<8x192xf32>
    %c0_1 = arith.constant 0 : index
    %c0_2 = arith.constant 0 : index
    %1 = vector.load %arg1[%c0_1, %c0_2] : memref<192x32xf32, #tpu.memory_space<vmem>>, vector<192x32xf32>
    %cst = arith.constant dense<0.000000e+00> : vector<8x32xf32>
    %2 = tpu.matmul %0, %1, %cst {dimension_numbers = #tpu.dot_dimension_numbers<[1], [0], [0], [1], [0, 0, 1, 1], [], []>} : vector<8x192xf32>, vector<192x32xf32>, vector<8x32xf32> -> vector<8x32xf32>
    %c0_3 = arith.constant 0 : index
    %c0_4 = arith.constant 0 : index
    %3 = vector.load %arg2[%c0_3, %c0_4] : memref<1x32xf32, #tpu.memory_space<vmem>>, vector<1x32xf32>
    %4 = vector.broadcast %3 : vector<1x32xf32> to vector<8x32xf32>
    %5 = arith.addf %2, %4 : vector<8x32xf32>
    %c0_5 = arith.constant 0 : index
    %c0_6 = arith.constant 0 : index
    %6 = vector.load %arg3[%c0_5, %c0_6] : memref<8x32xf32, #tpu.memory_space<vmem>>, vector<8x32xf32>
    %7 = arith.addf %5, %6 : vector<8x32xf32>
    %c0_7 = arith.constant 0 : index
    %c0_8 = arith.constant 0 : index
    %8 = vector.load %arg4[%c0_7, %c0_8] : memref<8x32xf32, #tpu.memory_space<vmem>>, vector<8x32xf32>
    tpu.vector_store %arg4[%c0_7, %c0_8], %7 {strides = array<i32>} : memref<8x32xf32, #tpu.memory_space<vmem>>, vector<8x32xf32>,
    return
  }
}

module attributes {stable_mosaic.version = 11 : i64} {
  func.func @kernel(%arg0: memref<16x32xf32, #tpu.memory_space<vmem>>, %arg1: memref<16x1xf32, #tpu.memory_space<vmem>>, %arg2: memref<64x16xf32, #tpu.memory_space<vmem>>, %arg3: memref<1x32xf32, #tpu.memory_space<vmem>>, %arg4: memref<32x32xf32, #tpu.memory_space<vmem>>, %arg5: memref<1x32xf32, #tpu.memory_space<vmem>>, %arg6: memref<32x32xf32, #tpu.memory_space<vmem>>, %arg7: memref<1x32xf32, #tpu.memory_space<vmem>>, %arg8: memref<4x32xf32, #tpu.memory_space<vmem>>, %arg9: memref<1x32xf32, #tpu.memory_space<vmem>>, %arg10: memref<32x32xf32, #tpu.memory_space<vmem>>, %arg11: memref<1x32xf32, #tpu.memory_space<vmem>>, %arg12: memref<32x32xf32, #tpu.memory_space<vmem>>, %arg13: memref<1x32xf32, #tpu.memory_space<vmem>>, %arg14: memref<1x32xf32, #tpu.memory_space<vmem>>, %arg15: memref<32x32xf32, #tpu.memory_space<vmem>>, %arg16: memref<1x32xf32, #tpu.memory_space<vmem>>, %arg17: memref<1x32xf32, #tpu.memory_space<vmem>>, %arg18: memref<32x256xf32, #tpu.memory_space<vmem>>, %arg19: memref<1x256xf32, #tpu.memory_space<vmem>>, %arg20: memref<128x32xf32, #tpu.memory_space<vmem>>, %arg21: memref<1x32xf32, #tpu.memory_space<vmem>>, %arg22: memref<16x32xf32, #tpu.memory_space<vmem>>, %arg23: memref<16x32xf32, #tpu.memory_space<vmem>>) attributes {dimension_semantics = [], scalar_prefetch = 0 : i64, scratch_operands = 0 : i64, tpu.core_type = #tpu.core_type<tc>} {
    %c0 = arith.constant 0 : index
    %c0_0 = arith.constant 0 : index
    %0 = vector.load %arg0[%c0, %c0_0] : memref<16x32xf32, #tpu.memory_space<vmem>>, vector<16x32xf32>
    %c0_1 = arith.constant 0 : index
    %c0_2 = arith.constant 0 : index
    %1 = vector.load %arg1[%c0_1, %c0_2] : memref<16x1xf32, #tpu.memory_space<vmem>>, vector<16x1xf32>
    %c0_3 = arith.constant 0 : index
    %c0_4 = arith.constant 0 : index
    %2 = vector.load %arg3[%c0_3, %c0_4] : memref<1x32xf32, #tpu.memory_space<vmem>>, vector<1x32xf32>
    %3 = arith.mulf %0, %0 : vector<16x32xf32>
    %cst = arith.constant dense<0.000000e+00> : vector<16xf32>
    %4 = vector.multi_reduction <add>, %3, %cst [1] : vector<16x32xf32> to vector<16xf32>
    %5 = vector.shape_cast %4 : vector<16xf32> to vector<16x1xf32>
    %cst_5 = arith.constant 3.200000e+01 : f32
    %6 = vector.broadcast %cst_5 : f32 to vector<16x1xf32>
    %7 = arith.divf %5, %6 : vector<16x1xf32>
    %cst_6 = arith.constant 9.99999997E-7 : f32
    %8 = vector.broadcast %cst_6 : f32 to vector<16x1xf32>
    %9 = arith.addf %7, %8 : vector<16x1xf32>
    %10 = math.rsqrt %9 : vector<16x1xf32>
    %11 = vector.broadcast %10 : vector<16x1xf32> to vector<16x32xf32>
    %12 = arith.mulf %0, %11 : vector<16x32xf32>
    %cst_7 = arith.constant 1.000000e+00 : f32
    %13 = vector.broadcast %cst_7 : f32 to vector<1x32xf32>
    %14 = arith.addf %13, %2 : vector<1x32xf32>
    %15 = vector.broadcast %14 : vector<1x32xf32> to vector<16x32xf32>
    %16 = arith.mulf %12, %15 : vector<16x32xf32>
    %c0_8 = arith.constant 0 : index
    %c0_9 = arith.constant 0 : index
    %17 = vector.load %arg4[%c0_8, %c0_9] : memref<32x32xf32, #tpu.memory_space<vmem>>, vector<32x32xf32>
    %cst_10 = arith.constant dense<0.000000e+00> : vector<16x32xf32>
    %18 = tpu.matmul %16, %17, %cst_10 {dimension_numbers = #tpu.dot_dimension_numbers<[1], [0], [0], [1], [0, 0, 1, 1], [], []>} : vector<16x32xf32>, vector<32x32xf32>, vector<16x32xf32> -> vector<16x32xf32>
    %c0_11 = arith.constant 0 : index
    %c0_12 = arith.constant 0 : index
    %19 = vector.load %arg5[%c0_11, %c0_12] : memref<1x32xf32, #tpu.memory_space<vmem>>, vector<1x32xf32>
    %20 = vector.broadcast %19 : vector<1x32xf32> to vector<16x32xf32>
    %21 = arith.addf %18, %20 : vector<16x32xf32>
    %cst_13 = arith.constant 5.000000e-01 : f32
    %22 = vector.broadcast %cst_13 : f32 to vector<16x32xf32>
    %23 = arith.mulf %22, %21 : vector<16x32xf32>
    %cst_14 = arith.constant 0.707106769 : f32
    %24 = vector.broadcast %cst_14 : f32 to vector<16x32xf32>
    %25 = arith.mulf %21, %24 : vector<16x32xf32>
    %cst_15 = arith.constant 0.000000e+00 : f32
    %26 = vector.broadcast %cst_15 : f32 to vector<16x32xf32>
    %27 = arith.cmpf oge, %25, %26 : vector<16x32xf32>
    %cst_16 = arith.constant 1.000000e+00 : f32
    %cst_17 = arith.constant -1.000000e+00 : f32
    %28 = vector.broadcast %cst_16 : f32 to vector<16x32xf32>
    %29 = vector.broadcast %cst_17 : f32 to vector<16x32xf32>
    %30 = arith.select %27, %28, %29 : vector<16x32xi1>, vector<16x32xf32>
    %31 = math.absf %25 : vector<16x32xf32>
    %cst_18 = arith.constant 0.327591091 : f32
    %32 = vector.broadcast %cst_18 : f32 to vector<16x32xf32>
    %33 = arith.mulf %32, %31 : vector<16x32xf32>
    %cst_19 = arith.constant 1.000000e+00 : f32
    %34 = vector.broadcast %cst_19 : f32 to vector<16x32xf32>
    %35 = arith.addf %34, %33 : vector<16x32xf32>
    %cst_20 = arith.constant 1.000000e+00 : f32
    %36 = vector.broadcast %cst_20 : f32 to vector<16x32xf32>
    %37 = arith.divf %36, %35 : vector<16x32xf32>
    %cst_21 = arith.constant 1.06140542 : f32
    %38 = vector.broadcast %cst_21 : f32 to vector<16x32xf32>
    %39 = arith.mulf %38, %37 : vector<16x32xf32>
    %cst_22 = arith.constant -1.45315206 : f32
    %40 = vector.broadcast %cst_22 : f32 to vector<16x32xf32>
    %41 = arith.addf %39, %40 : vector<16x32xf32>
    %42 = arith.mulf %41, %37 : vector<16x32xf32>
    %cst_23 = arith.constant 1.42141378 : f32
    %43 = vector.broadcast %cst_23 : f32 to vector<16x32xf32>
    %44 = arith.addf %42, %43 : vector<16x32xf32>
    %45 = arith.mulf %44, %37 : vector<16x32xf32>
    %cst_24 = arith.constant -0.284496725 : f32
    %46 = vector.broadcast %cst_24 : f32 to vector<16x32xf32>
    %47 = arith.addf %45, %46 : vector<16x32xf32>
    %48 = arith.mulf %47, %37 : vector<16x32xf32>
    %cst_25 = arith.constant 0.254829586 : f32
    %49 = vector.broadcast %cst_25 : f32 to vector<16x32xf32>
    %50 = arith.addf %48, %49 : vector<16x32xf32>
    %51 = arith.mulf %50, %37 : vector<16x32xf32>
    %cst_26 = arith.constant 0.000000e+00 : f32
    %52 = vector.broadcast %cst_26 : f32 to vector<16x32xf32>
    %53 = arith.subf %52, %31 : vector<16x32xf32>
    %54 = arith.mulf %53, %31 : vector<16x32xf32>
    %55 = math.exp %54 : vector<16x32xf32>
    %56 = arith.mulf %51, %55 : vector<16x32xf32>
    %cst_27 = arith.constant 1.000000e+00 : f32
    %57 = vector.broadcast %cst_27 : f32 to vector<16x32xf32>
    %58 = arith.subf %57, %56 : vector<16x32xf32>
    %59 = arith.mulf %30, %58 : vector<16x32xf32>
    %cst_28 = arith.constant 1.000000e+00 : f32
    %60 = vector.broadcast %cst_28 : f32 to vector<16x32xf32>
    %61 = arith.addf %60, %59 : vector<16x32xf32>
    %62 = arith.mulf %23, %61 : vector<16x32xf32>
    %c0_29 = arith.constant 0 : index
    %c0_30 = arith.constant 0 : index
    %63 = vector.load %arg6[%c0_29, %c0_30] : memref<32x32xf32, #tpu.memory_space<vmem>>, vector<32x32xf32>
    %cst_31 = arith.constant dense<0.000000e+00> : vector<16x32xf32>
    %64 = tpu.matmul %16, %63, %cst_31 {dimension_numbers = #tpu.dot_dimension_numbers<[1], [0], [0], [1], [0, 0, 1, 1], [], []>} : vector<16x32xf32>, vector<32x32xf32>, vector<16x32xf32> -> vector<16x32xf32>
    %c0_32 = arith.constant 0 : index
    %c0_33 = arith.constant 0 : index
    %65 = vector.load %arg7[%c0_32, %c0_33] : memref<1x32xf32, #tpu.memory_space<vmem>>, vector<1x32xf32>
    %66 = vector.broadcast %65 : vector<1x32xf32> to vector<16x32xf32>
    %67 = arith.addf %64, %66 : vector<16x32xf32>
    %cst_34 = arith.constant 0.000000e+00 : f32
    %68 = vector.broadcast %cst_34 : f32 to vector<16x32xf32>
    %c0_35 = arith.constant 0 : index
    %c0_36 = arith.constant 0 : index
    %69 = vector.load %arg9[%c0_35, %c0_36] : memref<1x32xf32, #tpu.memory_space<vmem>>, vector<1x32xf32>
    %70 = vector.broadcast %69 : vector<1x32xf32> to vector<16x32xf32>
    %71 = arith.addf %68, %70 : vector<16x32xf32>
    %c16 = arith.constant 16 : index
    %c0_37 = arith.constant 0 : index
    %72 = vector.load %arg2[%c16, %c0_37] : memref<64x16xf32, #tpu.memory_space<vmem>>, vector<16x16xf32>
    %cst_38 = arith.constant dense<0.000000e+00> : vector<16x32xf32>
    %73 = tpu.matmul %72, %67, %cst_38 {dimension_numbers = #tpu.dot_dimension_numbers<[1], [0], [0], [1], [0, 0, 1, 1], [], []>} : vector<16x16xf32>, vector<16x32xf32>, vector<16x32xf32> -> vector<16x32xf32>
    %c2 = arith.constant 2 : index
    %c0_39 = arith.constant 0 : index
    %74 = vector.load %arg8[%c2, %c0_39] : memref<4x32xf32, #tpu.memory_space<vmem>>, vector<1x32xf32>
    %75 = vector.broadcast %74 : vector<1x32xf32> to vector<16x32xf32>
    %76 = arith.mulf %73, %75 : vector<16x32xf32>
    %77 = arith.addf %71, %76 : vector<16x32xf32>
    %c0_40 = arith.constant 0 : index
    %c0_41 = arith.constant 0 : index
    %78 = vector.load %arg2[%c0_40, %c0_41] : memref<64x16xf32, #tpu.memory_space<vmem>>, vector<16x16xf32>
    %cst_42 = arith.constant dense<0.000000e+00> : vector<16x32xf32>
    %79 = tpu.matmul %78, %67, %cst_42 {dimension_numbers = #tpu.dot_dimension_numbers<[1], [0], [0], [1], [0, 0, 1, 1], [], []>} : vector<16x16xf32>, vector<16x32xf32>, vector<16x32xf32> -> vector<16x32xf32>
    %c3 = arith.constant 3 : index
    %c0_43 = arith.constant 0 : index
    %80 = vector.load %arg8[%c3, %c0_43] : memref<4x32xf32, #tpu.memory_space<vmem>>, vector<1x32xf32>
    %81 = vector.broadcast %80 : vector<1x32xf32> to vector<16x32xf32>
    %82 = arith.mulf %79, %81 : vector<16x32xf32>
    %83 = arith.addf %77, %82 : vector<16x32xf32>
    %c0_44 = arith.constant 0 : index
    %c0_45 = arith.constant 0 : index
    %84 = vector.load %arg10[%c0_44, %c0_45] : memref<32x32xf32, #tpu.memory_space<vmem>>, vector<32x32xf32>
    %cst_46 = arith.constant dense<0.000000e+00> : vector<16x32xf32>
    %85 = tpu.matmul %83, %84, %cst_46 {dimension_numbers = #tpu.dot_dimension_numbers<[1], [0], [0], [1], [0, 0, 1, 1], [], []>} : vector<16x32xf32>, vector<32x32xf32>, vector<16x32xf32> -> vector<16x32xf32>
    %c0_47 = arith.constant 0 : index
    %c0_48 = arith.constant 0 : index
    %86 = vector.load %arg11[%c0_47, %c0_48] : memref<1x32xf32, #tpu.memory_space<vmem>>, vector<1x32xf32>
    %87 = vector.broadcast %86 : vector<1x32xf32> to vector<16x32xf32>
    %88 = arith.addf %85, %87 : vector<16x32xf32>
    %cst_49 = arith.constant 0.000000e+00 : f32
    %89 = vector.broadcast %cst_49 : f32 to vector<16x32xf32>
    %90 = arith.subf %89, %88 : vector<16x32xf32>
    %91 = math.exp %90 : vector<16x32xf32>
    %cst_50 = arith.constant 1.000000e+00 : f32
    %92 = vector.broadcast %cst_50 : f32 to vector<16x32xf32>
    %93 = arith.addf %92, %91 : vector<16x32xf32>
    %cst_51 = arith.constant 1.000000e+00 : f32
    %94 = vector.broadcast %cst_51 : f32 to vector<16x32xf32>
    %95 = arith.divf %94, %93 : vector<16x32xf32>
    %c0_52 = arith.constant 0 : index
    %c0_53 = arith.constant 0 : index
    %96 = vector.load %arg12[%c0_52, %c0_53] : memref<32x32xf32, #tpu.memory_space<vmem>>, vector<32x32xf32>
    %cst_54 = arith.constant dense<0.000000e+00> : vector<16x32xf32>
    %97 = tpu.matmul %83, %96, %cst_54 {dimension_numbers = #tpu.dot_dimension_numbers<[1], [0], [0], [1], [0, 0, 1, 1], [], []>} : vector<16x32xf32>, vector<32x32xf32>, vector<16x32xf32> -> vector<16x32xf32>
    %c0_55 = arith.constant 0 : index
    %c0_56 = arith.constant 0 : index
    %98 = vector.load %arg13[%c0_55, %c0_56] : memref<1x32xf32, #tpu.memory_space<vmem>>, vector<1x32xf32>
    %99 = vector.broadcast %98 : vector<1x32xf32> to vector<16x32xf32>
    %100 = arith.addf %97, %99 : vector<16x32xf32>
    %cst_57 = arith.constant 0.000000e+00 : f32
    %101 = vector.broadcast %cst_57 : f32 to vector<16x32xf32>
    %102 = arith.subf %101, %100 : vector<16x32xf32>
    %103 = math.exp %102 : vector<16x32xf32>
    %cst_58 = arith.constant 1.000000e+00 : f32
    %104 = vector.broadcast %cst_58 : f32 to vector<16x32xf32>
    %105 = arith.addf %104, %103 : vector<16x32xf32>
    %cst_59 = arith.constant 1.000000e+00 : f32
    %106 = vector.broadcast %cst_59 : f32 to vector<16x32xf32>
    %107 = arith.divf %106, %105 : vector<16x32xf32>
    %cst_60 = arith.constant -8.000000e+00 : f32
    %108 = vector.broadcast %cst_60 : f32 to vector<16x32xf32>
    %109 = arith.mulf %108, %107 : vector<16x32xf32>
    %c0_61 = arith.constant 0 : index
    %c0_62 = arith.constant 0 : index
    %110 = vector.load %arg14[%c0_61, %c0_62] : memref<1x32xf32, #tpu.memory_space<vmem>>, vector<1x32xf32>
    %cst_63 = arith.constant 0.000000e+00 : f32
    %111 = vector.broadcast %cst_63 : f32 to vector<1x32xf32>
    %112 = arith.maximumf %110, %111 : vector<1x32xf32>
    %113 = math.absf %110 : vector<1x32xf32>
    %cst_64 = arith.constant 0.000000e+00 : f32
    %114 = vector.broadcast %cst_64 : f32 to vector<1x32xf32>
    %115 = arith.subf %114, %113 : vector<1x32xf32>
    %116 = math.exp %115 : vector<1x32xf32>
    %cst_65 = arith.constant 1.000000e+00 : f32
    %117 = vector.broadcast %cst_65 : f32 to vector<1x32xf32>
    %118 = arith.addf %117, %116 : vector<1x32xf32>
    %119 = math.log %118 : vector<1x32xf32>
    %120 = arith.addf %112, %119 : vector<1x32xf32>
    %121 = vector.broadcast %120 : vector<1x32xf32> to vector<16x32xf32>
    %122 = arith.mulf %109, %121 : vector<16x32xf32>
    %123 = math.exp %122 : vector<16x32xf32>
    %cst_66 = arith.constant 2.000000e+00 : f32
    %124 = vector.broadcast %cst_66 : f32 to vector<16x32xf32>
    %125 = arith.mulf %124, %122 : vector<16x32xf32>
    %126 = math.exp %125 : vector<16x32xf32>
    %cst_67 = arith.constant 1.000000e+00 : f32
    %127 = vector.broadcast %cst_67 : f32 to vector<16x32xf32>
    %128 = arith.subf %127, %126 : vector<16x32xf32>
    %cst_68 = arith.constant 0.000000e+00 : f32
    %129 = vector.broadcast %cst_68 : f32 to vector<16x32xf32>
    %130 = arith.maximumf %128, %129 : vector<16x32xf32>
    %131 = math.sqrt %130 : vector<16x32xf32>
    %cst_69 = arith.constant 0.000000e+00 : f32
    %132 = vector.broadcast %cst_69 : f32 to vector<16x1xf32>
    %133 = arith.cmpf oeq, %1, %132 : vector<16x1xf32>
    %cst_70 = arith.constant 1.000000e+00 : f32
    %134 = vector.shape_cast %133 : vector<16x1xi1> to vector<16x1xi1>
    %135 = vector.broadcast %134 : vector<16x1xi1> to vector<16x32xi1>
    %136 = vector.broadcast %cst_70 : f32 to vector<16x32xf32>
    %137 = arith.select %135, %136, %131 : vector<16x32xi1>, vector<16x32xf32>
    %138 = arith.mulf %83, %95 : vector<16x32xf32>
    %139 = arith.mulf %138, %137 : vector<16x32xf32>
    %c16_71 = arith.constant 16 : index
    %c0_72 = arith.constant 0 : index
    %140 = vector.load %arg2[%c16_71, %c0_72] : memref<64x16xf32, #tpu.memory_space<vmem>>, vector<16x16xf32>
    %cst_73 = arith.constant dense<0.000000e+00> : vector<16x32xf32>
    %141 = tpu.matmul %140, %139, %cst_73 {dimension_numbers = #tpu.dot_dimension_numbers<[1], [0], [0], [1], [0, 0, 1, 1], [], []>} : vector<16x16xf32>, vector<16x32xf32>, vector<16x32xf32> -> vector<16x32xf32>
    %cst_74 = arith.constant 1.000000e+00 : f32
    %142 = vector.broadcast %cst_74 : f32 to vector<16x1xf32>
    %143 = arith.cmpf oeq, %1, %142 : vector<16x1xf32>
    %144 = arith.mulf %123, %141 : vector<16x32xf32>
    %145 = arith.addf %144, %139 : vector<16x32xf32>
    %146 = vector.shape_cast %143 : vector<16x1xi1> to vector<16x1xi1>
    %147 = vector.broadcast %146 : vector<16x1xi1> to vector<16x32xi1>
    %148 = arith.select %147, %145, %139 : vector<16x32xi1>, vector<16x32xf32>
    %c0_75 = arith.constant 0 : index
    %c0_76 = arith.constant 0 : index
    %149 = vector.load %arg23[%c0_75, %c0_76] : memref<16x32xf32, #tpu.memory_space<vmem>>, vector<16x32xf32>
    tpu.vector_store %arg23[%c0_75, %c0_76], %148 {strides = array<i32>} : memref<16x32xf32, #tpu.memory_space<vmem>>, vector<16x32xf32>,
    %150 = arith.mulf %148, %62 : vector<16x32xf32>
    %c0_77 = arith.constant 0 : index
    %c0_78 = arith.constant 0 : index
    %151 = vector.load %arg15[%c0_77, %c0_78] : memref<32x32xf32, #tpu.memory_space<vmem>>, vector<32x32xf32>
    %cst_79 = arith.constant dense<0.000000e+00> : vector<16x32xf32>
    %152 = tpu.matmul %150, %151, %cst_79 {dimension_numbers = #tpu.dot_dimension_numbers<[1], [0], [0], [1], [0, 0, 1, 1], [], []>} : vector<16x32xf32>, vector<32x32xf32>, vector<16x32xf32> -> vector<16x32xf32>
    %c0_80 = arith.constant 0 : index
    %c0_81 = arith.constant 0 : index
    %153 = vector.load %arg16[%c0_80, %c0_81] : memref<1x32xf32, #tpu.memory_space<vmem>>, vector<1x32xf32>
    %154 = vector.broadcast %153 : vector<1x32xf32> to vector<16x32xf32>
    %155 = arith.addf %152, %154 : vector<16x32xf32>
    %156 = arith.addf %0, %155 : vector<16x32xf32>
    %c0_82 = arith.constant 0 : index
    %c0_83 = arith.constant 0 : index
    %157 = vector.load %arg17[%c0_82, %c0_83] : memref<1x32xf32, #tpu.memory_space<vmem>>, vector<1x32xf32>
    %158 = arith.mulf %156, %156 : vector<16x32xf32>
    %cst_84 = arith.constant dense<0.000000e+00> : vector<16xf32>
    %159 = vector.multi_reduction <add>, %158, %cst_84 [1] : vector<16x32xf32> to vector<16xf32>
    %160 = vector.shape_cast %159 : vector<16xf32> to vector<16x1xf32>
    %cst_85 = arith.constant 3.200000e+01 : f32
    %161 = vector.broadcast %cst_85 : f32 to vector<16x1xf32>
    %162 = arith.divf %160, %161 : vector<16x1xf32>
    %cst_86 = arith.constant 9.99999997E-7 : f32
    %163 = vector.broadcast %cst_86 : f32 to vector<16x1xf32>
    %164 = arith.addf %162, %163 : vector<16x1xf32>
    %165 = math.rsqrt %164 : vector<16x1xf32>
    %166 = vector.broadcast %165 : vector<16x1xf32> to vector<16x32xf32>
    %167 = arith.mulf %156, %166 : vector<16x32xf32>
    %cst_87 = arith.constant 1.000000e+00 : f32
    %168 = vector.broadcast %cst_87 : f32 to vector<1x32xf32>
    %169 = arith.addf %168, %157 : vector<1x32xf32>
    %170 = vector.broadcast %169 : vector<1x32xf32> to vector<16x32xf32>
    %171 = arith.mulf %167, %170 : vector<16x32xf32>
    %c0_88 = arith.constant 0 : index
    %c0_89 = arith.constant 0 : index
    %172 = vector.load %arg18[%c0_88, %c0_89] : memref<32x256xf32, #tpu.memory_space<vmem>>, vector<32x256xf32>
    %cst_90 = arith.constant dense<0.000000e+00> : vector<16x256xf32>
    %173 = tpu.matmul %171, %172, %cst_90 {dimension_numbers = #tpu.dot_dimension_numbers<[1], [0], [0], [1], [0, 0, 1, 1], [], []>} : vector<16x32xf32>, vector<32x256xf32>, vector<16x256xf32> -> vector<16x256xf32>
    %c0_91 = arith.constant 0 : index
    %c0_92 = arith.constant 0 : index
    %174 = vector.load %arg19[%c0_91, %c0_92] : memref<1x256xf32, #tpu.memory_space<vmem>>, vector<1x256xf32>
    %175 = vector.broadcast %174 : vector<1x256xf32> to vector<16x256xf32>
    %176 = arith.addf %173, %175 : vector<16x256xf32>
    %177 = vector.extract_strided_slice %176 {offsets = [0, 0], sizes = [16, 128], strides = [1, 1]} : vector<16x256xf32> to vector<16x128xf32>
    %cst_93 = arith.constant 5.000000e-01 : f32
    %178 = vector.broadcast %cst_93 : f32 to vector<16x128xf32>
    %179 = arith.mulf %178, %177 : vector<16x128xf32>
    %cst_94 = arith.constant 0.707106769 : f32
    %180 = vector.broadcast %cst_94 : f32 to vector<16x128xf32>
    %181 = arith.mulf %177, %180 : vector<16x128xf32>
    %cst_95 = arith.constant 0.000000e+00 : f32
    %182 = vector.broadcast %cst_95 : f32 to vector<16x128xf32>
    %183 = arith.cmpf oge, %181, %182 : vector<16x128xf32>
    %cst_96 = arith.constant 1.000000e+00 : f32
    %cst_97 = arith.constant -1.000000e+00 : f32
    %184 = vector.broadcast %cst_96 : f32 to vector<16x128xf32>
    %185 = vector.broadcast %cst_97 : f32 to vector<16x128xf32>
    %186 = arith.select %183, %184, %185 : vector<16x128xi1>, vector<16x128xf32>
    %187 = math.absf %181 : vector<16x128xf32>
    %cst_98 = arith.constant 0.327591091 : f32
    %188 = vector.broadcast %cst_98 : f32 to vector<16x128xf32>
    %189 = arith.mulf %188, %187 : vector<16x128xf32>
    %cst_99 = arith.constant 1.000000e+00 : f32
    %190 = vector.broadcast %cst_99 : f32 to vector<16x128xf32>
    %191 = arith.addf %190, %189 : vector<16x128xf32>
    %cst_100 = arith.constant 1.000000e+00 : f32
    %192 = vector.broadcast %cst_100 : f32 to vector<16x128xf32>
    %193 = arith.divf %192, %191 : vector<16x128xf32>
    %cst_101 = arith.constant 1.06140542 : f32
    %194 = vector.broadcast %cst_101 : f32 to vector<16x128xf32>
    %195 = arith.mulf %194, %193 : vector<16x128xf32>
    %cst_102 = arith.constant -1.45315206 : f32
    %196 = vector.broadcast %cst_102 : f32 to vector<16x128xf32>
    %197 = arith.addf %195, %196 : vector<16x128xf32>
    %198 = arith.mulf %197, %193 : vector<16x128xf32>
    %cst_103 = arith.constant 1.42141378 : f32
    %199 = vector.broadcast %cst_103 : f32 to vector<16x128xf32>
    %200 = arith.addf %198, %199 : vector<16x128xf32>
    %201 = arith.mulf %200, %193 : vector<16x128xf32>
    %cst_104 = arith.constant -0.284496725 : f32
    %202 = vector.broadcast %cst_104 : f32 to vector<16x128xf32>
    %203 = arith.addf %201, %202 : vector<16x128xf32>
    %204 = arith.mulf %203, %193 : vector<16x128xf32>
    %cst_105 = arith.constant 0.254829586 : f32
    %205 = vector.broadcast %cst_105 : f32 to vector<16x128xf32>
    %206 = arith.addf %204, %205 : vector<16x128xf32>
    %207 = arith.mulf %206, %193 : vector<16x128xf32>
    %cst_106 = arith.constant 0.000000e+00 : f32
    %208 = vector.broadcast %cst_106 : f32 to vector<16x128xf32>
    %209 = arith.subf %208, %187 : vector<16x128xf32>
    %210 = arith.mulf %209, %187 : vector<16x128xf32>
    %211 = math.exp %210 : vector<16x128xf32>
    %212 = arith.mulf %207, %211 : vector<16x128xf32>
    %cst_107 = arith.constant 1.000000e+00 : f32
    %213 = vector.broadcast %cst_107 : f32 to vector<16x128xf32>
    %214 = arith.subf %213, %212 : vector<16x128xf32>
    %215 = arith.mulf %186, %214 : vector<16x128xf32>
    %cst_108 = arith.constant 1.000000e+00 : f32
    %216 = vector.broadcast %cst_108 : f32 to vector<16x128xf32>
    %217 = arith.addf %216, %215 : vector<16x128xf32>
    %218 = arith.mulf %179, %217 : vector<16x128xf32>
    %219 = vector.extract_strided_slice %176 {offsets = [0, 128], sizes = [16, 128], strides = [1, 1]} : vector<16x256xf32> to vector<16x128xf32>
    %220 = arith.mulf %218, %219 : vector<16x128xf32>
    %c0_109 = arith.constant 0 : index
    %c0_110 = arith.constant 0 : index
    %221 = vector.load %arg20[%c0_109, %c0_110] : memref<128x32xf32, #tpu.memory_space<vmem>>, vector<128x32xf32>
    %cst_111 = arith.constant dense<0.000000e+00> : vector<16x32xf32>
    %222 = tpu.matmul %220, %221, %cst_111 {dimension_numbers = #tpu.dot_dimension_numbers<[1], [0], [0], [1], [0, 0, 1, 1], [], []>} : vector<16x128xf32>, vector<128x32xf32>, vector<16x32xf32> -> vector<16x32xf32>
    %c0_112 = arith.constant 0 : index
    %c0_113 = arith.constant 0 : index
    %223 = vector.load %arg21[%c0_112, %c0_113] : memref<1x32xf32, #tpu.memory_space<vmem>>, vector<1x32xf32>
    %224 = vector.broadcast %223 : vector<1x32xf32> to vector<16x32xf32>
    %225 = arith.addf %222, %224 : vector<16x32xf32>
    %226 = arith.addf %156, %225 : vector<16x32xf32>
    %c0_114 = arith.constant 0 : index
    %c0_115 = arith.constant 0 : index
    %227 = vector.load %arg22[%c0_114, %c0_115] : memref<16x32xf32, #tpu.memory_space<vmem>>, vector<16x32xf32>
    tpu.vector_store %arg22[%c0_114, %c0_115], %226 {strides = array<i32>} : memref<16x32xf32, #tpu.memory_space<vmem>>, vector<16x32xf32>,
    return
  }
}

module attributes {stable_mosaic.version = 11 : i64} {
  func.func @kernel(%arg0: memref<16x32xf32, #tpu.memory_space<vmem>>, %arg1: memref<16x16xf32, #tpu.memory_space<vmem>>, %arg2: memref<1x32xf32, #tpu.memory_space<vmem>>, %arg3: memref<1x32xf32, #tpu.memory_space<vmem>>, %arg4: memref<64x16xf32, #tpu.memory_space<vmem>>, %arg5: memref<2x16xf32, #tpu.memory_space<vmem>>, %arg6: memref<64x16xf32, #tpu.memory_space<vmem>>, %arg7: memref<2x16xf32, #tpu.memory_space<vmem>>, %arg8: memref<64x16xf32, #tpu.memory_space<vmem>>, %arg9: memref<2x16xf32, #tpu.memory_space<vmem>>, %arg10: memref<32x32xf32, #tpu.memory_space<vmem>>, %arg11: memref<1x32xf32, #tpu.memory_space<vmem>>, %arg12: memref<1x32xf32, #tpu.memory_space<vmem>>, %arg13: memref<1x32xf32, #tpu.memory_space<vmem>>, %arg14: memref<32x128xf32, #tpu.memory_space<vmem>>, %arg15: memref<1x128xf32, #tpu.memory_space<vmem>>, %arg16: memref<128x32xf32, #tpu.memory_space<vmem>>, %arg17: memref<1x32xf32, #tpu.memory_space<vmem>>, %arg18: memref<16x32xf32, #tpu.memory_space<vmem>>) attributes {dimension_semantics = [], scalar_prefetch = 0 : i64, scratch_operands = 0 : i64, tpu.core_type = #tpu.core_type<tc>} {
    %c0 = arith.constant 0 : index
    %c0_0 = arith.constant 0 : index
    %0 = vector.load %arg0[%c0, %c0_0] : memref<16x32xf32, #tpu.memory_space<vmem>>, vector<16x32xf32>
    %c0_1 = arith.constant 0 : index
    %c0_2 = arith.constant 0 : index
    %1 = vector.load %arg2[%c0_1, %c0_2] : memref<1x32xf32, #tpu.memory_space<vmem>>, vector<1x32xf32>
    %c0_3 = arith.constant 0 : index
    %c0_4 = arith.constant 0 : index
    %2 = vector.load %arg3[%c0_3, %c0_4] : memref<1x32xf32, #tpu.memory_space<vmem>>, vector<1x32xf32>
    %cst = arith.constant dense<0.000000e+00> : vector<16xf32>
    %3 = vector.multi_reduction <add>, %0, %cst [1] : vector<16x32xf32> to vector<16xf32>
    %4 = vector.shape_cast %3 : vector<16xf32> to vector<16x1xf32>
    %cst_5 = arith.constant 3.200000e+01 : f32
    %5 = vector.broadcast %cst_5 : f32 to vector<16x1xf32>
    %6 = arith.divf %4, %5 : vector<16x1xf32>
    %7 = vector.broadcast %6 : vector<16x1xf32> to vector<16x32xf32>
    %8 = arith.subf %0, %7 : vector<16x32xf32>
    %9 = arith.mulf %8, %8 : vector<16x32xf32>
    %cst_6 = arith.constant dense<0.000000e+00> : vector<16xf32>
    %10 = vector.multi_reduction <add>, %9, %cst_6 [1] : vector<16x32xf32> to vector<16xf32>
    %11 = vector.shape_cast %10 : vector<16xf32> to vector<16x1xf32>
    %cst_7 = arith.constant 3.200000e+01 : f32
    %12 = vector.broadcast %cst_7 : f32 to vector<16x1xf32>
    %13 = arith.divf %11, %12 : vector<16x1xf32>
    %14 = vector.broadcast %6 : vector<16x1xf32> to vector<16x32xf32>
    %15 = arith.subf %0, %14 : vector<16x32xf32>
    %cst_8 = arith.constant 9.99999974E-6 : f32
    %16 = vector.broadcast %cst_8 : f32 to vector<16x1xf32>
    %17 = arith.addf %13, %16 : vector<16x1xf32>
    %18 = math.rsqrt %17 : vector<16x1xf32>
    %19 = vector.broadcast %18 : vector<16x1xf32> to vector<16x32xf32>
    %20 = arith.mulf %15, %19 : vector<16x32xf32>
    %21 = vector.broadcast %1 : vector<1x32xf32> to vector<16x32xf32>
    %22 = arith.mulf %20, %21 : vector<16x32xf32>
    %23 = vector.broadcast %2 : vector<1x32xf32> to vector<16x32xf32>
    %24 = arith.addf %22, %23 : vector<16x32xf32>
    %c0_9 = arith.constant 0 : index
    %c0_10 = arith.constant 0 : index
    %25 = vector.load %arg1[%c0_9, %c0_10] : memref<16x16xf32, #tpu.memory_space<vmem>>, vector<16x16xf32>
    %c0_11 = arith.constant 0 : index
    %c0_12 = arith.constant 0 : index
    %26 = vector.load %arg4[%c0_11, %c0_12] : memref<64x16xf32, #tpu.memory_space<vmem>>, vector<32x16xf32>
    %cst_13 = arith.constant dense<0.000000e+00> : vector<16x16xf32>
    %27 = tpu.matmul %24, %26, %cst_13 {dimension_numbers = #tpu.dot_dimension_numbers<[1], [0], [0], [1], [0, 0, 1, 1], [], []>} : vector<16x32xf32>, vector<32x16xf32>, vector<16x16xf32> -> vector<16x16xf32>
    %c0_14 = arith.constant 0 : index
    %c0_15 = arith.constant 0 : index
    %28 = vector.load %arg5[%c0_14, %c0_15] : memref<2x16xf32, #tpu.memory_space<vmem>>, vector<1x16xf32>
    %29 = vector.broadcast %28 : vector<1x16xf32> to vector<16x16xf32>
    %30 = arith.addf %27, %29 : vector<16x16xf32>
    %c0_16 = arith.constant 0 : index
    %c0_17 = arith.constant 0 : index
    %31 = vector.load %arg6[%c0_16, %c0_17] : memref<64x16xf32, #tpu.memory_space<vmem>>, vector<32x16xf32>
    %cst_18 = arith.constant dense<0.000000e+00> : vector<16x16xf32>
    %32 = tpu.matmul %24, %31, %cst_18 {dimension_numbers = #tpu.dot_dimension_numbers<[1], [0], [0], [1], [0, 0, 1, 1], [], []>} : vector<16x32xf32>, vector<32x16xf32>, vector<16x16xf32> -> vector<16x16xf32>
    %c0_19 = arith.constant 0 : index
    %c0_20 = arith.constant 0 : index
    %33 = vector.load %arg7[%c0_19, %c0_20] : memref<2x16xf32, #tpu.memory_space<vmem>>, vector<1x16xf32>
    %34 = vector.broadcast %33 : vector<1x16xf32> to vector<16x16xf32>
    %35 = arith.addf %32, %34 : vector<16x16xf32>
    %c0_21 = arith.constant 0 : index
    %c0_22 = arith.constant 0 : index
    %36 = vector.load %arg8[%c0_21, %c0_22] : memref<64x16xf32, #tpu.memory_space<vmem>>, vector<32x16xf32>
    %cst_23 = arith.constant dense<0.000000e+00> : vector<16x16xf32>
    %37 = tpu.matmul %24, %36, %cst_23 {dimension_numbers = #tpu.dot_dimension_numbers<[1], [0], [0], [1], [0, 0, 1, 1], [], []>} : vector<16x32xf32>, vector<32x16xf32>, vector<16x16xf32> -> vector<16x16xf32>
    %c0_24 = arith.constant 0 : index
    %c0_25 = arith.constant 0 : index
    %38 = vector.load %arg9[%c0_24, %c0_25] : memref<2x16xf32, #tpu.memory_space<vmem>>, vector<1x16xf32>
    %39 = vector.broadcast %38 : vector<1x16xf32> to vector<16x16xf32>
    %40 = arith.addf %37, %39 : vector<16x16xf32>
    %cst_26 = arith.constant dense<0.000000e+00> : vector<16x16xf32>
    %41 = tpu.matmul %30, %35, %cst_26 {dimension_numbers = #tpu.dot_dimension_numbers<[1], [1], [0], [0], [0, 0, 1, 0], [], []>} : vector<16x16xf32>, vector<16x16xf32>, vector<16x16xf32> -> vector<16x16xf32>
    %cst_27 = arith.constant 2.500000e-01 : f32
    %42 = vector.broadcast %cst_27 : f32 to vector<16x16xf32>
    %43 = arith.mulf %41, %42 : vector<16x16xf32>
    %44 = arith.addf %43, %25 : vector<16x16xf32>
    %cst_28 = arith.constant dense<0xFF800000> : vector<16xf32>
    %45 = vector.multi_reduction <maximumf>, %44, %cst_28 [1] : vector<16x16xf32> to vector<16xf32>
    %46 = vector.shape_cast %45 : vector<16xf32> to vector<16x1xf32>
    %47 = vector.broadcast %46 : vector<16x1xf32> to vector<16x16xf32>
    %48 = arith.subf %44, %47 : vector<16x16xf32>
    %49 = math.exp %48 : vector<16x16xf32>
    %cst_29 = arith.constant dense<0.000000e+00> : vector<16xf32>
    %50 = vector.multi_reduction <add>, %49, %cst_29 [1] : vector<16x16xf32> to vector<16xf32>
    %51 = vector.shape_cast %50 : vector<16xf32> to vector<16x1xf32>
    %52 = vector.broadcast %51 : vector<16x1xf32> to vector<16x16xf32>
    %53 = arith.divf %49, %52 : vector<16x16xf32>
    %cst_30 = arith.constant dense<0.000000e+00> : vector<16x16xf32>
    %54 = tpu.matmul %53, %40, %cst_30 {dimension_numbers = #tpu.dot_dimension_numbers<[1], [0], [0], [1], [0, 0, 1, 1], [], []>} : vector<16x16xf32>, vector<16x16xf32>, vector<16x16xf32> -> vector<16x16xf32>
    %c32 = arith.constant 32 : index
    %c0_31 = arith.constant 0 : index
    %55 = vector.load %arg4[%c32, %c0_31] : memref<64x16xf32, #tpu.memory_space<vmem>>, vector<32x16xf32>
    %cst_32 = arith.constant dense<0.000000e+00> : vector<16x16xf32>
    %56 = tpu.matmul %24, %55, %cst_32 {dimension_numbers = #tpu.dot_dimension_numbers<[1], [0], [0], [1], [0, 0, 1, 1], [], []>} : vector<16x32xf32>, vector<32x16xf32>, vector<16x16xf32> -> vector<16x16xf32>
    %c1 = arith.constant 1 : index
    %c0_33 = arith.constant 0 : index
    %57 = vector.load %arg5[%c1, %c0_33] : memref<2x16xf32, #tpu.memory_space<vmem>>, vector<1x16xf32>
    %58 = vector.broadcast %57 : vector<1x16xf32> to vector<16x16xf32>
    %59 = arith.addf %56, %58 : vector<16x16xf32>
    %c32_34 = arith.constant 32 : index
    %c0_35 = arith.constant 0 : index
    %60 = vector.load %arg6[%c32_34, %c0_35] : memref<64x16xf32, #tpu.memory_space<vmem>>, vector<32x16xf32>
    %cst_36 = arith.constant dense<0.000000e+00> : vector<16x16xf32>
    %61 = tpu.matmul %24, %60, %cst_36 {dimension_numbers = #tpu.dot_dimension_numbers<[1], [0], [0], [1], [0, 0, 1, 1], [], []>} : vector<16x32xf32>, vector<32x16xf32>, vector<16x16xf32> -> vector<16x16xf32>
    %c1_37 = arith.constant 1 : index
    %c0_38 = arith.constant 0 : index
    %62 = vector.load %arg7[%c1_37, %c0_38] : memref<2x16xf32, #tpu.memory_space<vmem>>, vector<1x16xf32>
    %63 = vector.broadcast %62 : vector<1x16xf32> to vector<16x16xf32>
    %64 = arith.addf %61, %63 : vector<16x16xf32>
    %c32_39 = arith.constant 32 : index
    %c0_40 = arith.constant 0 : index
    %65 = vector.load %arg8[%c32_39, %c0_40] : memref<64x16xf32, #tpu.memory_space<vmem>>, vector<32x16xf32>
    %cst_41 = arith.constant dense<0.000000e+00> : vector<16x16xf32>
    %66 = tpu.matmul %24, %65, %cst_41 {dimension_numbers = #tpu.dot_dimension_numbers<[1], [0], [0], [1], [0, 0, 1, 1], [], []>} : vector<16x32xf32>, vector<32x16xf32>, vector<16x16xf32> -> vector<16x16xf32>
    %c1_42 = arith.constant 1 : index
    %c0_43 = arith.constant 0 : index
    %67 = vector.load %arg9[%c1_42, %c0_43] : memref<2x16xf32, #tpu.memory_space<vmem>>, vector<1x16xf32>
    %68 = vector.broadcast %67 : vector<1x16xf32> to vector<16x16xf32>
    %69 = arith.addf %66, %68 : vector<16x16xf32>
    %cst_44 = arith.constant dense<0.000000e+00> : vector<16x16xf32>
    %70 = tpu.matmul %59, %64, %cst_44 {dimension_numbers = #tpu.dot_dimension_numbers<[1], [1], [0], [0], [0, 0, 1, 0], [], []>} : vector<16x16xf32>, vector<16x16xf32>, vector<16x16xf32> -> vector<16x16xf32>
    %cst_45 = arith.constant 2.500000e-01 : f32
    %71 = vector.broadcast %cst_45 : f32 to vector<16x16xf32>
    %72 = arith.mulf %70, %71 : vector<16x16xf32>
    %73 = arith.addf %72, %25 : vector<16x16xf32>
    %cst_46 = arith.constant dense<0xFF800000> : vector<16xf32>
    %74 = vector.multi_reduction <maximumf>, %73, %cst_46 [1] : vector<16x16xf32> to vector<16xf32>
    %75 = vector.shape_cast %74 : vector<16xf32> to vector<16x1xf32>
    %76 = vector.broadcast %75 : vector<16x1xf32> to vector<16x16xf32>
    %77 = arith.subf %73, %76 : vector<16x16xf32>
    %78 = math.exp %77 : vector<16x16xf32>
    %cst_47 = arith.constant dense<0.000000e+00> : vector<16xf32>
    %79 = vector.multi_reduction <add>, %78, %cst_47 [1] : vector<16x16xf32> to vector<16xf32>
    %80 = vector.shape_cast %79 : vector<16xf32> to vector<16x1xf32>
    %81 = vector.broadcast %80 : vector<16x1xf32> to vector<16x16xf32>
    %82 = arith.divf %78, %81 : vector<16x16xf32>
    %cst_48 = arith.constant dense<0.000000e+00> : vector<16x16xf32>
    %83 = tpu.matmul %82, %69, %cst_48 {dimension_numbers = #tpu.dot_dimension_numbers<[1], [0], [0], [1], [0, 0, 1, 1], [], []>} : vector<16x16xf32>, vector<16x16xf32>, vector<16x16xf32> -> vector<16x16xf32>
    %84 = tpu.concatenate %54, %83 in 1 : vector<16x16xf32>, vector<16x16xf32> -> vector<16x32xf32>
    %c0_49 = arith.constant 0 : index
    %c0_50 = arith.constant 0 : index
    %85 = vector.load %arg10[%c0_49, %c0_50] : memref<32x32xf32, #tpu.memory_space<vmem>>, vector<32x32xf32>
    %cst_51 = arith.constant dense<0.000000e+00> : vector<16x32xf32>
    %86 = tpu.matmul %84, %85, %cst_51 {dimension_numbers = #tpu.dot_dimension_numbers<[1], [0], [0], [1], [0, 0, 1, 1], [], []>} : vector<16x32xf32>, vector<32x32xf32>, vector<16x32xf32> -> vector<16x32xf32>
    %c0_52 = arith.constant 0 : index
    %c0_53 = arith.constant 0 : index
    %87 = vector.load %arg11[%c0_52, %c0_53] : memref<1x32xf32, #tpu.memory_space<vmem>>, vector<1x32xf32>
    %88 = vector.broadcast %87 : vector<1x32xf32> to vector<16x32xf32>
    %89 = arith.addf %86, %88 : vector<16x32xf32>
    %90 = arith.addf %0, %89 : vector<16x32xf32>
    %c0_54 = arith.constant 0 : index
    %c0_55 = arith.constant 0 : index
    %91 = vector.load %arg12[%c0_54, %c0_55] : memref<1x32xf32, #tpu.memory_space<vmem>>, vector<1x32xf32>
    %c0_56 = arith.constant 0 : index
    %c0_57 = arith.constant 0 : index
    %92 = vector.load %arg13[%c0_56, %c0_57] : memref<1x32xf32, #tpu.memory_space<vmem>>, vector<1x32xf32>
    %cst_58 = arith.constant dense<0.000000e+00> : vector<16xf32>
    %93 = vector.multi_reduction <add>, %90, %cst_58 [1] : vector<16x32xf32> to vector<16xf32>
    %94 = vector.shape_cast %93 : vector<16xf32> to vector<16x1xf32>
    %cst_59 = arith.constant 3.200000e+01 : f32
    %95 = vector.broadcast %cst_59 : f32 to vector<16x1xf32>
    %96 = arith.divf %94, %95 : vector<16x1xf32>
    %97 = vector.broadcast %96 : vector<16x1xf32> to vector<16x32xf32>
    %98 = arith.subf %90, %97 : vector<16x32xf32>
    %99 = arith.mulf %98, %98 : vector<16x32xf32>
    %cst_60 = arith.constant dense<0.000000e+00> : vector<16xf32>
    %100 = vector.multi_reduction <add>, %99, %cst_60 [1] : vector<16x32xf32> to vector<16xf32>
    %101 = vector.shape_cast %100 : vector<16xf32> to vector<16x1xf32>
    %cst_61 = arith.constant 3.200000e+01 : f32
    %102 = vector.broadcast %cst_61 : f32 to vector<16x1xf32>
    %103 = arith.divf %101, %102 : vector<16x1xf32>
    %104 = vector.broadcast %96 : vector<16x1xf32> to vector<16x32xf32>
    %105 = arith.subf %90, %104 : vector<16x32xf32>
    %cst_62 = arith.constant 9.99999974E-6 : f32
    %106 = vector.broadcast %cst_62 : f32 to vector<16x1xf32>
    %107 = arith.addf %103, %106 : vector<16x1xf32>
    %108 = math.rsqrt %107 : vector<16x1xf32>
    %109 = vector.broadcast %108 : vector<16x1xf32> to vector<16x32xf32>
    %110 = arith.mulf %105, %109 : vector<16x32xf32>
    %111 = vector.broadcast %91 : vector<1x32xf32> to vector<16x32xf32>
    %112 = arith.mulf %110, %111 : vector<16x32xf32>
    %113 = vector.broadcast %92 : vector<1x32xf32> to vector<16x32xf32>
    %114 = arith.addf %112, %113 : vector<16x32xf32>
    %c0_63 = arith.constant 0 : index
    %c0_64 = arith.constant 0 : index
    %115 = vector.load %arg14[%c0_63, %c0_64] : memref<32x128xf32, #tpu.memory_space<vmem>>, vector<32x128xf32>
    %cst_65 = arith.constant dense<0.000000e+00> : vector<16x128xf32>
    %116 = tpu.matmul %114, %115, %cst_65 {dimension_numbers = #tpu.dot_dimension_numbers<[1], [0], [0], [1], [0, 0, 1, 1], [], []>} : vector<16x32xf32>, vector<32x128xf32>, vector<16x128xf32> -> vector<16x128xf32>
    %c0_66 = arith.constant 0 : index
    %c0_67 = arith.constant 0 : index
    %117 = vector.load %arg15[%c0_66, %c0_67] : memref<1x128xf32, #tpu.memory_space<vmem>>, vector<1x128xf32>
    %118 = vector.broadcast %117 : vector<1x128xf32> to vector<16x128xf32>
    %119 = arith.addf %116, %118 : vector<16x128xf32>
    %cst_68 = arith.constant 5.000000e-01 : f32
    %120 = vector.broadcast %cst_68 : f32 to vector<16x128xf32>
    %121 = arith.mulf %120, %119 : vector<16x128xf32>
    %cst_69 = arith.constant 0.707106769 : f32
    %122 = vector.broadcast %cst_69 : f32 to vector<16x128xf32>
    %123 = arith.mulf %119, %122 : vector<16x128xf32>
    %cst_70 = arith.constant 0.000000e+00 : f32
    %124 = vector.broadcast %cst_70 : f32 to vector<16x128xf32>
    %125 = arith.cmpf oge, %123, %124 : vector<16x128xf32>
    %cst_71 = arith.constant 1.000000e+00 : f32
    %cst_72 = arith.constant -1.000000e+00 : f32
    %126 = vector.broadcast %cst_71 : f32 to vector<16x128xf32>
    %127 = vector.broadcast %cst_72 : f32 to vector<16x128xf32>
    %128 = arith.select %125, %126, %127 : vector<16x128xi1>, vector<16x128xf32>
    %129 = math.absf %123 : vector<16x128xf32>
    %cst_73 = arith.constant 0.327591091 : f32
    %130 = vector.broadcast %cst_73 : f32 to vector<16x128xf32>
    %131 = arith.mulf %130, %129 : vector<16x128xf32>
    %cst_74 = arith.constant 1.000000e+00 : f32
    %132 = vector.broadcast %cst_74 : f32 to vector<16x128xf32>
    %133 = arith.addf %132, %131 : vector<16x128xf32>
    %cst_75 = arith.constant 1.000000e+00 : f32
    %134 = vector.broadcast %cst_75 : f32 to vector<16x128xf32>
    %135 = arith.divf %134, %133 : vector<16x128xf32>
    %cst_76 = arith.constant 1.06140542 : f32
    %136 = vector.broadcast %cst_76 : f32 to vector<16x128xf32>
    %137 = arith.mulf %136, %135 : vector<16x128xf32>
    %cst_77 = arith.constant -1.45315206 : f32
    %138 = vector.broadcast %cst_77 : f32 to vector<16x128xf32>
    %139 = arith.addf %137, %138 : vector<16x128xf32>
    %140 = arith.mulf %139, %135 : vector<16x128xf32>
    %cst_78 = arith.constant 1.42141378 : f32
    %141 = vector.broadcast %cst_78 : f32 to vector<16x128xf32>
    %142 = arith.addf %140, %141 : vector<16x128xf32>
    %143 = arith.mulf %142, %135 : vector<16x128xf32>
    %cst_79 = arith.constant -0.284496725 : f32
    %144 = vector.broadcast %cst_79 : f32 to vector<16x128xf32>
    %145 = arith.addf %143, %144 : vector<16x128xf32>
    %146 = arith.mulf %145, %135 : vector<16x128xf32>
    %cst_80 = arith.constant 0.254829586 : f32
    %147 = vector.broadcast %cst_80 : f32 to vector<16x128xf32>
    %148 = arith.addf %146, %147 : vector<16x128xf32>
    %149 = arith.mulf %148, %135 : vector<16x128xf32>
    %cst_81 = arith.constant 0.000000e+00 : f32
    %150 = vector.broadcast %cst_81 : f32 to vector<16x128xf32>
    %151 = arith.subf %150, %129 : vector<16x128xf32>
    %152 = arith.mulf %151, %129 : vector<16x128xf32>
    %153 = math.exp %152 : vector<16x128xf32>
    %154 = arith.mulf %149, %153 : vector<16x128xf32>
    %cst_82 = arith.constant 1.000000e+00 : f32
    %155 = vector.broadcast %cst_82 : f32 to vector<16x128xf32>
    %156 = arith.subf %155, %154 : vector<16x128xf32>
    %157 = arith.mulf %128, %156 : vector<16x128xf32>
    %cst_83 = arith.constant 1.000000e+00 : f32
    %158 = vector.broadcast %cst_83 : f32 to vector<16x128xf32>
    %159 = arith.addf %158, %157 : vector<16x128xf32>
    %160 = arith.mulf %121, %159 : vector<16x128xf32>
    %c0_84 = arith.constant 0 : index
    %c0_85 = arith.constant 0 : index
    %161 = vector.load %arg16[%c0_84, %c0_85] : memref<128x32xf32, #tpu.memory_space<vmem>>, vector<128x32xf32>
    %cst_86 = arith.constant dense<0.000000e+00> : vector<16x32xf32>
    %162 = tpu.matmul %160, %161, %cst_86 {dimension_numbers = #tpu.dot_dimension_numbers<[1], [0], [0], [1], [0, 0, 1, 1], [], []>} : vector<16x128xf32>, vector<128x32xf32>, vector<16x32xf32> -> vector<16x32xf32>
    %c0_87 = arith.constant 0 : index
    %c0_88 = arith.constant 0 : index
    %163 = vector.load %arg17[%c0_87, %c0_88] : memref<1x32xf32, #tpu.memory_space<vmem>>, vector<1x32xf32>
    %164 = vector.broadcast %163 : vector<1x32xf32> to vector<16x32xf32>
    %165 = arith.addf %162, %164 : vector<16x32xf32>
    %166 = arith.addf %90, %165 : vector<16x32xf32>
    %c0_89 = arith.constant 0 : index
    %c0_90 = arith.constant 0 : index
    %167 = vector.load %arg18[%c0_89, %c0_90] : memref<16x32xf32, #tpu.memory_space<vmem>>, vector<16x32xf32>
    tpu.vector_store %arg18[%c0_89, %c0_90], %166 {strides = array<i32>} : memref<16x32xf32, #tpu.memory_space<vmem>>, vector<16x32xf32>,
    return
  }
}

module attributes {stable_mosaic.version = 11 : i64} {
  func.func @kernel(%arg0: memref<16x32xf32, #tpu.memory_space<vmem>>, %arg1: memref<16x16xf32, #tpu.memory_space<vmem>>, %arg2: memref<1x32xf32, #tpu.memory_space<vmem>>, %arg3: memref<1x32xf32, #tpu.memory_space<vmem>>, %arg4: memref<64x16xf32, #tpu.memory_space<vmem>>, %arg5: memref<2x16xf32, #tpu.memory_space<vmem>>, %arg6: memref<64x16xf32, #tpu.memory_space<vmem>>, %arg7: memref<2x16xf32, #tpu.memory_space<vmem>>, %arg8: memref<64x16xf32, #tpu.memory_space<vmem>>, %arg9: memref<2x16xf32, #tpu.memory_space<vmem>>, %arg10: memref<32x32xf32, #tpu.memory_space<vmem>>, %arg11: memref<1x32xf32, #tpu.memory_space<vmem>>, %arg12: memref<1x32xf32, #tpu.memory_space<vmem>>, %arg13: memref<1x32xf32, #tpu.memory_space<vmem>>, %arg14: memref<32x128xf32, #tpu.memory_space<vmem>>, %arg15: memref<1x128xf32, #tpu.memory_space<vmem>>, %arg16: memref<128x32xf32, #tpu.memory_space<vmem>>, %arg17: memref<1x32xf32, #tpu.memory_space<vmem>>, %arg18: memref<16x32xf32, #tpu.memory_space<vmem>>) attributes {dimension_semantics = [], scalar_prefetch = 0 : i64, scratch_operands = 0 : i64, tpu.core_type = #tpu.core_type<tc>} {
    %c0 = arith.constant 0 : index
    %c0_0 = arith.constant 0 : index
    %0 = vector.load %arg0[%c0, %c0_0] : memref<16x32xf32, #tpu.memory_space<vmem>>, vector<16x32xf32>
    %c0_1 = arith.constant 0 : index
    %c0_2 = arith.constant 0 : index
    %1 = vector.load %arg2[%c0_1, %c0_2] : memref<1x32xf32, #tpu.memory_space<vmem>>, vector<1x32xf32>
    %c0_3 = arith.constant 0 : index
    %c0_4 = arith.constant 0 : index
    %2 = vector.load %arg3[%c0_3, %c0_4] : memref<1x32xf32, #tpu.memory_space<vmem>>, vector<1x32xf32>
    %cst = arith.constant dense<0.000000e+00> : vector<16xf32>
    %3 = vector.multi_reduction <add>, %0, %cst [1] : vector<16x32xf32> to vector<16xf32>
    %4 = vector.shape_cast %3 : vector<16xf32> to vector<16x1xf32>
    %cst_5 = arith.constant 3.200000e+01 : f32
    %5 = vector.broadcast %cst_5 : f32 to vector<16x1xf32>
    %6 = arith.divf %4, %5 : vector<16x1xf32>
    %7 = vector.broadcast %6 : vector<16x1xf32> to vector<16x32xf32>
    %8 = arith.subf %0, %7 : vector<16x32xf32>
    %9 = arith.mulf %8, %8 : vector<16x32xf32>
    %cst_6 = arith.constant dense<0.000000e+00> : vector<16xf32>
    %10 = vector.multi_reduction <add>, %9, %cst_6 [1] : vector<16x32xf32> to vector<16xf32>
    %11 = vector.shape_cast %10 : vector<16xf32> to vector<16x1xf32>
    %cst_7 = arith.constant 3.200000e+01 : f32
    %12 = vector.broadcast %cst_7 : f32 to vector<16x1xf32>
    %13 = arith.divf %11, %12 : vector<16x1xf32>
    %14 = vector.broadcast %6 : vector<16x1xf32> to vector<16x32xf32>
    %15 = arith.subf %0, %14 : vector<16x32xf32>
    %cst_8 = arith.constant 9.99999974E-6 : f32
    %16 = vector.broadcast %cst_8 : f32 to vector<16x1xf32>
    %17 = arith.addf %13, %16 : vector<16x1xf32>
    %18 = math.rsqrt %17 : vector<16x1xf32>
    %19 = vector.broadcast %18 : vector<16x1xf32> to vector<16x32xf32>
    %20 = arith.mulf %15, %19 : vector<16x32xf32>
    %21 = vector.broadcast %1 : vector<1x32xf32> to vector<16x32xf32>
    %22 = arith.mulf %20, %21 : vector<16x32xf32>
    %23 = vector.broadcast %2 : vector<1x32xf32> to vector<16x32xf32>
    %24 = arith.addf %22, %23 : vector<16x32xf32>
    %c0_9 = arith.constant 0 : index
    %c0_10 = arith.constant 0 : index
    %25 = vector.load %arg1[%c0_9, %c0_10] : memref<16x16xf32, #tpu.memory_space<vmem>>, vector<16x16xf32>
    %c0_11 = arith.constant 0 : index
    %c0_12 = arith.constant 0 : index
    %26 = vector.load %arg4[%c0_11, %c0_12] : memref<64x16xf32, #tpu.memory_space<vmem>>, vector<32x16xf32>
    %cst_13 = arith.constant dense<0.000000e+00> : vector<16x16xf32>
    %27 = tpu.matmul %24, %26, %cst_13 {dimension_numbers = #tpu.dot_dimension_numbers<[1], [0], [0], [1], [0, 0, 1, 1], [], []>} : vector<16x32xf32>, vector<32x16xf32>, vector<16x16xf32> -> vector<16x16xf32>
    %c0_14 = arith.constant 0 : index
    %c0_15 = arith.constant 0 : index
    %28 = vector.load %arg5[%c0_14, %c0_15] : memref<2x16xf32, #tpu.memory_space<vmem>>, vector<1x16xf32>
    %29 = vector.broadcast %28 : vector<1x16xf32> to vector<16x16xf32>
    %30 = arith.addf %27, %29 : vector<16x16xf32>
    %c0_16 = arith.constant 0 : index
    %c0_17 = arith.constant 0 : index
    %31 = vector.load %arg6[%c0_16, %c0_17] : memref<64x16xf32, #tpu.memory_space<vmem>>, vector<32x16xf32>
    %cst_18 = arith.constant dense<0.000000e+00> : vector<16x16xf32>
    %32 = tpu.matmul %24, %31, %cst_18 {dimension_numbers = #tpu.dot_dimension_numbers<[1], [0], [0], [1], [0, 0, 1, 1], [], []>} : vector<16x32xf32>, vector<32x16xf32>, vector<16x16xf32> -> vector<16x16xf32>
    %c0_19 = arith.constant 0 : index
    %c0_20 = arith.constant 0 : index
    %33 = vector.load %arg7[%c0_19, %c0_20] : memref<2x16xf32, #tpu.memory_space<vmem>>, vector<1x16xf32>
    %34 = vector.broadcast %33 : vector<1x16xf32> to vector<16x16xf32>
    %35 = arith.addf %32, %34 : vector<16x16xf32>
    %c0_21 = arith.constant 0 : index
    %c0_22 = arith.constant 0 : index
    %36 = vector.load %arg8[%c0_21, %c0_22] : memref<64x16xf32, #tpu.memory_space<vmem>>, vector<32x16xf32>
    %cst_23 = arith.constant dense<0.000000e+00> : vector<16x16xf32>
    %37 = tpu.matmul %24, %36, %cst_23 {dimension_numbers = #tpu.dot_dimension_numbers<[1], [0], [0], [1], [0, 0, 1, 1], [], []>} : vector<16x32xf32>, vector<32x16xf32>, vector<16x16xf32> -> vector<16x16xf32>
    %c0_24 = arith.constant 0 : index
    %c0_25 = arith.constant 0 : index
    %38 = vector.load %arg9[%c0_24, %c0_25] : memref<2x16xf32, #tpu.memory_space<vmem>>, vector<1x16xf32>
    %39 = vector.broadcast %38 : vector<1x16xf32> to vector<16x16xf32>
    %40 = arith.addf %37, %39 : vector<16x16xf32>
    %cst_26 = arith.constant dense<0.000000e+00> : vector<16x16xf32>
    %41 = tpu.matmul %30, %35, %cst_26 {dimension_numbers = #tpu.dot_dimension_numbers<[1], [1], [0], [0], [0, 0, 1, 0], [], []>} : vector<16x16xf32>, vector<16x16xf32>, vector<16x16xf32> -> vector<16x16xf32>
    %cst_27 = arith.constant 2.500000e-01 : f32
    %42 = vector.broadcast %cst_27 : f32 to vector<16x16xf32>
    %43 = arith.mulf %41, %42 : vector<16x16xf32>
    %44 = arith.addf %43, %25 : vector<16x16xf32>
    %cst_28 = arith.constant dense<0xFF800000> : vector<16xf32>
    %45 = vector.multi_reduction <maximumf>, %44, %cst_28 [1] : vector<16x16xf32> to vector<16xf32>
    %46 = vector.shape_cast %45 : vector<16xf32> to vector<16x1xf32>
    %47 = vector.broadcast %46 : vector<16x1xf32> to vector<16x16xf32>
    %48 = arith.subf %44, %47 : vector<16x16xf32>
    %49 = math.exp %48 : vector<16x16xf32>
    %cst_29 = arith.constant dense<0.000000e+00> : vector<16xf32>
    %50 = vector.multi_reduction <add>, %49, %cst_29 [1] : vector<16x16xf32> to vector<16xf32>
    %51 = vector.shape_cast %50 : vector<16xf32> to vector<16x1xf32>
    %52 = vector.broadcast %51 : vector<16x1xf32> to vector<16x16xf32>
    %53 = arith.divf %49, %52 : vector<16x16xf32>
    %cst_30 = arith.constant dense<0.000000e+00> : vector<16x16xf32>
    %54 = tpu.matmul %53, %40, %cst_30 {dimension_numbers = #tpu.dot_dimension_numbers<[1], [0], [0], [1], [0, 0, 1, 1], [], []>} : vector<16x16xf32>, vector<16x16xf32>, vector<16x16xf32> -> vector<16x16xf32>
    %c32 = arith.constant 32 : index
    %c0_31 = arith.constant 0 : index
    %55 = vector.load %arg4[%c32, %c0_31] : memref<64x16xf32, #tpu.memory_space<vmem>>, vector<32x16xf32>
    %cst_32 = arith.constant dense<0.000000e+00> : vector<16x16xf32>
    %56 = tpu.matmul %24, %55, %cst_32 {dimension_numbers = #tpu.dot_dimension_numbers<[1], [0], [0], [1], [0, 0, 1, 1], [], []>} : vector<16x32xf32>, vector<32x16xf32>, vector<16x16xf32> -> vector<16x16xf32>
    %c1 = arith.constant 1 : index
    %c0_33 = arith.constant 0 : index
    %57 = vector.load %arg5[%c1, %c0_33] : memref<2x16xf32, #tpu.memory_space<vmem>>, vector<1x16xf32>
    %58 = vector.broadcast %57 : vector<1x16xf32> to vector<16x16xf32>
    %59 = arith.addf %56, %58 : vector<16x16xf32>
    %c32_34 = arith.constant 32 : index
    %c0_35 = arith.constant 0 : index
    %60 = vector.load %arg6[%c32_34, %c0_35] : memref<64x16xf32, #tpu.memory_space<vmem>>, vector<32x16xf32>
    %cst_36 = arith.constant dense<0.000000e+00> : vector<16x16xf32>
    %61 = tpu.matmul %24, %60, %cst_36 {dimension_numbers = #tpu.dot_dimension_numbers<[1], [0], [0], [1], [0, 0, 1, 1], [], []>} : vector<16x32xf32>, vector<32x16xf32>, vector<16x16xf32> -> vector<16x16xf32>
    %c1_37 = arith.constant 1 : index
    %c0_38 = arith.constant 0 : index
    %62 = vector.load %arg7[%c1_37, %c0_38] : memref<2x16xf32, #tpu.memory_space<vmem>>, vector<1x16xf32>
    %63 = vector.broadcast %62 : vector<1x16xf32> to vector<16x16xf32>
    %64 = arith.addf %61, %63 : vector<16x16xf32>
    %c32_39 = arith.constant 32 : index
    %c0_40 = arith.constant 0 : index
    %65 = vector.load %arg8[%c32_39, %c0_40] : memref<64x16xf32, #tpu.memory_space<vmem>>, vector<32x16xf32>
    %cst_41 = arith.constant dense<0.000000e+00> : vector<16x16xf32>
    %66 = tpu.matmul %24, %65, %cst_41 {dimension_numbers = #tpu.dot_dimension_numbers<[1], [0], [0], [1], [0, 0, 1, 1], [], []>} : vector<16x32xf32>, vector<32x16xf32>, vector<16x16xf32> -> vector<16x16xf32>
    %c1_42 = arith.constant 1 : index
    %c0_43 = arith.constant 0 : index
    %67 = vector.load %arg9[%c1_42, %c0_43] : memref<2x16xf32, #tpu.memory_space<vmem>>, vector<1x16xf32>
    %68 = vector.broadcast %67 : vector<1x16xf32> to vector<16x16xf32>
    %69 = arith.addf %66, %68 : vector<16x16xf32>
    %cst_44 = arith.constant dense<0.000000e+00> : vector<16x16xf32>
    %70 = tpu.matmul %59, %64, %cst_44 {dimension_numbers = #tpu.dot_dimension_numbers<[1], [1], [0], [0], [0, 0, 1, 0], [], []>} : vector<16x16xf32>, vector<16x16xf32>, vector<16x16xf32> -> vector<16x16xf32>
    %cst_45 = arith.constant 2.500000e-01 : f32
    %71 = vector.broadcast %cst_45 : f32 to vector<16x16xf32>
    %72 = arith.mulf %70, %71 : vector<16x16xf32>
    %73 = arith.addf %72, %25 : vector<16x16xf32>
    %cst_46 = arith.constant dense<0xFF800000> : vector<16xf32>
    %74 = vector.multi_reduction <maximumf>, %73, %cst_46 [1] : vector<16x16xf32> to vector<16xf32>
    %75 = vector.shape_cast %74 : vector<16xf32> to vector<16x1xf32>
    %76 = vector.broadcast %75 : vector<16x1xf32> to vector<16x16xf32>
    %77 = arith.subf %73, %76 : vector<16x16xf32>
    %78 = math.exp %77 : vector<16x16xf32>
    %cst_47 = arith.constant dense<0.000000e+00> : vector<16xf32>
    %79 = vector.multi_reduction <add>, %78, %cst_47 [1] : vector<16x16xf32> to vector<16xf32>
    %80 = vector.shape_cast %79 : vector<16xf32> to vector<16x1xf32>
    %81 = vector.broadcast %80 : vector<16x1xf32> to vector<16x16xf32>
    %82 = arith.divf %78, %81 : vector<16x16xf32>
    %cst_48 = arith.constant dense<0.000000e+00> : vector<16x16xf32>
    %83 = tpu.matmul %82, %69, %cst_48 {dimension_numbers = #tpu.dot_dimension_numbers<[1], [0], [0], [1], [0, 0, 1, 1], [], []>} : vector<16x16xf32>, vector<16x16xf32>, vector<16x16xf32> -> vector<16x16xf32>
    %84 = tpu.concatenate %54, %83 in 1 : vector<16x16xf32>, vector<16x16xf32> -> vector<16x32xf32>
    %c0_49 = arith.constant 0 : index
    %c0_50 = arith.constant 0 : index
    %85 = vector.load %arg10[%c0_49, %c0_50] : memref<32x32xf32, #tpu.memory_space<vmem>>, vector<32x32xf32>
    %cst_51 = arith.constant dense<0.000000e+00> : vector<16x32xf32>
    %86 = tpu.matmul %84, %85, %cst_51 {dimension_numbers = #tpu.dot_dimension_numbers<[1], [0], [0], [1], [0, 0, 1, 1], [], []>} : vector<16x32xf32>, vector<32x32xf32>, vector<16x32xf32> -> vector<16x32xf32>
    %c0_52 = arith.constant 0 : index
    %c0_53 = arith.constant 0 : index
    %87 = vector.load %arg11[%c0_52, %c0_53] : memref<1x32xf32, #tpu.memory_space<vmem>>, vector<1x32xf32>
    %88 = vector.broadcast %87 : vector<1x32xf32> to vector<16x32xf32>
    %89 = arith.addf %86, %88 : vector<16x32xf32>
    %90 = arith.addf %0, %89 : vector<16x32xf32>
    %c0_54 = arith.constant 0 : index
    %c0_55 = arith.constant 0 : index
    %91 = vector.load %arg12[%c0_54, %c0_55] : memref<1x32xf32, #tpu.memory_space<vmem>>, vector<1x32xf32>
    %c0_56 = arith.constant 0 : index
    %c0_57 = arith.constant 0 : index
    %92 = vector.load %arg13[%c0_56, %c0_57] : memref<1x32xf32, #tpu.memory_space<vmem>>, vector<1x32xf32>
    %cst_58 = arith.constant dense<0.000000e+00> : vector<16xf32>
    %93 = vector.multi_reduction <add>, %90, %cst_58 [1] : vector<16x32xf32> to vector<16xf32>
    %94 = vector.shape_cast %93 : vector<16xf32> to vector<16x1xf32>
    %cst_59 = arith.constant 3.200000e+01 : f32
    %95 = vector.broadcast %cst_59 : f32 to vector<16x1xf32>
    %96 = arith.divf %94, %95 : vector<16x1xf32>
    %97 = vector.broadcast %96 : vector<16x1xf32> to vector<16x32xf32>
    %98 = arith.subf %90, %97 : vector<16x32xf32>
    %99 = arith.mulf %98, %98 : vector<16x32xf32>
    %cst_60 = arith.constant dense<0.000000e+00> : vector<16xf32>
    %100 = vector.multi_reduction <add>, %99, %cst_60 [1] : vector<16x32xf32> to vector<16xf32>
    %101 = vector.shape_cast %100 : vector<16xf32> to vector<16x1xf32>
    %cst_61 = arith.constant 3.200000e+01 : f32
    %102 = vector.broadcast %cst_61 : f32 to vector<16x1xf32>
    %103 = arith.divf %101, %102 : vector<16x1xf32>
    %104 = vector.broadcast %96 : vector<16x1xf32> to vector<16x32xf32>
    %105 = arith.subf %90, %104 : vector<16x32xf32>
    %cst_62 = arith.constant 9.99999974E-6 : f32
    %106 = vector.broadcast %cst_62 : f32 to vector<16x1xf32>
    %107 = arith.addf %103, %106 : vector<16x1xf32>
    %108 = math.rsqrt %107 : vector<16x1xf32>
    %109 = vector.broadcast %108 : vector<16x1xf32> to vector<16x32xf32>
    %110 = arith.mulf %105, %109 : vector<16x32xf32>
    %111 = vector.broadcast %91 : vector<1x32xf32> to vector<16x32xf32>
    %112 = arith.mulf %110, %111 : vector<16x32xf32>
    %113 = vector.broadcast %92 : vector<1x32xf32> to vector<16x32xf32>
    %114 = arith.addf %112, %113 : vector<16x32xf32>
    %c0_63 = arith.constant 0 : index
    %c0_64 = arith.constant 0 : index
    %115 = vector.load %arg14[%c0_63, %c0_64] : memref<32x128xf32, #tpu.memory_space<vmem>>, vector<32x128xf32>
    %cst_65 = arith.constant dense<0.000000e+00> : vector<16x128xf32>
    %116 = tpu.matmul %114, %115, %cst_65 {dimension_numbers = #tpu.dot_dimension_numbers<[1], [0], [0], [1], [0, 0, 1, 1], [], []>} : vector<16x32xf32>, vector<32x128xf32>, vector<16x128xf32> -> vector<16x128xf32>
    %c0_66 = arith.constant 0 : index
    %c0_67 = arith.constant 0 : index
    %117 = vector.load %arg15[%c0_66, %c0_67] : memref<1x128xf32, #tpu.memory_space<vmem>>, vector<1x128xf32>
    %118 = vector.broadcast %117 : vector<1x128xf32> to vector<16x128xf32>
    %119 = arith.addf %116, %118 : vector<16x128xf32>
    %cst_68 = arith.constant 5.000000e-01 : f32
    %120 = vector.broadcast %cst_68 : f32 to vector<16x128xf32>
    %121 = arith.mulf %120, %119 : vector<16x128xf32>
    %cst_69 = arith.constant 0.707106769 : f32
    %122 = vector.broadcast %cst_69 : f32 to vector<16x128xf32>
    %123 = arith.mulf %119, %122 : vector<16x128xf32>
    %cst_70 = arith.constant 0.000000e+00 : f32
    %124 = vector.broadcast %cst_70 : f32 to vector<16x128xf32>
    %125 = arith.cmpf oge, %123, %124 : vector<16x128xf32>
    %cst_71 = arith.constant 1.000000e+00 : f32
    %cst_72 = arith.constant -1.000000e+00 : f32
    %126 = vector.broadcast %cst_71 : f32 to vector<16x128xf32>
    %127 = vector.broadcast %cst_72 : f32 to vector<16x128xf32>
    %128 = arith.select %125, %126, %127 : vector<16x128xi1>, vector<16x128xf32>
    %129 = math.absf %123 : vector<16x128xf32>
    %cst_73 = arith.constant 0.327591091 : f32
    %130 = vector.broadcast %cst_73 : f32 to vector<16x128xf32>
    %131 = arith.mulf %130, %129 : vector<16x128xf32>
    %cst_74 = arith.constant 1.000000e+00 : f32
    %132 = vector.broadcast %cst_74 : f32 to vector<16x128xf32>
    %133 = arith.addf %132, %131 : vector<16x128xf32>
    %cst_75 = arith.constant 1.000000e+00 : f32
    %134 = vector.broadcast %cst_75 : f32 to vector<16x128xf32>
    %135 = arith.divf %134, %133 : vector<16x128xf32>
    %cst_76 = arith.constant 1.06140542 : f32
    %136 = vector.broadcast %cst_76 : f32 to vector<16x128xf32>
    %137 = arith.mulf %136, %135 : vector<16x128xf32>
    %cst_77 = arith.constant -1.45315206 : f32
    %138 = vector.broadcast %cst_77 : f32 to vector<16x128xf32>
    %139 = arith.addf %137, %138 : vector<16x128xf32>
    %140 = arith.mulf %139, %135 : vector<16x128xf32>
    %cst_78 = arith.constant 1.42141378 : f32
    %141 = vector.broadcast %cst_78 : f32 to vector<16x128xf32>
    %142 = arith.addf %140, %141 : vector<16x128xf32>
    %143 = arith.mulf %142, %135 : vector<16x128xf32>
    %cst_79 = arith.constant -0.284496725 : f32
    %144 = vector.broadcast %cst_79 : f32 to vector<16x128xf32>
    %145 = arith.addf %143, %144 : vector<16x128xf32>
    %146 = arith.mulf %145, %135 : vector<16x128xf32>
    %cst_80 = arith.constant 0.254829586 : f32
    %147 = vector.broadcast %cst_80 : f32 to vector<16x128xf32>
    %148 = arith.addf %146, %147 : vector<16x128xf32>
    %149 = arith.mulf %148, %135 : vector<16x128xf32>
    %cst_81 = arith.constant 0.000000e+00 : f32
    %150 = vector.broadcast %cst_81 : f32 to vector<16x128xf32>
    %151 = arith.subf %150, %129 : vector<16x128xf32>
    %152 = arith.mulf %151, %129 : vector<16x128xf32>
    %153 = math.exp %152 : vector<16x128xf32>
    %154 = arith.mulf %149, %153 : vector<16x128xf32>
    %cst_82 = arith.constant 1.000000e+00 : f32
    %155 = vector.broadcast %cst_82 : f32 to vector<16x128xf32>
    %156 = arith.subf %155, %154 : vector<16x128xf32>
    %157 = arith.mulf %128, %156 : vector<16x128xf32>
    %cst_83 = arith.constant 1.000000e+00 : f32
    %158 = vector.broadcast %cst_83 : f32 to vector<16x128xf32>
    %159 = arith.addf %158, %157 : vector<16x128xf32>
    %160 = arith.mulf %121, %159 : vector<16x128xf32>
    %c0_84 = arith.constant 0 : index
    %c0_85 = arith.constant 0 : index
    %161 = vector.load %arg16[%c0_84, %c0_85] : memref<128x32xf32, #tpu.memory_space<vmem>>, vector<128x32xf32>
    %cst_86 = arith.constant dense<0.000000e+00> : vector<16x32xf32>
    %162 = tpu.matmul %160, %161, %cst_86 {dimension_numbers = #tpu.dot_dimension_numbers<[1], [0], [0], [1], [0, 0, 1, 1], [], []>} : vector<16x128xf32>, vector<128x32xf32>, vector<16x32xf32> -> vector<16x32xf32>
    %c0_87 = arith.constant 0 : index
    %c0_88 = arith.constant 0 : index
    %163 = vector.load %arg17[%c0_87, %c0_88] : memref<1x32xf32, #tpu.memory_space<vmem>>, vector<1x32xf32>
    %164 = vector.broadcast %163 : vector<1x32xf32> to vector<16x32xf32>
    %165 = arith.addf %162, %164 : vector<16x32xf32>
    %166 = arith.addf %90, %165 : vector<16x32xf32>
    %c0_89 = arith.constant 0 : index
    %c0_90 = arith.constant 0 : index
    %167 = vector.load %arg18[%c0_89, %c0_90] : memref<16x32xf32, #tpu.memory_space<vmem>>, vector<16x32xf32>
    tpu.vector_store %arg18[%c0_89, %c0_90], %166 {strides = array<i32>} : memref<16x32xf32, #tpu.memory_space<vmem>>, vector<16x32xf32>,
    return
  }
}

module attributes {stable_mosaic.version = 11 : i64} {
  func.func @kernel(%arg0: memref<8x32xf32, #tpu.memory_space<vmem>>, %arg1: memref<1x32xf32, #tpu.memory_space<vmem>>, %arg2: memref<1x32xf32, #tpu.memory_space<vmem>>, %arg3: memref<32x256xf32, #tpu.memory_space<vmem>>, %arg4: memref<1x256xf32, #tpu.memory_space<vmem>>, %arg5: memref<1x256xf32, #tpu.memory_space<vmem>>, %arg6: memref<1x256xf32, #tpu.memory_space<vmem>>, %arg7: memref<256x256xf32, #tpu.memory_space<vmem>>, %arg8: memref<1x256xf32, #tpu.memory_space<vmem>>, %arg9: memref<1x256xf32, #tpu.memory_space<vmem>>, %arg10: memref<1x256xf32, #tpu.memory_space<vmem>>, %arg11: memref<256x512xf32, #tpu.memory_space<vmem>>, %arg12: memref<1x512xf32, #tpu.memory_space<vmem>>, %arg13: memref<32x256xf32, #tpu.memory_space<vmem>>, %arg14: memref<1x256xf32, #tpu.memory_space<vmem>>, %arg15: memref<1x256xf32, #tpu.memory_space<vmem>>, %arg16: memref<1x256xf32, #tpu.memory_space<vmem>>, %arg17: memref<256x256xf32, #tpu.memory_space<vmem>>, %arg18: memref<1x256xf32, #tpu.memory_space<vmem>>, %arg19: memref<1x256xf32, #tpu.memory_space<vmem>>, %arg20: memref<1x256xf32, #tpu.memory_space<vmem>>, %arg21: memref<256x1xf32, #tpu.memory_space<vmem>>, %arg22: memref<1x1xf32, #tpu.memory_space<vmem>>, %arg23: memref<8x2xf32, #tpu.memory_space<vmem>>, %arg24: memref<8x512xf32, #tpu.memory_space<vmem>>, %arg25: memref<8x1xf32, #tpu.memory_space<vmem>>) attributes {dimension_semantics = [], scalar_prefetch = 0 : i64, scratch_operands = 0 : i64, tpu.core_type = #tpu.core_type<tc>} {
    %c0 = arith.constant 0 : index
    %c0_0 = arith.constant 0 : index
    %0 = vector.load %arg0[%c0, %c0_0] : memref<8x32xf32, #tpu.memory_space<vmem>>, vector<8x32xf32>
    %c0_1 = arith.constant 0 : index
    %c0_2 = arith.constant 0 : index
    %1 = vector.load %arg1[%c0_1, %c0_2] : memref<1x32xf32, #tpu.memory_space<vmem>>, vector<1x32xf32>
    %c0_3 = arith.constant 0 : index
    %c0_4 = arith.constant 0 : index
    %2 = vector.load %arg2[%c0_3, %c0_4] : memref<1x32xf32, #tpu.memory_space<vmem>>, vector<1x32xf32>
    %cst = arith.constant dense<0.000000e+00> : vector<8xf32>
    %3 = vector.multi_reduction <add>, %0, %cst [1] : vector<8x32xf32> to vector<8xf32>
    %4 = vector.shape_cast %3 : vector<8xf32> to vector<8x1xf32>
    %cst_5 = arith.constant 3.200000e+01 : f32
    %5 = vector.broadcast %cst_5 : f32 to vector<8x1xf32>
    %6 = arith.divf %4, %5 : vector<8x1xf32>
    %7 = vector.broadcast %6 : vector<8x1xf32> to vector<8x32xf32>
    %8 = arith.subf %0, %7 : vector<8x32xf32>
    %9 = arith.mulf %8, %8 : vector<8x32xf32>
    %cst_6 = arith.constant dense<0.000000e+00> : vector<8xf32>
    %10 = vector.multi_reduction <add>, %9, %cst_6 [1] : vector<8x32xf32> to vector<8xf32>
    %11 = vector.shape_cast %10 : vector<8xf32> to vector<8x1xf32>
    %cst_7 = arith.constant 3.200000e+01 : f32
    %12 = vector.broadcast %cst_7 : f32 to vector<8x1xf32>
    %13 = arith.divf %11, %12 : vector<8x1xf32>
    %14 = vector.broadcast %6 : vector<8x1xf32> to vector<8x32xf32>
    %15 = arith.subf %0, %14 : vector<8x32xf32>
    %cst_8 = arith.constant 9.99999974E-6 : f32
    %16 = vector.broadcast %cst_8 : f32 to vector<8x1xf32>
    %17 = arith.addf %13, %16 : vector<8x1xf32>
    %18 = math.rsqrt %17 : vector<8x1xf32>
    %19 = vector.broadcast %18 : vector<8x1xf32> to vector<8x32xf32>
    %20 = arith.mulf %15, %19 : vector<8x32xf32>
    %21 = vector.broadcast %1 : vector<1x32xf32> to vector<8x32xf32>
    %22 = arith.mulf %20, %21 : vector<8x32xf32>
    %23 = vector.broadcast %2 : vector<1x32xf32> to vector<8x32xf32>
    %24 = arith.addf %22, %23 : vector<8x32xf32>
    %c0_9 = arith.constant 0 : index
    %c0_10 = arith.constant 0 : index
    %25 = vector.load %arg3[%c0_9, %c0_10] : memref<32x256xf32, #tpu.memory_space<vmem>>, vector<32x256xf32>
    %c0_11 = arith.constant 0 : index
    %c0_12 = arith.constant 0 : index
    %26 = vector.load %arg4[%c0_11, %c0_12] : memref<1x256xf32, #tpu.memory_space<vmem>>, vector<1x256xf32>
    %c0_13 = arith.constant 0 : index
    %c0_14 = arith.constant 0 : index
    %27 = vector.load %arg5[%c0_13, %c0_14] : memref<1x256xf32, #tpu.memory_space<vmem>>, vector<1x256xf32>
    %c0_15 = arith.constant 0 : index
    %c0_16 = arith.constant 0 : index
    %28 = vector.load %arg6[%c0_15, %c0_16] : memref<1x256xf32, #tpu.memory_space<vmem>>, vector<1x256xf32>
    %c0_17 = arith.constant 0 : index
    %c0_18 = arith.constant 0 : index
    %29 = vector.load %arg7[%c0_17, %c0_18] : memref<256x256xf32, #tpu.memory_space<vmem>>, vector<256x256xf32>
    %c0_19 = arith.constant 0 : index
    %c0_20 = arith.constant 0 : index
    %30 = vector.load %arg8[%c0_19, %c0_20] : memref<1x256xf32, #tpu.memory_space<vmem>>, vector<1x256xf32>
    %c0_21 = arith.constant 0 : index
    %c0_22 = arith.constant 0 : index
    %31 = vector.load %arg9[%c0_21, %c0_22] : memref<1x256xf32, #tpu.memory_space<vmem>>, vector<1x256xf32>
    %c0_23 = arith.constant 0 : index
    %c0_24 = arith.constant 0 : index
    %32 = vector.load %arg10[%c0_23, %c0_24] : memref<1x256xf32, #tpu.memory_space<vmem>>, vector<1x256xf32>
    %c0_25 = arith.constant 0 : index
    %c0_26 = arith.constant 0 : index
    %33 = vector.load %arg11[%c0_25, %c0_26] : memref<256x512xf32, #tpu.memory_space<vmem>>, vector<256x512xf32>
    %c0_27 = arith.constant 0 : index
    %c0_28 = arith.constant 0 : index
    %34 = vector.load %arg12[%c0_27, %c0_28] : memref<1x512xf32, #tpu.memory_space<vmem>>, vector<1x512xf32>
    %cst_29 = arith.constant dense<0.000000e+00> : vector<8x256xf32>
    %35 = tpu.matmul %24, %25, %cst_29 {dimension_numbers = #tpu.dot_dimension_numbers<[1], [0], [0], [1], [0, 0, 1, 1], [], []>} : vector<8x32xf32>, vector<32x256xf32>, vector<8x256xf32> -> vector<8x256xf32>
    %36 = vector.broadcast %26 : vector<1x256xf32> to vector<8x256xf32>
    %37 = arith.addf %35, %36 : vector<8x256xf32>
    %cst_30 = arith.constant dense<0.000000e+00> : vector<8xf32>
    %38 = vector.multi_reduction <add>, %37, %cst_30 [1] : vector<8x256xf32> to vector<8xf32>
    %39 = vector.shape_cast %38 : vector<8xf32> to vector<8x1xf32>
    %cst_31 = arith.constant 2.560000e+02 : f32
    %40 = vector.broadcast %cst_31 : f32 to vector<8x1xf32>
    %41 = arith.divf %39, %40 : vector<8x1xf32>
    %42 = vector.broadcast %41 : vector<8x1xf32> to vector<8x256xf32>
    %43 = arith.subf %37, %42 : vector<8x256xf32>
    %44 = arith.mulf %43, %43 : vector<8x256xf32>
    %cst_32 = arith.constant dense<0.000000e+00> : vector<8xf32>
    %45 = vector.multi_reduction <add>, %44, %cst_32 [1] : vector<8x256xf32> to vector<8xf32>
    %46 = vector.shape_cast %45 : vector<8xf32> to vector<8x1xf32>
    %cst_33 = arith.constant 2.560000e+02 : f32
    %47 = vector.broadcast %cst_33 : f32 to vector<8x1xf32>
    %48 = arith.divf %46, %47 : vector<8x1xf32>
    %49 = vector.broadcast %41 : vector<8x1xf32> to vector<8x256xf32>
    %50 = arith.subf %37, %49 : vector<8x256xf32>
    %cst_34 = arith.constant 9.99999974E-6 : f32
    %51 = vector.broadcast %cst_34 : f32 to vector<8x1xf32>
    %52 = arith.addf %48, %51 : vector<8x1xf32>
    %53 = math.rsqrt %52 : vector<8x1xf32>
    %54 = vector.broadcast %53 : vector<8x1xf32> to vector<8x256xf32>
    %55 = arith.mulf %50, %54 : vector<8x256xf32>
    %56 = vector.broadcast %27 : vector<1x256xf32> to vector<8x256xf32>
    %57 = arith.mulf %55, %56 : vector<8x256xf32>
    %58 = vector.broadcast %28 : vector<1x256xf32> to vector<8x256xf32>
    %59 = arith.addf %57, %58 : vector<8x256xf32>
    %cst_35 = arith.constant 5.000000e-01 : f32
    %60 = vector.broadcast %cst_35 : f32 to vector<8x256xf32>
    %61 = arith.mulf %60, %59 : vector<8x256xf32>
    %cst_36 = arith.constant 0.707106769 : f32
    %62 = vector.broadcast %cst_36 : f32 to vector<8x256xf32>
    %63 = arith.mulf %59, %62 : vector<8x256xf32>
    %cst_37 = arith.constant 0.000000e+00 : f32
    %64 = vector.broadcast %cst_37 : f32 to vector<8x256xf32>
    %65 = arith.cmpf oge, %63, %64 : vector<8x256xf32>
    %cst_38 = arith.constant 1.000000e+00 : f32
    %cst_39 = arith.constant -1.000000e+00 : f32
    %66 = vector.broadcast %cst_38 : f32 to vector<8x256xf32>
    %67 = vector.broadcast %cst_39 : f32 to vector<8x256xf32>
    %68 = arith.select %65, %66, %67 : vector<8x256xi1>, vector<8x256xf32>
    %69 = math.absf %63 : vector<8x256xf32>
    %cst_40 = arith.constant 0.327591091 : f32
    %70 = vector.broadcast %cst_40 : f32 to vector<8x256xf32>
    %71 = arith.mulf %70, %69 : vector<8x256xf32>
    %cst_41 = arith.constant 1.000000e+00 : f32
    %72 = vector.broadcast %cst_41 : f32 to vector<8x256xf32>
    %73 = arith.addf %72, %71 : vector<8x256xf32>
    %cst_42 = arith.constant 1.000000e+00 : f32
    %74 = vector.broadcast %cst_42 : f32 to vector<8x256xf32>
    %75 = arith.divf %74, %73 : vector<8x256xf32>
    %cst_43 = arith.constant 1.06140542 : f32
    %76 = vector.broadcast %cst_43 : f32 to vector<8x256xf32>
    %77 = arith.mulf %76, %75 : vector<8x256xf32>
    %cst_44 = arith.constant -1.45315206 : f32
    %78 = vector.broadcast %cst_44 : f32 to vector<8x256xf32>
    %79 = arith.addf %77, %78 : vector<8x256xf32>
    %80 = arith.mulf %79, %75 : vector<8x256xf32>
    %cst_45 = arith.constant 1.42141378 : f32
    %81 = vector.broadcast %cst_45 : f32 to vector<8x256xf32>
    %82 = arith.addf %80, %81 : vector<8x256xf32>
    %83 = arith.mulf %82, %75 : vector<8x256xf32>
    %cst_46 = arith.constant -0.284496725 : f32
    %84 = vector.broadcast %cst_46 : f32 to vector<8x256xf32>
    %85 = arith.addf %83, %84 : vector<8x256xf32>
    %86 = arith.mulf %85, %75 : vector<8x256xf32>
    %cst_47 = arith.constant 0.254829586 : f32
    %87 = vector.broadcast %cst_47 : f32 to vector<8x256xf32>
    %88 = arith.addf %86, %87 : vector<8x256xf32>
    %89 = arith.mulf %88, %75 : vector<8x256xf32>
    %cst_48 = arith.constant 0.000000e+00 : f32
    %90 = vector.broadcast %cst_48 : f32 to vector<8x256xf32>
    %91 = arith.subf %90, %69 : vector<8x256xf32>
    %92 = arith.mulf %91, %69 : vector<8x256xf32>
    %93 = math.exp %92 : vector<8x256xf32>
    %94 = arith.mulf %89, %93 : vector<8x256xf32>
    %cst_49 = arith.constant 1.000000e+00 : f32
    %95 = vector.broadcast %cst_49 : f32 to vector<8x256xf32>
    %96 = arith.subf %95, %94 : vector<8x256xf32>
    %97 = arith.mulf %68, %96 : vector<8x256xf32>
    %cst_50 = arith.constant 1.000000e+00 : f32
    %98 = vector.broadcast %cst_50 : f32 to vector<8x256xf32>
    %99 = arith.addf %98, %97 : vector<8x256xf32>
    %100 = arith.mulf %61, %99 : vector<8x256xf32>
    %cst_51 = arith.constant dense<0.000000e+00> : vector<8x256xf32>
    %101 = tpu.matmul %100, %29, %cst_51 {dimension_numbers = #tpu.dot_dimension_numbers<[1], [0], [0], [1], [0, 0, 1, 1], [], []>} : vector<8x256xf32>, vector<256x256xf32>, vector<8x256xf32> -> vector<8x256xf32>
    %102 = vector.broadcast %30 : vector<1x256xf32> to vector<8x256xf32>
    %103 = arith.addf %101, %102 : vector<8x256xf32>
    %cst_52 = arith.constant dense<0.000000e+00> : vector<8xf32>
    %104 = vector.multi_reduction <add>, %103, %cst_52 [1] : vector<8x256xf32> to vector<8xf32>
    %105 = vector.shape_cast %104 : vector<8xf32> to vector<8x1xf32>
    %cst_53 = arith.constant 2.560000e+02 : f32
    %106 = vector.broadcast %cst_53 : f32 to vector<8x1xf32>
    %107 = arith.divf %105, %106 : vector<8x1xf32>
    %108 = vector.broadcast %107 : vector<8x1xf32> to vector<8x256xf32>
    %109 = arith.subf %103, %108 : vector<8x256xf32>
    %110 = arith.mulf %109, %109 : vector<8x256xf32>
    %cst_54 = arith.constant dense<0.000000e+00> : vector<8xf32>
    %111 = vector.multi_reduction <add>, %110, %cst_54 [1] : vector<8x256xf32> to vector<8xf32>
    %112 = vector.shape_cast %111 : vector<8xf32> to vector<8x1xf32>
    %cst_55 = arith.constant 2.560000e+02 : f32
    %113 = vector.broadcast %cst_55 : f32 to vector<8x1xf32>
    %114 = arith.divf %112, %113 : vector<8x1xf32>
    %115 = vector.broadcast %107 : vector<8x1xf32> to vector<8x256xf32>
    %116 = arith.subf %103, %115 : vector<8x256xf32>
    %cst_56 = arith.constant 9.99999974E-6 : f32
    %117 = vector.broadcast %cst_56 : f32 to vector<8x1xf32>
    %118 = arith.addf %114, %117 : vector<8x1xf32>
    %119 = math.rsqrt %118 : vector<8x1xf32>
    %120 = vector.broadcast %119 : vector<8x1xf32> to vector<8x256xf32>
    %121 = arith.mulf %116, %120 : vector<8x256xf32>
    %122 = vector.broadcast %31 : vector<1x256xf32> to vector<8x256xf32>
    %123 = arith.mulf %121, %122 : vector<8x256xf32>
    %124 = vector.broadcast %32 : vector<1x256xf32> to vector<8x256xf32>
    %125 = arith.addf %123, %124 : vector<8x256xf32>
    %cst_57 = arith.constant 5.000000e-01 : f32
    %126 = vector.broadcast %cst_57 : f32 to vector<8x256xf32>
    %127 = arith.mulf %126, %125 : vector<8x256xf32>
    %cst_58 = arith.constant 0.707106769 : f32
    %128 = vector.broadcast %cst_58 : f32 to vector<8x256xf32>
    %129 = arith.mulf %125, %128 : vector<8x256xf32>
    %cst_59 = arith.constant 0.000000e+00 : f32
    %130 = vector.broadcast %cst_59 : f32 to vector<8x256xf32>
    %131 = arith.cmpf oge, %129, %130 : vector<8x256xf32>
    %cst_60 = arith.constant 1.000000e+00 : f32
    %cst_61 = arith.constant -1.000000e+00 : f32
    %132 = vector.broadcast %cst_60 : f32 to vector<8x256xf32>
    %133 = vector.broadcast %cst_61 : f32 to vector<8x256xf32>
    %134 = arith.select %131, %132, %133 : vector<8x256xi1>, vector<8x256xf32>
    %135 = math.absf %129 : vector<8x256xf32>
    %cst_62 = arith.constant 0.327591091 : f32
    %136 = vector.broadcast %cst_62 : f32 to vector<8x256xf32>
    %137 = arith.mulf %136, %135 : vector<8x256xf32>
    %cst_63 = arith.constant 1.000000e+00 : f32
    %138 = vector.broadcast %cst_63 : f32 to vector<8x256xf32>
    %139 = arith.addf %138, %137 : vector<8x256xf32>
    %cst_64 = arith.constant 1.000000e+00 : f32
    %140 = vector.broadcast %cst_64 : f32 to vector<8x256xf32>
    %141 = arith.divf %140, %139 : vector<8x256xf32>
    %cst_65 = arith.constant 1.06140542 : f32
    %142 = vector.broadcast %cst_65 : f32 to vector<8x256xf32>
    %143 = arith.mulf %142, %141 : vector<8x256xf32>
    %cst_66 = arith.constant -1.45315206 : f32
    %144 = vector.broadcast %cst_66 : f32 to vector<8x256xf32>
    %145 = arith.addf %143, %144 : vector<8x256xf32>
    %146 = arith.mulf %145, %141 : vector<8x256xf32>
    %cst_67 = arith.constant 1.42141378 : f32
    %147 = vector.broadcast %cst_67 : f32 to vector<8x256xf32>
    %148 = arith.addf %146, %147 : vector<8x256xf32>
    %149 = arith.mulf %148, %141 : vector<8x256xf32>
    %cst_68 = arith.constant -0.284496725 : f32
    %150 = vector.broadcast %cst_68 : f32 to vector<8x256xf32>
    %151 = arith.addf %149, %150 : vector<8x256xf32>
    %152 = arith.mulf %151, %141 : vector<8x256xf32>
    %cst_69 = arith.constant 0.254829586 : f32
    %153 = vector.broadcast %cst_69 : f32 to vector<8x256xf32>
    %154 = arith.addf %152, %153 : vector<8x256xf32>
    %155 = arith.mulf %154, %141 : vector<8x256xf32>
    %cst_70 = arith.constant 0.000000e+00 : f32
    %156 = vector.broadcast %cst_70 : f32 to vector<8x256xf32>
    %157 = arith.subf %156, %135 : vector<8x256xf32>
    %158 = arith.mulf %157, %135 : vector<8x256xf32>
    %159 = math.exp %158 : vector<8x256xf32>
    %160 = arith.mulf %155, %159 : vector<8x256xf32>
    %cst_71 = arith.constant 1.000000e+00 : f32
    %161 = vector.broadcast %cst_71 : f32 to vector<8x256xf32>
    %162 = arith.subf %161, %160 : vector<8x256xf32>
    %163 = arith.mulf %134, %162 : vector<8x256xf32>
    %cst_72 = arith.constant 1.000000e+00 : f32
    %164 = vector.broadcast %cst_72 : f32 to vector<8x256xf32>
    %165 = arith.addf %164, %163 : vector<8x256xf32>
    %166 = arith.mulf %127, %165 : vector<8x256xf32>
    %cst_73 = arith.constant dense<0.000000e+00> : vector<8x512xf32>
    %167 = tpu.matmul %166, %33, %cst_73 {dimension_numbers = #tpu.dot_dimension_numbers<[1], [0], [0], [1], [0, 0, 1, 1], [], []>} : vector<8x256xf32>, vector<256x512xf32>, vector<8x512xf32> -> vector<8x512xf32>
    %168 = vector.broadcast %34 : vector<1x512xf32> to vector<8x512xf32>
    %169 = arith.addf %167, %168 : vector<8x512xf32>
    %c0_74 = arith.constant 0 : index
    %c0_75 = arith.constant 0 : index
    %170 = vector.load %arg24[%c0_74, %c0_75] : memref<8x512xf32, #tpu.memory_space<vmem>>, vector<8x512xf32>
    tpu.vector_store %arg24[%c0_74, %c0_75], %169 {strides = array<i32>} : memref<8x512xf32, #tpu.memory_space<vmem>>, vector<8x512xf32>,
    %171 = vector.extract_strided_slice %169 {offsets = [0, 0], sizes = [8, 256], strides = [1, 1]} : vector<8x512xf32> to vector<8x256xf32>
    %172 = tpu.iota {dimensions = array<i32: 1>} : vector<8x256xi32>
    %173 = arith.sitofp %172 : vector<8x256xi32> to vector<8x256xf32>
    %cst_76 = arith.constant dense<0xFF800000> : vector<8xf32>
    %174 = vector.multi_reduction <maximumf>, %171, %cst_76 [1] : vector<8x256xf32> to vector<8xf32>
    %175 = vector.shape_cast %174 : vector<8xf32> to vector<8x1xf32>
    %176 = vector.broadcast %175 : vector<8x1xf32> to vector<8x256xf32>
    %177 = arith.cmpf oeq, %171, %176 : vector<8x256xf32>
    %cst_77 = arith.constant 2.560000e+02 : f32
    %178 = vector.broadcast %cst_77 : f32 to vector<8x256xf32>
    %179 = arith.select %177, %173, %178 : vector<8x256xi1>, vector<8x256xf32>
    %cst_78 = arith.constant dense<0x7F800000> : vector<8xf32>
    %180 = vector.multi_reduction <minimumf>, %179, %cst_78 [1] : vector<8x256xf32> to vector<8xf32>
    %181 = vector.shape_cast %180 : vector<8xf32> to vector<8x1xf32>
    %182 = vector.broadcast %181 : vector<8x1xf32> to vector<8x256xf32>
    %183 = arith.subf %182, %173 : vector<8x256xf32>
    %184 = math.absf %183 : vector<8x256xf32>
    %cst_79 = arith.constant 2.000000e+01 : f32
    %185 = vector.broadcast %cst_79 : f32 to vector<8x256xf32>
    %186 = arith.cmpf ole, %184, %185 : vector<8x256xf32>
    %187 = arith.extui %186 : vector<8x256xi1> to vector<8x256xi32>
    %188 = arith.sitofp %187 : vector<8x256xi32> to vector<8x256xf32>
    %cst_80 = arith.constant 5.000000e-01 : f32
    %189 = vector.broadcast %cst_80 : f32 to vector<8x256xf32>
    %190 = arith.mulf %171, %189 : vector<8x256xf32>
    %cst_81 = arith.constant dense<0xFF800000> : vector<8xf32>
    %191 = vector.multi_reduction <maximumf>, %190, %cst_81 [1] : vector<8x256xf32> to vector<8xf32>
    %192 = vector.shape_cast %191 : vector<8xf32> to vector<8x1xf32>
    %193 = vector.broadcast %192 : vector<8x1xf32> to vector<8x256xf32>
    %194 = arith.subf %190, %193 : vector<8x256xf32>
    %195 = math.exp %194 : vector<8x256xf32>
    %cst_82 = arith.constant dense<0.000000e+00> : vector<8xf32>
    %196 = vector.multi_reduction <add>, %195, %cst_82 [1] : vector<8x256xf32> to vector<8xf32>
    %197 = vector.shape_cast %196 : vector<8xf32> to vector<8x1xf32>
    %198 = vector.broadcast %197 : vector<8x1xf32> to vector<8x256xf32>
    %199 = arith.divf %195, %198 : vector<8x256xf32>
    %200 = arith.mulf %199, %188 : vector<8x256xf32>
    %cst_83 = arith.constant dense<0.000000e+00> : vector<8xf32>
    %201 = vector.multi_reduction <add>, %200, %cst_83 [1] : vector<8x256xf32> to vector<8xf32>
    %202 = vector.shape_cast %201 : vector<8xf32> to vector<8x1xf32>
    %203 = vector.broadcast %202 : vector<8x1xf32> to vector<8x256xf32>
    %204 = arith.divf %200, %203 : vector<8x256xf32>
    %205 = arith.mulf %204, %173 : vector<8x256xf32>
    %cst_84 = arith.constant dense<0.000000e+00> : vector<8xf32>
    %206 = vector.multi_reduction <add>, %205, %cst_84 [1] : vector<8x256xf32> to vector<8xf32>
    %207 = vector.shape_cast %206 : vector<8xf32> to vector<8x1xf32>
    %208 = vector.extract_strided_slice %169 {offsets = [0, 256], sizes = [8, 256], strides = [1, 1]} : vector<8x512xf32> to vector<8x256xf32>
    %209 = tpu.iota {dimensions = array<i32: 1>} : vector<8x256xi32>
    %210 = arith.sitofp %209 : vector<8x256xi32> to vector<8x256xf32>
    %cst_85 = arith.constant dense<0xFF800000> : vector<8xf32>
    %211 = vector.multi_reduction <maximumf>, %208, %cst_85 [1] : vector<8x256xf32> to vector<8xf32>
    %212 = vector.shape_cast %211 : vector<8xf32> to vector<8x1xf32>
    %213 = vector.broadcast %212 : vector<8x1xf32> to vector<8x256xf32>
    %214 = arith.cmpf oeq, %208, %213 : vector<8x256xf32>
    %cst_86 = arith.constant 2.560000e+02 : f32
    %215 = vector.broadcast %cst_86 : f32 to vector<8x256xf32>
    %216 = arith.select %214, %210, %215 : vector<8x256xi1>, vector<8x256xf32>
    %cst_87 = arith.constant dense<0x7F800000> : vector<8xf32>
    %217 = vector.multi_reduction <minimumf>, %216, %cst_87 [1] : vector<8x256xf32> to vector<8xf32>
    %218 = vector.shape_cast %217 : vector<8xf32> to vector<8x1xf32>
    %219 = vector.broadcast %218 : vector<8x1xf32> to vector<8x256xf32>
    %220 = arith.subf %219, %210 : vector<8x256xf32>
    %221 = math.absf %220 : vector<8x256xf32>
    %cst_88 = arith.constant 2.000000e+01 : f32
    %222 = vector.broadcast %cst_88 : f32 to vector<8x256xf32>
    %223 = arith.cmpf ole, %221, %222 : vector<8x256xf32>
    %224 = arith.extui %223 : vector<8x256xi1> to vector<8x256xi32>
    %225 = arith.sitofp %224 : vector<8x256xi32> to vector<8x256xf32>
    %cst_89 = arith.constant 5.000000e-01 : f32
    %226 = vector.broadcast %cst_89 : f32 to vector<8x256xf32>
    %227 = arith.mulf %208, %226 : vector<8x256xf32>
    %cst_90 = arith.constant dense<0xFF800000> : vector<8xf32>
    %228 = vector.multi_reduction <maximumf>, %227, %cst_90 [1] : vector<8x256xf32> to vector<8xf32>
    %229 = vector.shape_cast %228 : vector<8xf32> to vector<8x1xf32>
    %230 = vector.broadcast %229 : vector<8x1xf32> to vector<8x256xf32>
    %231 = arith.subf %227, %230 : vector<8x256xf32>
    %232 = math.exp %231 : vector<8x256xf32>
    %cst_91 = arith.constant dense<0.000000e+00> : vector<8xf32>
    %233 = vector.multi_reduction <add>, %232, %cst_91 [1] : vector<8x256xf32> to vector<8xf32>
    %234 = vector.shape_cast %233 : vector<8xf32> to vector<8x1xf32>
    %235 = vector.broadcast %234 : vector<8x1xf32> to vector<8x256xf32>
    %236 = arith.divf %232, %235 : vector<8x256xf32>
    %237 = arith.mulf %236, %225 : vector<8x256xf32>
    %cst_92 = arith.constant dense<0.000000e+00> : vector<8xf32>
    %238 = vector.multi_reduction <add>, %237, %cst_92 [1] : vector<8x256xf32> to vector<8xf32>
    %239 = vector.shape_cast %238 : vector<8xf32> to vector<8x1xf32>
    %240 = vector.broadcast %239 : vector<8x1xf32> to vector<8x256xf32>
    %241 = arith.divf %237, %240 : vector<8x256xf32>
    %242 = arith.mulf %241, %210 : vector<8x256xf32>
    %cst_93 = arith.constant dense<0.000000e+00> : vector<8xf32>
    %243 = vector.multi_reduction <add>, %242, %cst_93 [1] : vector<8x256xf32> to vector<8xf32>
    %244 = vector.shape_cast %243 : vector<8xf32> to vector<8x1xf32>
    %245 = tpu.concatenate %207, %244 in 1 : vector<8x1xf32>, vector<8x1xf32> -> vector<8x2xf32>
    %cst_94 = arith.constant 5.000000e-01 : f32
    %246 = vector.broadcast %cst_94 : f32 to vector<8x2xf32>
    %247 = arith.addf %245, %246 : vector<8x2xf32>
    %c0_95 = arith.constant 0 : index
    %c0_96 = arith.constant 0 : index
    %248 = vector.load %arg23[%c0_95, %c0_96] : memref<8x2xf32, #tpu.memory_space<vmem>>, vector<8x2xf32>
    tpu.vector_store %arg23[%c0_95, %c0_96], %247 {strides = array<i32>} : memref<8x2xf32, #tpu.memory_space<vmem>>, vector<8x2xf32>,
    %c0_97 = arith.constant 0 : index
    %c0_98 = arith.constant 0 : index
    %249 = vector.load %arg13[%c0_97, %c0_98] : memref<32x256xf32, #tpu.memory_space<vmem>>, vector<32x256xf32>
    %c0_99 = arith.constant 0 : index
    %c0_100 = arith.constant 0 : index
    %250 = vector.load %arg14[%c0_99, %c0_100] : memref<1x256xf32, #tpu.memory_space<vmem>>, vector<1x256xf32>
    %c0_101 = arith.constant 0 : index
    %c0_102 = arith.constant 0 : index
    %251 = vector.load %arg15[%c0_101, %c0_102] : memref<1x256xf32, #tpu.memory_space<vmem>>, vector<1x256xf32>
    %c0_103 = arith.constant 0 : index
    %c0_104 = arith.constant 0 : index
    %252 = vector.load %arg16[%c0_103, %c0_104] : memref<1x256xf32, #tpu.memory_space<vmem>>, vector<1x256xf32>
    %c0_105 = arith.constant 0 : index
    %c0_106 = arith.constant 0 : index
    %253 = vector.load %arg17[%c0_105, %c0_106] : memref<256x256xf32, #tpu.memory_space<vmem>>, vector<256x256xf32>
    %c0_107 = arith.constant 0 : index
    %c0_108 = arith.constant 0 : index
    %254 = vector.load %arg18[%c0_107, %c0_108] : memref<1x256xf32, #tpu.memory_space<vmem>>, vector<1x256xf32>
    %c0_109 = arith.constant 0 : index
    %c0_110 = arith.constant 0 : index
    %255 = vector.load %arg19[%c0_109, %c0_110] : memref<1x256xf32, #tpu.memory_space<vmem>>, vector<1x256xf32>
    %c0_111 = arith.constant 0 : index
    %c0_112 = arith.constant 0 : index
    %256 = vector.load %arg20[%c0_111, %c0_112] : memref<1x256xf32, #tpu.memory_space<vmem>>, vector<1x256xf32>
    %c0_113 = arith.constant 0 : index
    %c0_114 = arith.constant 0 : index
    %257 = vector.load %arg21[%c0_113, %c0_114] : memref<256x1xf32, #tpu.memory_space<vmem>>, vector<256x1xf32>
    %c0_115 = arith.constant 0 : index
    %c0_116 = arith.constant 0 : index
    %258 = vector.load %arg22[%c0_115, %c0_116] : memref<1x1xf32, #tpu.memory_space<vmem>>, vector<1x1xf32>
    %cst_117 = arith.constant dense<0.000000e+00> : vector<8x256xf32>
    %259 = tpu.matmul %24, %249, %cst_117 {dimension_numbers = #tpu.dot_dimension_numbers<[1], [0], [0], [1], [0, 0, 1, 1], [], []>} : vector<8x32xf32>, vector<32x256xf32>, vector<8x256xf32> -> vector<8x256xf32>
    %260 = vector.broadcast %250 : vector<1x256xf32> to vector<8x256xf32>
    %261 = arith.addf %259, %260 : vector<8x256xf32>
    %cst_118 = arith.constant dense<0.000000e+00> : vector<8xf32>
    %262 = vector.multi_reduction <add>, %261, %cst_118 [1] : vector<8x256xf32> to vector<8xf32>
    %263 = vector.shape_cast %262 : vector<8xf32> to vector<8x1xf32>
    %cst_119 = arith.constant 2.560000e+02 : f32
    %264 = vector.broadcast %cst_119 : f32 to vector<8x1xf32>
    %265 = arith.divf %263, %264 : vector<8x1xf32>
    %266 = vector.broadcast %265 : vector<8x1xf32> to vector<8x256xf32>
    %267 = arith.subf %261, %266 : vector<8x256xf32>
    %268 = arith.mulf %267, %267 : vector<8x256xf32>
    %cst_120 = arith.constant dense<0.000000e+00> : vector<8xf32>
    %269 = vector.multi_reduction <add>, %268, %cst_120 [1] : vector<8x256xf32> to vector<8xf32>
    %270 = vector.shape_cast %269 : vector<8xf32> to vector<8x1xf32>
    %cst_121 = arith.constant 2.560000e+02 : f32
    %271 = vector.broadcast %cst_121 : f32 to vector<8x1xf32>
    %272 = arith.divf %270, %271 : vector<8x1xf32>
    %273 = vector.broadcast %265 : vector<8x1xf32> to vector<8x256xf32>
    %274 = arith.subf %261, %273 : vector<8x256xf32>
    %cst_122 = arith.constant 9.99999974E-6 : f32
    %275 = vector.broadcast %cst_122 : f32 to vector<8x1xf32>
    %276 = arith.addf %272, %275 : vector<8x1xf32>
    %277 = math.rsqrt %276 : vector<8x1xf32>
    %278 = vector.broadcast %277 : vector<8x1xf32> to vector<8x256xf32>
    %279 = arith.mulf %274, %278 : vector<8x256xf32>
    %280 = vector.broadcast %251 : vector<1x256xf32> to vector<8x256xf32>
    %281 = arith.mulf %279, %280 : vector<8x256xf32>
    %282 = vector.broadcast %252 : vector<1x256xf32> to vector<8x256xf32>
    %283 = arith.addf %281, %282 : vector<8x256xf32>
    %cst_123 = arith.constant 5.000000e-01 : f32
    %284 = vector.broadcast %cst_123 : f32 to vector<8x256xf32>
    %285 = arith.mulf %284, %283 : vector<8x256xf32>
    %cst_124 = arith.constant 0.707106769 : f32
    %286 = vector.broadcast %cst_124 : f32 to vector<8x256xf32>
    %287 = arith.mulf %283, %286 : vector<8x256xf32>
    %cst_125 = arith.constant 0.000000e+00 : f32
    %288 = vector.broadcast %cst_125 : f32 to vector<8x256xf32>
    %289 = arith.cmpf oge, %287, %288 : vector<8x256xf32>
    %cst_126 = arith.constant 1.000000e+00 : f32
    %cst_127 = arith.constant -1.000000e+00 : f32
    %290 = vector.broadcast %cst_126 : f32 to vector<8x256xf32>
    %291 = vector.broadcast %cst_127 : f32 to vector<8x256xf32>
    %292 = arith.select %289, %290, %291 : vector<8x256xi1>, vector<8x256xf32>
    %293 = math.absf %287 : vector<8x256xf32>
    %cst_128 = arith.constant 0.327591091 : f32
    %294 = vector.broadcast %cst_128 : f32 to vector<8x256xf32>
    %295 = arith.mulf %294, %293 : vector<8x256xf32>
    %cst_129 = arith.constant 1.000000e+00 : f32
    %296 = vector.broadcast %cst_129 : f32 to vector<8x256xf32>
    %297 = arith.addf %296, %295 : vector<8x256xf32>
    %cst_130 = arith.constant 1.000000e+00 : f32
    %298 = vector.broadcast %cst_130 : f32 to vector<8x256xf32>
    %299 = arith.divf %298, %297 : vector<8x256xf32>
    %cst_131 = arith.constant 1.06140542 : f32
    %300 = vector.broadcast %cst_131 : f32 to vector<8x256xf32>
    %301 = arith.mulf %300, %299 : vector<8x256xf32>
    %cst_132 = arith.constant -1.45315206 : f32
    %302 = vector.broadcast %cst_132 : f32 to vector<8x256xf32>
    %303 = arith.addf %301, %302 : vector<8x256xf32>
    %304 = arith.mulf %303, %299 : vector<8x256xf32>
    %cst_133 = arith.constant 1.42141378 : f32
    %305 = vector.broadcast %cst_133 : f32 to vector<8x256xf32>
    %306 = arith.addf %304, %305 : vector<8x256xf32>
    %307 = arith.mulf %306, %299 : vector<8x256xf32>
    %cst_134 = arith.constant -0.284496725 : f32
    %308 = vector.broadcast %cst_134 : f32 to vector<8x256xf32>
    %309 = arith.addf %307, %308 : vector<8x256xf32>
    %310 = arith.mulf %309, %299 : vector<8x256xf32>
    %cst_135 = arith.constant 0.254829586 : f32
    %311 = vector.broadcast %cst_135 : f32 to vector<8x256xf32>
    %312 = arith.addf %310, %311 : vector<8x256xf32>
    %313 = arith.mulf %312, %299 : vector<8x256xf32>
    %cst_136 = arith.constant 0.000000e+00 : f32
    %314 = vector.broadcast %cst_136 : f32 to vector<8x256xf32>
    %315 = arith.subf %314, %293 : vector<8x256xf32>
    %316 = arith.mulf %315, %293 : vector<8x256xf32>
    %317 = math.exp %316 : vector<8x256xf32>
    %318 = arith.mulf %313, %317 : vector<8x256xf32>
    %cst_137 = arith.constant 1.000000e+00 : f32
    %319 = vector.broadcast %cst_137 : f32 to vector<8x256xf32>
    %320 = arith.subf %319, %318 : vector<8x256xf32>
    %321 = arith.mulf %292, %320 : vector<8x256xf32>
    %cst_138 = arith.constant 1.000000e+00 : f32
    %322 = vector.broadcast %cst_138 : f32 to vector<8x256xf32>
    %323 = arith.addf %322, %321 : vector<8x256xf32>
    %324 = arith.mulf %285, %323 : vector<8x256xf32>
    %cst_139 = arith.constant dense<0.000000e+00> : vector<8x256xf32>
    %325 = tpu.matmul %324, %253, %cst_139 {dimension_numbers = #tpu.dot_dimension_numbers<[1], [0], [0], [1], [0, 0, 1, 1], [], []>} : vector<8x256xf32>, vector<256x256xf32>, vector<8x256xf32> -> vector<8x256xf32>
    %326 = vector.broadcast %254 : vector<1x256xf32> to vector<8x256xf32>
    %327 = arith.addf %325, %326 : vector<8x256xf32>
    %cst_140 = arith.constant dense<0.000000e+00> : vector<8xf32>
    %328 = vector.multi_reduction <add>, %327, %cst_140 [1] : vector<8x256xf32> to vector<8xf32>
    %329 = vector.shape_cast %328 : vector<8xf32> to vector<8x1xf32>
    %cst_141 = arith.constant 2.560000e+02 : f32
    %330 = vector.broadcast %cst_141 : f32 to vector<8x1xf32>
    %331 = arith.divf %329, %330 : vector<8x1xf32>
    %332 = vector.broadcast %331 : vector<8x1xf32> to vector<8x256xf32>
    %333 = arith.subf %327, %332 : vector<8x256xf32>
    %334 = arith.mulf %333, %333 : vector<8x256xf32>
    %cst_142 = arith.constant dense<0.000000e+00> : vector<8xf32>
    %335 = vector.multi_reduction <add>, %334, %cst_142 [1] : vector<8x256xf32> to vector<8xf32>
    %336 = vector.shape_cast %335 : vector<8xf32> to vector<8x1xf32>
    %cst_143 = arith.constant 2.560000e+02 : f32
    %337 = vector.broadcast %cst_143 : f32 to vector<8x1xf32>
    %338 = arith.divf %336, %337 : vector<8x1xf32>
    %339 = vector.broadcast %331 : vector<8x1xf32> to vector<8x256xf32>
    %340 = arith.subf %327, %339 : vector<8x256xf32>
    %cst_144 = arith.constant 9.99999974E-6 : f32
    %341 = vector.broadcast %cst_144 : f32 to vector<8x1xf32>
    %342 = arith.addf %338, %341 : vector<8x1xf32>
    %343 = math.rsqrt %342 : vector<8x1xf32>
    %344 = vector.broadcast %343 : vector<8x1xf32> to vector<8x256xf32>
    %345 = arith.mulf %340, %344 : vector<8x256xf32>
    %346 = vector.broadcast %255 : vector<1x256xf32> to vector<8x256xf32>
    %347 = arith.mulf %345, %346 : vector<8x256xf32>
    %348 = vector.broadcast %256 : vector<1x256xf32> to vector<8x256xf32>
    %349 = arith.addf %347, %348 : vector<8x256xf32>
    %cst_145 = arith.constant 5.000000e-01 : f32
    %350 = vector.broadcast %cst_145 : f32 to vector<8x256xf32>
    %351 = arith.mulf %350, %349 : vector<8x256xf32>
    %cst_146 = arith.constant 0.707106769 : f32
    %352 = vector.broadcast %cst_146 : f32 to vector<8x256xf32>
    %353 = arith.mulf %349, %352 : vector<8x256xf32>
    %cst_147 = arith.constant 0.000000e+00 : f32
    %354 = vector.broadcast %cst_147 : f32 to vector<8x256xf32>
    %355 = arith.cmpf oge, %353, %354 : vector<8x256xf32>
    %cst_148 = arith.constant 1.000000e+00 : f32
    %cst_149 = arith.constant -1.000000e+00 : f32
    %356 = vector.broadcast %cst_148 : f32 to vector<8x256xf32>
    %357 = vector.broadcast %cst_149 : f32 to vector<8x256xf32>
    %358 = arith.select %355, %356, %357 : vector<8x256xi1>, vector<8x256xf32>
    %359 = math.absf %353 : vector<8x256xf32>
    %cst_150 = arith.constant 0.327591091 : f32
    %360 = vector.broadcast %cst_150 : f32 to vector<8x256xf32>
    %361 = arith.mulf %360, %359 : vector<8x256xf32>
    %cst_151 = arith.constant 1.000000e+00 : f32
    %362 = vector.broadcast %cst_151 : f32 to vector<8x256xf32>
    %363 = arith.addf %362, %361 : vector<8x256xf32>
    %cst_152 = arith.constant 1.000000e+00 : f32
    %364 = vector.broadcast %cst_152 : f32 to vector<8x256xf32>
    %365 = arith.divf %364, %363 : vector<8x256xf32>
    %cst_153 = arith.constant 1.06140542 : f32
    %366 = vector.broadcast %cst_153 : f32 to vector<8x256xf32>
    %367 = arith.mulf %366, %365 : vector<8x256xf32>
    %cst_154 = arith.constant -1.45315206 : f32
    %368 = vector.broadcast %cst_154 : f32 to vector<8x256xf32>
    %369 = arith.addf %367, %368 : vector<8x256xf32>
    %370 = arith.mulf %369, %365 : vector<8x256xf32>
    %cst_155 = arith.constant 1.42141378 : f32
    %371 = vector.broadcast %cst_155 : f32 to vector<8x256xf32>
    %372 = arith.addf %370, %371 : vector<8x256xf32>
    %373 = arith.mulf %372, %365 : vector<8x256xf32>
    %cst_156 = arith.constant -0.284496725 : f32
    %374 = vector.broadcast %cst_156 : f32 to vector<8x256xf32>
    %375 = arith.addf %373, %374 : vector<8x256xf32>
    %376 = arith.mulf %375, %365 : vector<8x256xf32>
    %cst_157 = arith.constant 0.254829586 : f32
    %377 = vector.broadcast %cst_157 : f32 to vector<8x256xf32>
    %378 = arith.addf %376, %377 : vector<8x256xf32>
    %379 = arith.mulf %378, %365 : vector<8x256xf32>
    %cst_158 = arith.constant 0.000000e+00 : f32
    %380 = vector.broadcast %cst_158 : f32 to vector<8x256xf32>
    %381 = arith.subf %380, %359 : vector<8x256xf32>
    %382 = arith.mulf %381, %359 : vector<8x256xf32>
    %383 = math.exp %382 : vector<8x256xf32>
    %384 = arith.mulf %379, %383 : vector<8x256xf32>
    %cst_159 = arith.constant 1.000000e+00 : f32
    %385 = vector.broadcast %cst_159 : f32 to vector<8x256xf32>
    %386 = arith.subf %385, %384 : vector<8x256xf32>
    %387 = arith.mulf %358, %386 : vector<8x256xf32>
    %cst_160 = arith.constant 1.000000e+00 : f32
    %388 = vector.broadcast %cst_160 : f32 to vector<8x256xf32>
    %389 = arith.addf %388, %387 : vector<8x256xf32>
    %390 = arith.mulf %351, %389 : vector<8x256xf32>
    %cst_161 = arith.constant dense<0.000000e+00> : vector<8x1xf32>
    %391 = tpu.matmul %390, %257, %cst_161 {dimension_numbers = #tpu.dot_dimension_numbers<[1], [0], [0], [1], [0, 0, 1, 1], [], []>} : vector<8x256xf32>, vector<256x1xf32>, vector<8x1xf32> -> vector<8x1xf32>
    %392 = vector.broadcast %258 : vector<1x1xf32> to vector<8x1xf32>
    %393 = arith.addf %391, %392 : vector<8x1xf32>
    %c0_162 = arith.constant 0 : index
    %c0_163 = arith.constant 0 : index
    %394 = vector.load %arg25[%c0_162, %c0_163] : memref<8x1xf32, #tpu.memory_space<vmem>>, vector<8x1xf32>
    tpu.vector_store %arg25[%c0_162, %c0_163], %393 {strides = array<i32>} : memref<8x1xf32, #tpu.memory_space<vmem>>, vector<8x1xf32>,
    return
  }
}

</mosaic_0001>

<bundles_post_ra>
// kernel: tapnext_forward.6
= control target key start
LH: loop header
LB: loop body
LE: loop exit
PB: predicated region body
PF: predicated region fallthrough
CT: control target
= control target key end

     0   :  { %v171_v0 = vmov 0.0|0.0   ;;  %vm50_vm0 = vcmask 523264   ;;  %vm126_vm1 = vcmask 261120   ;;  %s296_s1 = inlined_call_operand.vmem [shape: f32[192,32], index: 1, kind: input, shape index: {}]   ;;  %s297_s0 = inlined_call_operand.vmem [shape: f32[8,192], index: 0, kind: input, shape index: {}]   ;;  %s298_s2 = inlined_call_operand.vmem [shape: f32[1,32], index: 2, kind: input, shape index: {}]   ;;  %s299_s3 = inlined_call_operand.vmem [shape: f32[8,32], index: 3, kind: input, shape index: {}]   ;;  %s300_s4 = inlined_call_operand.vmem [shape: f32[8,32], index: 4, kind: output, shape index: {}]  }
   0x1   :  { %134 = vmatprep.subr.bf16.mxu0 %v171_v0  ;;  %v19_v1 = vld [vmem:[%s296_s1] sm:$0xff]  ;;  %v20_v2 = vld [vmem:[%s296_s1 + $0x8] sm:$0xff]  ;;  %v21_v3 = vld [vmem:[%s296_s1 + $0x10] sm:$0xff] }
   0x2   :  { %v135_v4 = vpack.c.bf16 %v20_v2, %v19_v1  ;;  %v22_v5 = vld [vmem:[%s296_s1 + $0x18] sm:$0xff]  ;;  %v23_v7 = vld [vmem:[%s296_s1 + $0x20] sm:$0xff]  ;;  %v24_v8 = vld [vmem:[%s296_s1 + $0x28] sm:$0xff] }
   0x3   :  { %v138_v6 = vpack.c.bf16 %v22_v5, %v21_v3  ;;  %v141_v9 = vpack.c.bf16 %v24_v8, %v23_v7  ;;  %v25_v10 = vld [vmem:[%s296_s1 + $0x30] sm:$0xff]  ;;  %v26_v11 = vld [vmem:[%s296_s1 + $0x38] sm:$0xff]  ;;  %v18_v12 = vld [vmem:[%s297_s0 + $0x8] sm:$0xff] }
   0x4   :  { %136 = vmatpush1.bf16.msra.mxu0 %v135_v4  ;;  %133 = vmatprep.mubr.msk.f32.mxu0 %vm50_vm0, %v18_v12  ;;  %v144_v13 = vpack.c.bf16 %v26_v11, %v25_v10  ;;  %v27_v14 = vld [vmem:[%s296_s1 + $0x40] sm:$0xff]  ;;  %v28_v15 = vld [vmem:[%s296_s1 + $0x48] sm:$0xff]  ;;  %v29_v17 = vld [vmem:[%s296_s1 + $0x50] sm:$0xff] }
   0x5   :  { %137 = vmatprep.subr.bf16.mxu0 %v171_v0  ;;  %v147_v16 = vpack.c.bf16 %v28_v15, %v27_v14  ;;  %v30_v18 = vld [vmem:[%s296_s1 + $0x58] sm:$0xff]  ;;  %v31_v20 = vld [vmem:[%s296_s1 + $0x60] sm:$0xff]  ;;  %v32_v21 = vld [vmem:[%s296_s1 + $0x68] sm:$0xff] }
   0x6   :  { %v150_v19 = vpack.c.bf16 %v30_v18, %v29_v17  ;;  %v153_v22 = vpack.c.bf16 %v32_v21, %v31_v20  ;;  %v33_v23 = vld [vmem:[%s296_s1 + $0x70] sm:$0xff]  ;;  %v34_v24 = vld [vmem:[%s296_s1 + $0x78] sm:$0xff]  ;;  %v35_v26 = vld [vmem:[%s296_s1 + $0x80] sm:$0xff] }
   0x7   :  { %v156_v25 = vpack.c.bf16 %v34_v24, %v33_v23  ;;  %v36_v27 = vld [vmem:[%s296_s1 + $0x88] sm:$0xff]  ;;  %v37_v29 = vld [vmem:[%s296_s1 + $0x90] sm:$0xff]  ;;  %v38_v30 = vld [vmem:[%s296_s1 + $0x98] sm:$0xff] }
   0x8   :  { %139 = vmatpush1.bf16.msra.mxu0 %v138_v6  ;;  %v159_v28 = vpack.c.bf16 %v36_v27, %v35_v26  ;;  %v162_v31 = vpack.c.bf16 %v38_v30, %v37_v29  ;;  %v39_v32 = vld [vmem:[%s296_s1 + $0xa0] sm:$0xff]  ;;  %v40_v33 = vld [vmem:[%s296_s1 + $0xa8] sm:$0xff]  ;;  %v41_v35 = vld [vmem:[%s296_s1 + $0xb0] sm:$0xff] }
   0x9   :  { %140 = vmatprep.subr.bf16.mxu0 %v171_v0  ;;  %v165_v34 = vpack.c.bf16 %v40_v33, %v39_v32  ;;  %v42_v36 = vld [vmem:[%s296_s1 + $0xb8] sm:$0xff]  ;;  %v17_v38 = vld [vmem:[%s297_s0] sm:$0xff] }
   0xa   :  { %v168_v37 = vpack.c.bf16 %v42_v36, %v41_v35  ;;  %v132_v39 = vld [vmem:[%s298_s2] ss:$0 sm:$0xff] }
   0xb   :  { %v124_v41 = vld [vmem:[%s299_s3] sm:$0xff] }
   0xc   :  { %142 = vmatpush1.bf16.msra.mxu0 %v141_v9 }
   0xd   :  { %143 = vmatprep.subr.bf16.mxu0 %v171_v0 }
  0x10   :  { %145 = vmatpush1.bf16.msra.mxu0 %v144_v13 }
  0x11   :  { %146 = vmatprep.subr.bf16.mxu0 %v171_v0 }
  0x14   :  { %148 = vmatpush1.bf16.msra.mxu0 %v147_v16 }
  0x15   :  { %149 = vmatprep.subr.bf16.mxu0 %v171_v0 }
  0x18   :  { %151 = vmatpush1.bf16.msra.mxu0 %v150_v19 }
  0x19   :  { %152 = vmatprep.subr.bf16.mxu0 %v171_v0 }
  0x1c   :  { %154 = vmatpush1.bf16.msra.mxu0 %v153_v22 }
  0x1d   :  { %155 = vmatprep.subr.bf16.mxu0 %v171_v0 }
  0x20   :  { %157 = vmatpush1.bf16.msra.mxu0 %v156_v25 }
  0x21   :  { %158 = vmatprep.subr.bf16.mxu0 %v171_v0 }
  0x24   :  { %160 = vmatpush1.bf16.msra.mxu0 %v159_v28 }
  0x25   :  { %161 = vmatprep.subr.bf16.mxu0 %v171_v0 }
  0x28   :  { %163 = vmatpush1.bf16.msra.mxu0 %v162_v31 }
  0x29   :  { %164 = vmatprep.subr.bf16.mxu0 %v171_v0 }
  0x2c   :  { %166 = vmatpush1.bf16.msra.mxu0 %v165_v34 }
  0x2d   :  { %167 = vmatprep.subr.bf16.mxu0 %v171_v0 }
  0x30   :  { %169 = vmatpush1.bf16.msra.mxu0 %v168_v37 }
  0x33   :  { %119 = vmatmul.mubr.f32.vlgmr.msra.gmra.mrb[0].mxu0 %v17_v38 }
 0x106   :  { %v120_v40 = vpop.f32.mrb[0].mxu0 }
 0x107   :  { %v121_v42 = vadd.f32 %v132_v39, %v120_v40  ;;  %v122_v43 = vpop.f32.mrb[1].mxu0 }
 0x109   :  { %v125_v44 = vadd.f32 %v124_v41, %v121_v42 }
 0x10b   :  { %127 = vst.msk [vmem:[%s300_s4] sm:$0xff] %vm126_vm1, %v125_v44 }

// kernel: tapnext_forward.7
= control target key start
LH: loop header
LB: loop body
LE: loop exit
PB: predicated region body
PF: predicated region fallthrough
CT: control target
= control target key end

     0   :  { %vm80_vm0 = vcmask 261120   ;;  %v98_v17 = vlaneseq  ;;  %vm347_vm1 = vcmask 130048   ;;  %v1635_v60 = vmov 0   ;;  %s2079_s0 = inlined_call_operand.vmem [shape: f32[16,32], index: 0, kind: input, shape index: {}]   ;;  %s2080_s4 = inlined_call_operand.vmem [shape: f32[32,32], index: 4, kind: input, shape index: {}]   ;;  %s2081_s6 = inlined_call_operand.vmem [shape: f32[32,32], index: 6, kind: input, shape index: {}]   ;;  %s2082_s3 = inlined_call_operand.vmem [shape: f32[1,32], index: 3, kind: input, shape index: {}]   ;;  %s2083_s2 = inlined_call_operand.vmem [shape: f32[64,16], index: 2, kind: input, shape index: {}]   ;;  %s2084_s7 = inlined_call_operand.vmem [shape: f32[1,32], index: 7, kind: input, shape index: {}]   ;;  %s2085_s10 = inlined_call_operand.vmem [shape: f32[32,32], index: 10, kind: input, shape index: {}]   ;;  %s2086_s12 = inlined_call_operand.vmem [shape: f32[32,32], index: 12, kind: input, shape index: {}]   ;;  %s2087_s1 = inlined_call_operand.vmem [shape: f32[16,1], index: 1, kind: input, shape index: {}]   ;;  %s2088_s8 = inlined_call_operand.vmem [shape: f32[4,32], index: 8, kind: input, shape index: {}]   ;;  %s2089_s9 = inlined_call_operand.vmem [shape: f32[1,32], index: 9, kind: input, shape index: {}]   ;;  %s2090_s14 = inlined_call_operand.vmem [shape: f32[1,32], index: 14, kind: input, shape index: {}]   ;;  %s2091_s13 = inlined_call_operand.vmem [shape: f32[1,32], index: 13, kind: input, shape index: {}]   ;;  %s2092_s11 = inlined_call_operand.vmem [shape: f32[1,32], index: 11, kind: input, shape index: {}]   ;;  %s2093_s15 = inlined_call_operand.vmem [shape: f32[32,32], index: 15, kind: input, shape index: {}]   ;;  %s2094_s5 = inlined_call_operand.vmem [shape: f32[1,32], index: 5, kind: input, shape index: {}]   ;;  %s2095_s23 = inlined_call_operand.vmem [shape: f32[16,32], index: 23, kind: output, shape index: {1}]   ;;  %s2096_s16 = inlined_call_operand.vmem [shape: f32[1,32], index: 16, kind: input, shape index: {}]   ;;  %s2097_s18 = inlined_call_operand.vmem [shape: f32[32,256], index: 18, kind: input, shape index: {}]   ;;  %s2098_s17 = inlined_call_operand.vmem [shape: f32[1,32], index: 17, kind: input, shape index: {}]   ;;  %s2099_s20 = inlined_call_operand.vmem [shape: f32[128,32], index: 20, kind: input, shape index: {}]   ;;  %s2100_s19 = inlined_call_operand.vmem [shape: f32[1,256], index: 19, kind: input, shape index: {}]   ;;  %s2101_s21 = inlined_call_operand.vmem [shape: f32[1,32], index: 21, kind: input, shape index: {}]   ;;  %s2102_s22 = inlined_call_operand.vmem [shape: f32[16,32], index: 22, kind: output, shape index: {0}]  }
   0x1   :  { %2109 = sst [smem:[#allocation2_spill]] %s2079_s0  ;;  %1577 = vset.pattern.permute.xlu1 %v1635_v60  ;;  %v75_v61 = vld [vmem:[%s2087_s1] sm:$0xff]  ;;  %v76_v62 = vld [vmem:[%s2087_s1 + $0x8] sm:$0xff]  ;;  %1578 = vset.pattern.permute.xlu0 %v1635_v60 }
   0x2   :  { %2110 = sst [smem:[#allocation3_spill]] %s2080_s4  ;;  %s2117_s24 = sld [smem:[#allocation2_spill]]  ;;  %v1792_v21 = vshrl.u32 %v98_v17, 7  ;;  %vm780_vm2 = vcmp.eq.f32.partialorder %v75_v61, 0.0  ;;  %vm781_vm3 = vcmp.eq.f32.partialorder %v76_v62, 0.0  ;;  %vm874_vm4 = vcmp.eq.f32.partialorder %v76_v62, 1.0 }
   0x3   :  { %2111 = sst [smem:[#allocation4_spill]] %s2081_s6  ;;  %s2118_s6 = sld [smem:[#allocation3_spill]]  ;;  %v782_v63 = vsel %vm780_vm2, 1, %v1635_v60  ;;  %vm873_vm5 = vcmp.eq.f32.partialorder %v75_v61, 1.0 }
   0x4   :  { %2112 = sst [smem:[#allocation5_spill]] %s2082_s3  ;;  %s2119_s30 = sld [smem:[#allocation4_spill]]  ;;  %v1798_v25 = vsub.s32 0, %v1792_v21  ;;  %785 = vperm.xlu1 %1577, %v782_v63  }
   0x5   :  { %2113 = sst [smem:[#allocation6_spill]] %s2083_s2  ;;  %s2120_s26 = sld [smem:[#allocation5_spill]] }
   0x6   :  { %2114 = sst [smem:[#allocation7_spill]] %s2084_s7  ;;  %s2121_s3 = sld [smem:[#allocation6_spill]] }
   0x7   :  { %2115 = sst [smem:[#allocation8_spill]] %s2085_s10 }
   0x8   :  { %2116 = sst [smem:[#allocation9_spill]] %s2086_s12  ;;  %v1761_v0 = vld [vmem:[%s2117_s24] sm:$0xff]  ;;  %v1766_v1 = vld [vmem:[%s2117_s24 + $0x8] sm:$0xff]  ;;  %s2123_s12 = sld [smem:[#allocation8_spill]] }
   0x9   :  { %v78_v2 = vmul.f32 %v1761_v0, %v1761_v0  ;;  %v79_v3 = vmul.f32 %v1766_v1, %v1766_v1  ;;  %v105_v6 = vld [vmem:[%s2118_s6] sm:$0xff]  ;;  %v106_v7 = vld [vmem:[%s2118_s6 + $0x8] sm:$0xff]  ;;  %v107_v8 = vld [vmem:[%s2118_s6 + $0x10] sm:$0xff] }
   0xa   :  { %v1482_v9 = vpack.c.bf16 %v106_v7, %v105_v6  ;;  %v108_v10 = vld [vmem:[%s2118_s6 + $0x18] sm:$0xff]  ;;  %v251_v12 = vld [vmem:[%s2119_s30] sm:$0xff]  ;;  %v252_v13 = vld [vmem:[%s2119_s30 + $0x8] sm:$0xff] }
   0xb   :  { %v81_v4 = vsel %vm80_vm0, %v78_v2, 0.0  ;;  %v84_v5 = vsel %vm80_vm0, %v79_v3, 0.0  ;;  %v1486_v11 = vpack.c.bf16 %v108_v10, %v107_v8  ;;  %v1490_v14 = vpack.c.bf16 %v252_v13, %v251_v12  ;;  %v77_v23 = vld [vmem:[%s2120_s26] sm:$0x1]  ;;  %v253_v31 = vld [vmem:[%s2119_s30 + $0x10] sm:$0xff]  ;;  %v254_v32 = vld [vmem:[%s2119_s30 + $0x18] sm:$0xff] }
   0xc   :  { %82 = vadd.xlane.f32.xlu0 %v81_v4  ;;  %1483 = vmatprep.subr.bf16.mxu0 %v1482_v9  ;;  %v96_v24 = vadd.f32 1.0, %v77_v23  ;;  %v1494_v35 = vpack.c.bf16 %v254_v32, %v253_v31  ;;  %v1816_v36 = vld [vmem:[%s2121_s3 + $0x10] sm:$0xff]  ;;  %s2122_s30 = sld [smem:[#allocation7_spill]]  ;;  %v1830_v45 = vld [vmem:[%s2121_s3 + $0x18] sm:$0xff]  ;;  %v438_v46 = vld [vmem:[%s2121_s3] sm:$0xff]  ;;  %v783_v2 = vsel %vm781_vm3, 1, %v1635_v60 }
   0xd   :  { %1485 = vmatpush3.bf16.msra.mxu0 %v1482_v9  ;;  %v439_v47 = vld [vmem:[%s2121_s3 + $0x8] sm:$0xff]  ;;  %788 = vperm.xlu1 %1577, %v783_v2   ;;  %v880_v3 = vsel %vm874_vm4, 1, %v1635_v60  ;;  %v1293_v4 = vld [vmem:[%s2088_s8 + $0x2] ss:$0 sm:$0xff]  ;;  %v1290_v8 = vld [vmem:[%s2089_s9] ss:$0 sm:$0xff] }
   0xe   :  { %1487 = vmatprep.subr.bf16.mxu0 %v1486_v11  ;;  %v101_v26 = vrot.slane %v96_v24, %v1798_v25  ;;  %v530_v48 = vld [vmem:[%s2123_s12] sm:$0xff]  ;;  %v531_v49 = vld [vmem:[%s2123_s12 + $0x8] sm:$0xff]  ;;  %v532_v54 = vld [vmem:[%s2123_s12 + $0x10] sm:$0xff] }
   0xf   :  { %v1506_v50 = vpack.c.bf16 %v531_v49, %v530_v48  ;;  %v533_v55 = vld [vmem:[%s2123_s12 + $0x18] sm:$0xff]  ;;  %v1296_v10 = vld [vmem:[%s2088_s8 + $0x3] ss:$0 sm:$0xff]  ;;  %v1297_v49 = vld [vmem:[%s2092_s11] ss:$0 sm:$0xff] }
  0x10   :  { %85 = vadd.xlane.f32.xlu0 %v84_v5  ;;  %v1510_v56 = vpack.c.bf16 %v533_v55, %v532_v54 }
  0x11   :  { %1489 = vmatpush3.bf16.msra.mxu0 %v1486_v11  ;;  %885 = vperm.xlu1 %1577, %v880_v3  }
  0x12   :  { %1491 = vmatprep.subr.bf16.mxu0 %v1490_v14  ;;  %v1287_v39 = vld [vmem:[%s2122_s30] ss:$0 sm:$0xff]  ;;  %s2124_s30 = sld [smem:[#allocation9_spill]] }
  0x18   :  { %v634_v51 = vld [vmem:[%s2124_s30] sm:$0xff]  ;;  %v635_v52 = vld [vmem:[%s2124_s30 + $0x8] sm:$0xff]  ;;  %v636_v57 = vld [vmem:[%s2124_s30 + $0x10] sm:$0xff] }
  0x19   :  { %v1514_v53 = vpack.c.bf16 %v635_v52, %v634_v51  ;;  %v637_v58 = vld [vmem:[%s2124_s30 + $0x18] sm:$0xff] }
  0x1a   :  { %v1518_v59 = vpack.c.bf16 %v637_v58, %v636_v57 }
  0x1b   :  { %1515 = vmatprep.subr.bf16.mxu1 %v1514_v53 }
  0x1c   :  { %1517 = vmatpush3.bf16.msra.mxu1 %v1514_v53 }
  0x1d   :  { %1519 = vmatprep.subr.bf16.mxu1 %v1518_v59 }
  0x20   :  { %1521 = vmatpush3.bf16.msra.mxu1 %v1518_v59 }
  0x99   :  { %v83_v15 = vpop.xlane.xlu0 %82 }
  0x9a   :  { %v88_v16 = vmul.f32 0.03125, %v83_v15 }
  0x9c   :  { %v90_v18 = vadd.f32 1e-06, %v88_v16 }
  0x9d   :  { %v86_v19 = vpop.xlane.xlu0 %85 }
  0x9e   :  { %1579 = vrsqrt.f32 %v90_v18  ;;  %v89_v20 = vmul.f32 0.03125, %v86_v19  ;;  %v879_v19 = vsel %vm873_vm5, 1, %v1635_v60 }
  0x9f   :  { %882 = vperm.xlu0 %1578, %v879_v19  }
  0xa0   :  { %v91_v22 = vadd.f32 1e-06, %v89_v20  ;;  %v734_v20 = vld [vmem:[%s2090_s14] sm:$0x1] }
  0xa2   :  { %1581 = vrsqrt.f32 %v91_v22  ;;  %v736_v22 = vand.u32 2147483647, %v734_v20 }
  0xa4   :  { %v737_v23 = vsub.f32 0.0, %v736_v22 }
  0xa6   :  { %v738_v24 = vmul.f32 1.442695, %v737_v23 }
  0xa8   :  { %v1580_v27 = vpop.eup %1579  ;;  %1583 = vpow2.f32 %v738_v24 }
  0xa9   :  { %v94_v28 = vmul.f32 %v1580_v27, %v1761_v0 }
  0xab   :  { %v103_v29 = vmul.f32 %v101_v26, %v94_v28 }
  0xac   :  { %v1582_v30 = vpop.eup %1581 }
  0xad   :  { %v95_v33 = vmul.f32 %v1582_v30, %v1766_v1  ;;  %1379 = vmatprep.mubr.msk.f32.mxu0 %vm80_vm0, %v103_v29 }
  0xaf   :  { %v104_v34 = vmul.f32 %v101_v26, %v95_v33  ;;  %v1300_v26 = vld [vmem:[%s2091_s13] ss:$0 sm:$0xff] }
  0xb1   :  { %1380 = vmatmul.mubr.msk.f32.vlgmr.msra.gmra.mrb[0].mxu0 %vm80_vm0, %v104_v34 }
  0xb2   :  { %1493 = vmatpush3.bf16.msra.mxu0 %v1490_v14  ;;  %1390 = vmatprep.mubr.msk.f32.mxu0 %vm80_vm0, %v103_v29  ;;  %v1584_v32 = vpop.eup %1583 }
  0xb3   :  { %1495 = vmatprep.subr.bf16.mxu0 %v1494_v35 }
  0xb6   :  { %1497 = vmatpush3.bf16.msra.mxu0 %v1494_v35 }
  0xb9   :  { %1391 = vmatmul.mubr.msk.f32.vlgmr.msra.gmra.mrb[2].mxu0 %vm80_vm0, %v104_v34 }
  0xba   :  { %1397 = vmatprep.mubr.msk.f32.mxu0 %vm347_vm1, %v1816_v36 }
 0x184   :  { %v1820_v37 = vpop.f32.mrb[0].mxu0 }
 0x185   :  { %v1822_v38 = vpop.f32.mrb[1].mxu0 }
 0x18c   :  { %v1392_v40 = vpop.f32.mrb[2].mxu0 }
 0x18d   :  { %v334_v41 = vadd.f32 %v1392_v40, %v1287_v39  ;;  %v328_v42 = vpop.f32.mrb[3].mxu0 }
 0x18e   :  { %v329_v43 = vadd.f32 %v1287_v39, %v328_v42  ;;  %v740_v39 = vadd.f32 1.0, %v1584_v32 }
 0x190   :  { %v1498_v44 = vpack.c.bf16 %v334_v41, %v329_v43 }
 0x192   :  { %1499 = vmatprep.subr.bf16.mxu0 %v1498_v44 }
 0x193   :  { %1501 = vmatpush3.bf16.msra.mxu0 %v1498_v44 }
 0x194   :  { %1503 = vmatprep.subr.bf16.mxu0 %v1498_v44 }
 0x196   :  { %1398 = vmatmul.mubr.msk.f32.vlgmr.msra.gmra.mrb[4].mxu0 %vm347_vm1, %v1830_v45 }
 0x197   :  { %1505 = vmatpush3.bf16.msra.mxu0 %v1498_v44  ;;  %1404 = vmatprep.mubr.msk.f32.mxu0 %vm347_vm1, %v438_v46 }
 0x198   :  { %1507 = vmatprep.subr.bf16.mxu0 %v1506_v50 }
 0x19a   :  { %1405 = vmatmul.mubr.msk.f32.vlgmr.msra.gmra.mrb[6].mxu0 %vm347_vm1, %v439_v47  ;;  %v735_v47 = vmax.f32 %v734_v20, 0.0 }
 0x19b   :  { %1509 = vmatpush3.bf16.msra.mxu0 %v1506_v50 }
 0x19c   :  { %1511 = vmatprep.subr.bf16.mxu0 %v1510_v56 }
 0x19f   :  { %1513 = vmatpush3.bf16.msra.mxu0 %v1510_v56 }
 0x269   :  { %v1399_v5 = vpop.f32.mrb[4].mxu0 }
 0x26a   :  { %v435_v6 = vmul.f32 %v1399_v5, %v1293_v4  ;;  %v420_v7 = vpop.f32.mrb[5].mxu0 }
 0x26b   :  { %v434_v9 = vmul.f32 %v1293_v4, %v420_v7 }
 0x26c   :  { %v437_v12 = vadd.f32 %v1290_v8, %v435_v6 }
 0x26d   :  { %v1406_v11 = vpop.f32.mrb[6].mxu0  ;;  %v436_v15 = vadd.f32 %v1290_v8, %v434_v9 }
 0x26e   :  { %v527_v13 = vmul.f32 %v1406_v11, %v1296_v10  ;;  %v512_v14 = vpop.f32.mrb[7].mxu0 }
 0x26f   :  { %v526_v16 = vmul.f32 %v1296_v10, %v512_v14 }
 0x270   :  { %v1881_v17 = vadd.f32 %v527_v13, %v437_v12 }
 0x271   :  { %v1883_v18 = vadd.f32 %v526_v16, %v436_v15  ;;  %v786_v16 = vpop.permute.xlu1 %785 }
 0x272   :  { %vm790_vm11 = vcmp.eq.s32.totalorder %v786_v16, 1 }
 0x273   :  { %1415 = vmatprep.mubr.msk.f32.mxu0 %vm80_vm0, %v1883_v18  ;;  %1426 = vmatprep.mubr.msk.f32.mxu1 %vm80_vm0, %v1883_v18 }
 0x274   :  { %1416 = vmatmul.mubr.msk.f32.vlgmr.msra.gmra.mrb[8].mxu0 %vm80_vm0, %v1881_v17  ;;  %1427 = vmatmul.mubr.msk.f32.vlgmr.msra.gmra.mrb[0].mxu1 %vm80_vm0, %v1881_v17 }
 0x275   :  { %1433 = vmatprep.mubr.msk.f32.mxu0 %vm347_vm1, %v1816_v36  ;;  %v789_v24 = vpop.permute.xlu1 %788 }
 0x276   :  { %vm791_vm8 = vcmp.eq.s32.totalorder %v789_v24, 1 }
 0x347   :  { %v1417_v27 = vpop.f32.mrb[8].mxu0  ;;  %v1428_v28 = vpop.f32.mrb[0].mxu1 }
 0x348   :  { %v717_v29 = vadd.f32 %v1428_v28, %v1300_v26  ;;  %v613_v30 = vpop.f32.mrb[9].mxu0  ;;  %v711_v31 = vpop.f32.mrb[1].mxu1  ;;  %v619_v51 = vadd.f32 %v1417_v27, %v1297_v49 }
 0x349   :  { %v712_v33 = vadd.f32 %v1300_v26, %v711_v31  ;;  %v614_v52 = vadd.f32 %v1297_v49, %v613_v30 }
 0x34a   :  { %v721_v34 = vsub.f32 0.0, %v717_v29  ;;  %v623_v55 = vsub.f32 0.0, %v619_v51 }
 0x34b   :  { %v720_v35 = vsub.f32 0.0, %v712_v33  ;;  %v622_v58 = vsub.f32 0.0, %v614_v52 }
 0x34c   :  { %v724_v36 = vmul.f32 1.442695, %v721_v34  ;;  %v626_v61 = vmul.f32 1.442695, %v623_v55 }
 0x34d   :  { %v722_v40 = vmul.f32 1.442695, %v720_v35  ;;  %v624_v2 = vmul.f32 1.442695, %v622_v58 }
 0x34e   :  { %1585 = vpow2.f32 %v724_v36 }
 0x34f   :  { %1587 = vlog2.f32 %v740_v39 }
 0x350   :  { %1589 = vpow2.f32 %v722_v40 }
 0x358   :  { %v1586_v41 = vpop.eup %1585 }
 0x359   :  { %v1588_v42 = vpop.eup %1587  ;;  %v727_v43 = vadd.f32 1.0, %v1586_v41 }
 0x35a   :  { %v1590_v44 = vpop.eup %1589  ;;  %v742_v48 = vmul.f32 0.6931472, %v1588_v42 }
 0x35b   :  { %1591 = vrcp.f32 %v727_v43  ;;  %v726_v46 = vadd.f32 1.0, %v1590_v44  ;;  %v897_v44 = vld [vmem:[%s2093_s15 + $0x10] sm:$0xff] }
 0x35c   :  { %v743_v50 = vadd.f32 %v742_v48, %v735_v47  ;;  %v1284_v47 = vld [vmem:[%s2094_s5] ss:$0 sm:$0xff] }
 0x35d   :  { %1593 = vrcp.f32 %v726_v46  ;;  %v898_v46 = vld [vmem:[%s2093_s15 + $0x18] sm:$0xff]  ;;  %v1937_v48 = vadd.f32 %v1820_v37, %v1284_v47  ;;  %v1940_v49 = vadd.f32 %v1284_v47, %v1822_v38 }
 0x35e   :  { %v748_v53 = vrot.slane %v743_v50, %v1798_v25  ;;  %1595 = vpow2.f32 %v626_v61 }
 0x35f   :  { %v200_v50 = vmul.f32 0.70710677, %v1937_v48  ;;  %v199_v51 = vmul.f32 0.70710677, %v1940_v49 }
 0x361   :  { %v206_v52 = vand.u32 2147483647, %v200_v50  ;;  %vm202_vm12 = vcmp.ge.f32.partialorder %v200_v50, 0.0  ;;  %vm201_vm13 = vcmp.ge.f32.partialorder %v199_v51, 0.0  ;;  %v198_v50 = vmul.f32 0.5, %v1937_v48 }
 0x365   :  { %v1592_v54 = vpop.eup %1591 }
 0x366   :  { %v733_v56 = vmul.f32 -8.0, %v1592_v54  ;;  %v208_v54 = vmul.f32 0.3275911, %v206_v52 }
 0x367   :  { %v1594_v57 = vpop.eup %1593 }
 0x368   :  { %v1905_v59 = vmul.f32 %v748_v53, %v733_v56  ;;  %v732_v60 = vmul.f32 -8.0, %v1594_v57  ;;  %v1596_v6 = vpop.eup %1595  ;;  %v210_v56 = vadd.f32 1.0, %v208_v54 }
 0x369   :  { %v629_v11 = vadd.f32 1.0, %v1596_v6 }
 0x36a   :  { %v757_v62 = vmul.f32 2.0, %v1905_v59  ;;  %v1908_v63 = vmul.f32 %v748_v53, %v732_v60  ;;  %v205_v53 = vand.u32 2147483647, %v199_v51 }
 0x36c   :  { %v760_v3 = vmul.f32 1.442695, %v757_v62  ;;  %v756_v4 = vmul.f32 2.0, %v1908_v63  ;;  %v207_v55 = vmul.f32 0.3275911, %v205_v53 }
 0x36e   :  { %1597 = vpow2.f32 %v760_v3  ;;  %v758_v5 = vmul.f32 1.442695, %v756_v4  ;;  %v209_v57 = vadd.f32 1.0, %v207_v55 }
 0x36f   :  { %1599 = vpow2.f32 %v624_v2 }
 0x370   :  { %1601 = vpow2.f32 %v758_v5  ;;  %v234_v5 = vsub.f32 0.0, %v206_v52 }
 0x378   :  { %v1598_v7 = vpop.eup %1597 }
 0x379   :  { %v1600_v8 = vpop.eup %1599  ;;  %v763_v9 = vsub.f32 1.0, %v1598_v7  ;;  %v233_v7 = vsub.f32 0.0, %v205_v53 }
 0x37a   :  { %v1602_v10 = vpop.eup %1601  ;;  %v628_v14 = vadd.f32 1.0, %v1600_v8 }
 0x37b   :  { %v765_v12 = vmax.f32 %v763_v9, 0.0  ;;  %v762_v13 = vsub.f32 1.0, %v1602_v10  ;;  %v236_v9 = vmul.f32 %v234_v5, %v206_v52  ;;  %v197_v52 = vmul.f32 0.5, %v1940_v49 }
 0x37d   :  { %v764_v15 = vmax.f32 %v762_v13, 0.0  ;;  %1603 = vrsqrt.f32 %v765_v12  ;;  %vm775_vm6 = vcmp.eq.f32.partialorder %v765_v12, inf  ;;  %v778_v26 = vand.u32 2147483648, %v765_v12 }
 0x37e   :  { %1605 = vrcp.f32 %v629_v11  ;;  %vm777_vm7 = vcmp.eq.f32.partialorder %v765_v12, 0.0  ;;  %v235_v11 = vmul.f32 %v233_v7, %v205_v53  ;;  %v239_v13 = vmul.f32 1.442695, %v236_v9  ;;  %v1015_v7 = vld [vmem:[%s2097_s18] sm:$0xff] }
 0x37f   :  { %1607 = vrsqrt.f32 %v764_v15  ;;  %vm768_vm9 = vcmp.eq.f32.partialorder %v764_v15, inf  ;;  %v771_v30 = vand.u32 2147483648, %v764_v15  ;;  %vm770_vm10 = vcmp.eq.f32.partialorder %v764_v15, 0.0 }
 0x380   :  { %1609 = vrcp.f32 %v628_v14 }
 0x381   :  { %1611 = vrcp.f32 %v210_v56 }
 0x382   :  { %1613 = vrcp.f32 %v209_v57 }
 0x383   :  { %1615 = vpow2.f32 %v239_v13  ;;  %v1019_v13 = vld [vmem:[%s2097_s18 + $0x20] sm:$0xff] }
 0x387   :  { %v1604_v19 = vpop.eup %1603 }
 0x388   :  { %v1606_v20 = vpop.eup %1605  ;;  %v774_v22 = vmul.f32 %v1604_v19, %v765_v12 }
 0x389   :  { %v1608_v23 = vpop.eup %1607  ;;  %v795_v32 = vmul.f32 %v1606_v20, %v1881_v17  ;;  %v895_v17 = vld [vmem:[%s2093_s15] sm:$0xff] }
 0x38a   :  { %v1610_v27 = vpop.eup %1609  ;;  %v767_v28 = vmul.f32 %v1608_v23, %v764_v15  ;;  %v776_v29 = vsel %vm775_vm6, %v765_v12, %v774_v22 }
 0x38b   :  { %v779_v31 = vsel %vm777_vm7, %v778_v26, %v776_v29  ;;  %v794_v36 = vmul.f32 %v1610_v27, %v1883_v18  ;;  %v896_v18 = vld [vmem:[%s2093_s15 + $0x8] sm:$0xff]  ;;  %v1612_v58 = vpop.eup %1611  ;;  %v754_v26 = vmul.f32 1.442695, %v1905_v59 }
 0x38c   :  { %v769_v33 = vsel %vm768_vm9, %v764_v15, %v767_v28  ;;  %v793_v34 = vsel %vm791_vm8, 1.0, %v779_v31  ;;  %v1526_v43 = vpack.c.bf16 %v896_v18, %v895_v17  ;;  %v1614_v60 = vpop.eup %1613  ;;  %v216_v61 = vmul.f32 1.0614054, %v1612_v58 }
 0x38d   :  { %v772_v35 = vsel %vm770_vm10, %v771_v30, %v769_v33  ;;  %v1913_v39 = vmul.f32 %v795_v32, %v793_v34  ;;  %v215_v37 = vmul.f32 1.0614054, %v1614_v60  ;;  %v237_v15 = vmul.f32 1.442695, %v235_v11  ;;  %v1616_v27 = vpop.eup %1615  ;;  %v1022_v11 = vld [vmem:[%s2097_s18 + $0x38] sm:$0xff] }
 0x38e   :  { %v792_v40 = vsel %vm790_vm11, 1.0, %v772_v35  ;;  %1527 = vmatprep.subr.bf16.mxu1 %v1526_v43  ;;  %v218_v62 = vadd.f32 -1.4531521, %v216_v61  ;;  %v752_v28 = vmul.f32 1.442695, %v1908_v63  ;;  %v1636_v34 = vmov -1.0   ;;  %v883_v63 = vpop.permute.xlu0 %882 }
 0x38f   :  { %v1915_v41 = vmul.f32 %v794_v36, %v792_v40  ;;  %1529 = vmatpush3.bf16.msra.mxu1 %v1526_v43  ;;  %v217_v2 = vadd.f32 -1.4531521, %v215_v37  ;;  %1617 = vpow2.f32 %v237_v15  ;;  %v204_v35 = vsel %vm202_vm12, 1.0, %v1636_v34 }
 0x390   :  { %v220_v38 = vmul.f32 %v1612_v58, %v218_v62  ;;  %1619 = vpow2.f32 %v754_v26  ;;  %v203_v40 = vsel %vm201_vm13, 1.0, %v1636_v34  ;;  %vm887_vm14 = vcmp.eq.s32.totalorder %v883_v63, 1 }
 0x391   :  { %v1522_v42 = vpack.c.bf16 %v1913_v39, %v1915_v41  ;;  %v219_v3 = vmul.f32 %v1614_v60, %v217_v2  ;;  %1621 = vpow2.f32 %v752_v28 }
 0x392   :  { %v222_v4 = vadd.f32 1.4214138, %v220_v38 }
 0x393   :  { %1523 = vmatprep.subr.bf16.mxu0 %v1522_v42  ;;  %v221_v6 = vadd.f32 1.4214138, %v219_v3 }
 0x394   :  { %1525 = vmatpush3.bf16.msra.mxu0 %v1522_v42  ;;  %v224_v8 = vmul.f32 %v1612_v58, %v222_v4 }
 0x395   :  { %v223_v10 = vmul.f32 %v1614_v60, %v221_v6 }
 0x396   :  { %v226_v12 = vadd.f32 -0.28449672, %v224_v8  ;;  %v1017_v8 = vld [vmem:[%s2097_s18 + $0x10] sm:$0xff] }
 0x397   :  { %1434 = vmatmul.mubr.msk.f32.vlgmr.msra.gmra.mrb[10].mxu0 %vm347_vm1, %v1830_v45  ;;  %v1530_v45 = vpack.c.bf16 %v898_v46, %v897_v44  ;;  %v225_v14 = vadd.f32 -0.28449672, %v223_v10  ;;  %v886_v46 = vpop.permute.xlu1 %885  ;;  %v1536_v9 = vpack.c.bf16 %v1017_v8, %v1015_v7  ;;  %v1020_v10 = vld [vmem:[%s2097_s18 + $0x28] sm:$0xff] }
 0x398   :  { %v228_v16 = vmul.f32 %v1612_v58, %v226_v12  ;;  %vm888_vm15 = vcmp.eq.s32.totalorder %v886_v46, 1  ;;  %v1538_v12 = vpack.c.bf16 %v1022_v11, %v1020_v10 }
 0x399   :  { %1531 = vmatprep.subr.bf16.mxu1 %v1530_v45  ;;  %v227_v19 = vmul.f32 %v1614_v60, %v225_v14  ;;  %v1618_v29 = vpop.eup %1617  ;;  %v1021_v14 = vld [vmem:[%s2097_s18 + $0x30] sm:$0xff] }
 0x39a   :  { %1533 = vmatpush3.bf16.msra.mxu1 %v1530_v45  ;;  %v230_v20 = vadd.f32 0.2548296, %v228_v16  ;;  %v1620_v59 = vpop.eup %1619  ;;  %v1540_v15 = vpack.c.bf16 %v1021_v14, %v1019_v13  ;;  %v1637_v16 = vmov 0.0  }
 0x39b   :  { %v229_v22 = vadd.f32 0.2548296, %v227_v19  ;;  %v1622_v43 = vpop.eup %1621  ;;  %1105 = vmatprep.mubr.f32.mxu0 %v1637_v16 }
 0x39c   :  { %v232_v23 = vmul.f32 %v1612_v58, %v230_v20 }
 0x39d   :  { %v231_v24 = vmul.f32 %v1614_v60, %v229_v22 }
 0x39e   :  { %v242_v30 = vmul.f32 %v1616_v27, %v232_v23  ;;  %v989_v27 = vld [vmem:[%s2098_s17] sm:$0x1] }
 0x39f   :  { %v241_v31 = vmul.f32 %v1618_v29, %v231_v24  ;;  %v1006_v28 = vadd.f32 1.0, %v989_v27 }
 0x3a0   :  { %v244_v32 = vsub.f32 1.0, %v242_v30 }
 0x3a1   :  { %v243_v33 = vsub.f32 1.0, %v241_v31  ;;  %v1011_v29 = vrot.slane %v1006_v28, %v1798_v25 }
 0x3a2   :  { %v246_v36 = vmul.f32 %v244_v32, %v204_v35 }
 0x3a3   :  { %v245_v42 = vmul.f32 %v243_v33, %v203_v40  ;;  %v1174_v40 = vld [vmem:[%s2099_s20] sm:$0xff] }
 0x3a4   :  { %v248_v17 = vadd.f32 1.0, %v246_v36 }
 0x3a5   :  { %v247_v44 = vadd.f32 1.0, %v245_v42  ;;  %v1175_v42 = vld [vmem:[%s2099_s20 + $0x8] sm:$0xff] }
 0x3a6   :  { %v250_v54 = vmul.f32 %v248_v17, %v198_v50  ;;  %v1176_v17 = vld [vmem:[%s2099_s20 + $0x10] sm:$0xff] }
 0x3a7   :  { %v249_v56 = vmul.f32 %v247_v44, %v197_v52  ;;  %v1179_v44 = vld [vmem:[%s2099_s20 + $0x28] sm:$0xff] }
 0x3a8   :  { %v1183_v52 = vld [vmem:[%s2099_s20 + $0x48] sm:$0xff] }
 0x46a   :  { %v1435_v18 = vpop.f32.mrb[10].mxu0 }
 0x46b   :  { %v876_v45 = vmul.f32 %v1620_v59, %v1435_v18  ;;  %v864_v47 = vpop.f32.mrb[11].mxu0  ;;  %v1542_v59 = vpack.c.bf16 %v1175_v42, %v1174_v40  ;;  %v1177_v18 = vld [vmem:[%s2099_s20 + $0x18] sm:$0xff] }
 0x46c   :  { %v875_v51 = vmul.f32 %v1622_v43, %v864_v47  ;;  %v1546_v63 = vpack.c.bf16 %v1177_v18, %v1176_v17  ;;  %v1178_v43 = vld [vmem:[%s2099_s20 + $0x20] sm:$0xff]  ;;  %v1181_v47 = vld [vmem:[%s2099_s20 + $0x38] sm:$0xff] }
 0x46d   :  { %v878_v53 = vadd.f32 %v876_v45, %v1913_v39  ;;  %1543 = vmatprep.subr.bf16.mxu1 %v1542_v59  ;;  %v1550_v46 = vpack.c.bf16 %v1179_v44, %v1178_v43  ;;  %v1180_v45 = vld [vmem:[%s2099_s20 + $0x30] sm:$0xff]  ;;  %v1031_v43 = vsub.s32 1, %v1792_v21 }
 0x46e   :  { %v877_v55 = vadd.f32 %v875_v51, %v1915_v41  ;;  %v1554_v50 = vpack.c.bf16 %v1181_v47, %v1180_v45  ;;  %v1182_v51 = vld [vmem:[%s2099_s20 + $0x40] sm:$0xff] }
 0x46f   :  { %v890_v57 = vsel %vm888_vm15, %v878_v53, %v1913_v39  ;;  %v1305_v39 = vld [vmem:[%s2096_s16] ss:$0 sm:$0xff]  ;;  %v1558_v53 = vpack.c.bf16 %v1183_v52, %v1182_v51 }
 0x470   :  { %v894_v58 = vmul.f32 %v890_v57, %v250_v54  ;;  %892 = vst.msk [vmem:[%s2095_s23 + $0x8] sm:$0xff] %vm80_vm0, %v890_v57  ;;  %v889_v48 = vsel %vm887_vm14, %v877_v55, %v1915_v41  ;;  %v1184_v54 = vld [vmem:[%s2099_s20 + $0x50] sm:$0xff]  ;;  %v1185_v55 = vld [vmem:[%s2099_s20 + $0x58] sm:$0xff]  ;;  %v1186_v57 = vld [vmem:[%s2099_s20 + $0x60] sm:$0xff] }
 0x471   :  { %891 = vst.msk [vmem:[%s2095_s23] sm:$0xff] %vm80_vm0, %v889_v48  ;;  %v893_v49 = vmul.f32 %v889_v48, %v249_v56  ;;  %v1562_v56 = vpack.c.bf16 %v1185_v55, %v1184_v54 }
 0x473   :  { %1444 = vmatprep.mubr.msk.f32.mxu1 %vm80_vm0, %v893_v49  ;;  %v1188_v49 = vld [vmem:[%s2099_s20 + $0x70] sm:$0xff] }
 0x474   :  { %1445 = vmatmul.mubr.msk.f32.vlgmr.msra.gmra.mrb[2].mxu1 %vm80_vm0, %v894_v58  ;;  %v1187_v58 = vld [vmem:[%s2099_s20 + $0x68] sm:$0xff] }
 0x475   :  { %1545 = vmatpush3.bf16.msra.mxu1 %v1542_v59  ;;  %v1566_v48 = vpack.c.bf16 %v1187_v58, %v1186_v57 }
 0x476   :  { %1547 = vmatprep.subr.bf16.mxu1 %v1546_v63 }
 0x479   :  { %1549 = vmatpush3.bf16.msra.mxu1 %v1546_v63 }
 0x47a   :  { %1551 = vmatprep.subr.bf16.mxu1 %v1550_v46 }
 0x47d   :  { %1553 = vmatpush3.bf16.msra.mxu1 %v1550_v46 }
 0x47e   :  { %1555 = vmatprep.subr.bf16.mxu1 %v1554_v50 }
 0x481   :  { %1557 = vmatpush3.bf16.msra.mxu1 %v1554_v50 }
 0x482   :  { %1559 = vmatprep.subr.bf16.mxu1 %v1558_v53 }
 0x485   :  { %1561 = vmatpush3.bf16.msra.mxu1 %v1558_v53 }
 0x486   :  { %1563 = vmatprep.subr.bf16.mxu1 %v1562_v56 }
 0x489   :  { %1565 = vmatpush3.bf16.msra.mxu1 %v1562_v56 }
 0x48a   :  { %1567 = vmatprep.subr.bf16.mxu1 %v1566_v48 }
 0x48d   :  { %1569 = vmatpush3.bf16.msra.mxu1 %v1566_v48 }
 0x547   :  { %v1446_v60 = vpop.f32.mrb[2].mxu1 }
 0x548   :  { %v984_v61 = vadd.f32 %v1446_v60, %v1305_v39  ;;  %v978_v37 = vpop.f32.mrb[3].mxu1 }
 0x549   :  { %v979_v62 = vadd.f32 %v1305_v39, %v978_v37  ;;  %v1189_v39 = vld [vmem:[%s2099_s20 + $0x78] sm:$0xff] }
 0x54a   :  { %v1968_v41 = vadd.f32 %v984_v61, %v1766_v1  ;;  %v1016_v1 = vld [vmem:[%s2097_s18 + $0x8] sm:$0xff]  ;;  %v1570_v60 = vpack.c.bf16 %v1189_v39, %v1188_v49  ;;  %v1023_v61 = vld [vmem:[%s2100_s19] sm:$0x3] }
 0x54b   :  { %v1971_v2 = vadd.f32 %v979_v62, %v1761_v0  ;;  %v1018_v0 = vld [vmem:[%s2097_s18 + $0x18] sm:$0xff]  ;;  %v1028_v37 = vrot.slane %v1023_v61, %v1798_v25  ;;  %v1032_v52 = vrot.slane %v1023_v61, %v1031_v43  ;;  %v1310_v61 = vld [vmem:[%s2101_s21] ss:$0 sm:$0xff] }
 0x54c   :  { %v991_v4 = vmul.f32 %v1968_v41, %v1968_v41  ;;  %v1534_v6 = vpack.c.bf16 %v1018_v0, %v1016_v1  ;;  %1571 = vmatprep.subr.bf16.mxu1 %v1570_v60 }
 0x54d   :  { %v990_v38 = vmul.f32 %v1971_v2, %v1971_v2  ;;  %1573 = vmatpush3.bf16.msra.mxu1 %v1570_v60 }
 0x54e   :  { %v995_v5 = vsel %vm80_vm0, %v991_v4, 0.0  ;;  %1535 = vmatprep.subr.bf16.mxu0 %v1534_v6 }
 0x54f   :  { %v992_v3 = vsel %vm80_vm0, %v990_v38, 0.0  ;;  %1537 = vmatpush1.bf16.msra.mxu0 %v1536_v9 }
 0x550   :  { %993 = vadd.xlane.f32.xlu1 %v992_v3  ;;  %1539 = vmatprep.subr.bf16.mxu0 %v1538_v12 }
 0x553   :  { %1541 = vmatpush1.bf16.msra.mxu0 %v1540_v15 }
 0x554   :  { %996 = vadd.xlane.f32.xlu1 %v995_v5 }
 0x5dd   :  { %v994_v19 = vpop.xlane.xlu1 %993 }
 0x5de   :  { %v998_v20 = vmul.f32 0.03125, %v994_v19 }
 0x5e0   :  { %v1000_v22 = vadd.f32 1e-06, %v998_v20 }
 0x5e1   :  { %v997_v23 = vpop.xlane.xlu1 %996 }
 0x5e2   :  { %1623 = vrsqrt.f32 %v1000_v22  ;;  %v999_v24 = vmul.f32 0.03125, %v997_v23 }
 0x5e4   :  { %v1001_v26 = vadd.f32 1e-06, %v999_v24 }
 0x5e6   :  { %1625 = vrsqrt.f32 %v1001_v26 }
 0x5ec   :  { %v1624_v30 = vpop.eup %1623 }
 0x5ed   :  { %v1004_v31 = vmul.f32 %v1624_v30, %v1971_v2 }
 0x5ef   :  { %v1013_v32 = vmul.f32 %v1011_v29, %v1004_v31 }
 0x5f0   :  { %v1626_v33 = vpop.eup %1625 }
 0x5f1   :  { %1308 = vmatmul.mubr.msk.f32.vlgmr.msra.gmra.mrb[12].mxu0 %vm80_vm0, %v1013_v32  ;;  %v1005_v35 = vmul.f32 %v1626_v33, %v1968_v41 }
 0x5f2   :  { %1111 = vmatprep.mubr.f32.mxu0 %v1637_v16 }
 0x5f3   :  { %v1014_v36 = vmul.f32 %v1011_v29, %v1005_v35 }
 0x5f5   :  { %1309 = vmatmul.mubr.msk.f32.gmra.mrb[14].mxu0 %vm80_vm0, %v1014_v36 }
 0x6c4   :  { %v1107_v62 = vpop.f32.mrb[12].mxu0 }
 0x6c5   :  { %v1108_v38 = vadd.f32 %v1107_v62, %v1028_v37  ;;  %v1109_v3 = vpop.f32.mrb[13].mxu0 }
 0x6c6   :  { %v1110_v58 = vadd.f32 %v1109_v3, %v1032_v52 }
 0x6c7   :  { %v1120_v4 = vmul.f32 0.70710677, %v1108_v38  ;;  %v1118_v54 = vmul.f32 0.5, %v1108_v38 }
 0x6c8   :  { %v1113_v5 = vpop.f32.mrb[14].mxu0 }
 0x6c9   :  { %v1126_v1 = vand.u32 2147483647, %v1120_v4  ;;  %v1114_v0 = vadd.f32 %v1113_v5, %v1028_v37  ;;  %v1115_v6 = vpop.f32.mrb[15].mxu0  ;;  %vm1122_vm1 = vcmp.ge.f32.partialorder %v1120_v4, 0.0 }
 0x6ca   :  { %v1124_v50 = vsel %vm1122_vm1, 1.0, %v1636_v34  ;;  %v1116_v37 = vadd.f32 %v1115_v6, %v1032_v52 }
 0x6cb   :  { %v1128_v7 = vmul.f32 0.3275911, %v1126_v1  ;;  %v1121_v8 = vmul.f32 0.70710677, %v1114_v0  ;;  %v1154_v13 = vsub.f32 0.0, %v1126_v1  ;;  %v1119_v21 = vmul.f32 0.5, %v1114_v0 }
 0x6cd   :  { %v1130_v9 = vadd.f32 1.0, %v1128_v7  ;;  %v1127_v10 = vand.u32 2147483647, %v1121_v8  ;;  %v1156_v15 = vmul.f32 %v1154_v13, %v1126_v1  ;;  %vm1123_vm2 = vcmp.ge.f32.partialorder %v1121_v8, 0.0 }
 0x6ce   :  { %v1125_v57 = vsel %vm1123_vm2, 1.0, %v1636_v34 }
 0x6cf   :  { %1627 = vrcp.f32 %v1130_v9  ;;  %v1129_v11 = vmul.f32 0.3275911, %v1127_v10  ;;  %v1155_v25 = vsub.f32 0.0, %v1127_v10  ;;  %v1158_v22 = vmul.f32 1.442695, %v1156_v15 }
 0x6d1   :  { %v1131_v12 = vadd.f32 1.0, %v1129_v11  ;;  %v1157_v23 = vmul.f32 %v1155_v25, %v1127_v10 }
 0x6d3   :  { %1629 = vrcp.f32 %v1131_v12  ;;  %v1160_v29 = vmul.f32 1.442695, %v1157_v23 }
 0x6d4   :  { %1631 = vpow2.f32 %v1158_v22 }
 0x6d5   :  { %1633 = vpow2.f32 %v1160_v29 }
 0x6d9   :  { %v1628_v14 = vpop.eup %1627 }
 0x6da   :  { %v1136_v16 = vmul.f32 1.0614054, %v1628_v14 }
 0x6dc   :  { %v1138_v19 = vadd.f32 -1.4531521, %v1136_v16 }
 0x6dd   :  { %v1630_v20 = vpop.eup %1629 }
 0x6de   :  { %v1140_v24 = vmul.f32 %v1628_v14, %v1138_v19  ;;  %v1137_v26 = vmul.f32 1.0614054, %v1630_v20  ;;  %v1632_v18 = vpop.eup %1631 }
 0x6df   :  { %v1634_v47 = vpop.eup %1633 }
 0x6e0   :  { %v1142_v27 = vadd.f32 1.4214138, %v1140_v24  ;;  %v1139_v28 = vadd.f32 -1.4531521, %v1137_v26 }
 0x6e2   :  { %v1144_v30 = vmul.f32 %v1628_v14, %v1142_v27  ;;  %v1141_v31 = vmul.f32 %v1630_v20, %v1139_v28 }
 0x6e4   :  { %v1146_v32 = vadd.f32 -0.28449672, %v1144_v30  ;;  %v1143_v33 = vadd.f32 1.4214138, %v1141_v31 }
 0x6e6   :  { %v1148_v35 = vmul.f32 %v1628_v14, %v1146_v32  ;;  %v1145_v36 = vmul.f32 %v1630_v20, %v1143_v33 }
 0x6e8   :  { %v1150_v40 = vadd.f32 0.2548296, %v1148_v35  ;;  %v1147_v42 = vadd.f32 -0.28449672, %v1145_v36 }
 0x6ea   :  { %v1152_v59 = vmul.f32 %v1628_v14, %v1150_v40  ;;  %v1149_v17 = vmul.f32 %v1630_v20, %v1147_v42 }
 0x6ec   :  { %v1162_v63 = vmul.f32 %v1632_v18, %v1152_v59  ;;  %v1151_v44 = vadd.f32 0.2548296, %v1149_v17 }
 0x6ee   :  { %v1164_v46 = vsub.f32 1.0, %v1162_v63  ;;  %v1153_v45 = vmul.f32 %v1630_v20, %v1151_v44 }
 0x6f0   :  { %v1166_v51 = vmul.f32 %v1164_v46, %v1124_v50  ;;  %v1163_v53 = vmul.f32 %v1634_v47, %v1153_v45 }
 0x6f2   :  { %v1168_v55 = vadd.f32 1.0, %v1166_v51  ;;  %v1165_v56 = vsub.f32 1.0, %v1163_v53 }
 0x6f4   :  { %v1170_v48 = vmul.f32 %v1168_v55, %v1118_v54  ;;  %v1167_v49 = vmul.f32 %v1165_v56, %v1125_v57 }
 0x6f6   :  { %v1172_v39 = vmul.f32 %v1170_v48, %v1110_v58  ;;  %v1169_v60 = vadd.f32 1.0, %v1167_v49 }
 0x6f8   :  { %v1171_v62 = vmul.f32 %v1169_v60, %v1119_v21  ;;  %1479 = vmatprep.mubr.f32.mxu1 %v1172_v39 }
 0x6fa   :  { %v1173_v4 = vmul.f32 %v1171_v62, %v1116_v37 }
 0x6fc   :  { %1480 = vmatmul.mubr.f32.vlgmr.msra.gmra.mrb[4].mxu1 %v1173_v4 }
 0x7cf   :  { %v1481_v38 = vpop.f32.mrb[4].mxu1 }
 0x7d0   :  { %v1269_v5 = vadd.f32 %v1481_v38, %v1310_v61  ;;  %v1263_v1 = vpop.f32.mrb[5].mxu1 }
 0x7d1   :  { %v1264_v7 = vadd.f32 %v1310_v61, %v1263_v1 }
 0x7d2   :  { %v1273_v34 = vadd.f32 %v1269_v5, %v1968_v41 }
 0x7d3   :  { %v1272_v3 = vadd.f32 %v1264_v7, %v1971_v2 }
 0x7d4   :  { %1275 = vst.msk [vmem:[%s2102_s22 + $0x8] sm:$0xff] %vm80_vm0, %v1273_v34 }
 0x7d5   :  { %1274 = vst.msk [vmem:[%s2102_s22] sm:$0xff] %vm80_vm0, %v1272_v3 }

// kernel: tapnext_forward.8
= control target key start
LH: loop header
LB: loop body
LE: loop exit
PB: predicated region body
PF: predicated region fallthrough
CT: control target
= control target key end

     0   :  { %vm63_vm0 = vcmask 261120   ;;  %vm367_vm1 = vcmask 130048   ;;  %s1832_s25 = smov 16   ;;  %s2238_s0 = inlined_call_operand.vmem [shape: f32[16,32], index: 0, kind: input, shape index: {}]   ;;  %s2239_s4 = inlined_call_operand.vmem [shape: f32[64,16], index: 4, kind: input, shape index: {}]   ;;  %s2240_s6 = inlined_call_operand.vmem [shape: f32[64,16], index: 6, kind: input, shape index: {}]   ;;  %s2241_s2 = inlined_call_operand.vmem [shape: f32[1,32], index: 2, kind: input, shape index: {}]   ;;  %s2242_s3 = inlined_call_operand.vmem [shape: f32[1,32], index: 3, kind: input, shape index: {}]   ;;  %s2243_s8 = inlined_call_operand.vmem [shape: f32[64,16], index: 8, kind: input, shape index: {}]   ;;  %s2244_s5 = inlined_call_operand.vmem [shape: f32[2,16], index: 5, kind: input, shape index: {}]   ;;  %s2245_s7 = inlined_call_operand.vmem [shape: f32[2,16], index: 7, kind: input, shape index: {}]   ;;  %s2246_s9 = inlined_call_operand.vmem [shape: f32[2,16], index: 9, kind: input, shape index: {}]   ;;  %s2247_s1 = inlined_call_operand.vmem [shape: f32[16,16], index: 1, kind: input, shape index: {}]   ;;  %s2248_s10 = inlined_call_operand.vmem [shape: f32[32,32], index: 10, kind: input, shape index: {}]   ;;  %s2249_s11 = inlined_call_operand.vmem [shape: f32[1,32], index: 11, kind: input, shape index: {}]   ;;  %s2250_s14 = inlined_call_operand.vmem [shape: f32[32,128], index: 14, kind: input, shape index: {}]   ;;  %s2251_s12 = inlined_call_operand.vmem [shape: f32[1,32], index: 12, kind: input, shape index: {}]   ;;  %s2252_s13 = inlined_call_operand.vmem [shape: f32[1,32], index: 13, kind: input, shape index: {}]   ;;  %s2253_s16 = inlined_call_operand.vmem [shape: f32[128,32], index: 16, kind: input, shape index: {}]   ;;  %s2254_s15 = inlined_call_operand.vmem [shape: f32[1,128], index: 15, kind: input, shape index: {}]   ;;  %s2255_s17 = inlined_call_operand.vmem [shape: f32[1,32], index: 17, kind: input, shape index: {}]   ;;  %s2256_s18 = inlined_call_operand.vmem [shape: f32[16,32], index: 18, kind: output, shape index: {}]  }
   0x1   :  { %2260 = sst [smem:[#allocation2_spill]] %s2238_s0  ;;  %v1408_v30 = vld [vmem:[%s2241_s2] ss:$0 sm:$0xff]  ;;  %v284_v43 = vld [vmem:[%s2243_s8 + $0x8] sm:$0xff]  ;;  %v285_v45 = vld [vmem:[%s2243_s8 + $0x10] sm:$0xff] }
   0x2   :  { %2261 = sst [smem:[#allocation3_spill]] %s2239_s4  ;;  %s2263_s29 = sld [smem:[#allocation2_spill]]  ;;  %v1409_v32 = vld [vmem:[%s2242_s3] ss:$0 sm:$0xff]  ;;  %v286_v46 = vld [vmem:[%s2243_s8 + $0x18] sm:$0xff]  ;;  %vm2020_vm2 = vmpackc.low %vm367_vm1, %vm367_vm1 }
   0x3   :  { %2262 = sst [smem:[#allocation4_spill]] %s2240_s6  ;;  %s2264_s20 = sld [smem:[#allocation3_spill]]  ;;  %v283_v42 = vld [vmem:[%s2243_s8] sm:$0xff]  ;;  %v1702_v47 = vpack.c.bf16 %v286_v46, %v285_v45 }
   0x4   :  { %s2265_s28 = sld [smem:[#allocation4_spill]]  ;;  %v1698_v44 = vpack.c.bf16 %v284_v43, %v283_v42  ;;  %v1410_v48 = vld [vmem:[%s2244_s5] ss:$0 sm:$0xff] }
   0x5   :  { %v1413_v52 = vld [vmem:[%s2245_s7] ss:$0 sm:$0xff] }
   0x6   :  { %v1416_v62 = vld [vmem:[%s2246_s9] ss:$0 sm:$0xff] }
   0x8   :  { %v1932_v0 = vld [vmem:[%s2263_s29] sm:$0xff]  ;;  %v1937_v1 = vld [vmem:[%s2263_s29 + $0x8] sm:$0xff] }
   0x9   :  { %v64_v2 = vsel %vm63_vm0, %v1932_v0, 0.0  ;;  %v67_v3 = vsel %vm63_vm0, %v1937_v1, 0.0  ;;  %v109_v14 = vld [vmem:[%s2264_s20] sm:$0xff]  ;;  %v110_v15 = vld [vmem:[%s2264_s20 + $0x8] sm:$0xff]  ;;  %v111_v17 = vld [vmem:[%s2264_s20 + $0x10] sm:$0xff] }
   0xa   :  { %65 = vadd.xlane.f32.xlu0 %v64_v2  ;;  %v1682_v16 = vpack.c.bf16 %v110_v15, %v109_v14  ;;  %v112_v18 = vld [vmem:[%s2264_s20 + $0x18] sm:$0xff]  ;;  %v199_v20 = vld [vmem:[%s2265_s28] sm:$0xff]  ;;  %v200_v21 = vld [vmem:[%s2265_s28 + $0x8] sm:$0xff] }
   0xb   :  { %v1686_v19 = vpack.c.bf16 %v112_v18, %v111_v17  ;;  %v1690_v22 = vpack.c.bf16 %v200_v21, %v199_v20  ;;  %v201_v37 = vld [vmem:[%s2265_s28 + $0x10] sm:$0xff]  ;;  %v202_v38 = vld [vmem:[%s2265_s28 + $0x18] sm:$0xff]  ;;  %v562_v56 = vld [vmem:[%s2264_s20 + $0x20] sm:$0xff] }
   0xc   :  { %1683 = vmatprep.subr.bf16.mxu1 %v1682_v16  ;;  %v1694_v41 = vpack.c.bf16 %v202_v38, %v201_v37  ;;  %v563_v57 = vld [vmem:[%s2264_s20 + $0x28] sm:$0xff]  ;;  %v733_v14 = vld [vmem:[%s2243_s8 + $0x38] sm:$0xff]  ;;  %v2066_v20 = vld [vmem:[%s2247_s1] sm:$0xff] }
   0xd   :  { %1685 = vmatpush3.bf16.msra.mxu1 %v1682_v16  ;;  %v1716_v61 = vpack.c.bf16 %v563_v57, %v562_v56  ;;  %v2061_v17 = vld [vmem:[%s2247_s1 + $0x8] sm:$0xff] }
   0xe   :  { %68 = vadd.xlane.f32.xlu0 %v67_v3  ;;  %1687 = vmatprep.subr.bf16.mxu1 %v1686_v19 }
  0x11   :  { %1689 = vmatpush3.bf16.msra.mxu1 %v1686_v19 }
  0x12   :  { %1691 = vmatprep.subr.bf16.mxu1 %v1690_v22 }
  0x97   :  { %v66_v4 = vpop.xlane.xlu0 %65 }
  0x98   :  { %v71_v5 = vmul.f32 0.03125, %v66_v4  ;;  %v564_v4 = vld [vmem:[%s2264_s20 + $0x30] sm:$0xff] }
  0x9a   :  { %v73_v6 = vsub.f32 %v1932_v0, %v71_v5  ;;  %v565_v5 = vld [vmem:[%s2264_s20 + $0x38] sm:$0xff] }
  0x9b   :  { %v69_v7 = vpop.xlane.xlu0 %68 }
  0x9c   :  { %v72_v8 = vmul.f32 0.03125, %v69_v7  ;;  %v75_v9 = vmul.f32 %v73_v6, %v73_v6 }
  0x9e   :  { %v74_v10 = vsub.f32 %v1937_v1, %v72_v8  ;;  %v77_v11 = vsel %vm63_vm0, %v75_v9, 0.0  ;;  %v1720_v9 = vpack.c.bf16 %v565_v5, %v564_v4 }
  0x9f   :  { %78 = vadd.xlane.f32.xlu1 %v77_v11  ;;  %v731_v11 = vld [vmem:[%s2243_s8 + $0x28] sm:$0xff] }
  0xa0   :  { %v76_v12 = vmul.f32 %v74_v10, %v74_v10 }
  0xa2   :  { %v80_v13 = vsel %vm63_vm0, %v76_v12, 0.0 }
  0xa3   :  { %81 = vadd.xlane.f32.xlu1 %v80_v13  ;;  %v732_v13 = vld [vmem:[%s2243_s8 + $0x30] sm:$0xff] }
  0xa4   :  { %v1736_v15 = vpack.c.bf16 %v733_v14, %v732_v13 }
 0x12c   :  { %v79_v23 = vpop.xlane.xlu1 %78 }
 0x12d   :  { %v83_v24 = vmul.f32 0.03125, %v79_v23 }
 0x12f   :  { %v85_v25 = vadd.f32 1e-05, %v83_v24 }
 0x130   :  { %v82_v26 = vpop.xlane.xlu1 %81 }
 0x131   :  { %1800 = vrsqrt.f32 %v85_v25  ;;  %v84_v27 = vmul.f32 0.03125, %v82_v26  ;;  %v1425_v26 = vld [vmem:[%s2244_s5 + $0x1] ss:$0 sm:$0xff] }
 0x133   :  { %v86_v28 = vadd.f32 1e-05, %v84_v27 }
 0x135   :  { %1802 = vrsqrt.f32 %v86_v28 }
 0x13b   :  { %v1801_v29 = vpop.eup %1800 }
 0x13c   :  { %v89_v31 = vmul.f32 %v1801_v29, %v73_v6 }
 0x13e   :  { %v97_v33 = vmul.f32 %v1408_v30, %v89_v31 }
 0x13f   :  { %v1803_v34 = vpop.eup %1802 }
 0x140   :  { %v1971_v35 = vadd.f32 %v1409_v32, %v97_v33  ;;  %v90_v36 = vmul.f32 %v1803_v34, %v74_v10  ;;  %v730_v10 = vld [vmem:[%s2243_s8 + $0x20] sm:$0xff] }
 0x141   :  { %v1732_v12 = vpack.c.bf16 %v731_v11, %v730_v10 }
 0x142   :  { %v98_v39 = vmul.f32 %v1408_v30, %v90_v36  ;;  %1539 = vmatprep.mubr.msk.f32.mxu1 %vm63_vm0, %v1971_v35  ;;  %v1431_v30 = vld [vmem:[%s2246_s9 + $0x1] ss:$0 sm:$0xff] }
 0x144   :  { %v1981_v40 = vadd.f32 %v1409_v32, %v98_v39 }
 0x146   :  { %1540 = vmatmul.mubr.msk.f32.vlgmr.msra.gmra.mrb[0].mxu1 %vm63_vm0, %v1981_v40 }
 0x147   :  { %1693 = vmatpush3.bf16.msra.mxu1 %v1690_v22  ;;  %1550 = vmatprep.mubr.msk.f32.mxu1 %vm63_vm0, %v1971_v35 }
 0x148   :  { %1695 = vmatprep.subr.bf16.mxu1 %v1694_v41 }
 0x14b   :  { %1697 = vmatpush3.bf16.msra.mxu1 %v1694_v41 }
 0x14c   :  { %1699 = vmatprep.subr.bf16.mxu1 %v1698_v44 }
 0x14e   :  { %1551 = vmatmul.mubr.msk.f32.vlgmr.msra.gmra.mrb[2].mxu1 %vm63_vm0, %v1981_v40 }
 0x14f   :  { %1701 = vmatpush3.bf16.msra.mxu1 %v1698_v44  ;;  %1561 = vmatprep.mubr.msk.f32.mxu1 %vm63_vm0, %v1971_v35 }
 0x150   :  { %1703 = vmatprep.subr.bf16.mxu1 %v1702_v47 }
 0x153   :  { %1705 = vmatpush3.bf16.msra.mxu1 %v1702_v47 }
 0x156   :  { %1562 = vmatmul.mubr.msk.f32.vlgmr.msra.gmra.mrb[4].mxu1 %vm63_vm0, %v1981_v40 }
 0x219   :  { %v1541_v49 = vpop.f32.mrb[0].mxu1 }
 0x21a   :  { %v190_v50 = vpop.f32.mrb[1].mxu1  ;;  %v196_v7 = vadd.f32 %v1541_v49, %v1410_v48  ;;  %v647_v49 = vld [vmem:[%s2265_s28 + $0x28] sm:$0xff] }
 0x21b   :  { %v191_v51 = vadd.f32 %v1410_v48, %v190_v50  ;;  %v646_v48 = vld [vmem:[%s2265_s28 + $0x20] sm:$0xff] }
 0x21c   :  { %v1724_v50 = vpack.c.bf16 %v647_v49, %v646_v48 }
 0x21d   :  { %1568 = vmatprep.mubr.msk.f32.mxu1 %vm367_vm1, %v191_v51 }
 0x221   :  { %v1552_v53 = vpop.f32.mrb[2].mxu1 }
 0x222   :  { %v280_v54 = vadd.f32 %v1552_v53, %v1413_v52  ;;  %v274_v55 = vpop.f32.mrb[3].mxu1 }
 0x223   :  { %v275_v58 = vadd.f32 %v1413_v52, %v274_v55  ;;  %v649_v55 = vld [vmem:[%s2265_s28 + $0x38] sm:$0xff] }
 0x225   :  { %v1706_v60 = vpack.c.bf16 %v280_v54, %v275_v58  ;;  %v648_v54 = vld [vmem:[%s2265_s28 + $0x30] sm:$0xff] }
 0x227   :  { %1708 = vmatprep.subr.msk.bf16.mxu1 %vm2020_vm2, %v1706_v60 }
 0x228   :  { %1711 = vmatpush3.bf16.xpose.msk.msra.mxu1 %vm2020_vm2, %v1706_v60  ;;  %v1728_v60 = vpack.c.bf16 %v649_v55, %v648_v54 }
 0x229   :  { %v1563_v63 = vpop.f32.mrb[4].mxu1  ;;  %1717 = vmatprep.subr.bf16.mxu1 %v1716_v61 }
 0x22a   :  { %v364_v2 = vadd.f32 %v1563_v63, %v1416_v62  ;;  %v358_v3 = vpop.f32.mrb[5].mxu1 }
 0x22b   :  { %v359_v6 = vadd.f32 %v1416_v62, %v358_v3 }
 0x22d   :  { %v1712_v8 = vpack.c.bf16 %v364_v2, %v359_v6  ;;  %v1428_v2 = vld [vmem:[%s2245_s7 + $0x1] ss:$0 sm:$0xff] }
 0x22f   :  { %1569 = vmatmul.mubr.msk.f32.vlgmr.msra.gmra.mrb[6].mxu1 %vm367_vm1, %v196_v7  ;;  %1713 = vmatprep.subr.bf16.mxu0 %v1712_v8 }
 0x230   :  { %1715 = vmatpush3.bf16.msra.mxu0 %v1712_v8  ;;  %1719 = vmatpush3.bf16.msra.mxu1 %v1716_v61 }
 0x231   :  { %1586 = vmatprep.mubr.msk.f32.mxu1 %vm63_vm0, %v1971_v35  ;;  %1721 = vmatprep.subr.bf16.mxu1 %v1720_v9 }
 0x232   :  { %1725 = vmatprep.subr.bf16.mxu0 %v1724_v50 }
 0x234   :  { %1723 = vmatpush3.bf16.msra.mxu1 %v1720_v9 }
 0x235   :  { %1733 = vmatprep.subr.bf16.mxu1 %v1732_v12 }
 0x237   :  { %1587 = vmatmul.mubr.msk.f32.vlgmr.msra.gmra.mrb[8].mxu1 %vm63_vm0, %v1981_v40 }
 0x238   :  { %1735 = vmatpush3.bf16.msra.mxu1 %v1732_v12  ;;  %1608 = vmatprep.mubr.msk.f32.mxu1 %vm63_vm0, %v1971_v35 }
 0x239   :  { %1737 = vmatprep.subr.bf16.mxu1 %v1736_v15 }
 0x23c   :  { %1739 = vmatpush3.bf16.msra.mxu1 %v1736_v15 }
 0x23f   :  { %1609 = vmatmul.mubr.msk.f32.vlgmr.msra.gmra.mrb[10].mxu1 %vm63_vm0, %v1981_v40 }
 0x302   :  { %v1570_v16 = vpop.f32.mrb[6].mxu1 }
 0x303   :  { %v456_v18 = vmul.f32 0.25, %v1570_v16  ;;  %v446_v19 = vpop.f32.mrb[7].mxu1 }
 0x304   :  { %v455_v21 = vmul.f32 0.25, %v446_v19 }
 0x305   :  { %v458_v22 = vadd.f32 %v456_v18, %v2061_v17 }
 0x306   :  { %v457_v23 = vadd.f32 %v455_v21, %v2066_v20 }
 0x307   :  { %v462_v24 = vsel %vm367_vm1, %v458_v22, -inf }
 0x308   :  { %463 = vmax.xlane.f32.xlu1 %v462_v24  ;;  %v459_v25 = vsel %vm367_vm1, %v457_v23, -inf }
 0x309   :  { %460 = vmax.xlane.f32.xlu0 %v459_v25 }
 0x30a   :  { %v1588_v27 = vpop.f32.mrb[8].mxu1 }
 0x30b   :  { %v643_v28 = vadd.f32 %v1588_v27, %v1425_v26  ;;  %v637_v29 = vpop.f32.mrb[9].mxu1 }
 0x30c   :  { %v638_v61 = vadd.f32 %v1425_v26, %v637_v29  ;;  %v1018_v29 = vld [vmem:[%s2248_s10] sm:$0xff] }
 0x312   :  { %v1610_v31 = vpop.f32.mrb[10].mxu1 }
 0x313   :  { %v811_v32 = vadd.f32 %v1610_v31, %v1431_v30  ;;  %v805_v33 = vpop.f32.mrb[11].mxu1  ;;  %v1020_v31 = vld [vmem:[%s2248_s10 + $0x10] sm:$0xff] }
 0x314   :  { %v806_v34 = vadd.f32 %v1431_v30, %v805_v33  ;;  %v1019_v30 = vld [vmem:[%s2248_s10 + $0x8] sm:$0xff]  ;;  %v1021_v33 = vld [vmem:[%s2248_s10 + $0x18] sm:$0xff] }
 0x316   :  { %v1746_v36 = vpack.c.bf16 %v811_v32, %v806_v34  ;;  %v1750_v32 = vpack.c.bf16 %v1019_v30, %v1018_v29  ;;  %v1754_v34 = vpack.c.bf16 %v1021_v33, %v1020_v31  ;;  %v1310_v30 = vld [vmem:[%s2253_s16 + $0x40] sm:$0xff]  ;;  %v1311_v31 = vld [vmem:[%s2253_s16 + $0x48] sm:$0xff]  ;;  %v1312_v33 = vld [vmem:[%s2253_s16 + $0x50] sm:$0xff] }
 0x318   :  { %1747 = vmatprep.subr.bf16.mxu1 %v1746_v36 }
 0x319   :  { %1749 = vmatpush3.bf16.msra.mxu1 %v1746_v36 }
 0x395   :  { %v464_v37 = vpop.xlane.xlu1 %463 }
 0x396   :  { %v466_v38 = vsub.f32 %v458_v22, %v464_v37  ;;  %v461_v39 = vpop.xlane.xlu0 %460 }
 0x397   :  { %v465_v41 = vsub.f32 %v457_v23, %v461_v39 }
 0x398   :  { %v469_v42 = vmul.f32 1.442695, %v466_v38 }
 0x399   :  { %v467_v43 = vmul.f32 1.442695, %v465_v41 }
 0x39a   :  { %1804 = vpow2.f32 %v469_v42 }
 0x39b   :  { %1806 = vpow2.f32 %v467_v43  ;;  %v1440_v43 = vld [vmem:[%s2249_s11] ss:$0 sm:$0xff] }
 0x3a4   :  { %v1805_v44 = vpop.eup %1804 }
 0x3a5   :  { %v1807_v45 = vpop.eup %1806  ;;  %v474_v46 = vsel %vm367_vm1, %v1805_v44, 0.0 }
 0x3a6   :  { %475 = vadd.xlane.f32.xlu1 %v474_v46  ;;  %v471_v47 = vsel %vm367_vm1, %v1807_v45, 0.0 }
 0x3a7   :  { %472 = vadd.xlane.f32.xlu0 %v471_v47 }
 0x433   :  { %v476_v51 = vpop.xlane.xlu1 %475 }
 0x434   :  { %1808 = vrcp.f32 %v476_v51  ;;  %v473_v52 = vpop.xlane.xlu0 %472 }
 0x435   :  { %1810 = vrcp.f32 %v473_v52 }
 0x43e   :  { %v1809_v53 = vpop.eup %1808 }
 0x43f   :  { %v1811_v56 = vpop.eup %1810  ;;  %v480_v58 = vmul.f32 %v1809_v53, %v1805_v44 }
 0x440   :  { %v478_v57 = vmul.f32 %v1811_v56, %v1807_v45 }
 0x442   :  { %1575 = vmatprep.mubr.msk.f32.mxu0 %vm367_vm1, %v478_v57 }
 0x443   :  { %1576 = vmatmul.mubr.msk.f32.vlgmr.msra.gmra.mrb[0].mxu0 %vm367_vm1, %v480_v58 }
 0x444   :  { %1727 = vmatpush3.bf16.msra.mxu0 %v1724_v50  ;;  %1597 = vmatprep.mubr.msk.f32.mxu0 %vm63_vm0, %v1971_v35 }
 0x445   :  { %1729 = vmatprep.subr.bf16.mxu0 %v1728_v60 }
 0x448   :  { %1731 = vmatpush3.bf16.msra.mxu0 %v1728_v60 }
 0x44b   :  { %1598 = vmatmul.mubr.msk.f32.vlgmr.msra.gmra.mrb[2].mxu0 %vm63_vm0, %v1981_v40 }
 0x44c   :  { %1615 = vmatprep.mubr.msk.f32.mxu0 %vm367_vm1, %v638_v61  ;;  %v1156_v61 = vld [vmem:[%s2250_s14] sm:$0xff] }
 0x516   :  { %v2099_v62 = vpop.f32.mrb[0].mxu0 }
 0x517   :  { %v2101_v63 = vpop.f32.mrb[1].mxu0 }
 0x51e   :  { %v1599_v3 = vpop.f32.mrb[2].mxu0 }
 0x51f   :  { %v727_v4 = vadd.f32 %v1599_v3, %v1428_v2  ;;  %v721_v5 = vpop.f32.mrb[3].mxu0  ;;  %v1159_v3 = vld [vmem:[%s2250_s14 + $0x18] sm:$0xff] }
 0x520   :  { %v722_v35 = vadd.f32 %v1428_v2, %v721_v5  ;;  %v1158_v2 = vld [vmem:[%s2250_s14 + $0x10] sm:$0xff] }
 0x522   :  { %v1740_v6 = vpack.c.bf16 %v727_v4, %v722_v35  ;;  %v1762_v4 = vpack.c.bf16 %v1159_v3, %v1158_v2 }
 0x524   :  { %1742 = vmatprep.subr.msk.bf16.mxu0 %vm2020_vm2, %v1740_v6 }
 0x525   :  { %1745 = vmatpush3.bf16.xpose.msk.msra.mxu0 %vm2020_vm2, %v1740_v6 }
 0x526   :  { %1751 = vmatprep.subr.bf16.mxu0 %v1750_v32 }
 0x52c   :  { %1616 = vmatmul.mubr.msk.f32.vlgmr.msra.gmra.mrb[4].mxu0 %vm367_vm1, %v643_v28 }
 0x52d   :  { %1753 = vmatpush3.bf16.msra.mxu0 %v1750_v32  ;;  %v1782_v32 = vpack.c.bf16 %v1311_v31, %v1310_v30 }
 0x52e   :  { %1755 = vmatprep.subr.bf16.mxu0 %v1754_v34 }
 0x531   :  { %1757 = vmatpush3.bf16.msra.mxu0 %v1754_v34  ;;  %v1313_v34 = vld [vmem:[%s2253_s16 + $0x58] sm:$0xff] }
 0x5ff   :  { %v1617_v40 = vpop.f32.mrb[4].mxu0 }
 0x600   :  { %v902_v7 = vmul.f32 0.25, %v1617_v40  ;;  %v892_v8 = vpop.f32.mrb[5].mxu0 }
 0x601   :  { %v901_v9 = vmul.f32 0.25, %v892_v8 }
 0x602   :  { %v904_v10 = vadd.f32 %v902_v7, %v2061_v17 }
 0x603   :  { %v903_v11 = vadd.f32 %v901_v9, %v2066_v20 }
 0x604   :  { %v908_v12 = vsel %vm367_vm1, %v904_v10, -inf }
 0x605   :  { %909 = vmax.xlane.f32.xlu1 %v908_v12  ;;  %v905_v13 = vsel %vm367_vm1, %v903_v11, -inf }
 0x606   :  { %906 = vmax.xlane.f32.xlu0 %v905_v13 }
 0x692   :  { %v910_v14 = vpop.xlane.xlu1 %909 }
 0x693   :  { %v912_v15 = vsub.f32 %v904_v10, %v910_v14  ;;  %v907_v59 = vpop.xlane.xlu0 %906  ;;  %v1443_v10 = vld [vmem:[%s2251_s12] ss:$0 sm:$0xff] }
 0x694   :  { %v911_v16 = vsub.f32 %v903_v11, %v907_v59  ;;  %v1444_v14 = vld [vmem:[%s2252_s13] ss:$0 sm:$0xff] }
 0x695   :  { %v915_v18 = vmul.f32 1.442695, %v912_v15 }
 0x696   :  { %v913_v19 = vmul.f32 1.442695, %v911_v16 }
 0x697   :  { %1812 = vpow2.f32 %v915_v18 }
 0x698   :  { %1814 = vpow2.f32 %v913_v19  ;;  %v1302_v19 = vld [vmem:[%s2253_s16] sm:$0xff] }
 0x6a1   :  { %v1813_v21 = vpop.eup %1812 }
 0x6a2   :  { %v1815_v22 = vpop.eup %1814  ;;  %v920_v17 = vsel %vm367_vm1, %v1813_v21, 0.0 }
 0x6a3   :  { %921 = vadd.xlane.f32.xlu1 %v920_v17  ;;  %v917_v20 = vsel %vm367_vm1, %v1815_v22, 0.0  ;;  %v1304_v17 = vld [vmem:[%s2253_s16 + $0x10] sm:$0xff] }
 0x6a4   :  { %918 = vadd.xlane.f32.xlu0 %v917_v20  ;;  %v1305_v20 = vld [vmem:[%s2253_s16 + $0x18] sm:$0xff] }
 0x730   :  { %v922_v23 = vpop.xlane.xlu1 %921 }
 0x731   :  { %1816 = vrcp.f32 %v922_v23  ;;  %v919_v24 = vpop.xlane.xlu0 %918  ;;  %v1770_v23 = vpack.c.bf16 %v1305_v20, %v1304_v17 }
 0x732   :  { %1818 = vrcp.f32 %v919_v24  ;;  %v1306_v24 = vld [vmem:[%s2253_s16 + $0x20] sm:$0xff] }
 0x73b   :  { %v1817_v25 = vpop.eup %1816 }
 0x73c   :  { %v1819_v26 = vpop.eup %1818  ;;  %v926_v28 = vmul.f32 %v1817_v25, %v1813_v21  ;;  %v1303_v21 = vld [vmem:[%s2253_s16 + $0x8] sm:$0xff] }
 0x73d   :  { %v924_v27 = vmul.f32 %v1819_v26, %v1815_v22  ;;  %v1766_v22 = vpack.c.bf16 %v1303_v21, %v1302_v19  ;;  %v1307_v25 = vld [vmem:[%s2253_s16 + $0x28] sm:$0xff] }
 0x73e   :  { %v1774_v26 = vpack.c.bf16 %v1307_v25, %v1306_v24  ;;  %v1833_v24 = vmov -1.0  }
 0x73f   :  { %1622 = vmatprep.mubr.msk.f32.mxu1 %vm367_vm1, %v924_v27  ;;  %1767 = vmatprep.subr.bf16.mxu0 %v1766_v22  ;;  %v1308_v27 = vld [vmem:[%s2253_s16 + $0x30] sm:$0xff] }
 0x740   :  { %1623 = vmatmul.mubr.msk.f32.vlgmr.msra.gmra.mrb[12].mxu1 %vm367_vm1, %v926_v28  ;;  %v1309_v28 = vld [vmem:[%s2253_s16 + $0x38] sm:$0xff] }
 0x741   :  { %v1778_v29 = vpack.c.bf16 %v1309_v28, %v1308_v27 }
 0x813   :  { %v1624_v36 = vpop.f32.mrb[12].mxu1 }
 0x814   :  { %1012 = vrot.lane.b32.xlu1 %v1624_v36, %s1832_s25  ;;  %v999_v37 = vpop.f32.mrb[13].mxu1  ;;  %v1786_v36 = vpack.c.bf16 %v1313_v34, %v1312_v33 }
 0x815   :  { %1010 = vrot.lane.b32.xlu0 %v999_v37, %s1832_s25  ;;  %v1314_v37 = vld [vmem:[%s2253_s16 + $0x60] sm:$0xff] }
 0x886   :  { %v1013_v38 = vpop.permute.xlu1 %1012 }
 0x887   :  { %v1011_v39 = vpop.permute.xlu0 %1010  ;;  %v1017_v42 = vsel %vm367_vm1, %v2099_v62, %v1013_v38  ;;  %v1157_v62 = vld [vmem:[%s2250_s14 + $0x8] sm:$0xff] }
 0x888   :  { %v1016_v41 = vsel %vm367_vm1, %v2101_v63, %v1011_v39  ;;  %v1758_v63 = vpack.c.bf16 %v1157_v62, %v1156_v61  ;;  %v1315_v38 = vld [vmem:[%s2253_s16 + $0x68] sm:$0xff] }
 0x889   :  { %1633 = vmatprep.mubr.msk.f32.mxu0 %vm63_vm0, %v1016_v41  ;;  %v1790_v39 = vpack.c.bf16 %v1315_v38, %v1314_v37  ;;  %v1316_v41 = vld [vmem:[%s2253_s16 + $0x70] sm:$0xff]  ;;  %v1448_v37 = vld [vmem:[%s2255_s17] ss:$0 sm:$0xff] }
 0x88a   :  { %1634 = vmatmul.mubr.msk.f32.vlgmr.msra.gmra.mrb[6].mxu0 %vm63_vm0, %v1017_v42  ;;  %1759 = vmatprep.subr.bf16.mxu1 %v1758_v63  ;;  %v1317_v42 = vld [vmem:[%s2253_s16 + $0x78] sm:$0xff] }
 0x88b   :  { %1761 = vmatpush3.bf16.msra.mxu1 %v1758_v63  ;;  %1769 = vmatpush3.bf16.msra.mxu0 %v1766_v22 }
 0x88c   :  { %1763 = vmatprep.subr.bf16.mxu1 %v1762_v4  ;;  %1771 = vmatprep.subr.bf16.mxu0 %v1770_v23 }
 0x88f   :  { %1765 = vmatpush3.bf16.msra.mxu1 %v1762_v4  ;;  %1773 = vmatpush3.bf16.msra.mxu0 %v1770_v23 }
 0x890   :  { %1775 = vmatprep.subr.bf16.mxu0 %v1774_v26 }
 0x893   :  { %1777 = vmatpush3.bf16.msra.mxu0 %v1774_v26 }
 0x894   :  { %1779 = vmatprep.subr.bf16.mxu0 %v1778_v29 }
 0x897   :  { %1781 = vmatpush3.bf16.msra.mxu0 %v1778_v29 }
 0x898   :  { %1783 = vmatprep.subr.bf16.mxu0 %v1782_v32 }
 0x89b   :  { %1785 = vmatpush3.bf16.msra.mxu0 %v1782_v32 }
 0x89c   :  { %1787 = vmatprep.subr.bf16.mxu0 %v1786_v36 }
 0x89f   :  { %1789 = vmatpush3.bf16.msra.mxu0 %v1786_v36 }
 0x8a0   :  { %1791 = vmatprep.subr.bf16.mxu0 %v1790_v39 }
 0x8a3   :  { %1793 = vmatpush3.bf16.msra.mxu0 %v1790_v39 }
 0x95d   :  { %v1635_v44 = vpop.f32.mrb[6].mxu0 }
 0x95e   :  { %v1107_v45 = vadd.f32 %v1635_v44, %v1440_v43  ;;  %v1101_v46 = vpop.f32.mrb[7].mxu0  ;;  %v1445_v44 = vld [vmem:[%s2254_s15] ss:$0 sm:$0xff] }
 0x95f   :  { %v1102_v47 = vadd.f32 %v1440_v43, %v1101_v46  ;;  %v1794_v43 = vpack.c.bf16 %v1317_v42, %v1316_v41 }
 0x960   :  { %v2141_v48 = vadd.f32 %v1107_v45, %v1937_v1 }
 0x961   :  { %v2144_v49 = vadd.f32 %v1102_v47, %v1932_v0  ;;  %1795 = vmatprep.subr.bf16.mxu0 %v1794_v43 }
 0x962   :  { %v1117_v50 = vsel %vm63_vm0, %v2141_v48, 0.0  ;;  %1797 = vmatpush3.bf16.msra.mxu0 %v1794_v43 }
 0x963   :  { %1118 = vadd.xlane.f32.xlu0 %v1117_v50  ;;  %v1114_v51 = vsel %vm63_vm0, %v2144_v49, 0.0 }
 0x964   :  { %1115 = vadd.xlane.f32.xlu1 %v1114_v51 }
 0x9f0   :  { %v1119_v52 = vpop.xlane.xlu0 %1118 }
 0x9f1   :  { %v1121_v53 = vmul.f32 0.03125, %v1119_v52  ;;  %v1116_v54 = vpop.xlane.xlu1 %1115 }
 0x9f2   :  { %v1120_v55 = vmul.f32 0.03125, %v1116_v54 }
 0x9f3   :  { %v1123_v56 = vsub.f32 %v2141_v48, %v1121_v53 }
 0x9f4   :  { %v1122_v1 = vsub.f32 %v2144_v49, %v1120_v55 }
 0x9f5   :  { %v1125_v57 = vmul.f32 %v1123_v56, %v1123_v56 }
 0x9f6   :  { %v1124_v58 = vmul.f32 %v1122_v1, %v1122_v1 }
 0x9f7   :  { %v1129_v0 = vsel %vm63_vm0, %v1125_v57, 0.0 }
 0x9f8   :  { %1130 = vadd.xlane.f32.xlu1 %v1129_v0  ;;  %v1126_v60 = vsel %vm63_vm0, %v1124_v58, 0.0 }
 0x9f9   :  { %1127 = vadd.xlane.f32.xlu0 %v1126_v60 }
 0xa85   :  { %v1131_v5 = vpop.xlane.xlu1 %1130 }
 0xa86   :  { %v1133_v35 = vmul.f32 0.03125, %v1131_v5  ;;  %v1128_v6 = vpop.xlane.xlu0 %1127 }
 0xa87   :  { %v1132_v40 = vmul.f32 0.03125, %v1128_v6 }
 0xa88   :  { %v1135_v7 = vadd.f32 1e-05, %v1133_v35 }
 0xa89   :  { %v1134_v8 = vadd.f32 1e-05, %v1132_v40 }
 0xa8a   :  { %1820 = vrsqrt.f32 %v1135_v7 }
 0xa8b   :  { %1822 = vrsqrt.f32 %v1134_v8 }
 0xa94   :  { %v1821_v9 = vpop.eup %1820 }
 0xa95   :  { %v1823_v11 = vpop.eup %1822  ;;  %v1139_v12 = vmul.f32 %v1821_v9, %v1123_v56 }
 0xa96   :  { %v1138_v13 = vmul.f32 %v1823_v11, %v1122_v1 }
 0xa97   :  { %v1147_v15 = vmul.f32 %v1443_v10, %v1139_v12 }
 0xa98   :  { %v1146_v59 = vmul.f32 %v1443_v10, %v1138_v13 }
 0xa99   :  { %v1155_v18 = vadd.f32 %v1444_v14, %v1147_v15 }
 0xa9a   :  { %v1154_v16 = vadd.f32 %v1444_v14, %v1146_v59 }
 0xa9c   :  { %1644 = vmatprep.mubr.msk.f32.mxu1 %vm63_vm0, %v1154_v16 }
 0xa9d   :  { %1645 = vmatmul.mubr.msk.f32.vlgmr.msra.gmra.mrb[14].mxu1 %vm63_vm0, %v1155_v18 }
 0xb70   :  { %v1646_v45 = vpop.f32.mrb[14].mxu1 }
 0xb71   :  { %v1245_v46 = vadd.f32 %v1646_v45, %v1445_v44  ;;  %v1239_v47 = vpop.f32.mrb[15].mxu1 }
 0xb72   :  { %v1240_v50 = vadd.f32 %v1445_v44, %v1239_v47 }
 0xb73   :  { %v1251_v51 = vmul.f32 0.70710677, %v1245_v46  ;;  %v1249_v33 = vmul.f32 0.5, %v1245_v46 }
 0xb74   :  { %v1250_v52 = vmul.f32 0.70710677, %v1240_v50  ;;  %v1248_v31 = vmul.f32 0.5, %v1240_v50 }
 0xb75   :  { %v1257_v53 = vand.u32 2147483647, %v1251_v51  ;;  %vm1253_vm3 = vcmp.ge.f32.partialorder %v1251_v51, 0.0 }
 0xb76   :  { %v1256_v54 = vand.u32 2147483647, %v1250_v52  ;;  %vm1252_vm4 = vcmp.ge.f32.partialorder %v1250_v52, 0.0  ;;  %v1255_v25 = vsel %vm1253_vm3, 1.0, %v1833_v24 }
 0xb77   :  { %v1259_v55 = vmul.f32 0.3275911, %v1257_v53  ;;  %v1285_v58 = vsub.f32 0.0, %v1257_v53  ;;  %v1254_v28 = vsel %vm1252_vm4, 1.0, %v1833_v24 }
 0xb78   :  { %v1258_v56 = vmul.f32 0.3275911, %v1256_v54  ;;  %v1284_v0 = vsub.f32 0.0, %v1256_v54 }
 0xb79   :  { %v1261_v1 = vadd.f32 1.0, %v1259_v55  ;;  %v1287_v61 = vmul.f32 %v1285_v58, %v1257_v53 }
 0xb7a   :  { %v1260_v57 = vadd.f32 1.0, %v1258_v56  ;;  %v1286_v2 = vmul.f32 %v1284_v0, %v1256_v54 }
 0xb7b   :  { %1824 = vrcp.f32 %v1261_v1  ;;  %v1290_v5 = vmul.f32 1.442695, %v1287_v61 }
 0xb7c   :  { %1826 = vrcp.f32 %v1260_v57  ;;  %v1288_v40 = vmul.f32 1.442695, %v1286_v2 }
 0xb7d   :  { %1828 = vpow2.f32 %v1290_v5 }
 0xb7e   :  { %1830 = vpow2.f32 %v1288_v40 }
 0xb85   :  { %v1825_v60 = vpop.eup %1824 }
 0xb86   :  { %v1827_v62 = vpop.eup %1826  ;;  %v1267_v63 = vmul.f32 1.0614054, %v1825_v60 }
 0xb87   :  { %v1266_v3 = vmul.f32 1.0614054, %v1827_v62  ;;  %v1829_v19 = vpop.eup %1828 }
 0xb88   :  { %v1269_v4 = vadd.f32 -1.4531521, %v1267_v63  ;;  %v1831_v22 = vpop.eup %1830 }
 0xb89   :  { %v1268_v35 = vadd.f32 -1.4531521, %v1266_v3 }
 0xb8a   :  { %v1271_v6 = vmul.f32 %v1825_v60, %v1269_v4 }
 0xb8b   :  { %v1270_v7 = vmul.f32 %v1827_v62, %v1268_v35 }
 0xb8c   :  { %v1273_v8 = vadd.f32 1.4214138, %v1271_v6 }
 0xb8d   :  { %v1272_v9 = vadd.f32 1.4214138, %v1270_v7 }
 0xb8e   :  { %v1275_v10 = vmul.f32 %v1825_v60, %v1273_v8 }
 0xb8f   :  { %v1274_v11 = vmul.f32 %v1827_v62, %v1272_v9 }
 0xb90   :  { %v1277_v12 = vadd.f32 -0.28449672, %v1275_v10 }
 0xb91   :  { %v1276_v13 = vadd.f32 -0.28449672, %v1274_v11 }
 0xb92   :  { %v1279_v14 = vmul.f32 %v1825_v60, %v1277_v12 }
 0xb93   :  { %v1278_v15 = vmul.f32 %v1827_v62, %v1276_v13 }
 0xb94   :  { %v1281_v59 = vadd.f32 0.2548296, %v1279_v14 }
 0xb95   :  { %v1280_v16 = vadd.f32 0.2548296, %v1278_v15 }
 0xb96   :  { %v1283_v18 = vmul.f32 %v1825_v60, %v1281_v59 }
 0xb97   :  { %v1282_v21 = vmul.f32 %v1827_v62, %v1280_v16 }
 0xb98   :  { %v1293_v17 = vmul.f32 %v1829_v19, %v1283_v18 }
 0xb99   :  { %v1292_v20 = vmul.f32 %v1831_v22, %v1282_v21 }
 0xb9a   :  { %v1295_v23 = vsub.f32 1.0, %v1293_v17 }
 0xb9b   :  { %v1294_v26 = vsub.f32 1.0, %v1292_v20 }
 0xb9c   :  { %v1297_v27 = vmul.f32 %v1295_v23, %v1255_v25 }
 0xb9d   :  { %v1296_v29 = vmul.f32 %v1294_v26, %v1254_v28 }
 0xb9e   :  { %v1299_v30 = vadd.f32 1.0, %v1297_v27 }
 0xb9f   :  { %v1298_v32 = vadd.f32 1.0, %v1296_v29 }
 0xba0   :  { %v1301_v36 = vmul.f32 %v1299_v30, %v1249_v33 }
 0xba1   :  { %v1300_v34 = vmul.f32 %v1298_v32, %v1248_v31 }
 0xba3   :  { %1679 = vmatprep.mubr.f32.mxu0 %v1300_v34 }
 0xba4   :  { %1680 = vmatmul.mubr.f32.vlgmr.msra.gmra.mrb[8].mxu0 %v1301_v36 }
 0xc77   :  { %v1681_v38 = vpop.f32.mrb[8].mxu0 }
 0xc78   :  { %v1397_v39 = vadd.f32 %v1681_v38, %v1448_v37  ;;  %v1391_v41 = vpop.f32.mrb[9].mxu0 }
 0xc79   :  { %v1392_v42 = vadd.f32 %v1448_v37, %v1391_v41 }
 0xc7a   :  { %v1401_v43 = vadd.f32 %v1397_v39, %v2141_v48 }
 0xc7b   :  { %v1400_v44 = vadd.f32 %v1392_v42, %v2144_v49 }
 0xc7c   :  { %1403 = vst.msk [vmem:[%s2256_s18 + $0x8] sm:$0xff] %vm63_vm0, %v1401_v43 }
 0xc7d   :  { %1402 = vst.msk [vmem:[%s2256_s18] sm:$0xff] %vm63_vm0, %v1400_v44 }

// kernel: tapnext_forward.10
= control target key start
LH: loop header
LB: loop body
LE: loop exit
PB: predicated region body
PF: predicated region fallthrough
CT: control target
= control target key end

     0   :  { %s2423_s0 = inlined_call_operand.vmem [shape: f32[16,32], index: 0, kind: input, shape index: {}]   ;;  %s2424_s1 = inlined_call_operand.vmem [shape: f32[16,16], index: 1, kind: input, shape index: {}]   ;;  %s2425_s2 = inlined_call_operand.vmem [shape: f32[1,32], index: 2, kind: input, shape index: {}]   ;;  %s2426_s3 = inlined_call_operand.vmem [shape: f32[1,32], index: 3, kind: input, shape index: {}]   ;;  %s2427_s4 = inlined_call_operand.vmem [shape: f32[64,16], index: 4, kind: input, shape index: {}]   ;;  %s2428_s5 = inlined_call_operand.vmem [shape: f32[2,16], index: 5, kind: input, shape index: {}]   ;;  %s2429_s6 = inlined_call_operand.vmem [shape: f32[64,16], index: 6, kind: input, shape index: {}]   ;;  %s2430_s7 = inlined_call_operand.vmem [shape: f32[2,16], index: 7, kind: input, shape index: {}]   ;;  %s2431_s8 = inlined_call_operand.vmem [shape: f32[64,16], index: 8, kind: input, shape index: {}]   ;;  %s2432_s9 = inlined_call_operand.vmem [shape: f32[2,16], index: 9, kind: input, shape index: {}]   ;;  %s2433_s10 = inlined_call_operand.vmem [shape: f32[32,32], index: 10, kind: input, shape index: {}]   ;;  %s2434_s11 = inlined_call_operand.vmem [shape: f32[1,32], index: 11, kind: input, shape index: {}]   ;;  %s2435_s12 = inlined_call_operand.hbm [shape: f32[1,32], index: 12, kind: input, shape index: {}]   ;;  %s2436_s13 = inlined_call_operand.hbm [shape: f32[1,32], index: 13, kind: input, shape index: {}]   ;;  %s2437_s14 = inlined_call_operand.vmem [shape: f32[32,128], index: 14, kind: input, shape index: {}]   ;;  %s2438_s15 = inlined_call_operand.hbm [shape: f32[1,128], index: 15, kind: input, shape index: {}]   ;;  %s2439_s16 = inlined_call_operand.vmem [shape: f32[128,32], index: 16, kind: input, shape index: {}]   ;;  %s2440_s17 = inlined_call_operand.hbm [shape: f32[1,32], index: 17, kind: input, shape index: {}]   ;;  %s2441_s18 = inlined_call_operand.vmem [shape: f32[16,32], index: 18, kind: output, shape index: {}]  }
   0x1   :  { %2444 = sst [smem:[#allocation12_spill]] %s2423_s0 }
   0x2   :  { %2445 = sst [smem:[#allocation13_spill]] %s2424_s1 }
   0x3   :  { %2446 = sst [smem:[#allocation14_spill]] %s2425_s2 }
   0x4   :  { %23 = vsyncpa [#allocation3], 0 }
   0x5   :  { %24 = vsyncpa [#allocation5], 0 }
   0x6   :  { %25 = vsyncpa [#allocation8], 0  ;;  %s1980_s27 = smov [#allocation4]   ;;  %s1981_s29 = smov [#allocation2]  }
   0x7   :  { %s66_s28 = sshll.u32 %s1980_s27, 4  ;;  %s56_s30 = sshll.u32 %s1981_s29, 4  ;;  %s67_s28 = int_to_ptr.vmem [resolvable:$true] %s66_s28  ;;  %s57_s30 = int_to_ptr.vmem [resolvable:$true] %s56_s30 }
   0x8   :  { %s1886_s1 = scalar_lea.hbm %s2436_s13, 16 }
   0x9   :  { %p1887_p0 = scmp.ne.s32.totalorder %s2436_s13, %s1886_s1  ;;  %p1890_p1 = scmp.lt.u32.totalorder %s1886_s1, %s2436_s13 }
   0xb   :  { %p1892_p2 = pnand %p1890_p1, %p1887_p0 }
   0xd   :  { %1895 = shalt.err (!%p1892_p2)
}
   0xe   :  { %s1896_s23 = scalar_lea.vmem %s67_s28, 16  ;;  %s1900_s24 = scalar_lea.vmem %s67_s28, 32 }
   0xf   :  { %p1897_p3 = scmp.ne.s32.totalorder %s67_s28, %s1896_s23  ;;  %p1901_p4 = scmp.lt.s32.totalorder %s67_s28, %s67_s28 }
  0x10   :  { %p1902_p5 = scmp.lt.s32.totalorder %s1900_s24, %s1896_s23 }
  0x12   :  { %p1903_p6 = por %p1902_p5, %p1901_p4 }
  0x14   :  { %p1904_p7 = pnand %p1903_p6, %p1897_p3 }
  0x16   :  { %1907 = shalt.err (!%p1904_p7)
}
  0x17   :  { %69 = dma.hbm_to_vmem [thread:$0]  %s2436_s13, 16, %s67_s28, [#allocation5]  }
  0x18   :  { %s1908_s0 = scalar_lea.hbm %s2435_s12, 16 }
  0x19   :  { %p1909_p8 = scmp.ne.s32.totalorder %s2435_s12, %s1908_s0  ;;  %p1912_p9 = scmp.lt.u32.totalorder %s1908_s0, %s2435_s12 }
  0x1b   :  { %p1914_p10 = pnand %p1912_p9, %p1909_p8 }
  0x1d   :  { %1917 = shalt.err (!%p1914_p10)
}
  0x1e   :  { %s1918_s22 = scalar_lea.vmem %s57_s30, 16  ;;  %s1922_s2 = scalar_lea.vmem %s57_s30, 32 }
  0x1f   :  { %p1919_p11 = scmp.ne.s32.totalorder %s57_s30, %s1918_s22  ;;  %p1923_p12 = scmp.lt.s32.totalorder %s57_s30, %s57_s30 }
  0x20   :  { %p1924_p13 = scmp.lt.s32.totalorder %s1922_s2, %s1918_s22 }
  0x22   :  { %p1925_p0 = por %p1924_p13, %p1923_p12 }
  0x24   :  { %p1926_p1 = pnand %p1925_p0, %p1919_p11 }
  0x26   :  { %1929 = shalt.err (!%p1926_p1)
}
  0x27   :  { %59 = dma.hbm_to_vmem [thread:$0]  %s2435_s12, 16, %s57_s30, [#allocation3]  }
  0x28   :  { %s1982_s23 = smov [#allocation6]   ;;  %s1983_s25 = smov [#allocation7]  }
  0x29   :  { %s78_s24 = sshll.u32 %s1982_s23, 4  ;;  %s90_s26 = sshll.u32 %s1983_s25, 4  ;;  %s79_s24 = int_to_ptr.vmem [resolvable:$true] %s78_s24  ;;  %s91_s26 = int_to_ptr.vmem [resolvable:$true] %s90_s26 }
  0x2a   :  { %s1930_s0 = scalar_lea.hbm %s2438_s15, 16 }
  0x2b   :  { %p1931_p2 = scmp.ne.s32.totalorder %s2438_s15, %s1930_s0  ;;  %p1934_p3 = scmp.lt.u32.totalorder %s1930_s0, %s2438_s15 }
  0x2d   :  { %p1936_p4 = pnand %p1934_p3, %p1931_p2 }
  0x2f   :  { %1939 = shalt.err (!%p1936_p4)
}
  0x30   :  { %s1940_s12 = scalar_lea.vmem %s79_s24, 16  ;;  %s1944_s30 = scalar_lea.vmem %s79_s24, 32 }
  0x31   :  { %p1941_p5 = scmp.ne.s32.totalorder %s79_s24, %s1940_s12  ;;  %p1945_p6 = scmp.lt.s32.totalorder %s79_s24, %s79_s24 }
  0x32   :  { %p1946_p7 = scmp.lt.s32.totalorder %s1944_s30, %s1940_s12 }
  0x34   :  { %p1947_p8 = por %p1946_p7, %p1945_p6 }
  0x36   :  { %p1948_p9 = pnand %p1947_p8, %p1941_p5 }
  0x38   :  { %1951 = shalt.err (!%p1948_p9)
}
  0x39   :  { %81 = dma.hbm_to_vmem [thread:$0]  %s2438_s15, 16, %s79_s24, [#allocation5]  }
  0x3a   :  { %s1952_s23 = scalar_lea.hbm %s2440_s17, 16 }
  0x3b   :  { %p1953_p10 = scmp.ne.s32.totalorder %s2440_s17, %s1952_s23  ;;  %p1956_p11 = scmp.lt.u32.totalorder %s1952_s23, %s2440_s17 }
  0x3d   :  { %p1958_p12 = pnand %p1956_p11, %p1953_p10 }
  0x3f   :  { %1961 = shalt.err (!%p1958_p12)
}
  0x40   :  { %s1962_s19 = scalar_lea.vmem %s91_s26, 16  ;;  %s1966_s1 = scalar_lea.vmem %s91_s26, 32 }
  0x41   :  { %p1963_p13 = scmp.ne.s32.totalorder %s91_s26, %s1962_s19  ;;  %p1967_p0 = scmp.lt.s32.totalorder %s91_s26, %s91_s26 }
  0x42   :  { %p1968_p1 = scmp.lt.s32.totalorder %s1966_s1, %s1962_s19 }
  0x44   :  { %p1969_p2 = por %p1968_p1, %p1967_p0 }
  0x46   :  { %p1970_p3 = pnand %p1969_p2, %p1963_p13 }
  0x48   :  { %1973 = shalt.err (!%p1970_p3)
}
  0x49   :  { %93 = dma.hbm_to_vmem [thread:$0]  %s2440_s17, 16, %s91_s26, [#allocation8]  }
  0x4a   :  { %1974 = dma.done.wait [#allocation3], 16  }
  0x4b   :  { %1975 = vsyncadd [#allocation3], 4294967280 }
  0x4c   :  { %1976 = dma.done.wait [#allocation5], 32  }
  0x4d   :  { %1977 = vsyncadd [#allocation5], 4294967264 }
  0x4e   :  { %1978 = dma.done.wait [#allocation8], 16  }
  0x4f   :  { %1979 = vsyncadd [#allocation8], 4294967280  ;;  %vm110_vm0 = vcmask 261120   ;;  %s2447_s12 = sld [smem:[#allocation12_spill]]  ;;  %v156_v14 = vld [vmem:[%s2427_s4] sm:$0xff]  ;;  %v157_v15 = vld [vmem:[%s2427_s4 + $0x8] sm:$0xff] }
  0x50   :  { %v1732_v16 = vpack.c.bf16 %v157_v15, %v156_v14  ;;  %v158_v17 = vld [vmem:[%s2427_s4 + $0x10] sm:$0xff]  ;;  %v159_v18 = vld [vmem:[%s2427_s4 + $0x18] sm:$0xff]  ;;  %v246_v20 = vld [vmem:[%s2429_s6] sm:$0xff]  ;;  %s2448_s20 = sld [smem:[#allocation14_spill]]  ;;  %vm414_vm1 = vcmask 130048   ;;  %s2451_s15 = sld [smem:[#allocation13_spill]] }
  0x51   :  { %v1736_v19 = vpack.c.bf16 %v159_v18, %v158_v17  ;;  %v247_v21 = vld [vmem:[%s2429_s6 + $0x8] sm:$0xff]  ;;  %v1459_v32 = vld [vmem:[%s2426_s3] ss:$0 sm:$0xff]  ;;  %v248_v37 = vld [vmem:[%s2429_s6 + $0x10] sm:$0xff]  ;;  %s1984_s1 = smov 16  }
  0x52   :  { %1733 = vmatprep.subr.bf16.mxu1 %v1732_v16  ;;  %v1740_v22 = vpack.c.bf16 %v247_v21, %v246_v20  ;;  %v249_v38 = vld [vmem:[%s2429_s6 + $0x18] sm:$0xff]  ;;  %v330_v42 = vld [vmem:[%s2431_s8] sm:$0xff]  ;;  %v331_v43 = vld [vmem:[%s2431_s8 + $0x8] sm:$0xff] }
  0x53   :  { %1735 = vmatpush3.bf16.msra.mxu1 %v1732_v16  ;;  %v1744_v41 = vpack.c.bf16 %v249_v38, %v248_v37  ;;  %v1748_v44 = vpack.c.bf16 %v331_v43, %v330_v42  ;;  %v332_v45 = vld [vmem:[%s2431_s8 + $0x10] sm:$0xff]  ;;  %v333_v46 = vld [vmem:[%s2431_s8 + $0x18] sm:$0xff]  ;;  %v1460_v48 = vld [vmem:[%s2428_s5] ss:$0 sm:$0xff] }
  0x54   :  { %1737 = vmatprep.subr.bf16.mxu1 %v1736_v19  ;;  %v1752_v47 = vpack.c.bf16 %v333_v46, %v332_v45  ;;  %v1463_v52 = vld [vmem:[%s2430_s7] ss:$0 sm:$0xff]  ;;  %v610_v57 = vld [vmem:[%s2427_s4 + $0x28] sm:$0xff]  ;;  %vm2220_vm2 = vmpackc.low %vm414_vm1, %vm414_vm1 }
  0x55   :  { %v2132_v0 = vld [vmem:[%s2447_s12] sm:$0xff]  ;;  %v2137_v1 = vld [vmem:[%s2447_s12 + $0x8] sm:$0xff]  ;;  %v780_v14 = vld [vmem:[%s2431_s8 + $0x38] sm:$0xff] }
  0x56   :  { %v111_v2 = vsel %vm110_vm0, %v2132_v0, 0.0  ;;  %v114_v3 = vsel %vm110_vm0, %v2137_v1, 0.0  ;;  %v1458_v30 = vld [vmem:[%s2448_s20] ss:$0 sm:$0xff]  ;;  %v2261_v17 = vld [vmem:[%s2451_s15 + $0x8] sm:$0xff] }
  0x57   :  { %112 = vadd.xlane.f32.xlu0 %v111_v2  ;;  %1739 = vmatpush3.bf16.msra.mxu1 %v1736_v19  ;;  %v609_v56 = vld [vmem:[%s2427_s4 + $0x20] sm:$0xff] }
  0x58   :  { %1741 = vmatprep.subr.bf16.mxu1 %v1740_v22  ;;  %v1766_v61 = vpack.c.bf16 %v610_v57, %v609_v56  ;;  %v1466_v62 = vld [vmem:[%s2432_s9] ss:$0 sm:$0xff] }
  0x59   :  { %v2266_v20 = vld [vmem:[%s2451_s15] sm:$0xff] }
  0x5b   :  { %115 = vadd.xlane.f32.xlu0 %v114_v3 }
  0xe4   :  { %v113_v4 = vpop.xlane.xlu0 %112 }
  0xe5   :  { %v118_v5 = vmul.f32 0.03125, %v113_v4  ;;  %v611_v4 = vld [vmem:[%s2427_s4 + $0x30] sm:$0xff] }
  0xe7   :  { %v120_v6 = vsub.f32 %v2132_v0, %v118_v5  ;;  %v612_v5 = vld [vmem:[%s2427_s4 + $0x38] sm:$0xff] }
  0xe8   :  { %v116_v7 = vpop.xlane.xlu0 %115 }
  0xe9   :  { %v119_v8 = vmul.f32 0.03125, %v116_v7  ;;  %v122_v9 = vmul.f32 %v120_v6, %v120_v6 }
  0xeb   :  { %v121_v10 = vsub.f32 %v2137_v1, %v119_v8  ;;  %v124_v11 = vsel %vm110_vm0, %v122_v9, 0.0  ;;  %v1770_v9 = vpack.c.bf16 %v612_v5, %v611_v4 }
  0xec   :  { %125 = vadd.xlane.f32.xlu1 %v124_v11  ;;  %v778_v11 = vld [vmem:[%s2431_s8 + $0x28] sm:$0xff] }
  0xed   :  { %v123_v12 = vmul.f32 %v121_v10, %v121_v10 }
  0xef   :  { %v127_v13 = vsel %vm110_vm0, %v123_v12, 0.0 }
  0xf0   :  { %128 = vadd.xlane.f32.xlu1 %v127_v13  ;;  %v779_v13 = vld [vmem:[%s2431_s8 + $0x30] sm:$0xff] }
  0xf1   :  { %v1786_v15 = vpack.c.bf16 %v780_v14, %v779_v13 }
 0x179   :  { %v126_v23 = vpop.xlane.xlu1 %125 }
 0x17a   :  { %v130_v24 = vmul.f32 0.03125, %v126_v23 }
 0x17c   :  { %v132_v25 = vadd.f32 1e-05, %v130_v24 }
 0x17d   :  { %v129_v26 = vpop.xlane.xlu1 %128 }
 0x17e   :  { %1854 = vrsqrt.f32 %v132_v25  ;;  %v131_v27 = vmul.f32 0.03125, %v129_v26  ;;  %v1475_v26 = vld [vmem:[%s2428_s5 + $0x1] ss:$0 sm:$0xff] }
 0x180   :  { %v133_v28 = vadd.f32 1e-05, %v131_v27 }
 0x182   :  { %1856 = vrsqrt.f32 %v133_v28 }
 0x188   :  { %v1855_v29 = vpop.eup %1854 }
 0x189   :  { %v136_v31 = vmul.f32 %v1855_v29, %v120_v6 }
 0x18b   :  { %v144_v33 = vmul.f32 %v1458_v30, %v136_v31 }
 0x18c   :  { %v1857_v34 = vpop.eup %1856 }
 0x18d   :  { %v2171_v35 = vadd.f32 %v1459_v32, %v144_v33  ;;  %v137_v36 = vmul.f32 %v1857_v34, %v121_v10  ;;  %v777_v10 = vld [vmem:[%s2431_s8 + $0x20] sm:$0xff] }
 0x18e   :  { %v1782_v12 = vpack.c.bf16 %v778_v11, %v777_v10 }
 0x18f   :  { %v145_v39 = vmul.f32 %v1458_v30, %v137_v36  ;;  %1589 = vmatprep.mubr.msk.f32.mxu1 %vm110_vm0, %v2171_v35  ;;  %v1481_v30 = vld [vmem:[%s2432_s9 + $0x1] ss:$0 sm:$0xff] }
 0x191   :  { %v2181_v40 = vadd.f32 %v1459_v32, %v145_v39 }
 0x193   :  { %1590 = vmatmul.mubr.msk.f32.vlgmr.msra.gmra.mrb[0].mxu1 %vm110_vm0, %v2181_v40 }
 0x194   :  { %1743 = vmatpush3.bf16.msra.mxu1 %v1740_v22  ;;  %1600 = vmatprep.mubr.msk.f32.mxu1 %vm110_vm0, %v2171_v35 }
 0x195   :  { %1745 = vmatprep.subr.bf16.mxu1 %v1744_v41 }
 0x198   :  { %1747 = vmatpush3.bf16.msra.mxu1 %v1744_v41 }
 0x199   :  { %1749 = vmatprep.subr.bf16.mxu1 %v1748_v44 }
 0x19b   :  { %1601 = vmatmul.mubr.msk.f32.vlgmr.msra.gmra.mrb[2].mxu1 %vm110_vm0, %v2181_v40 }
 0x19c   :  { %1751 = vmatpush3.bf16.msra.mxu1 %v1748_v44  ;;  %1611 = vmatprep.mubr.msk.f32.mxu1 %vm110_vm0, %v2171_v35 }
 0x19d   :  { %1753 = vmatprep.subr.bf16.mxu1 %v1752_v47 }
 0x1a0   :  { %1755 = vmatpush3.bf16.msra.mxu1 %v1752_v47 }
 0x1a3   :  { %1612 = vmatmul.mubr.msk.f32.vlgmr.msra.gmra.mrb[4].mxu1 %vm110_vm0, %v2181_v40 }
 0x266   :  { %v1591_v49 = vpop.f32.mrb[0].mxu1 }
 0x267   :  { %v237_v50 = vpop.f32.mrb[1].mxu1  ;;  %v243_v7 = vadd.f32 %v1591_v49, %v1460_v48  ;;  %v694_v49 = vld [vmem:[%s2429_s6 + $0x28] sm:$0xff] }
 0x268   :  { %v238_v51 = vadd.f32 %v1460_v48, %v237_v50  ;;  %v693_v48 = vld [vmem:[%s2429_s6 + $0x20] sm:$0xff] }
 0x269   :  { %v1774_v50 = vpack.c.bf16 %v694_v49, %v693_v48 }
 0x26a   :  { %1618 = vmatprep.mubr.msk.f32.mxu1 %vm414_vm1, %v238_v51 }
 0x26e   :  { %v1602_v53 = vpop.f32.mrb[2].mxu1 }
 0x26f   :  { %v327_v54 = vadd.f32 %v1602_v53, %v1463_v52  ;;  %v321_v55 = vpop.f32.mrb[3].mxu1 }
 0x270   :  { %v322_v58 = vadd.f32 %v1463_v52, %v321_v55  ;;  %v696_v55 = vld [vmem:[%s2429_s6 + $0x38] sm:$0xff] }
 0x272   :  { %v1756_v60 = vpack.c.bf16 %v327_v54, %v322_v58  ;;  %v695_v54 = vld [vmem:[%s2429_s6 + $0x30] sm:$0xff] }
 0x274   :  { %1758 = vmatprep.subr.msk.bf16.mxu1 %vm2220_vm2, %v1756_v60 }
 0x275   :  { %1761 = vmatpush3.bf16.xpose.msk.msra.mxu1 %vm2220_vm2, %v1756_v60  ;;  %v1778_v60 = vpack.c.bf16 %v696_v55, %v695_v54 }
 0x276   :  { %v1613_v63 = vpop.f32.mrb[4].mxu1  ;;  %1767 = vmatprep.subr.bf16.mxu1 %v1766_v61 }
 0x277   :  { %v411_v2 = vadd.f32 %v1613_v63, %v1466_v62  ;;  %v405_v3 = vpop.f32.mrb[5].mxu1 }
 0x278   :  { %v406_v6 = vadd.f32 %v1466_v62, %v405_v3 }
 0x27a   :  { %v1762_v8 = vpack.c.bf16 %v411_v2, %v406_v6  ;;  %v1478_v2 = vld [vmem:[%s2430_s7 + $0x1] ss:$0 sm:$0xff] }
 0x27c   :  { %1619 = vmatmul.mubr.msk.f32.vlgmr.msra.gmra.mrb[6].mxu1 %vm414_vm1, %v243_v7  ;;  %1763 = vmatprep.subr.bf16.mxu0 %v1762_v8 }
 0x27d   :  { %1765 = vmatpush3.bf16.msra.mxu0 %v1762_v8  ;;  %1769 = vmatpush3.bf16.msra.mxu1 %v1766_v61 }
 0x27e   :  { %1636 = vmatprep.mubr.msk.f32.mxu1 %vm110_vm0, %v2171_v35  ;;  %1771 = vmatprep.subr.bf16.mxu1 %v1770_v9 }
 0x27f   :  { %1775 = vmatprep.subr.bf16.mxu0 %v1774_v50 }
 0x281   :  { %1773 = vmatpush3.bf16.msra.mxu1 %v1770_v9 }
 0x282   :  { %1783 = vmatprep.subr.bf16.mxu1 %v1782_v12 }
 0x284   :  { %1637 = vmatmul.mubr.msk.f32.vlgmr.msra.gmra.mrb[8].mxu1 %vm110_vm0, %v2181_v40 }
 0x285   :  { %1785 = vmatpush3.bf16.msra.mxu1 %v1782_v12  ;;  %1658 = vmatprep.mubr.msk.f32.mxu1 %vm110_vm0, %v2171_v35 }
 0x286   :  { %1787 = vmatprep.subr.bf16.mxu1 %v1786_v15 }
 0x289   :  { %1789 = vmatpush3.bf16.msra.mxu1 %v1786_v15 }
 0x28c   :  { %1659 = vmatmul.mubr.msk.f32.vlgmr.msra.gmra.mrb[10].mxu1 %vm110_vm0, %v2181_v40 }
 0x34f   :  { %v1620_v16 = vpop.f32.mrb[6].mxu1 }
 0x350   :  { %v503_v18 = vmul.f32 0.25, %v1620_v16  ;;  %v493_v19 = vpop.f32.mrb[7].mxu1 }
 0x351   :  { %v502_v21 = vmul.f32 0.25, %v493_v19 }
 0x352   :  { %v505_v22 = vadd.f32 %v503_v18, %v2261_v17 }
 0x353   :  { %v504_v23 = vadd.f32 %v502_v21, %v2266_v20 }
 0x354   :  { %v509_v24 = vsel %vm414_vm1, %v505_v22, -inf }
 0x355   :  { %510 = vmax.xlane.f32.xlu1 %v509_v24  ;;  %v506_v25 = vsel %vm414_vm1, %v504_v23, -inf }
 0x356   :  { %507 = vmax.xlane.f32.xlu0 %v506_v25 }
 0x357   :  { %v1638_v27 = vpop.f32.mrb[8].mxu1 }
 0x358   :  { %v690_v28 = vadd.f32 %v1638_v27, %v1475_v26  ;;  %v684_v29 = vpop.f32.mrb[9].mxu1 }
 0x359   :  { %v685_v61 = vadd.f32 %v1475_v26, %v684_v29  ;;  %v1065_v29 = vld [vmem:[%s2433_s10] sm:$0xff] }
 0x35f   :  { %v1660_v31 = vpop.f32.mrb[10].mxu1 }
 0x360   :  { %v858_v32 = vadd.f32 %v1660_v31, %v1481_v30  ;;  %v852_v33 = vpop.f32.mrb[11].mxu1  ;;  %v1067_v31 = vld [vmem:[%s2433_s10 + $0x10] sm:$0xff] }
 0x361   :  { %v853_v34 = vadd.f32 %v1481_v30, %v852_v33  ;;  %v1066_v30 = vld [vmem:[%s2433_s10 + $0x8] sm:$0xff]  ;;  %v1068_v33 = vld [vmem:[%s2433_s10 + $0x18] sm:$0xff] }
 0x363   :  { %v1796_v36 = vpack.c.bf16 %v858_v32, %v853_v34  ;;  %v1800_v32 = vpack.c.bf16 %v1066_v30, %v1065_v29  ;;  %v1804_v34 = vpack.c.bf16 %v1068_v33, %v1067_v31  ;;  %v1357_v30 = vld [vmem:[%s2439_s16 + $0x40] sm:$0xff]  ;;  %v1358_v31 = vld [vmem:[%s2439_s16 + $0x48] sm:$0xff]  ;;  %v1359_v33 = vld [vmem:[%s2439_s16 + $0x50] sm:$0xff] }
 0x365   :  { %1797 = vmatprep.subr.bf16.mxu1 %v1796_v36 }
 0x366   :  { %1799 = vmatpush3.bf16.msra.mxu1 %v1796_v36 }
 0x3e2   :  { %v511_v37 = vpop.xlane.xlu1 %510 }
 0x3e3   :  { %v513_v38 = vsub.f32 %v505_v22, %v511_v37  ;;  %v508_v39 = vpop.xlane.xlu0 %507 }
 0x3e4   :  { %v512_v41 = vsub.f32 %v504_v23, %v508_v39 }
 0x3e5   :  { %v516_v42 = vmul.f32 1.442695, %v513_v38 }
 0x3e6   :  { %v514_v43 = vmul.f32 1.442695, %v512_v41 }
 0x3e7   :  { %1858 = vpow2.f32 %v516_v42 }
 0x3e8   :  { %1860 = vpow2.f32 %v514_v43  ;;  %v1490_v43 = vld [vmem:[%s2434_s11] ss:$0 sm:$0xff] }
 0x3f1   :  { %v1859_v44 = vpop.eup %1858 }
 0x3f2   :  { %v1861_v45 = vpop.eup %1860  ;;  %v521_v46 = vsel %vm414_vm1, %v1859_v44, 0.0 }
 0x3f3   :  { %522 = vadd.xlane.f32.xlu1 %v521_v46  ;;  %v518_v47 = vsel %vm414_vm1, %v1861_v45, 0.0 }
 0x3f4   :  { %519 = vadd.xlane.f32.xlu0 %v518_v47 }
 0x480   :  { %v523_v51 = vpop.xlane.xlu1 %522 }
 0x481   :  { %1862 = vrcp.f32 %v523_v51  ;;  %v520_v52 = vpop.xlane.xlu0 %519 }
 0x482   :  { %1864 = vrcp.f32 %v520_v52 }
 0x48b   :  { %v1863_v53 = vpop.eup %1862 }
 0x48c   :  { %v1865_v56 = vpop.eup %1864  ;;  %v527_v58 = vmul.f32 %v1863_v53, %v1859_v44 }
 0x48d   :  { %v525_v57 = vmul.f32 %v1865_v56, %v1861_v45 }
 0x48f   :  { %1625 = vmatprep.mubr.msk.f32.mxu0 %vm414_vm1, %v525_v57 }
 0x490   :  { %1626 = vmatmul.mubr.msk.f32.vlgmr.msra.gmra.mrb[0].mxu0 %vm414_vm1, %v527_v58 }
 0x491   :  { %1777 = vmatpush3.bf16.msra.mxu0 %v1774_v50  ;;  %1647 = vmatprep.mubr.msk.f32.mxu0 %vm110_vm0, %v2171_v35 }
 0x492   :  { %1779 = vmatprep.subr.bf16.mxu0 %v1778_v60 }
 0x495   :  { %1781 = vmatpush3.bf16.msra.mxu0 %v1778_v60 }
 0x498   :  { %1648 = vmatmul.mubr.msk.f32.vlgmr.msra.gmra.mrb[2].mxu0 %vm110_vm0, %v2181_v40 }
 0x499   :  { %1665 = vmatprep.mubr.msk.f32.mxu0 %vm414_vm1, %v685_v61  ;;  %v1203_v61 = vld [vmem:[%s2437_s14] sm:$0xff] }
 0x563   :  { %v2299_v62 = vpop.f32.mrb[0].mxu0 }
 0x564   :  { %v600_v63 = vpop.f32.mrb[1].mxu0 }
 0x56b   :  { %v1649_v3 = vpop.f32.mrb[2].mxu0 }
 0x56c   :  { %v774_v4 = vadd.f32 %v1649_v3, %v1478_v2  ;;  %v768_v5 = vpop.f32.mrb[3].mxu0  ;;  %v1206_v3 = vld [vmem:[%s2437_s14 + $0x18] sm:$0xff] }
 0x56d   :  { %v769_v6 = vadd.f32 %v1478_v2, %v768_v5  ;;  %v1205_v2 = vld [vmem:[%s2437_s14 + $0x10] sm:$0xff] }
 0x56f   :  { %v1790_v35 = vpack.c.bf16 %v774_v4, %v769_v6  ;;  %v1812_v4 = vpack.c.bf16 %v1206_v3, %v1205_v2 }
 0x571   :  { %1792 = vmatprep.subr.msk.bf16.mxu0 %vm2220_vm2, %v1790_v35 }
 0x572   :  { %1795 = vmatpush3.bf16.xpose.msk.msra.mxu0 %vm2220_vm2, %v1790_v35 }
 0x573   :  { %1801 = vmatprep.subr.bf16.mxu0 %v1800_v32 }
 0x579   :  { %1666 = vmatmul.mubr.msk.f32.vlgmr.msra.gmra.mrb[4].mxu0 %vm414_vm1, %v690_v28 }
 0x57a   :  { %1803 = vmatpush3.bf16.msra.mxu0 %v1800_v32  ;;  %v1832_v32 = vpack.c.bf16 %v1358_v31, %v1357_v30 }
 0x57b   :  { %1805 = vmatprep.subr.bf16.mxu0 %v1804_v34 }
 0x57e   :  { %1807 = vmatpush3.bf16.msra.mxu0 %v1804_v34  ;;  %v1360_v34 = vld [vmem:[%s2439_s16 + $0x58] sm:$0xff] }
 0x64c   :  { %v1667_v40 = vpop.f32.mrb[4].mxu0 }
 0x64d   :  { %v949_v7 = vmul.f32 0.25, %v1667_v40  ;;  %v939_v8 = vpop.f32.mrb[5].mxu0 }
 0x64e   :  { %v948_v9 = vmul.f32 0.25, %v939_v8 }
 0x64f   :  { %v951_v10 = vadd.f32 %v949_v7, %v2261_v17 }
 0x650   :  { %v950_v11 = vadd.f32 %v948_v9, %v2266_v20 }
 0x651   :  { %v955_v12 = vsel %vm414_vm1, %v951_v10, -inf }
 0x652   :  { %956 = vmax.xlane.f32.xlu1 %v955_v12  ;;  %v952_v13 = vsel %vm414_vm1, %v950_v11, -inf }
 0x653   :  { %953 = vmax.xlane.f32.xlu0 %v952_v13 }
 0x6df   :  { %v957_v14 = vpop.xlane.xlu1 %956 }
 0x6e0   :  { %v959_v15 = vsub.f32 %v951_v10, %v957_v14  ;;  %v954_v59 = vpop.xlane.xlu0 %953  ;;  %v1493_v10 = vld [vmem:[#allocation2] ss:$0 sm:$0xff]  ;;  %v1494_v14 = vld [vmem:[#allocation4] ss:$0 sm:$0xff] }
 0x6e1   :  { %v958_v16 = vsub.f32 %v950_v11, %v954_v59 }
 0x6e2   :  { %v962_v18 = vmul.f32 1.442695, %v959_v15 }
 0x6e3   :  { %v960_v19 = vmul.f32 1.442695, %v958_v16 }
 0x6e4   :  { %1866 = vpow2.f32 %v962_v18 }
 0x6e5   :  { %1868 = vpow2.f32 %v960_v19  ;;  %v1349_v19 = vld [vmem:[%s2439_s16] sm:$0xff] }
 0x6ee   :  { %v1867_v21 = vpop.eup %1866 }
 0x6ef   :  { %v1869_v22 = vpop.eup %1868  ;;  %v967_v17 = vsel %vm414_vm1, %v1867_v21, 0.0 }
 0x6f0   :  { %968 = vadd.xlane.f32.xlu1 %v967_v17  ;;  %v964_v20 = vsel %vm414_vm1, %v1869_v22, 0.0  ;;  %v1351_v17 = vld [vmem:[%s2439_s16 + $0x10] sm:$0xff] }
 0x6f1   :  { %965 = vadd.xlane.f32.xlu0 %v964_v20  ;;  %v1352_v20 = vld [vmem:[%s2439_s16 + $0x18] sm:$0xff] }
 0x77d   :  { %v969_v23 = vpop.xlane.xlu1 %968 }
 0x77e   :  { %1870 = vrcp.f32 %v969_v23  ;;  %v966_v24 = vpop.xlane.xlu0 %965  ;;  %v1820_v23 = vpack.c.bf16 %v1352_v20, %v1351_v17 }
 0x77f   :  { %1872 = vrcp.f32 %v966_v24  ;;  %v1353_v24 = vld [vmem:[%s2439_s16 + $0x20] sm:$0xff] }
 0x788   :  { %v1871_v25 = vpop.eup %1870 }
 0x789   :  { %v1873_v26 = vpop.eup %1872  ;;  %v973_v28 = vmul.f32 %v1871_v25, %v1867_v21  ;;  %v1350_v21 = vld [vmem:[%s2439_s16 + $0x8] sm:$0xff] }
 0x78a   :  { %v971_v27 = vmul.f32 %v1873_v26, %v1869_v22  ;;  %v1816_v22 = vpack.c.bf16 %v1350_v21, %v1349_v19  ;;  %v1354_v25 = vld [vmem:[%s2439_s16 + $0x28] sm:$0xff] }
 0x78b   :  { %v1824_v26 = vpack.c.bf16 %v1354_v25, %v1353_v24  ;;  %v1985_v24 = vmov -1.0  }
 0x78c   :  { %1672 = vmatprep.mubr.msk.f32.mxu1 %vm414_vm1, %v971_v27  ;;  %1817 = vmatprep.subr.bf16.mxu0 %v1816_v22  ;;  %v1355_v27 = vld [vmem:[%s2439_s16 + $0x30] sm:$0xff] }
 0x78d   :  { %1673 = vmatmul.mubr.msk.f32.vlgmr.msra.gmra.mrb[12].mxu1 %vm414_vm1, %v973_v28  ;;  %v1356_v28 = vld [vmem:[%s2439_s16 + $0x38] sm:$0xff] }
 0x78e   :  { %v1828_v29 = vpack.c.bf16 %v1356_v28, %v1355_v27 }
 0x860   :  { %v1674_v36 = vpop.f32.mrb[12].mxu1 }
 0x861   :  { %1059 = vrot.lane.b32.xlu1 %v1674_v36, %s1984_s1  ;;  %v1046_v37 = vpop.f32.mrb[13].mxu1  ;;  %v1836_v36 = vpack.c.bf16 %v1360_v34, %v1359_v33 }
 0x862   :  { %1057 = vrot.lane.b32.xlu0 %v1046_v37, %s1984_s1  ;;  %v1361_v37 = vld [vmem:[%s2439_s16 + $0x60] sm:$0xff] }
 0x8d3   :  { %v1060_v38 = vpop.permute.xlu1 %1059 }
 0x8d4   :  { %v1058_v39 = vpop.permute.xlu0 %1057  ;;  %v1064_v42 = vsel %vm414_vm1, %v2299_v62, %v1060_v38  ;;  %v1204_v62 = vld [vmem:[%s2437_s14 + $0x8] sm:$0xff] }
 0x8d5   :  { %v1063_v41 = vsel %vm414_vm1, %v600_v63, %v1058_v39  ;;  %v1808_v63 = vpack.c.bf16 %v1204_v62, %v1203_v61  ;;  %v1362_v38 = vld [vmem:[%s2439_s16 + $0x68] sm:$0xff] }
 0x8d6   :  { %1683 = vmatprep.mubr.msk.f32.mxu0 %vm110_vm0, %v1063_v41  ;;  %v1840_v39 = vpack.c.bf16 %v1362_v38, %v1361_v37  ;;  %v1363_v41 = vld [vmem:[%s2439_s16 + $0x70] sm:$0xff]  ;;  %v1498_v37 = vld [vmem:[#allocation7] ss:$0 sm:$0xff] }
 0x8d7   :  { %1684 = vmatmul.mubr.msk.f32.vlgmr.msra.gmra.mrb[6].mxu0 %vm110_vm0, %v1064_v42  ;;  %1809 = vmatprep.subr.bf16.mxu1 %v1808_v63  ;;  %v1364_v42 = vld [vmem:[%s2439_s16 + $0x78] sm:$0xff] }
 0x8d8   :  { %1811 = vmatpush3.bf16.msra.mxu1 %v1808_v63  ;;  %1819 = vmatpush3.bf16.msra.mxu0 %v1816_v22 }
 0x8d9   :  { %1813 = vmatprep.subr.bf16.mxu1 %v1812_v4  ;;  %1821 = vmatprep.subr.bf16.mxu0 %v1820_v23 }
 0x8dc   :  { %1815 = vmatpush3.bf16.msra.mxu1 %v1812_v4  ;;  %1823 = vmatpush3.bf16.msra.mxu0 %v1820_v23 }
 0x8dd   :  { %1825 = vmatprep.subr.bf16.mxu0 %v1824_v26 }
 0x8e0   :  { %1827 = vmatpush3.bf16.msra.mxu0 %v1824_v26 }
 0x8e1   :  { %1829 = vmatprep.subr.bf16.mxu0 %v1828_v29 }
 0x8e4   :  { %1831 = vmatpush3.bf16.msra.mxu0 %v1828_v29 }
 0x8e5   :  { %1833 = vmatprep.subr.bf16.mxu0 %v1832_v32 }
 0x8e8   :  { %1835 = vmatpush3.bf16.msra.mxu0 %v1832_v32 }
 0x8e9   :  { %1837 = vmatprep.subr.bf16.mxu0 %v1836_v36 }
 0x8ec   :  { %1839 = vmatpush3.bf16.msra.mxu0 %v1836_v36 }
 0x8ed   :  { %1841 = vmatprep.subr.bf16.mxu0 %v1840_v39 }
 0x8f0   :  { %1843 = vmatpush3.bf16.msra.mxu0 %v1840_v39 }
 0x9aa   :  { %v1685_v44 = vpop.f32.mrb[6].mxu0 }
 0x9ab   :  { %v1154_v45 = vadd.f32 %v1685_v44, %v1490_v43  ;;  %v1148_v46 = vpop.f32.mrb[7].mxu0  ;;  %v1495_v44 = vld [vmem:[#allocation6] ss:$0 sm:$0xff] }
 0x9ac   :  { %v1149_v47 = vadd.f32 %v1490_v43, %v1148_v46  ;;  %v1844_v43 = vpack.c.bf16 %v1364_v42, %v1363_v41 }
 0x9ad   :  { %v2338_v48 = vadd.f32 %v1154_v45, %v2137_v1 }
 0x9ae   :  { %v2341_v49 = vadd.f32 %v1149_v47, %v2132_v0  ;;  %1845 = vmatprep.subr.bf16.mxu0 %v1844_v43 }
 0x9af   :  { %v1164_v50 = vsel %vm110_vm0, %v2338_v48, 0.0  ;;  %1847 = vmatpush3.bf16.msra.mxu0 %v1844_v43 }
 0x9b0   :  { %1165 = vadd.xlane.f32.xlu0 %v1164_v50  ;;  %v1161_v51 = vsel %vm110_vm0, %v2341_v49, 0.0 }
 0x9b1   :  { %1162 = vadd.xlane.f32.xlu1 %v1161_v51 }
 0xa3d   :  { %v1166_v52 = vpop.xlane.xlu0 %1165 }
 0xa3e   :  { %v1168_v53 = vmul.f32 0.03125, %v1166_v52  ;;  %v1163_v54 = vpop.xlane.xlu1 %1162 }
 0xa3f   :  { %v1167_v55 = vmul.f32 0.03125, %v1163_v54 }
 0xa40   :  { %v1170_v56 = vsub.f32 %v2338_v48, %v1168_v53 }
 0xa41   :  { %v1169_v1 = vsub.f32 %v2341_v49, %v1167_v55 }
 0xa42   :  { %v1172_v57 = vmul.f32 %v1170_v56, %v1170_v56 }
 0xa43   :  { %v1171_v58 = vmul.f32 %v1169_v1, %v1169_v1 }
 0xa44   :  { %v1176_v0 = vsel %vm110_vm0, %v1172_v57, 0.0 }
 0xa45   :  { %1177 = vadd.xlane.f32.xlu1 %v1176_v0  ;;  %v1173_v60 = vsel %vm110_vm0, %v1171_v58, 0.0 }
 0xa46   :  { %1174 = vadd.xlane.f32.xlu0 %v1173_v60 }
 0xad2   :  { %v1178_v5 = vpop.xlane.xlu1 %1177 }
 0xad3   :  { %v1180_v6 = vmul.f32 0.03125, %v1178_v5  ;;  %v1175_v35 = vpop.xlane.xlu0 %1174 }
 0xad4   :  { %v1179_v40 = vmul.f32 0.03125, %v1175_v35 }
 0xad5   :  { %v1182_v7 = vadd.f32 1e-05, %v1180_v6 }
 0xad6   :  { %v1181_v8 = vadd.f32 1e-05, %v1179_v40 }
 0xad7   :  { %1874 = vrsqrt.f32 %v1182_v7 }
 0xad8   :  { %1876 = vrsqrt.f32 %v1181_v8 }
 0xae1   :  { %v1875_v9 = vpop.eup %1874 }
 0xae2   :  { %v1877_v11 = vpop.eup %1876  ;;  %v1186_v12 = vmul.f32 %v1875_v9, %v1170_v56 }
 0xae3   :  { %v1185_v13 = vmul.f32 %v1877_v11, %v1169_v1 }
 0xae4   :  { %v1194_v15 = vmul.f32 %v1493_v10, %v1186_v12 }
 0xae5   :  { %v1193_v59 = vmul.f32 %v1493_v10, %v1185_v13 }
 0xae6   :  { %v1202_v18 = vadd.f32 %v1494_v14, %v1194_v15 }
 0xae7   :  { %v1201_v16 = vadd.f32 %v1494_v14, %v1193_v59 }
 0xae9   :  { %1694 = vmatprep.mubr.msk.f32.mxu1 %vm110_vm0, %v1201_v16 }
 0xaea   :  { %1695 = vmatmul.mubr.msk.f32.vlgmr.msra.gmra.mrb[14].mxu1 %vm110_vm0, %v1202_v18 }
 0xbbd   :  { %v1696_v45 = vpop.f32.mrb[14].mxu1 }
 0xbbe   :  { %v1292_v46 = vadd.f32 %v1696_v45, %v1495_v44  ;;  %v1286_v47 = vpop.f32.mrb[15].mxu1 }
 0xbbf   :  { %v1287_v50 = vadd.f32 %v1495_v44, %v1286_v47 }
 0xbc0   :  { %v1298_v51 = vmul.f32 0.70710677, %v1292_v46  ;;  %v1296_v33 = vmul.f32 0.5, %v1292_v46 }
 0xbc1   :  { %v1297_v52 = vmul.f32 0.70710677, %v1287_v50  ;;  %v1295_v31 = vmul.f32 0.5, %v1287_v50 }
 0xbc2   :  { %v1304_v53 = vand.u32 2147483647, %v1298_v51  ;;  %vm1300_vm3 = vcmp.ge.f32.partialorder %v1298_v51, 0.0 }
 0xbc3   :  { %v1303_v54 = vand.u32 2147483647, %v1297_v52  ;;  %vm1299_vm4 = vcmp.ge.f32.partialorder %v1297_v52, 0.0  ;;  %v1302_v25 = vsel %vm1300_vm3, 1.0, %v1985_v24 }
 0xbc4   :  { %v1306_v55 = vmul.f32 0.3275911, %v1304_v53  ;;  %v1332_v58 = vsub.f32 0.0, %v1304_v53  ;;  %v1301_v28 = vsel %vm1299_vm4, 1.0, %v1985_v24 }
 0xbc5   :  { %v1305_v56 = vmul.f32 0.3275911, %v1303_v54  ;;  %v1331_v0 = vsub.f32 0.0, %v1303_v54 }
 0xbc6   :  { %v1308_v1 = vadd.f32 1.0, %v1306_v55  ;;  %v1334_v61 = vmul.f32 %v1332_v58, %v1304_v53 }
 0xbc7   :  { %v1307_v57 = vadd.f32 1.0, %v1305_v56  ;;  %v1333_v2 = vmul.f32 %v1331_v0, %v1303_v54 }
 0xbc8   :  { %1878 = vrcp.f32 %v1308_v1  ;;  %v1337_v5 = vmul.f32 1.442695, %v1334_v61 }
 0xbc9   :  { %1880 = vrcp.f32 %v1307_v57  ;;  %v1335_v40 = vmul.f32 1.442695, %v1333_v2 }
 0xbca   :  { %1882 = vpow2.f32 %v1337_v5 }
 0xbcb   :  { %1884 = vpow2.f32 %v1335_v40 }
 0xbd2   :  { %v1879_v60 = vpop.eup %1878 }
 0xbd3   :  { %v1881_v62 = vpop.eup %1880  ;;  %v1314_v63 = vmul.f32 1.0614054, %v1879_v60 }
 0xbd4   :  { %v1313_v3 = vmul.f32 1.0614054, %v1881_v62  ;;  %v1883_v19 = vpop.eup %1882 }
 0xbd5   :  { %v1316_v4 = vadd.f32 -1.4531521, %v1314_v63  ;;  %v1885_v22 = vpop.eup %1884 }
 0xbd6   :  { %v1315_v6 = vadd.f32 -1.4531521, %v1313_v3 }
 0xbd7   :  { %v1318_v35 = vmul.f32 %v1879_v60, %v1316_v4 }
 0xbd8   :  { %v1317_v7 = vmul.f32 %v1881_v62, %v1315_v6 }
 0xbd9   :  { %v1320_v8 = vadd.f32 1.4214138, %v1318_v35 }
 0xbda   :  { %v1319_v9 = vadd.f32 1.4214138, %v1317_v7 }
 0xbdb   :  { %v1322_v10 = vmul.f32 %v1879_v60, %v1320_v8 }
 0xbdc   :  { %v1321_v11 = vmul.f32 %v1881_v62, %v1319_v9 }
 0xbdd   :  { %v1324_v12 = vadd.f32 -0.28449672, %v1322_v10 }
 0xbde   :  { %v1323_v13 = vadd.f32 -0.28449672, %v1321_v11 }
 0xbdf   :  { %v1326_v14 = vmul.f32 %v1879_v60, %v1324_v12 }
 0xbe0   :  { %v1325_v15 = vmul.f32 %v1881_v62, %v1323_v13 }
 0xbe1   :  { %v1328_v59 = vadd.f32 0.2548296, %v1326_v14 }
 0xbe2   :  { %v1327_v16 = vadd.f32 0.2548296, %v1325_v15 }
 0xbe3   :  { %v1330_v18 = vmul.f32 %v1879_v60, %v1328_v59 }
 0xbe4   :  { %v1329_v21 = vmul.f32 %v1881_v62, %v1327_v16 }
 0xbe5   :  { %v1340_v17 = vmul.f32 %v1883_v19, %v1330_v18 }
 0xbe6   :  { %v1339_v20 = vmul.f32 %v1885_v22, %v1329_v21 }
 0xbe7   :  { %v1342_v23 = vsub.f32 1.0, %v1340_v17 }
 0xbe8   :  { %v1341_v26 = vsub.f32 1.0, %v1339_v20 }
 0xbe9   :  { %v1344_v27 = vmul.f32 %v1342_v23, %v1302_v25 }
 0xbea   :  { %v1343_v29 = vmul.f32 %v1341_v26, %v1301_v28 }
 0xbeb   :  { %v1346_v30 = vadd.f32 1.0, %v1344_v27 }
 0xbec   :  { %v1345_v32 = vadd.f32 1.0, %v1343_v29 }
 0xbed   :  { %v1348_v36 = vmul.f32 %v1346_v30, %v1296_v33 }
 0xbee   :  { %v1347_v34 = vmul.f32 %v1345_v32, %v1295_v31 }
 0xbf0   :  { %1729 = vmatprep.mubr.f32.mxu0 %v1347_v34 }
 0xbf1   :  { %1730 = vmatmul.mubr.f32.vlgmr.msra.gmra.mrb[8].mxu0 %v1348_v36 }
 0xcc4   :  { %v1731_v38 = vpop.f32.mrb[8].mxu0 }
 0xcc5   :  { %v1444_v39 = vadd.f32 %v1731_v38, %v1498_v37  ;;  %v1438_v41 = vpop.f32.mrb[9].mxu0 }
 0xcc6   :  { %v1439_v42 = vadd.f32 %v1498_v37, %v1438_v41 }
 0xcc7   :  { %v1448_v43 = vadd.f32 %v1444_v39, %v2338_v48 }
 0xcc8   :  { %v1447_v44 = vadd.f32 %v1439_v42, %v2341_v49 }
 0xcc9   :  { %1450 = vst.msk [vmem:[%s2441_s18 + $0x8] sm:$0xff] %vm110_vm0, %v1448_v43 }
 0xcca   :  { %1449 = vst.msk [vmem:[%s2441_s18] sm:$0xff] %vm110_vm0, %v1447_v44 }
 0xccb   :  { %1455 = vsyncpa [#allocation3], 1 }
 0xccc   :  { %1456 = vsyncpa [#allocation5], 1 }
 0xccd   :  { %1457 = vsyncpa [#allocation8], 1 }

// kernel: tapnext_forward.11
= control target key start
LH: loop header
LB: loop body
LE: loop exit
PB: predicated region body
PF: predicated region fallthrough
CT: control target
= control target key end

     0   :  { %s3308_s0 = inlined_call_operand.vmem [shape: f32[8,32], index: 0, kind: input, shape index: {}]   ;;  %s3309_s1 = inlined_call_operand.hbm [shape: f32[1,32], index: 1, kind: input, shape index: {}]   ;;  %s3310_s2 = inlined_call_operand.hbm [shape: f32[1,32], index: 2, kind: input, shape index: {}]   ;;  %s3311_s3 = inlined_call_operand.vmem [shape: f32[32,256], index: 3, kind: input, shape index: {}]   ;;  %s3312_s4 = inlined_call_operand.vmem [shape: f32[1,256], index: 4, kind: input, shape index: {}]   ;;  %s3313_s5 = inlined_call_operand.vmem [shape: f32[1,256], index: 5, kind: input, shape index: {}]   ;;  %s3314_s6 = inlined_call_operand.vmem [shape: f32[1,256], index: 6, kind: input, shape index: {}]   ;;  %s3315_s7 = inlined_call_operand.vmem [shape: f32[256,256], index: 7, kind: input, shape index: {}]   ;;  %s3316_s8 = inlined_call_operand.vmem [shape: f32[1,256], index: 8, kind: input, shape index: {}]   ;;  %s3317_s9 = inlined_call_operand.vmem [shape: f32[1,256], index: 9, kind: input, shape index: {}]   ;;  %s3318_s10 = inlined_call_operand.vmem [shape: f32[1,256], index: 10, kind: input, shape index: {}]   ;;  %s3319_s11 = inlined_call_operand.vmem [shape: f32[256,512], index: 11, kind: input, shape index: {}]   ;;  %s3320_s12 = inlined_call_operand.vmem [shape: f32[1,512], index: 12, kind: input, shape index: {}]   ;;  %s3321_s13 = inlined_call_operand.vmem [shape: f32[32,256], index: 13, kind: input, shape index: {}]   ;;  %s3322_s14 = inlined_call_operand.vmem [shape: f32[1,256], index: 14, kind: input, shape index: {}]   ;;  %s3323_s15 = inlined_call_operand.vmem [shape: f32[1,256], index: 15, kind: input, shape index: {}]   ;;  %s3324_s16 = inlined_call_operand.vmem [shape: f32[1,256], index: 16, kind: input, shape index: {}]   ;;  %s3325_s17 = inlined_call_operand.vmem [shape: f32[256,256], index: 17, kind: input, shape index: {}]   ;;  %s3326_s18 = inlined_call_operand.vmem [shape: f32[1,256], index: 18, kind: input, shape index: {}]   ;;  %s3327_s19 = inlined_call_operand.vmem [shape: f32[1,256], index: 19, kind: input, shape index: {}]   ;;  %s3328_s20 = inlined_call_operand.vmem [shape: f32[1,256], index: 20, kind: input, shape index: {}]   ;;  %s3329_s21 = inlined_call_operand.vmem [shape: f32[256,1], index: 21, kind: input, shape index: {}]   ;;  %s3330_s22 = inlined_call_operand.<no memory space> [shape: f32[1,1], index: 22, kind: input, shape index: {}]   ;;  %s3331_s23 = inlined_call_operand.vmem [shape: f32[8,2], index: 23, kind: output, shape index: {0}]   ;;  %s3332_s24 = inlined_call_operand.vmem [shape: f32[8,512], index: 24, kind: output, shape index: {1}]   ;;  %s3333_s25 = inlined_call_operand.vmem [shape: f32[8,1], index: 25, kind: output, shape index: {2}]  }
   0x1   :  { %3338 = sst [smem:[#allocation9_spill]] %s3308_s0  ;;  %v31_v0 = vstv %s3330_s22 }
   0x2   :  { %3339 = sst [smem:[#allocation10_spill]] %s3309_s1  ;;  %32 = vst [vmem:[#allocation2] sm:$0x1] %v31_v0 }
   0x3   :  { %3340 = sst [smem:[#allocation11_spill]] %s3310_s2 }
   0x4   :  { %3341 = sst [smem:[#allocation12_spill]] %s3311_s3 }
   0x5   :  { %3342 = sst [smem:[#allocation13_spill]] %s3312_s4 }
   0x6   :  { %3343 = sst [smem:[#allocation14_spill]] %s3313_s5 }
   0x7   :  { %3344 = sst [smem:[#allocation15_spill]] %s3314_s6 }
   0x8   :  { %3345 = sst [smem:[#allocation16_spill]] %s3315_s7 }
   0x9   :  { %3346 = sst [smem:[#allocation17_spill]] %s3316_s8 }
   0xa   :  { %3347 = sst [smem:[#allocation18_spill]] %s3317_s9 }
   0xb   :  { %33 = vsyncpa [#allocation4], 0 }
   0xc   :  { %34 = vsyncpa [#allocation6], 0  ;;  %s1995_s6 = smov [#allocation3]   ;;  %s1996_s7 = smov [#allocation5]  }
   0xd   :  { %s43_s30 = sshll.u32 %s1995_s6, 4  ;;  %s53_s3 = sshll.u32 %s1996_s7, 4  ;;  %s44_s30 = int_to_ptr.vmem [resolvable:$true] %s43_s30  ;;  %s54_s3 = int_to_ptr.vmem [resolvable:$true] %s53_s3 }
   0xe   :  { %s3348_s8 = sld [smem:[#allocation10_spill]] }
  0x14   :  { %s1947_s27 = scalar_lea.hbm %s3348_s8, 16 }
  0x15   :  { %p1948_p0 = scmp.ne.s32.totalorder %s3348_s8, %s1947_s27  ;;  %p1951_p1 = scmp.lt.u32.totalorder %s1947_s27, %s3348_s8 }
  0x17   :  { %p1953_p2 = pnand %p1951_p1, %p1948_p0 }
  0x19   :  { %1956 = shalt.err (!%p1953_p2)
}
  0x1a   :  { %s1957_s22 = scalar_lea.vmem %s44_s30, 16  ;;  %s1961_s0 = scalar_lea.vmem %s44_s30, 32 }
  0x1b   :  { %p1958_p3 = scmp.ne.s32.totalorder %s44_s30, %s1957_s22  ;;  %p1962_p4 = scmp.lt.s32.totalorder %s44_s30, %s44_s30 }
  0x1c   :  { %p1963_p5 = scmp.lt.s32.totalorder %s1961_s0, %s1957_s22 }
  0x1e   :  { %p1964_p6 = por %p1963_p5, %p1962_p4 }
  0x20   :  { %p1965_p7 = pnand %p1964_p6, %p1958_p3 }
  0x22   :  { %1968 = shalt.err (!%p1965_p7)
}
  0x23   :  { %46 = dma.hbm_to_vmem [thread:$0]  %s3348_s8, 16, %s44_s30, [#allocation4]  }
  0x24   :  { %s3349_s26 = sld [smem:[#allocation11_spill]] }
  0x2a   :  { %s1969_s1 = scalar_lea.hbm %s3349_s26, 16 }
  0x2b   :  { %p1970_p8 = scmp.ne.s32.totalorder %s3349_s26, %s1969_s1  ;;  %p1973_p9 = scmp.lt.u32.totalorder %s1969_s1, %s3349_s26 }
  0x2d   :  { %p1975_p10 = pnand %p1973_p9, %p1970_p8 }
  0x2f   :  { %1978 = shalt.err (!%p1975_p10)
}
  0x30   :  { %s1979_s5 = scalar_lea.vmem %s54_s3, 16  ;;  %s1983_s22 = scalar_lea.vmem %s54_s3, 32 }
  0x31   :  { %p1980_p11 = scmp.ne.s32.totalorder %s54_s3, %s1979_s5  ;;  %p1984_p12 = scmp.lt.s32.totalorder %s54_s3, %s54_s3 }
  0x32   :  { %p1985_p13 = scmp.lt.s32.totalorder %s1983_s22, %s1979_s5 }
  0x34   :  { %p1986_p0 = por %p1985_p13, %p1984_p12 }
  0x36   :  { %p1987_p1 = pnand %p1986_p0, %p1980_p11 }
  0x38   :  { %1990 = shalt.err (!%p1987_p1)
}
  0x39   :  { %56 = dma.hbm_to_vmem [thread:$0]  %s3349_s26, 16, %s54_s3, [#allocation6]  }
  0x3a   :  { %1991 = dma.done.wait [#allocation4], 16  }
  0x3b   :  { %1992 = vsyncadd [#allocation4], 4294967280 }
  0x3c   :  { %1993 = dma.done.wait [#allocation6], 16  }
  0x3d   :  { %1994 = vsyncadd [#allocation6], 4294967280  ;;  %vm106_vm0 = vcmask 261120   ;;  %s3350_s2 = sld [smem:[#allocation9_spill]]  ;;  %s3351_s7 = sld [smem:[#allocation12_spill]]  ;;  %v1997_v15 = vmov 0.0   ;;  %v343_v30 = vlaneseq }
  0x3e   :  { %420 = vmatprep.mubr.f32.mxu0 %v1997_v15  ;;  %v1537_v25 = vld [vmem:[#allocation3] ss:$0 sm:$0xff]  ;;  %v1538_v27 = vld [vmem:[#allocation5] ss:$0 sm:$0xff]  ;;  %s3352_s26 = sld [smem:[#allocation13_spill]]  ;;  %s3353_s27 = sld [smem:[#allocation16_spill]] }
  0x3f   :  { %v2191_v31 = vshrl.u32 %v343_v30, 7  ;;  %s3356_s1 = sld [smem:[#allocation17_spill]]  ;;  %s3357_s30 = sld [smem:[#allocation18_spill]] }
  0x41   :  { %v2194_v32 = vsub.s32 0, %v2191_v31  ;;  %v2200_v34 = vsub.s32 1, %v2191_v31 }
  0x43   :  { %v103_v1 = vld [vmem:[%s3350_s2] sm:$0xff]  ;;  %v136_v8 = vld [vmem:[%s3351_s7 + $0x8] sm:$0xff]  ;;  %v138_v9 = vld [vmem:[%s3351_s7 + $0x18] sm:$0xff]  ;;  %s3354_s2 = sld [smem:[#allocation14_spill]] }
  0x44   :  { %v107_v2 = vsel %vm106_vm0, %v103_v1, 0.0  ;;  %v135_v10 = vld [vmem:[%s3351_s7] sm:$0xff]  ;;  %v1581_v11 = vpack.c.bf16 %v138_v9, %v136_v8  ;;  %v137_v12 = vld [vmem:[%s3351_s7 + $0x10] sm:$0xff]  ;;  %v140_v13 = vld [vmem:[%s3351_s7 + $0x28] sm:$0xff] }
  0x45   :  { %108 = vadd.xlane.f32.xlu0 %v107_v2  ;;  %v142_v14 = vld [vmem:[%s3351_s7 + $0x38] sm:$0xff]  ;;  %v1583_v16 = vpack.c.bf16 %v137_v12, %v135_v10  ;;  %v139_v18 = vld [vmem:[%s3351_s7 + $0x20] sm:$0xff]  ;;  %v141_v19 = vld [vmem:[%s3351_s7 + $0x30] sm:$0xff]  ;;  %s3355_s7 = sld [smem:[#allocation15_spill]] }
  0x46   :  { %v1585_v17 = vpack.c.bf16 %v142_v14, %v140_v13  ;;  %1582 = vmatprep.subr.bf16.mxu0 %v1581_v11  ;;  %v1587_v20 = vpack.c.bf16 %v141_v19, %v139_v18  ;;  %v143_v33 = vld [vmem:[%s3352_s26] sm:$0x3]  ;;  %v147_v49 = vld [vmem:[%s3353_s27 + $0x8] sm:$0xff]  ;;  %v149_v50 = vld [vmem:[%s3353_s27 + $0x18] sm:$0xff] }
  0x47   :  { %1584 = vmatpush1.bf16.msra.mxu0 %v1583_v16  ;;  %v346_v35 = vrot.slane %v143_v33, %v2194_v32  ;;  %v350_v36 = vrot.slane %v143_v33, %v2200_v34  ;;  %v1589_v51 = vpack.c.bf16 %v149_v50, %v147_v49  ;;  %v146_v52 = vld [vmem:[%s3353_s27] sm:$0xff]  ;;  %v148_v53 = vld [vmem:[%s3353_s27 + $0x10] sm:$0xff]  ;;  %v151_v55 = vld [vmem:[%s3353_s27 + $0x28] sm:$0xff] }
  0x48   :  { %1586 = vmatprep.subr.bf16.mxu0 %v1585_v17  ;;  %v1591_v54 = vpack.c.bf16 %v148_v53, %v146_v52  ;;  %v153_v56 = vld [vmem:[%s3353_s27 + $0x38] sm:$0xff]  ;;  %v150_v57 = vld [vmem:[%s3353_s27 + $0x20] sm:$0xff]  ;;  %v152_v59 = vld [vmem:[%s3353_s27 + $0x30] sm:$0xff] }
  0x49   :  { %1590 = vmatprep.subr.bf16.mxu1 %v1589_v51  ;;  %v1593_v58 = vpack.c.bf16 %v153_v56, %v151_v55  ;;  %v155_v60 = vld [vmem:[%s3353_s27 + $0x48] sm:$0xff]  ;;  %v157_v61 = vld [vmem:[%s3353_s27 + $0x58] sm:$0xff]  ;;  %v1595_v62 = vpack.c.bf16 %v152_v59, %v150_v57  ;;  %v154_v0 = vld [vmem:[%s3353_s27 + $0x40] sm:$0xff] }
  0x4a   :  { %1592 = vmatpush1.bf16.msra.mxu1 %v1591_v54  ;;  %v1597_v63 = vpack.c.bf16 %v157_v61, %v155_v60  ;;  %v159_v2 = vld [vmem:[%s3353_s27 + $0x68] sm:$0xff]  ;;  %v165_v9 = vld [vmem:[%s3353_s27 + $0x98] sm:$0xff]  ;;  %v162_v12 = vld [vmem:[%s3353_s27 + $0x80] sm:$0xff] }
  0x4b   :  { %1588 = vmatpush1.bf16.msra.mxu0 %v1587_v20  ;;  %1594 = vmatprep.subr.bf16.mxu1 %v1593_v58  ;;  %v163_v8 = vld [vmem:[%s3353_s27 + $0x88] sm:$0xff]  ;;  %v164_v13 = vld [vmem:[%s3353_s27 + $0x90] sm:$0xff]  ;;  %v169_v16 = vld [vmem:[%s3353_s27 + $0xb8] sm:$0xff] }
  0x4c   :  { %v1605_v11 = vpack.c.bf16 %v165_v9, %v163_v8  ;;  %v167_v14 = vld [vmem:[%s3353_s27 + $0xa8] sm:$0xff]  ;;  %v1607_v17 = vpack.c.bf16 %v164_v13, %v162_v12  ;;  %v166_v19 = vld [vmem:[%s3353_s27 + $0xa0] sm:$0xff]  ;;  %v168_v20 = vld [vmem:[%s3353_s27 + $0xb0] sm:$0xff] }
  0x4d   :  { %v1609_v18 = vpack.c.bf16 %v169_v16, %v167_v14  ;;  %v182_v50 = vld [vmem:[%s3353_s27 + $0x120] sm:$0xff]  ;;  %v184_v51 = vld [vmem:[%s3353_s27 + $0x130] sm:$0xff]  ;;  %v187_v52 = vld [vmem:[%s3353_s27 + $0x148] sm:$0xff] }
  0x4e   :  { %1596 = vmatpush1.bf16.msra.mxu1 %v1595_v62  ;;  %v189_v53 = vld [vmem:[%s3353_s27 + $0x158] sm:$0xff]  ;;  %v1627_v54 = vpack.c.bf16 %v184_v51, %v182_v50  ;;  %v186_v56 = vld [vmem:[%s3353_s27 + $0x140] sm:$0xff]  ;;  %v188_v57 = vld [vmem:[%s3353_s27 + $0x150] sm:$0xff] }
  0x4f   :  { %1598 = vmatprep.subr.bf16.mxu1 %v1597_v63  ;;  %v1629_v55 = vpack.c.bf16 %v189_v53, %v187_v52  ;;  %v191_v58 = vld [vmem:[%s3353_s27 + $0x168] sm:$0xff]  ;;  %v193_v59 = vld [vmem:[%s3353_s27 + $0x178] sm:$0xff]  ;;  %v1631_v60 = vpack.c.bf16 %v188_v57, %v186_v56  ;;  %v190_v62 = vld [vmem:[%s3353_s27 + $0x160] sm:$0xff] }
  0x50   :  { %v1633_v61 = vpack.c.bf16 %v193_v59, %v191_v58  ;;  %v192_v63 = vld [vmem:[%s3353_s27 + $0x170] sm:$0xff]  ;;  %v203_v12 = vld [vmem:[%s3353_s27 + $0x1c8] sm:$0xff]  ;;  %v205_v13 = vld [vmem:[%s3353_s27 + $0x1d8] sm:$0xff] }
  0x51   :  { %v1645_v16 = vpack.c.bf16 %v205_v13, %v203_v12 }
  0xd2   :  { %v109_v3 = vpop.xlane.xlu0 %108 }
  0xd3   :  { %v111_v4 = vmul.f32 0.03125, %v109_v3  ;;  %v161_v3 = vld [vmem:[%s3353_s27 + $0x78] sm:$0xff] }
  0xd5   :  { %v112_v5 = vsub.f32 %v103_v1, %v111_v4  ;;  %v156_v1 = vld [vmem:[%s3353_s27 + $0x50] sm:$0xff] }
  0xd6   :  { %v1599_v4 = vpack.c.bf16 %v156_v1, %v154_v0  ;;  %v195_v0 = vld [vmem:[%s3353_s27 + $0x188] sm:$0xff]  ;;  %v197_v1 = vld [vmem:[%s3353_s27 + $0x198] sm:$0xff] }
  0xd7   :  { %v113_v6 = vmul.f32 %v112_v5, %v112_v5 }
  0xd8   :  { %1600 = vmatpush1.bf16.msra.mxu1 %v1599_v4  ;;  %v194_v4 = vld [vmem:[%s3353_s27 + $0x180] sm:$0xff] }
  0xd9   :  { %v114_v7 = vsel %vm106_vm0, %v113_v6, 0.0  ;;  %v158_v6 = vld [vmem:[%s3353_s27 + $0x60] sm:$0xff] }
  0xda   :  { %115 = vadd.xlane.f32.xlu0 %v114_v7  ;;  %v160_v7 = vld [vmem:[%s3353_s27 + $0x70] sm:$0xff] }
  0xdb   :  { %v1603_v10 = vpack.c.bf16 %v160_v7, %v158_v6  ;;  %v199_v6 = vld [vmem:[%s3353_s27 + $0x1a8] sm:$0xff]  ;;  %v201_v7 = vld [vmem:[%s3353_s27 + $0x1b8] sm:$0xff] }
  0xdc   :  { %v1641_v9 = vpack.c.bf16 %v201_v7, %v199_v6 }
 0x167   :  { %v116_v21 = vpop.xlane.xlu0 %115 }
 0x168   :  { %v117_v22 = vmul.f32 0.03125, %v116_v21  ;;  %v171_v21 = vld [vmem:[%s3353_s27 + $0xc8] sm:$0xff] }
 0x16a   :  { %v118_v23 = vadd.f32 1e-05, %v117_v22  ;;  %v173_v22 = vld [vmem:[%s3353_s27 + $0xd8] sm:$0xff] }
 0x16c   :  { %1889 = vrsqrt.f32 %v118_v23  ;;  %v1611_v23 = vpack.c.bf16 %v168_v20, %v166_v19  ;;  %v207_v19 = vld [vmem:[%s3353_s27 + $0x1e8] sm:$0xff]  ;;  %v209_v20 = vld [vmem:[%s3353_s27 + $0x1f8] sm:$0xff] }
 0x176   :  { %v1890_v24 = vpop.eup %1889 }
 0x177   :  { %v120_v26 = vmul.f32 %v1890_v24, %v112_v5  ;;  %v1601_v5 = vpack.c.bf16 %v161_v3, %v159_v2  ;;  %v1613_v24 = vpack.c.bf16 %v173_v22, %v171_v21  ;;  %v1635_v2 = vpack.c.bf16 %v192_v63, %v190_v62 }
 0x178   :  { %v1637_v3 = vpack.c.bf16 %v197_v1, %v195_v0  ;;  %v1649_v22 = vpack.c.bf16 %v209_v20, %v207_v19 }
 0x179   :  { %v127_v28 = vmul.f32 %v1537_v25, %v120_v26  ;;  %1602 = vmatprep.subr.bf16.mxu1 %v1601_v5  ;;  %v170_v25 = vld [vmem:[%s3353_s27 + $0xc0] sm:$0xff]  ;;  %v172_v26 = vld [vmem:[%s3353_s27 + $0xd0] sm:$0xff] }
 0x17a   :  { %1604 = vmatpush1.bf16.msra.mxu1 %v1603_v10  ;;  %v1615_v33 = vpack.c.bf16 %v172_v26, %v170_v25  ;;  %v196_v5 = vld [vmem:[%s3353_s27 + $0x190] sm:$0xff]  ;;  %v198_v10 = vld [vmem:[%s3353_s27 + $0x1a0] sm:$0xff] }
 0x17b   :  { %v2186_v29 = vadd.f32 %v1538_v27, %v127_v28  ;;  %1606 = vmatprep.subr.bf16.mxu1 %v1605_v11  ;;  %v175_v27 = vld [vmem:[%s3353_s27 + $0xe8] sm:$0xff]  ;;  %v177_v28 = vld [vmem:[%s3353_s27 + $0xf8] sm:$0xff]  ;;  %v1639_v8 = vpack.c.bf16 %v196_v5, %v194_v4  ;;  %v200_v11 = vld [vmem:[%s3353_s27 + $0x1b0] sm:$0xff] }
 0x17c   :  { %v1643_v14 = vpack.c.bf16 %v200_v11, %v198_v10 }
 0x17d   :  { %1539 = vmatmul.mubr.msk.f32.vlgmr.msra.gmra.mrb[0].mxu0 %vm106_vm0, %v2186_v29 }
 0x17e   :  { %1608 = vmatpush1.bf16.msra.mxu1 %v1607_v17  ;;  %v202_v17 = vld [vmem:[%s3353_s27 + $0x1c0] sm:$0xff] }
 0x17f   :  { %1610 = vmatprep.subr.bf16.mxu1 %v1609_v18  ;;  %v204_v18 = vld [vmem:[%s3353_s27 + $0x1d0] sm:$0xff] }
 0x180   :  { %v1647_v21 = vpack.c.bf16 %v204_v18, %v202_v17 }
 0x182   :  { %1612 = vmatpush1.bf16.msra.mxu1 %v1611_v23  ;;  %v206_v23 = vld [vmem:[%s3353_s27 + $0x1e0] sm:$0xff] }
 0x183   :  { %1614 = vmatprep.subr.bf16.mxu1 %v1613_v24  ;;  %v208_v24 = vld [vmem:[%s3353_s27 + $0x1f0] sm:$0xff] }
 0x184   :  { %v1651_v25 = vpack.c.bf16 %v208_v24, %v206_v23  ;;  %v1998_v23 = vmov -1.0  }
 0x186   :  { %1616 = vmatpush1.bf16.msra.mxu1 %v1615_v33  ;;  %v144_v33 = vld [vmem:[%s3354_s2] sm:$0x3] }
 0x250   :  { %v422_v37 = vpop.f32.mrb[0].mxu0 }
 0x251   :  { %v423_v38 = vadd.f32 %v422_v37, %v346_v35  ;;  %v424_v39 = vpop.f32.mrb[1].mxu0  ;;  %v1617_v35 = vpack.c.bf16 %v177_v28, %v175_v27  ;;  %v176_v37 = vld [vmem:[%s3353_s27 + $0xf0] sm:$0xff] }
 0x252   :  { %v425_v40 = vadd.f32 %v424_v39, %v350_v36  ;;  %v174_v36 = vld [vmem:[%s3353_s27 + $0xe0] sm:$0xff]  ;;  %v181_v39 = vld [vmem:[%s3353_s27 + $0x118] sm:$0xff] }
 0x253   :  { %1618 = vmatprep.subr.bf16.mxu1 %v1617_v35  ;;  %v145_v35 = vld [vmem:[%s3355_s7] sm:$0x3] }
 0x254   :  { %v427_v41 = vadd.f32 %v425_v40, %v423_v38 }
 0x256   :  { %428 = vadd.xlane.f32.xlu1 %v427_v41 }
 0x2e3   :  { %v429_v42 = vpop.xlane.xlu1 %428 }
 0x2e4   :  { %v431_v43 = vmul.f32 0.00390625, %v429_v42  ;;  %v178_v42 = vld [vmem:[%s3353_s27 + $0x100] sm:$0xff] }
 0x2e6   :  { %v2204_v44 = vsub.f32 %v423_v38, %v431_v43  ;;  %v2206_v45 = vsub.f32 %v425_v40, %v431_v43  ;;  %v179_v38 = vld [vmem:[%s3353_s27 + $0x108] sm:$0xff]  ;;  %v1619_v40 = vpack.c.bf16 %v176_v37, %v174_v36  ;;  %v180_v43 = vld [vmem:[%s3353_s27 + $0x110] sm:$0xff]  ;;  %v448_v36 = vrot.slane %v144_v33, %v2194_v32 }
 0x2e7   :  { %v1621_v41 = vpack.c.bf16 %v181_v39, %v179_v38  ;;  %v452_v37 = vrot.slane %v144_v33, %v2200_v34 }
 0x2e8   :  { %v434_v46 = vmul.f32 %v2204_v44, %v2204_v44  ;;  %v435_v47 = vmul.f32 %v2206_v45, %v2206_v45  ;;  %1620 = vmatpush1.bf16.msra.mxu1 %v1619_v40  ;;  %v461_v40 = vrot.slane %v145_v35, %v2194_v32 }
 0x2e9   :  { %1622 = vmatprep.subr.bf16.mxu1 %v1621_v41  ;;  %v465_v41 = vrot.slane %v145_v35, %v2200_v34 }
 0x2ea   :  { %v436_v48 = vadd.f32 %v435_v47, %v434_v46  ;;  %v183_v46 = vld [vmem:[%s3353_s27 + $0x128] sm:$0xff]  ;;  %v185_v47 = vld [vmem:[%s3353_s27 + $0x138] sm:$0xff] }
 0x2eb   :  { %v1625_v49 = vpack.c.bf16 %v185_v47, %v183_v46 }
 0x2ec   :  { %437 = vadd.xlane.f32.xlu1 %v436_v48  ;;  %v1623_v48 = vpack.c.bf16 %v180_v43, %v178_v42 }
 0x2ee   :  { %1624 = vmatpush1.bf16.msra.mxu1 %v1623_v48 }
 0x2ef   :  { %1626 = vmatprep.subr.bf16.mxu1 %v1625_v49 }
 0x2f2   :  { %1628 = vmatpush1.bf16.msra.mxu1 %v1627_v54 }
 0x2f3   :  { %1630 = vmatprep.subr.bf16.mxu1 %v1629_v55 }
 0x2f6   :  { %1632 = vmatpush1.bf16.msra.mxu1 %v1631_v60 }
 0x2f7   :  { %1634 = vmatprep.subr.bf16.mxu1 %v1633_v61 }
 0x2fa   :  { %1636 = vmatpush1.bf16.msra.mxu1 %v1635_v2 }
 0x2fb   :  { %1638 = vmatprep.subr.bf16.mxu1 %v1637_v3 }
 0x2fe   :  { %1640 = vmatpush1.bf16.msra.mxu1 %v1639_v8 }
 0x2ff   :  { %1642 = vmatprep.subr.bf16.mxu1 %v1641_v9 }
 0x302   :  { %1644 = vmatpush1.bf16.msra.mxu1 %v1643_v14 }
 0x303   :  { %1646 = vmatprep.subr.bf16.mxu1 %v1645_v16 }
 0x306   :  { %1648 = vmatpush1.bf16.msra.mxu1 %v1647_v21 }
 0x307   :  { %1650 = vmatprep.subr.bf16.mxu1 %v1649_v22 }
 0x30a   :  { %1652 = vmatpush1.bf16.msra.mxu1 %v1651_v25 }
 0x379   :  { %v438_v26 = vpop.xlane.xlu1 %437 }
 0x37a   :  { %v439_v27 = vmul.f32 0.00390625, %v438_v26 }
 0x37c   :  { %v440_v28 = vadd.f32 1e-05, %v439_v27 }
 0x37e   :  { %1891 = vrsqrt.f32 %v440_v28 }
 0x388   :  { %v1892_v38 = vpop.eup %1891 }
 0x389   :  { %v443_v39 = vmul.f32 %v1892_v38, %v2206_v45  ;;  %v442_v42 = vmul.f32 %v1892_v38, %v2204_v44 }
 0x38b   :  { %v456_v43 = vmul.f32 %v452_v37, %v443_v39  ;;  %v455_v46 = vmul.f32 %v448_v36, %v442_v42 }
 0x38d   :  { %v469_v47 = vadd.f32 %v465_v41, %v456_v43  ;;  %v468_v48 = vadd.f32 %v461_v40, %v455_v46  ;;  %v210_v40 = vld [vmem:[%s3356_s1] sm:$0x3] }
 0x38e   :  { %v528_v41 = vrot.slane %v210_v40, %v2194_v32  ;;  %v532_v42 = vrot.slane %v210_v40, %v2200_v34 }
 0x38f   :  { %v473_v49 = vmul.f32 0.70710677, %v469_v47  ;;  %v472_v50 = vmul.f32 0.70710677, %v468_v48  ;;  %v471_v33 = vmul.f32 0.5, %v469_v47  ;;  %v470_v36 = vmul.f32 0.5, %v468_v48 }
 0x391   :  { %v479_v51 = vand.u32 2147483647, %v473_v49  ;;  %v478_v52 = vand.u32 2147483647, %v472_v50  ;;  %vm475_vm1 = vcmp.ge.f32.partialorder %v473_v49, 0.0  ;;  %vm474_vm2 = vcmp.ge.f32.partialorder %v472_v50, 0.0 }
 0x392   :  { %v477_v24 = vsel %vm475_vm1, 1.0, %v1998_v23  ;;  %v476_v27 = vsel %vm474_vm2, 1.0, %v1998_v23  ;;  %vm974_vm1 = vcmask 7168   ;;  %vm977_vm2 = vcmask 15360  }
 0x393   :  { %v481_v53 = vmul.f32 0.3275911, %v479_v51  ;;  %v480_v54 = vmul.f32 0.3275911, %v478_v52  ;;  %v507_v45 = vsub.f32 0.0, %v479_v51  ;;  %v506_v57 = vsub.f32 0.0, %v478_v52 }
 0x395   :  { %v483_v55 = vadd.f32 1.0, %v481_v53  ;;  %v482_v56 = vadd.f32 1.0, %v480_v54  ;;  %v509_v59 = vmul.f32 %v507_v45, %v479_v51  ;;  %v508_v61 = vmul.f32 %v506_v57, %v478_v52  ;;  %v214_v45 = vld [vmem:[%s3319_s11 + $0x8] sm:$0xff] }
 0x396   :  { %v218_v57 = vld [vmem:[%s3319_s11 + $0x28] sm:$0xff] }
 0x397   :  { %1893 = vrcp.f32 %v483_v55  ;;  %v512_v0 = vmul.f32 1.442695, %v509_v59  ;;  %v510_v3 = vmul.f32 1.442695, %v508_v61  ;;  %v213_v59 = vld [vmem:[%s3319_s11] sm:$0xff] }
 0x398   :  { %1895 = vrcp.f32 %v482_v56 }
 0x399   :  { %1897 = vpow2.f32 %v512_v0  ;;  %v219_v0 = vld [vmem:[%s3319_s11 + $0x30] sm:$0xff] }
 0x39a   :  { %1899 = vpow2.f32 %v510_v3  ;;  %v222_v3 = vld [vmem:[%s3319_s11 + $0x48] sm:$0xff] }
 0x3a1   :  { %v1894_v58 = vpop.eup %1893 }
 0x3a2   :  { %v1896_v60 = vpop.eup %1895  ;;  %v489_v44 = vmul.f32 1.0614054, %v1894_v58 }
 0x3a3   :  { %v488_v62 = vmul.f32 1.0614054, %v1896_v60  ;;  %v1898_v17 = vpop.eup %1897 }
 0x3a4   :  { %v491_v63 = vadd.f32 -1.4531521, %v489_v44  ;;  %v1900_v19 = vpop.eup %1899  ;;  %v216_v44 = vld [vmem:[%s3319_s11 + $0x18] sm:$0xff] }
 0x3a5   :  { %v490_v1 = vadd.f32 -1.4531521, %v488_v62  ;;  %v220_v62 = vld [vmem:[%s3319_s11 + $0x38] sm:$0xff] }
 0x3a6   :  { %v493_v2 = vmul.f32 %v1894_v58, %v491_v63  ;;  %v215_v63 = vld [vmem:[%s3319_s11 + $0x10] sm:$0xff] }
 0x3a7   :  { %v492_v4 = vmul.f32 %v1896_v60, %v490_v1  ;;  %v1717_v1 = vpack.c.bf16 %v220_v62, %v216_v44  ;;  %v253_v62 = vld [vmem:[%s3319_s11 + $0x140] sm:$0xff] }
 0x3a8   :  { %v495_v5 = vadd.f32 1.4214138, %v493_v2  ;;  %v1719_v2 = vpack.c.bf16 %v219_v0, %v215_v63  ;;  %v257_v63 = vld [vmem:[%s3319_s11 + $0x160] sm:$0xff] }
 0x3a9   :  { %v494_v6 = vadd.f32 1.4214138, %v492_v4  ;;  %v226_v4 = vld [vmem:[%s3319_s11 + $0x68] sm:$0xff]  ;;  %1718 = vmatprep.subr.bf16.mxu1 %v1717_v1  ;;  %v256_v1 = vld [vmem:[%s3319_s11 + $0x158] sm:$0xff] }
 0x3aa   :  { %v497_v7 = vmul.f32 %v1894_v58, %v495_v5  ;;  %v1657_v5 = vpack.c.bf16 %v226_v4, %v222_v3  ;;  %v255_v3 = vld [vmem:[%s3319_s11 + $0x150] sm:$0xff]  ;;  %v1675_v4 = vpack.c.bf16 %v257_v63, %v253_v62 }
 0x3ab   :  { %v496_v8 = vmul.f32 %v1896_v60, %v494_v6  ;;  %v221_v6 = vld [vmem:[%s3319_s11 + $0x40] sm:$0xff]  ;;  %v287_v63 = vld [vmem:[%s3319_s11 + $0x250] sm:$0xff] }
 0x3ac   :  { %v499_v9 = vadd.f32 -0.28449672, %v497_v7  ;;  %v225_v7 = vld [vmem:[%s3319_s11 + $0x60] sm:$0xff] }
 0x3ad   :  { %v498_v10 = vadd.f32 -0.28449672, %v496_v8  ;;  %v224_v8 = vld [vmem:[%s3319_s11 + $0x58] sm:$0xff] }
 0x3ae   :  { %v501_v11 = vmul.f32 %v1894_v58, %v499_v9  ;;  %v1659_v9 = vpack.c.bf16 %v225_v7, %v221_v6  ;;  %v259_v6 = vld [vmem:[%s3319_s11 + $0x170] sm:$0xff]  ;;  %v262_v7 = vld [vmem:[%s3319_s11 + $0x188] sm:$0xff] }
 0x3af   :  { %v500_v12 = vmul.f32 %v1896_v60, %v498_v10  ;;  %v228_v10 = vld [vmem:[%s3319_s11 + $0x78] sm:$0xff] }
 0x3b0   :  { %v503_v13 = vadd.f32 0.2548296, %v501_v11  ;;  %v223_v11 = vld [vmem:[%s3319_s11 + $0x50] sm:$0xff] }
 0x3b1   :  { %v502_v14 = vadd.f32 0.2548296, %v500_v12  ;;  %v227_v12 = vld [vmem:[%s3319_s11 + $0x70] sm:$0xff] }
 0x3b2   :  { %v505_v16 = vmul.f32 %v1894_v58, %v503_v13  ;;  %v1653_v58 = vpack.c.bf16 %v218_v57, %v214_v45  ;;  %v1721_v13 = vpack.c.bf16 %v228_v10, %v224_v8  ;;  %v266_v8 = vld [vmem:[%s3319_s11 + $0x1a8] sm:$0xff]  ;;  %v261_v10 = vld [vmem:[%s3319_s11 + $0x180] sm:$0xff] }
 0x3b3   :  { %v504_v18 = vmul.f32 %v1896_v60, %v502_v14  ;;  %v217_v60 = vld [vmem:[%s3319_s11 + $0x20] sm:$0xff]  ;;  %v1723_v14 = vpack.c.bf16 %v227_v12, %v223_v11  ;;  %v264_v12 = vld [vmem:[%s3319_s11 + $0x198] sm:$0xff] }
 0x3b4   :  { %v515_v20 = vmul.f32 %v1898_v17, %v505_v16  ;;  %v1655_v61 = vpack.c.bf16 %v217_v60, %v213_v59  ;;  %1654 = vmatprep.subr.bf16.mxu0 %v1653_v58  ;;  %v230_v16 = vld [vmem:[%s3319_s11 + $0x88] sm:$0xff]  ;;  %v247_v58 = vld [vmem:[%s3319_s11 + $0x110] sm:$0xff]  ;;  %v265_v11 = vld [vmem:[%s3319_s11 + $0x1a0] sm:$0xff] }
 0x3b5   :  { %v514_v21 = vmul.f32 %v1900_v19, %v504_v18  ;;  %v234_v17 = vld [vmem:[%s3319_s11 + $0xa8] sm:$0xff]  ;;  %v229_v19 = vld [vmem:[%s3319_s11 + $0x80] sm:$0xff]  ;;  %v251_v59 = vld [vmem:[%s3319_s11 + $0x130] sm:$0xff] }
 0x3b6   :  { %v517_v22 = vsub.f32 1.0, %v515_v20  ;;  %1656 = vmatpush1.bf16.msra.mxu0 %v1655_v61  ;;  %v1661_v18 = vpack.c.bf16 %v234_v17, %v230_v16  ;;  %v233_v20 = vld [vmem:[%s3319_s11 + $0xa0] sm:$0xff]  ;;  %v254_v60 = vld [vmem:[%s3319_s11 + $0x148] sm:$0xff]  ;;  %v1735_v44 = vpack.c.bf16 %v251_v59, %v247_v58  ;;  %v263_v16 = vld [vmem:[%s3319_s11 + $0x190] sm:$0xff] }
 0x3b7   :  { %v516_v25 = vsub.f32 1.0, %v514_v21  ;;  %1658 = vmatprep.subr.bf16.mxu0 %v1657_v5  ;;  %v232_v21 = vld [vmem:[%s3319_s11 + $0x98] sm:$0xff]  ;;  %v258_v61 = vld [vmem:[%s3319_s11 + $0x168] sm:$0xff]  ;;  %v285_v58 = vld [vmem:[%s3319_s11 + $0x240] sm:$0xff] }
 0x3b8   :  { %v519_v26 = vmul.f32 %v517_v22, %v477_v24  ;;  %v1663_v22 = vpack.c.bf16 %v233_v20, %v229_v19  ;;  %v236_v24 = vld [vmem:[%s3319_s11 + $0xb8] sm:$0xff]  ;;  %v1673_v0 = vpack.c.bf16 %v258_v61, %v254_v60  ;;  %v270_v19 = vld [vmem:[%s3319_s11 + $0x1c8] sm:$0xff]  ;;  %v289_v59 = vld [vmem:[%s3319_s11 + $0x260] sm:$0xff] }
 0x3b9   :  { %v518_v28 = vmul.f32 %v516_v25, %v476_v27  ;;  %v231_v25 = vld [vmem:[%s3319_s11 + $0x90] sm:$0xff]  ;;  %v1725_v27 = vpack.c.bf16 %v236_v24, %v232_v21  ;;  %v274_v20 = vld [vmem:[%s3319_s11 + $0x1e8] sm:$0xff]  ;;  %v1679_v21 = vpack.c.bf16 %v265_v11, %v261_v10  ;;  %v276_v24 = vld [vmem:[%s3319_s11 + $0x1f8] sm:$0xff] }
 0x3ba   :  { %v521_v35 = vadd.f32 1.0, %v519_v26  ;;  %1660 = vmatpush1.bf16.msra.mxu0 %v1659_v9  ;;  %v235_v26 = vld [vmem:[%s3319_s11 + $0xb0] sm:$0xff]  ;;  %v1677_v9 = vpack.c.bf16 %v266_v8, %v262_v7  ;;  %v298_v61 = vld [vmem:[%s3319_s11 + $0x2a8] sm:$0xff] }
 0x3bb   :  { %v520_v37 = vadd.f32 1.0, %v518_v28  ;;  %1662 = vmatprep.subr.bf16.mxu0 %v1661_v18  ;;  %v1727_v28 = vpack.c.bf16 %v235_v26, %v231_v25  ;;  %v267_v18 = vld [vmem:[%s3319_s11 + $0x1b0] sm:$0xff]  ;;  %v1681_v25 = vpack.c.bf16 %v274_v20, %v270_v19  ;;  %v269_v26 = vld [vmem:[%s3319_s11 + $0x1c0] sm:$0xff]  ;;  %v302_v8 = vld [vmem:[%s3319_s11 + $0x2c8] sm:$0xff] }
 0x3bc   :  { %v523_v38 = vmul.f32 %v521_v35, %v471_v33  ;;  %v238_v33 = vld [vmem:[%s3319_s11 + $0xc8] sm:$0xff]  ;;  %v295_v11 = vld [vmem:[%s3319_s11 + $0x290] sm:$0xff]  ;;  %v305_v19 = vld [vmem:[%s3319_s11 + $0x2e0] sm:$0xff] }
 0x3bd   :  { %v522_v39 = vmul.f32 %v520_v37, %v470_v36  ;;  %v242_v35 = vld [vmem:[%s3319_s11 + $0xe8] sm:$0xff]  ;;  %v237_v37 = vld [vmem:[%s3319_s11 + $0xc0] sm:$0xff] }
 0x3be   :  { %599 = vmatprep.mubr.f32.mxu1 %v523_v38  ;;  %1664 = vmatpush1.bf16.msra.mxu0 %v1663_v22  ;;  %v1665_v36 = vpack.c.bf16 %v242_v35, %v238_v33  ;;  %v241_v38 = vld [vmem:[%s3319_s11 + $0xe0] sm:$0xff]  ;;  %v272_v22 = vld [vmem:[%s3319_s11 + $0x1d8] sm:$0xff]  ;;  %v278_v33 = vld [vmem:[%s3319_s11 + $0x208] sm:$0xff] }
 0x3bf   :  { %600 = vmatmul.mubr.f32.vlgmr.msra.gmra.mrb[0].mxu1 %v522_v39  ;;  %v240_v39 = vld [vmem:[%s3319_s11 + $0xd8] sm:$0xff]  ;;  %v1667_v40 = vpack.c.bf16 %v241_v38, %v237_v37  ;;  %v282_v35 = vld [vmem:[%s3319_s11 + $0x228] sm:$0xff]  ;;  %v271_v37 = vld [vmem:[%s3319_s11 + $0x1d0] sm:$0xff] }
 0x3c0   :  { %1720 = vmatpush1.bf16.msra.mxu1 %v1719_v2  ;;  %1666 = vmatprep.subr.bf16.mxu0 %v1665_v36  ;;  %v260_v2 = vld [vmem:[%s3319_s11 + $0x178] sm:$0xff]  ;;  %v1745_v36 = vpack.c.bf16 %v276_v24, %v272_v22  ;;  %v275_v38 = vld [vmem:[%s3319_s11 + $0x1f0] sm:$0xff]  ;;  %v314_v22 = vld [vmem:[%s3319_s11 + $0x328] sm:$0xff] }
 0x3c1   :  { %1722 = vmatprep.subr.bf16.mxu1 %v1721_v13  ;;  %v1737_v5 = vpack.c.bf16 %v260_v2, %v256_v1  ;;  %v1739_v13 = vpack.c.bf16 %v259_v6, %v255_v3  ;;  %v1691_v1 = vpack.c.bf16 %v289_v59, %v285_v58  ;;  %v296_v2 = vld [vmem:[%s3319_s11 + $0x298] sm:$0xff]  ;;  %v297_v6 = vld [vmem:[%s3319_s11 + $0x2a0] sm:$0xff]  ;;  %v323_v58 = vld [vmem:[%s3319_s11 + $0x370] sm:$0xff] }
 0x3c2   :  { %1668 = vmatpush1.bf16.msra.mxu0 %v1667_v40  ;;  %v280_v40 = vld [vmem:[%s3319_s11 + $0x218] sm:$0xff] }
 0x3c3   :  { %v300_v3 = vld [vmem:[%s3319_s11 + $0x2b8] sm:$0xff] }
 0x3c4   :  { %1724 = vmatpush1.bf16.msra.mxu1 %v1723_v14  ;;  %v268_v14 = vld [vmem:[%s3319_s11 + $0x1b8] sm:$0xff]  ;;  %v1757_v10 = vpack.c.bf16 %v300_v3, %v296_v2  ;;  %v338_v2 = vld [vmem:[%s3319_s11 + $0x3e8] sm:$0xff] }
 0x3c5   :  { %1726 = vmatprep.subr.bf16.mxu1 %v1725_v27  ;;  %v1741_v17 = vpack.c.bf16 %v268_v14, %v264_v12  ;;  %v273_v27 = vld [vmem:[%s3319_s11 + $0x1e0] sm:$0xff]  ;;  %v299_v12 = vld [vmem:[%s3319_s11 + $0x2b0] sm:$0xff]  ;;  %v304_v14 = vld [vmem:[%s3319_s11 + $0x2d8] sm:$0xff] }
 0x3c6   :  { %v1759_v20 = vpack.c.bf16 %v299_v12, %v295_v11  ;;  %v337_v11 = vld [vmem:[%s3319_s11 + $0x3e0] sm:$0xff] }
 0x3c8   :  { %1728 = vmatpush1.bf16.msra.mxu1 %v1727_v28  ;;  %v1743_v28 = vpack.c.bf16 %v267_v18, %v263_v16  ;;  %v308_v16 = vld [vmem:[%s3319_s11 + $0x2f8] sm:$0xff]  ;;  %v301_v18 = vld [vmem:[%s3319_s11 + $0x2c0] sm:$0xff] }
 0x3c9   :  { %v1761_v24 = vpack.c.bf16 %v308_v16, %v304_v14  ;;  %v335_v14 = vld [vmem:[%s3319_s11 + $0x3d0] sm:$0xff] }
 0x3ca   :  { %v339_v16 = vld [vmem:[%s3319_s11 + $0x3f0] sm:$0xff] }
 0x492   :  { %v601_v43 = vpop.f32.mrb[0].mxu1 }
 0x493   :  { %v602_v46 = vadd.f32 %v601_v43, %v528_v41  ;;  %v603_v49 = vpop.f32.mrb[1].mxu1  ;;  %v244_v41 = vld [vmem:[%s3319_s11 + $0xf8] sm:$0xff]  ;;  %v243_v43 = vld [vmem:[%s3319_s11 + $0xf0] sm:$0xff] }
 0x494   :  { %v604_v50 = vadd.f32 %v603_v49, %v532_v42  ;;  %v239_v42 = vld [vmem:[%s3319_s11 + $0xd0] sm:$0xff] }
 0x495   :  { %v1731_v49 = vpack.c.bf16 %v243_v43, %v239_v42  ;;  %v1685_v42 = vpack.c.bf16 %v282_v35, %v278_v33  ;;  %v277_v43 = vld [vmem:[%s3319_s11 + $0x200] sm:$0xff]  ;;  %v316_v33 = vld [vmem:[%s3319_s11 + $0x338] sm:$0xff] }
 0x496   :  { %v606_v47 = vadd.f32 %v604_v50, %v602_v46 }
 0x498   :  { %607 = vadd.xlane.f32.xlu0 %v606_v47  ;;  %v250_v47 = vld [vmem:[%s3319_s11 + $0x128] sm:$0xff] }
 0x525   :  { %v608_v48 = vpop.xlane.xlu0 %607 }
 0x526   :  { %v609_v51 = vmul.f32 0.00390625, %v608_v48  ;;  %v245_v48 = vld [vmem:[%s3319_s11 + $0x100] sm:$0xff] }
 0x528   :  { %v2423_v52 = vsub.f32 %v602_v46, %v609_v51  ;;  %v2425_v53 = vsub.f32 %v604_v50, %v609_v51  ;;  %v1729_v46 = vpack.c.bf16 %v244_v41, %v240_v39  ;;  %v246_v50 = vld [vmem:[%s3319_s11 + $0x108] sm:$0xff]  ;;  %v1683_v39 = vpack.c.bf16 %v273_v27, %v269_v26  ;;  %v284_v41 = vld [vmem:[%s3319_s11 + $0x238] sm:$0xff]  ;;  %v307_v26 = vld [vmem:[%s3319_s11 + $0x2f0] sm:$0xff] }
 0x529   :  { %v1669_v51 = vpack.c.bf16 %v250_v47, %v246_v50  ;;  %v286_v50 = vld [vmem:[%s3319_s11 + $0x248] sm:$0xff]  ;;  %v1699_v27 = vpack.c.bf16 %v305_v19, %v301_v18  ;;  %v1779_v18 = vpack.c.bf16 %v339_v16, %v335_v14 }
 0x52a   :  { %v612_v54 = vmul.f32 %v2423_v52, %v2423_v52  ;;  %v613_v55 = vmul.f32 %v2425_v53, %v2425_v53  ;;  %1730 = vmatprep.subr.bf16.mxu1 %v1729_v46  ;;  %v281_v46 = vld [vmem:[%s3319_s11 + $0x220] sm:$0xff]  ;;  %v290_v47 = vld [vmem:[%s3319_s11 + $0x268] sm:$0xff] }
 0x52b   :  { %1732 = vmatpush1.bf16.msra.mxu1 %v1731_v49  ;;  %1670 = vmatprep.subr.bf16.mxu0 %v1669_v51  ;;  %v1747_v49 = vpack.c.bf16 %v275_v38, %v271_v37  ;;  %v279_v51 = vld [vmem:[%s3319_s11 + $0x210] sm:$0xff]  ;;  %v313_v37 = vld [vmem:[%s3319_s11 + $0x320] sm:$0xff]  ;;  %v980_v19 = vld [vmem:[%s3321_s13 + $0x8] sm:$0xff] }
 0x52c   :  { %v614_v56 = vadd.f32 %v613_v55, %v612_v54  ;;  %v249_v54 = vld [vmem:[%s3319_s11 + $0x120] sm:$0xff]  ;;  %v248_v55 = vld [vmem:[%s3319_s11 + $0x118] sm:$0xff] }
 0x52d   :  { %v1671_v45 = vpack.c.bf16 %v249_v54, %v245_v48  ;;  %v1749_v48 = vpack.c.bf16 %v284_v41, %v280_v40  ;;  %v283_v54 = vld [vmem:[%s3319_s11 + $0x230] sm:$0xff]  ;;  %v322_v40 = vld [vmem:[%s3319_s11 + $0x368] sm:$0xff] }
 0x52e   :  { %615 = vadd.xlane.f32.xlu1 %v614_v56  ;;  %v252_v56 = vld [vmem:[%s3319_s11 + $0x138] sm:$0xff]  ;;  %v1751_v60 = vpack.c.bf16 %v283_v54, %v279_v51  ;;  %v321_v51 = vld [vmem:[%s3319_s11 + $0x360] sm:$0xff] }
 0x52f   :  { %v1733_v57 = vpack.c.bf16 %v252_v56, %v248_v55  ;;  %1672 = vmatpush1.bf16.msra.mxu0 %v1671_v45  ;;  %v1687_v55 = vpack.c.bf16 %v281_v46, %v277_v43  ;;  %v288_v56 = vld [vmem:[%s3319_s11 + $0x258] sm:$0xff]  ;;  %v315_v43 = vld [vmem:[%s3319_s11 + $0x330] sm:$0xff] }
 0x530   :  { %1674 = vmatprep.subr.bf16.mxu0 %v1673_v0  ;;  %v292_v45 = vld [vmem:[%s3319_s11 + $0x278] sm:$0xff]  ;;  %v291_v0 = vld [vmem:[%s3319_s11 + $0x270] sm:$0xff] }
 0x531   :  { %1734 = vmatprep.subr.bf16.mxu1 %v1733_v57  ;;  %v1689_v57 = vpack.c.bf16 %v290_v47, %v286_v50  ;;  %v1753_v62 = vpack.c.bf16 %v292_v45, %v288_v56  ;;  %v1755_v7 = vpack.c.bf16 %v291_v0, %v287_v63  ;;  %v324_v50 = vld [vmem:[%s3319_s11 + $0x378] sm:$0xff]  ;;  %v330_v56 = vld [vmem:[%s3319_s11 + $0x3a8] sm:$0xff]  ;;  %v329_v63 = vld [vmem:[%s3319_s11 + $0x3a0] sm:$0xff] }
 0x532   :  { %1736 = vmatpush1.bf16.msra.mxu1 %v1735_v44  ;;  %v294_v44 = vld [vmem:[%s3319_s11 + $0x288] sm:$0xff] }
 0x533   :  { %1738 = vmatprep.subr.bf16.mxu1 %v1737_v5  ;;  %1676 = vmatpush1.bf16.msra.mxu0 %v1675_v4  ;;  %v1693_v4 = vpack.c.bf16 %v298_v61, %v294_v44  ;;  %v293_v5 = vld [vmem:[%s3319_s11 + $0x280] sm:$0xff]  ;;  %v332_v44 = vld [vmem:[%s3319_s11 + $0x3b8] sm:$0xff] }
 0x534   :  { %1678 = vmatprep.subr.bf16.mxu0 %v1677_v9  ;;  %v306_v9 = vld [vmem:[%s3319_s11 + $0x2e8] sm:$0xff] }
 0x536   :  { %1740 = vmatpush1.bf16.msra.mxu1 %v1739_v13  ;;  %v1695_v13 = vpack.c.bf16 %v297_v6, %v293_v5  ;;  %v331_v5 = vld [vmem:[%s3319_s11 + $0x3b0] sm:$0xff] }
 0x537   :  { %1742 = vmatprep.subr.bf16.mxu1 %v1741_v17  ;;  %1680 = vmatpush1.bf16.msra.mxu0 %v1679_v21  ;;  %v1697_v17 = vpack.c.bf16 %v306_v9, %v302_v8  ;;  %v310_v21 = vld [vmem:[%s3319_s11 + $0x308] sm:$0xff]  ;;  %v340_v8 = vld [vmem:[%s3319_s11 + $0x3f8] sm:$0xff] }
 0x538   :  { %1682 = vmatprep.subr.bf16.mxu0 %v1681_v25  ;;  %v303_v25 = vld [vmem:[%s3319_s11 + $0x2d0] sm:$0xff]  ;;  %v1701_v35 = vpack.c.bf16 %v314_v22, %v310_v21 }
 0x539   :  { %v1763_v38 = vpack.c.bf16 %v307_v26, %v303_v25  ;;  %v211_v26 = vld [vmem:[%s3357_s30] sm:$0x3] }
 0x53a   :  { %1744 = vmatpush1.bf16.msra.mxu1 %v1743_v28  ;;  %v312_v28 = vld [vmem:[%s3319_s11 + $0x318] sm:$0xff] }
 0x53b   :  { %1746 = vmatprep.subr.bf16.mxu1 %v1745_v36  ;;  %1684 = vmatpush1.bf16.msra.mxu0 %v1683_v39  ;;  %v309_v36 = vld [vmem:[%s3319_s11 + $0x300] sm:$0xff]  ;;  %v318_v39 = vld [vmem:[%s3319_s11 + $0x348] sm:$0xff]  ;;  %v1765_v41 = vpack.c.bf16 %v316_v33, %v312_v28  ;;  %v626_v28 = vrot.slane %v211_v26, %v2194_v32  ;;  %v630_v33 = vrot.slane %v211_v26, %v2200_v34 }
 0x53c   :  { %1686 = vmatprep.subr.bf16.mxu0 %v1685_v42  ;;  %v311_v42 = vld [vmem:[%s3319_s11 + $0x310] sm:$0xff]  ;;  %v1703_v46 = vpack.c.bf16 %v313_v37, %v309_v36  ;;  %v1705_v47 = vpack.c.bf16 %v322_v40, %v318_v39  ;;  %v979_v26 = vld [vmem:[%s3321_s13] sm:$0xff] }
 0x53d   :  { %v1767_v54 = vpack.c.bf16 %v315_v43, %v311_v42 }
 0x53e   :  { %1748 = vmatpush1.bf16.msra.mxu1 %v1747_v49  ;;  %v320_v49 = vld [vmem:[%s3319_s11 + $0x358] sm:$0xff] }
 0x53f   :  { %1750 = vmatprep.subr.bf16.mxu1 %v1749_v48  ;;  %1688 = vmatpush1.bf16.msra.mxu0 %v1687_v55  ;;  %v317_v48 = vld [vmem:[%s3319_s11 + $0x340] sm:$0xff]  ;;  %v326_v55 = vld [vmem:[%s3319_s11 + $0x388] sm:$0xff]  ;;  %v1769_v45 = vpack.c.bf16 %v324_v50, %v320_v49 }
 0x540   :  { %1690 = vmatprep.subr.bf16.mxu0 %v1689_v57  ;;  %v319_v57 = vld [vmem:[%s3319_s11 + $0x350] sm:$0xff]  ;;  %v1707_v59 = vpack.c.bf16 %v321_v51, %v317_v48  ;;  %v1709_v61 = vpack.c.bf16 %v330_v56, %v326_v55 }
 0x541   :  { %v1771_v0 = vpack.c.bf16 %v323_v58, %v319_v57 }
 0x542   :  { %1752 = vmatpush1.bf16.msra.mxu1 %v1751_v60  ;;  %v328_v60 = vld [vmem:[%s3319_s11 + $0x398] sm:$0xff] }
 0x543   :  { %1754 = vmatprep.subr.bf16.mxu1 %v1753_v62  ;;  %1692 = vmatpush1.bf16.msra.mxu0 %v1691_v1  ;;  %v325_v62 = vld [vmem:[%s3319_s11 + $0x380] sm:$0xff]  ;;  %v334_v1 = vld [vmem:[%s3319_s11 + $0x3c8] sm:$0xff]  ;;  %v1773_v3 = vpack.c.bf16 %v332_v44, %v328_v60 }
 0x544   :  { %1694 = vmatprep.subr.bf16.mxu0 %v1693_v4  ;;  %v327_v4 = vld [vmem:[%s3319_s11 + $0x390] sm:$0xff]  ;;  %v1711_v6 = vpack.c.bf16 %v329_v63, %v325_v62  ;;  %v1713_v9 = vpack.c.bf16 %v338_v2, %v334_v1 }
 0x545   :  { %v1775_v12 = vpack.c.bf16 %v331_v5, %v327_v4 }
 0x546   :  { %1756 = vmatpush1.bf16.msra.mxu1 %v1755_v7  ;;  %v336_v7 = vld [vmem:[%s3319_s11 + $0x3d8] sm:$0xff] }
 0x547   :  { %1758 = vmatprep.subr.bf16.mxu1 %v1757_v10  ;;  %1696 = vmatpush1.bf16.msra.mxu0 %v1695_v13  ;;  %v333_v10 = vld [vmem:[%s3319_s11 + $0x3c0] sm:$0xff]  ;;  %v1777_v13 = vpack.c.bf16 %v340_v8, %v336_v7 }
 0x548   :  { %1698 = vmatprep.subr.bf16.mxu0 %v1697_v17  ;;  %v1715_v17 = vpack.c.bf16 %v337_v11, %v333_v10 }
 0x54a   :  { %1760 = vmatpush1.bf16.msra.mxu1 %v1759_v20  ;;  %v982_v20 = vld [vmem:[%s3321_s13 + $0x18] sm:$0xff] }
 0x54b   :  { %1762 = vmatprep.subr.bf16.mxu1 %v1761_v24  ;;  %1700 = vmatpush1.bf16.msra.mxu0 %v1699_v27  ;;  %v1781_v21 = vpack.c.bf16 %v982_v20, %v980_v19  ;;  %v212_v27 = vld [vmem:[%s3318_s10] sm:$0x3] }
 0x54c   :  { %1702 = vmatprep.subr.bf16.mxu0 %v1701_v35  ;;  %v643_v39 = vrot.slane %v212_v27, %v2200_v34 }
 0x54e   :  { %1764 = vmatpush1.bf16.msra.mxu1 %v1763_v38  ;;  %v639_v38 = vrot.slane %v212_v27, %v2194_v32  ;;  %v981_v27 = vld [vmem:[%s3321_s13 + $0x10] sm:$0xff] }
 0x54f   :  { %1766 = vmatprep.subr.bf16.mxu1 %v1765_v41  ;;  %1704 = vmatpush1.bf16.msra.mxu0 %v1703_v46 }
 0x550   :  { %1706 = vmatprep.subr.bf16.mxu0 %v1705_v47 }
 0x552   :  { %1768 = vmatpush1.bf16.msra.mxu1 %v1767_v54 }
 0x553   :  { %1770 = vmatprep.subr.bf16.mxu1 %v1769_v45  ;;  %1708 = vmatpush1.bf16.msra.mxu0 %v1707_v59 }
 0x554   :  { %1710 = vmatprep.subr.bf16.mxu0 %v1709_v61 }
 0x556   :  { %1772 = vmatpush1.bf16.msra.mxu1 %v1771_v0 }
 0x557   :  { %1774 = vmatprep.subr.bf16.mxu1 %v1773_v3  ;;  %1712 = vmatpush1.bf16.msra.mxu0 %v1711_v6 }
 0x558   :  { %1714 = vmatprep.subr.bf16.mxu0 %v1713_v9 }
 0x55a   :  { %1776 = vmatpush1.bf16.msra.mxu1 %v1775_v12 }
 0x55b   :  { %1778 = vmatprep.subr.bf16.mxu1 %v1777_v13  ;;  %1716 = vmatpush1.bf16.msra.mxu0 %v1715_v17 }
 0x55c   :  { %1782 = vmatprep.subr.bf16.mxu0 %v1781_v21 }
 0x55e   :  { %1780 = vmatpush1.bf16.msra.mxu1 %v1779_v18 }
 0x5bb   :  { %v616_v22 = vpop.xlane.xlu1 %615 }
 0x5bc   :  { %v617_v24 = vmul.f32 0.00390625, %v616_v22 }
 0x5be   :  { %v618_v25 = vadd.f32 1e-05, %v617_v24 }
 0x5c0   :  { %1901 = vrsqrt.f32 %v618_v25 }
 0x5ca   :  { %v1902_v35 = vpop.eup %1901 }
 0x5cb   :  { %v620_v36 = vmul.f32 %v1902_v35, %v2423_v52  ;;  %v621_v37 = vmul.f32 %v1902_v35, %v2425_v53  ;;  %v984_v35 = vld [vmem:[%s3321_s13 + $0x28] sm:$0xff] }
 0x5cd   :  { %v634_v40 = vmul.f32 %v630_v33, %v621_v37  ;;  %v633_v41 = vmul.f32 %v626_v28, %v620_v36  ;;  %v986_v36 = vld [vmem:[%s3321_s13 + $0x38] sm:$0xff] }
 0x5cf   :  { %v647_v42 = vadd.f32 %v643_v39, %v634_v40  ;;  %v646_v43 = vadd.f32 %v639_v38, %v633_v41  ;;  %v1783_v40 = vpack.c.bf16 %v981_v27, %v979_v26  ;;  %v998_v27 = vld [vmem:[%s3325_s17 + $0x40] sm:$0xff] }
 0x5d1   :  { %v651_v46 = vmul.f32 0.70710677, %v647_v42  ;;  %v650_v49 = vmul.f32 0.70710677, %v646_v43  ;;  %v649_v28 = vmul.f32 0.5, %v647_v42  ;;  %v648_v37 = vmul.f32 0.5, %v646_v43 }
 0x5d2   :  { %v985_v42 = vld [vmem:[%s3321_s13 + $0x30] sm:$0xff]  ;;  %v713_v43 = vsub.s32 2, %v2191_v31 }
 0x5d3   :  { %v657_v50 = vand.u32 2147483647, %v651_v46  ;;  %v656_v47 = vand.u32 2147483647, %v650_v49  ;;  %vm653_vm3 = vcmp.ge.f32.partialorder %v651_v46, 0.0  ;;  %vm652_vm4 = vcmp.ge.f32.partialorder %v650_v49, 0.0 }
 0x5d4   :  { %v655_v20 = vsel %vm653_vm3, 1.0, %v1998_v23  ;;  %v654_v24 = vsel %vm652_vm4, 1.0, %v1998_v23  ;;  %v1785_v46 = vpack.c.bf16 %v986_v36, %v984_v35  ;;  %v983_v49 = vld [vmem:[%s3321_s13 + $0x20] sm:$0xff]  ;;  %v1003_v35 = vld [vmem:[%s3325_s17 + $0x68] sm:$0xff]  ;;  %v1005_v36 = vld [vmem:[%s3325_s17 + $0x78] sm:$0xff] }
 0x5d5   :  { %v659_v48 = vmul.f32 0.3275911, %v657_v50  ;;  %v658_v51 = vmul.f32 0.3275911, %v656_v47  ;;  %v685_v52 = vsub.f32 0.0, %v657_v50  ;;  %v684_v53 = vsub.f32 0.0, %v656_v47 }
 0x5d7   :  { %v661_v54 = vadd.f32 1.0, %v659_v48  ;;  %v660_v55 = vadd.f32 1.0, %v658_v51  ;;  %v687_v45 = vmul.f32 %v685_v52, %v657_v50  ;;  %v686_v59 = vmul.f32 %v684_v53, %v656_v47  ;;  %v341_v47 = vld [vmem:[%s3320_s12] sm:$0xf] }
 0x5d8   :  { %v1787_v50 = vpack.c.bf16 %v985_v42, %v983_v49  ;;  %v717_v48 = vsub.s32 3, %v2191_v31  ;;  %v706_v51 = vrot.slane %v341_v47, %v2194_v32  ;;  %v987_v31 = vld [vmem:[%s3322_s14] sm:$0x3]  ;;  %v1008_v42 = vld [vmem:[%s3325_s17 + $0x90] sm:$0xff] }
 0x5d9   :  { %1903 = vrcp.f32 %v661_v54  ;;  %v690_v61 = vmul.f32 1.442695, %v687_v45  ;;  %v688_v0 = vmul.f32 1.442695, %v686_v59  ;;  %v714_v54 = vrot.slane %v341_v47, %v713_v43  ;;  %v1006_v49 = vld [vmem:[%s3325_s17 + $0x80] sm:$0xff]  ;;  %v1011_v43 = vld [vmem:[%s3325_s17 + $0xa8] sm:$0xff] }
 0x5da   :  { %1905 = vrcp.f32 %v660_v55  ;;  %v710_v55 = vrot.slane %v341_v47, %v2200_v34  ;;  %v718_v52 = vrot.slane %v341_v47, %v717_v48  ;;  %v1013_v47 = vld [vmem:[%s3325_s17 + $0xb8] sm:$0xff]  ;;  %v1807_v48 = vpack.c.bf16 %v1008_v42, %v1006_v49 }
 0x5db   :  { %1907 = vpow2.f32 %v690_v61  ;;  %v1098_v61 = vrot.slane %v987_v31, %v2200_v34 }
 0x5dc   :  { %1909 = vpow2.f32 %v688_v0 }
 0x5e3   :  { %v1904_v56 = vpop.eup %1903 }
 0x5e4   :  { %v1906_v57 = vpop.eup %1905  ;;  %v667_v58 = vmul.f32 1.0614054, %v1904_v56 }
 0x5e5   :  { %v666_v60 = vmul.f32 1.0614054, %v1906_v57  ;;  %v1908_v13 = vpop.eup %1907 }
 0x5e6   :  { %v669_v44 = vadd.f32 -1.4531521, %v667_v58  ;;  %v1910_v16 = vpop.eup %1909 }
 0x5e7   :  { %v668_v62 = vadd.f32 -1.4531521, %v666_v60 }
 0x5e8   :  { %v671_v63 = vmul.f32 %v1904_v56, %v669_v44  ;;  %v1094_v44 = vrot.slane %v987_v31, %v2194_v32  ;;  %v1016_v31 = vld [vmem:[%s3325_s17 + $0xd0] sm:$0xff] }
 0x5e9   :  { %v670_v1 = vmul.f32 %v1906_v57, %v668_v62 }
 0x5ea   :  { %v673_v2 = vadd.f32 1.4214138, %v671_v63 }
 0x5eb   :  { %v672_v3 = vadd.f32 1.4214138, %v670_v1 }
 0x5ec   :  { %v675_v4 = vmul.f32 %v1904_v56, %v673_v2 }
 0x5ed   :  { %v674_v5 = vmul.f32 %v1906_v57, %v672_v3 }
 0x5ee   :  { %v677_v6 = vadd.f32 -0.28449672, %v675_v4 }
 0x5ef   :  { %v676_v7 = vadd.f32 -0.28449672, %v674_v5 }
 0x5f0   :  { %v679_v8 = vmul.f32 %v1904_v56, %v677_v6 }
 0x5f1   :  { %v678_v9 = vmul.f32 %v1906_v57, %v676_v7 }
 0x5f2   :  { %v681_v10 = vadd.f32 0.2548296, %v679_v8 }
 0x5f3   :  { %v680_v11 = vadd.f32 0.2548296, %v678_v9 }
 0x5f4   :  { %v683_v12 = vmul.f32 %v1904_v56, %v681_v10  ;;  %v991_v10 = vld [vmem:[%s3325_s17 + $0x8] sm:$0xff] }
 0x5f5   :  { %v682_v14 = vmul.f32 %v1906_v57, %v680_v11  ;;  %v993_v11 = vld [vmem:[%s3325_s17 + $0x18] sm:$0xff] }
 0x5f6   :  { %v693_v17 = vmul.f32 %v1908_v13, %v683_v12  ;;  %v1789_v12 = vpack.c.bf16 %v993_v11, %v991_v10  ;;  %v990_v13 = vld [vmem:[%s3325_s17] sm:$0xff]  ;;  %v1027_v10 = vld [vmem:[%s3325_s17 + $0x128] sm:$0xff]  ;;  %v1029_v11 = vld [vmem:[%s3325_s17 + $0x138] sm:$0xff] }
 0x5f7   :  { %v692_v18 = vmul.f32 %v1910_v16, %v682_v14  ;;  %v992_v14 = vld [vmem:[%s3325_s17 + $0x10] sm:$0xff] }
 0x5f8   :  { %v695_v19 = vsub.f32 1.0, %v693_v17  ;;  %v1791_v16 = vpack.c.bf16 %v992_v14, %v990_v13  ;;  %v995_v17 = vld [vmem:[%s3325_s17 + $0x28] sm:$0xff]  ;;  %v1825_v13 = vpack.c.bf16 %v1029_v11, %v1027_v10  ;;  %v1026_v14 = vld [vmem:[%s3325_s17 + $0x120] sm:$0xff] }
 0x5f9   :  { %v694_v21 = vsub.f32 1.0, %v692_v18  ;;  %v997_v18 = vld [vmem:[%s3325_s17 + $0x38] sm:$0xff] }
 0x5fa   :  { %v697_v22 = vmul.f32 %v695_v19, %v655_v20  ;;  %v1793_v19 = vpack.c.bf16 %v997_v18, %v995_v17  ;;  %v994_v20 = vld [vmem:[%s3325_s17 + $0x20] sm:$0xff]  ;;  %v1031_v17 = vld [vmem:[%s3325_s17 + $0x148] sm:$0xff]  ;;  %v1033_v18 = vld [vmem:[%s3325_s17 + $0x158] sm:$0xff] }
 0x5fb   :  { %v696_v25 = vmul.f32 %v694_v21, %v654_v24  ;;  %v996_v21 = vld [vmem:[%s3325_s17 + $0x30] sm:$0xff]  ;;  %v999_v24 = vld [vmem:[%s3325_s17 + $0x48] sm:$0xff] }
 0x5fc   :  { %v699_v33 = vadd.f32 1.0, %v697_v22  ;;  %v1795_v22 = vpack.c.bf16 %v996_v21, %v994_v20  ;;  %v1829_v20 = vpack.c.bf16 %v1033_v18, %v1031_v17  ;;  %v1030_v21 = vld [vmem:[%s3325_s17 + $0x140] sm:$0xff] }
 0x5fd   :  { %v698_v38 = vadd.f32 1.0, %v696_v25  ;;  %v1001_v25 = vld [vmem:[%s3325_s17 + $0x58] sm:$0xff] }
 0x5fe   :  { %v701_v39 = vmul.f32 %v699_v33, %v649_v28  ;;  %v1797_v26 = vpack.c.bf16 %v1001_v25, %v999_v24  ;;  %v1000_v28 = vld [vmem:[%s3325_s17 + $0x50] sm:$0xff]  ;;  %v1035_v24 = vld [vmem:[%s3325_s17 + $0x168] sm:$0xff]  ;;  %v1037_v25 = vld [vmem:[%s3325_s17 + $0x178] sm:$0xff] }
 0x5ff   :  { %v700_v41 = vmul.f32 %v698_v38, %v648_v37  ;;  %v1799_v33 = vpack.c.bf16 %v1000_v28, %v998_v27  ;;  %v1801_v37 = vpack.c.bf16 %v1005_v36, %v1003_v35  ;;  %v1002_v38 = vld [vmem:[%s3325_s17 + $0x60] sm:$0xff]  ;;  %v1833_v27 = vpack.c.bf16 %v1037_v25, %v1035_v24  ;;  %v1039_v35 = vld [vmem:[%s3325_s17 + $0x188] sm:$0xff]  ;;  %v1041_v36 = vld [vmem:[%s3325_s17 + $0x198] sm:$0xff] }
 0x600   :  { %787 = vmatprep.mubr.f32.mxu0 %v701_v39  ;;  %858 = vmatprep.mubr.f32.mxu1 %v701_v39  ;;  %v1004_v39 = vld [vmem:[%s3325_s17 + $0x70] sm:$0xff]  ;;  %v1034_v28 = vld [vmem:[%s3325_s17 + $0x160] sm:$0xff] }
 0x601   :  { %788 = vmatmul.mubr.f32.vlgmr.msra.gmra.mrb[2].mxu0 %v700_v41  ;;  %859 = vmatmul.mubr.f32.vlgmr.msra.gmra.mrb[2].mxu1 %v700_v41  ;;  %v1803_v41 = vpack.c.bf16 %v1004_v39, %v1002_v38  ;;  %v1837_v38 = vpack.c.bf16 %v1041_v36, %v1039_v35  ;;  %v1038_v39 = vld [vmem:[%s3325_s17 + $0x180] sm:$0xff] }
 0x602   :  { %1784 = vmatpush1.bf16.msra.mxu0 %v1783_v40  ;;  %1165 = vmatprep.mubr.f32.mxu0 %v1997_v15  ;;  %v1007_v40 = vld [vmem:[%s3325_s17 + $0x88] sm:$0xff] }
 0x603   :  { %1786 = vmatprep.subr.bf16.mxu0 %v1785_v46  ;;  %v1009_v46 = vld [vmem:[%s3325_s17 + $0x98] sm:$0xff] }
 0x606   :  { %1788 = vmatpush1.bf16.msra.mxu0 %v1787_v50  ;;  %v1805_v50 = vpack.c.bf16 %v1009_v46, %v1007_v40  ;;  %v1040_v40 = vld [vmem:[%s3325_s17 + $0x190] sm:$0xff]  ;;  %v1045_v46 = vld [vmem:[%s3325_s17 + $0x1b8] sm:$0xff] }
 0x607   :  { %1790 = vmatprep.subr.bf16.mxu0 %v1789_v12  ;;  %v1839_v49 = vpack.c.bf16 %v1040_v40, %v1038_v39 }
 0x609   :  { %1544 = vmatmul.mubr.msk.f32.vlgmr.msra.gmra.mrb[4].mxu0 %vm106_vm0, %v2186_v29 }
 0x60a   :  { %1792 = vmatpush1.bf16.msra.mxu0 %v1791_v16  ;;  %v1028_v16 = vld [vmem:[%s3325_s17 + $0x130] sm:$0xff] }
 0x60b   :  { %1794 = vmatprep.subr.bf16.mxu0 %v1793_v19  ;;  %v1827_v19 = vpack.c.bf16 %v1028_v16, %v1026_v14 }
 0x60e   :  { %1796 = vmatpush1.bf16.msra.mxu0 %v1795_v22  ;;  %v1032_v22 = vld [vmem:[%s3325_s17 + $0x150] sm:$0xff] }
 0x60f   :  { %1798 = vmatprep.subr.bf16.mxu0 %v1797_v26  ;;  %v1831_v26 = vpack.c.bf16 %v1032_v22, %v1030_v21 }
 0x612   :  { %1800 = vmatpush1.bf16.msra.mxu0 %v1799_v33  ;;  %v1036_v33 = vld [vmem:[%s3325_s17 + $0x170] sm:$0xff] }
 0x613   :  { %1802 = vmatprep.subr.bf16.mxu0 %v1801_v37  ;;  %v1835_v37 = vpack.c.bf16 %v1036_v33, %v1034_v28 }
 0x616   :  { %1804 = vmatpush1.bf16.msra.mxu0 %v1803_v41  ;;  %v1043_v41 = vld [vmem:[%s3325_s17 + $0x1a8] sm:$0xff] }
 0x617   :  { %1806 = vmatprep.subr.bf16.mxu0 %v1805_v50  ;;  %v1841_v42 = vpack.c.bf16 %v1045_v46, %v1043_v41  ;;  %v1042_v50 = vld [vmem:[%s3325_s17 + $0x1a0] sm:$0xff] }
 0x61a   :  { %1808 = vmatpush1.bf16.msra.mxu0 %v1807_v48  ;;  %v1049_v48 = vld [vmem:[%s3325_s17 + $0x1d8] sm:$0xff] }
 0x6d4   :  { %v789_v53 = vpop.f32.mrb[2].mxu0  ;;  %v860_v56 = vpop.f32.mrb[2].mxu1 }
 0x6d5   :  { %v2863_v45 = vadd.f32 %v789_v53, %v706_v51  ;;  %v2865_v57 = vadd.f32 %v860_v56, %v714_v54  ;;  %v791_v29 = vpop.f32.mrb[3].mxu0  ;;  %v862_v58 = vpop.f32.mrb[3].mxu1  ;;  %v1809_v51 = vpack.c.bf16 %v1013_v47, %v1011_v43  ;;  %v1010_v54 = vld [vmem:[%s3325_s17 + $0xa0] sm:$0xff]  ;;  %v1017_v53 = vld [vmem:[%s3325_s17 + $0xd8] sm:$0xff]  ;;  %v1044_v43 = vld [vmem:[%s3325_s17 + $0x1b0] sm:$0xff] }
 0x6d6   :  { %v2867_v59 = vadd.f32 %v791_v29, %v710_v55  ;;  %v2869_v60 = vadd.f32 %v862_v58, %v718_v52  ;;  %v1012_v55 = vld [vmem:[%s3325_s17 + $0xb0] sm:$0xff]  ;;  %v1015_v52 = vld [vmem:[%s3325_s17 + $0xc8] sm:$0xff]  ;;  %v1014_v58 = vld [vmem:[%s3325_s17 + $0xc0] sm:$0xff] }
 0x6d7   :  { %865 = vst [vmem:[%s3332_s24] sm:$0xff] %v2863_v45  ;;  %867 = vst [vmem:[%s3332_s24 + $0x10] sm:$0xff] %v2865_v57  ;;  %v1811_v56 = vpack.c.bf16 %v1012_v55, %v1010_v54  ;;  %1810 = vmatprep.subr.bf16.mxu0 %v1809_v51  ;;  %v1813_v29 = vpack.c.bf16 %v1017_v53, %v1015_v52  ;;  %v1047_v47 = vld [vmem:[%s3325_s17 + $0x1c8] sm:$0xff]  ;;  %v1843_v51 = vpack.c.bf16 %v1044_v43, %v1042_v50  ;;  %v1046_v55 = vld [vmem:[%s3325_s17 + $0x1c0] sm:$0xff] }
 0x6d8   :  { %866 = vst [vmem:[%s3332_s24 + $0x8] sm:$0xff] %v2867_v59  ;;  %868 = vst [vmem:[%s3332_s24 + $0x18] sm:$0xff] %v2869_v60  ;;  %v1845_v54 = vpack.c.bf16 %v1049_v48, %v1047_v47  ;;  %v1048_v52 = vld [vmem:[%s3325_s17 + $0x1d0] sm:$0xff]  ;;  %v1051_v53 = vld [vmem:[%s3325_s17 + $0x1e8] sm:$0xff] }
 0x6d9   :  { %1812 = vmatpush1.bf16.msra.mxu0 %v1811_v56  ;;  %v1053_v56 = vld [vmem:[%s3325_s17 + $0x1f8] sm:$0xff] }
 0x6da   :  { %1814 = vmatprep.subr.bf16.mxu0 %v1813_v29  ;;  %v1847_v29 = vpack.c.bf16 %v1048_v52, %v1046_v55 }
 0x6dc   :  { %v1167_v62 = vpop.f32.mrb[4].mxu0 }
 0x6dd   :  { %v1168_v63 = vadd.f32 %v1167_v62, %v1094_v44  ;;  %v1169_v0 = vpop.f32.mrb[5].mxu0  ;;  %v1019_v44 = vld [vmem:[%s3325_s17 + $0xe8] sm:$0xff]  ;;  %v1815_v62 = vpack.c.bf16 %v1016_v31, %v1014_v58  ;;  %v1849_v58 = vpack.c.bf16 %v1053_v56, %v1051_v53  ;;  %v1050_v31 = vld [vmem:[%s3325_s17 + $0x1e0] sm:$0xff] }
 0x6de   :  { %v1170_v1 = vadd.f32 %v1169_v0, %v1098_v61  ;;  %v1021_v61 = vld [vmem:[%s3325_s17 + $0xf8] sm:$0xff]  ;;  %v1018_v0 = vld [vmem:[%s3325_s17 + $0xe0] sm:$0xff] }
 0x6df   :  { %1816 = vmatpush1.bf16.msra.mxu0 %v1815_v62 }
 0x6e0   :  { %v1172_v2 = vadd.f32 %v1170_v1, %v1168_v63 }
 0x6e2   :  { %1173 = vadd.xlane.f32.xlu0 %v1172_v2  ;;  %v1023_v2 = vld [vmem:[%s3325_s17 + $0x108] sm:$0xff] }
 0x76f   :  { %v1174_v3 = vpop.xlane.xlu0 %1173 }
 0x770   :  { %v1175_v4 = vmul.f32 0.00390625, %v1174_v3  ;;  %v1025_v3 = vld [vmem:[%s3325_s17 + $0x118] sm:$0xff] }
 0x772   :  { %v2892_v5 = vsub.f32 %v1168_v63, %v1175_v4  ;;  %v2894_v6 = vsub.f32 %v1170_v1, %v1175_v4  ;;  %v1817_v63 = vpack.c.bf16 %v1021_v61, %v1019_v44  ;;  %v1020_v1 = vld [vmem:[%s3325_s17 + $0xf0] sm:$0xff] }
 0x773   :  { %v1819_v4 = vpack.c.bf16 %v1020_v1, %v1018_v0  ;;  %v1052_v44 = vld [vmem:[%s3325_s17 + $0x1f0] sm:$0xff]  ;;  %v988_v1 = vld [vmem:[%s3323_s15] sm:$0x3] }
 0x774   :  { %v1178_v7 = vmul.f32 %v2892_v5, %v2892_v5  ;;  %v1179_v8 = vmul.f32 %v2894_v6, %v2894_v6  ;;  %1818 = vmatprep.subr.bf16.mxu0 %v1817_v63  ;;  %v1851_v61 = vpack.c.bf16 %v1052_v44, %v1050_v31 }
 0x775   :  { %1820 = vmatpush1.bf16.msra.mxu0 %v1819_v4  ;;  %v1196_v4 = vrot.slane %v988_v1, %v2200_v34 }
 0x776   :  { %v1180_v9 = vadd.f32 %v1179_v8, %v1178_v7  ;;  %v1821_v7 = vpack.c.bf16 %v1025_v3, %v1023_v2  ;;  %v1022_v8 = vld [vmem:[%s3325_s17 + $0x100] sm:$0xff]  ;;  %v1192_v3 = vrot.slane %v988_v1, %v2194_v32 }
 0x777   :  { %v989_v2 = vld [vmem:[%s3324_s16] sm:$0x3] }
 0x778   :  { %1181 = vadd.xlane.f32.xlu1 %v1180_v9  ;;  %v1024_v9 = vld [vmem:[%s3325_s17 + $0x110] sm:$0xff]  ;;  %1822 = vmatprep.subr.bf16.mxu0 %v1821_v7  ;;  %v1205_v10 = vrot.slane %v989_v2, %v2194_v32  ;;  %v1209_v11 = vrot.slane %v989_v2, %v2200_v34 }
 0x779   :  { %v1823_v12 = vpack.c.bf16 %v1024_v9, %v1022_v8 }
 0x77b   :  { %1824 = vmatpush1.bf16.msra.mxu0 %v1823_v12 }
 0x77c   :  { %1826 = vmatprep.subr.bf16.mxu0 %v1825_v13 }
 0x77f   :  { %1828 = vmatpush1.bf16.msra.mxu0 %v1827_v19 }
 0x780   :  { %1830 = vmatprep.subr.bf16.mxu0 %v1829_v20 }
 0x783   :  { %1832 = vmatpush1.bf16.msra.mxu0 %v1831_v26 }
 0x784   :  { %1834 = vmatprep.subr.bf16.mxu0 %v1833_v27 }
 0x787   :  { %1836 = vmatpush1.bf16.msra.mxu0 %v1835_v37 }
 0x788   :  { %1838 = vmatprep.subr.bf16.mxu0 %v1837_v38 }
 0x78b   :  { %1840 = vmatpush1.bf16.msra.mxu0 %v1839_v49 }
 0x78c   :  { %1842 = vmatprep.subr.bf16.mxu0 %v1841_v42 }
 0x78f   :  { %1844 = vmatpush1.bf16.msra.mxu0 %v1843_v51 }
 0x790   :  { %1846 = vmatprep.subr.bf16.mxu0 %v1845_v54 }
 0x793   :  { %1848 = vmatpush1.bf16.msra.mxu0 %v1847_v29 }
 0x794   :  { %1850 = vmatprep.subr.bf16.mxu0 %v1849_v58 }
 0x797   :  { %1852 = vmatpush1.bf16.msra.mxu0 %v1851_v61 }
 0x805   :  { %v1182_v62 = vpop.xlane.xlu1 %1181 }
 0x806   :  { %v1183_v63 = vmul.f32 0.00390625, %v1182_v62 }
 0x808   :  { %v1184_v0 = vadd.f32 1e-05, %v1183_v63 }
 0x80a   :  { %1911 = vrsqrt.f32 %v1184_v0 }
 0x814   :  { %v1912_v7 = vpop.eup %1911 }
 0x815   :  { %v1186_v8 = vmul.f32 %v1912_v7, %v2892_v5  ;;  %v1187_v9 = vmul.f32 %v1912_v7, %v2894_v6 }
 0x817   :  { %v1200_v12 = vmul.f32 %v1196_v4, %v1187_v9  ;;  %v1199_v13 = vmul.f32 %v1192_v3, %v1186_v8 }
 0x819   :  { %v1213_v14 = vadd.f32 %v1209_v11, %v1200_v12  ;;  %v1212_v16 = vadd.f32 %v1205_v10, %v1199_v13  ;;  %v1054_v11 = vld [vmem:[%s3326_s18] sm:$0x3] }
 0x81a   :  { %v1272_v12 = vrot.slane %v1054_v11, %v2194_v32  ;;  %v1276_v13 = vrot.slane %v1054_v11, %v2200_v34 }
 0x81b   :  { %v1217_v17 = vmul.f32 0.70710677, %v1213_v14  ;;  %v1216_v18 = vmul.f32 0.70710677, %v1212_v16  ;;  %v1215_v3 = vmul.f32 0.5, %v1213_v14  ;;  %v1214_v7 = vmul.f32 0.5, %v1212_v16 }
 0x81c   :  { %v894_v16 = vmul.f32 0.5, %v2863_v45 }
 0x81d   :  { %v1223_v19 = vand.u32 2147483647, %v1217_v17  ;;  %v1222_v20 = vand.u32 2147483647, %v1216_v18  ;;  %vm1219_vm5 = vcmp.ge.f32.partialorder %v1217_v17, 0.0  ;;  %vm1218_vm6 = vcmp.ge.f32.partialorder %v1216_v18, 0.0 }
 0x81e   :  { %v1221_v62 = vsel %vm1219_vm5, 1.0, %v1998_v23  ;;  %v1220_v1 = vsel %vm1218_vm6, 1.0, %v1998_v23 }
 0x81f   :  { %v1225_v21 = vmul.f32 0.3275911, %v1223_v19  ;;  %v1224_v22 = vmul.f32 0.3275911, %v1222_v20  ;;  %v1251_v5 = vsub.f32 0.0, %v1223_v19  ;;  %v1250_v6 = vsub.f32 0.0, %v1222_v20 }
 0x821   :  { %v1227_v24 = vadd.f32 1.0, %v1225_v21  ;;  %v1226_v25 = vadd.f32 1.0, %v1224_v22  ;;  %v1253_v27 = vmul.f32 %v1251_v5, %v1223_v19  ;;  %v1252_v35 = vmul.f32 %v1250_v6, %v1222_v20 }
 0x822   :  { %v895_v21 = vmul.f32 0.5, %v2867_v59 }
 0x823   :  { %1913 = vrcp.f32 %v1227_v24  ;;  %v1256_v38 = vmul.f32 1.442695, %v1253_v27  ;;  %v1254_v41 = vmul.f32 1.442695, %v1252_v35  ;;  %v874_v24 = vmax.f32 %v2863_v45, %v2867_v59 }
 0x824   :  { %1915 = vrcp.f32 %v1226_v25  ;;  %v896_v22 = vmax.f32 %v894_v16, %v895_v21 }
 0x825   :  { %1917 = vpow2.f32 %v1256_v38 }
 0x826   :  { %1919 = vpow2.f32 %v1254_v41  ;;  %v3127_v41 = vmul.f32 0.5, %v2869_v60 }
 0x82d   :  { %v1914_v26 = vpop.eup %1913 }
 0x82e   :  { %v1916_v28 = vpop.eup %1915  ;;  %v1233_v33 = vmul.f32 1.0614054, %v1914_v26 }
 0x82f   :  { %v1232_v36 = vmul.f32 1.0614054, %v1916_v28  ;;  %v1918_v56 = vpop.eup %1917 }
 0x830   :  { %v1235_v37 = vadd.f32 -1.4531521, %v1233_v33  ;;  %v1920_v58 = vpop.eup %1919 }
 0x831   :  { %v1234_v39 = vadd.f32 -1.4531521, %v1232_v36 }
 0x832   :  { %v1237_v40 = vmul.f32 %v1914_v26, %v1235_v37  ;;  %v3124_v37 = vmul.f32 0.5, %v2865_v57 }
 0x833   :  { %v1236_v46 = vmul.f32 %v1916_v28, %v1234_v39 }
 0x834   :  { %v1239_v49 = vadd.f32 1.4214138, %v1237_v40 }
 0x835   :  { %v1238_v42 = vadd.f32 1.4214138, %v1236_v46  ;;  %v870_v46 = vand.u32 127, %v343_v30 }
 0x836   :  { %v1241_v50 = vmul.f32 %v1914_v26, %v1239_v49  ;;  %v946_v49 = vmax.f32 %v3124_v37, %v3127_v41 }
 0x837   :  { %v1240_v43 = vmul.f32 %v1916_v28, %v1238_v42  ;;  %v871_v42 = vadd.s32 128, %v870_v46 }
 0x838   :  { %v1243_v47 = vadd.f32 -0.28449672, %v1241_v50  ;;  %v924_v50 = vmax.f32 %v2865_v57, %v2869_v60 }
 0x839   :  { %v1242_v48 = vadd.f32 -0.28449672, %v1240_v43 }
 0x83a   :  { %v1245_v51 = vmul.f32 %v1914_v26, %v1243_v47  ;;  %v3134_v47 = vcvt.s32.f32 %v870_v46  ;;  %v1087_v46 = vld [vmem:[%s3329_s21 + $0xf0] sm:$0xff] }
 0x83b   :  { %v1244_v54 = vmul.f32 %v1916_v28, %v1242_v48  ;;  %v3136_v48 = vcvt.s32.f32 %v871_v42 }
 0x83c   :  { %v1247_v55 = vadd.f32 0.2548296, %v1245_v51 }
 0x83d   :  { %v1246_v52 = vadd.f32 0.2548296, %v1244_v54 }
 0x83e   :  { %v1249_v53 = vmul.f32 %v1914_v26, %v1247_v55 }
 0x83f   :  { %v1248_v29 = vmul.f32 %v1916_v28, %v1246_v52 }
 0x840   :  { %v1259_v31 = vmul.f32 %v1918_v56, %v1249_v53  ;;  %v1073_v56 = vld [vmem:[%s3329_s21 + $0x80] sm:$0xff] }
 0x841   :  { %v1258_v44 = vmul.f32 %v1920_v58, %v1248_v29  ;;  %v1058_v58 = vld [vmem:[%s3329_s21 + $0x8] sm:$0xff] }
 0x842   :  { %v1261_v61 = vsub.f32 1.0, %v1259_v31  ;;  %v1075_v31 = vld [vmem:[%s3329_s21 + $0x90] sm:$0xff] }
 0x843   :  { %v1260_v63 = vsub.f32 1.0, %v1258_v44  ;;  %v1076_v44 = vld [vmem:[%s3329_s21 + $0x98] sm:$0xff] }
 0x844   :  { %v1263_v0 = vmul.f32 %v1261_v61, %v1221_v62  ;;  %v1857_v62 = vpack.c.bf16 %v1076_v44, %v1075_v31  ;;  %v1055_v44 = vld [vmem:[%s3327_s19] sm:$0x3] }
 0x845   :  { %v1262_v2 = vmul.f32 %v1260_v63, %v1220_v1  ;;  %v1059_v63 = vld [vmem:[%s3329_s21 + $0x10] sm:$0xff]  ;;  %v1077_v1 = vld [vmem:[%s3329_s21 + $0xa0] sm:$0xff] }
 0x846   :  { %v1265_v4 = vadd.f32 1.0, %v1263_v0  ;;  %v1060_v0 = vld [vmem:[%s3329_s21 + $0x18] sm:$0xff] }
 0x847   :  { %v1264_v8 = vadd.f32 1.0, %v1262_v2  ;;  %v1078_v2 = vld [vmem:[%s3329_s21 + $0xa8] sm:$0xff] }
 0x848   :  { %v1267_v9 = vmul.f32 %v1265_v4, %v1215_v3  ;;  %v1859_v3 = vpack.c.bf16 %v1060_v0, %v1059_v63  ;;  %v1861_v4 = vpack.c.bf16 %v1078_v2, %v1077_v1  ;;  %v1370_v63 = vrot.slane %v1055_v44, %v2194_v32 }
 0x849   :  { %v1266_v10 = vmul.f32 %v1264_v8, %v1214_v7  ;;  %v1061_v7 = vld [vmem:[%s3329_s21 + $0x20] sm:$0xff]  ;;  %v1062_v8 = vld [vmem:[%s3329_s21 + $0x28] sm:$0xff]  ;;  %v1374_v0 = vrot.slane %v1055_v44, %v2200_v34 }
 0x84a   :  { %1343 = vmatprep.mubr.f32.mxu0 %v1267_v9  ;;  %v1079_v9 = vld [vmem:[%s3329_s21 + $0xb0] sm:$0xff]  ;;  %v1863_v11 = vpack.c.bf16 %v1062_v8, %v1061_v7 }
 0x84b   :  { %1344 = vmatmul.mubr.f32.vlgmr.msra.gmra.mrb[6].mxu0 %v1266_v10  ;;  %v1080_v10 = vld [vmem:[%s3329_s21 + $0xb8] sm:$0xff] }
 0x91e   :  { %v1345_v17 = vpop.f32.mrb[6].mxu0 }
 0x91f   :  { %v1346_v18 = vadd.f32 %v1345_v17, %v1272_v12  ;;  %v1347_v19 = vpop.f32.mrb[7].mxu0  ;;  %v1865_v12 = vpack.c.bf16 %v1080_v10, %v1079_v9  ;;  %v1064_v17 = vld [vmem:[%s3329_s21 + $0x38] sm:$0xff] }
 0x920   :  { %v1348_v20 = vadd.f32 %v1347_v19, %v1276_v13  ;;  %v1063_v13 = vld [vmem:[%s3329_s21 + $0x30] sm:$0xff]  ;;  %v1082_v19 = vld [vmem:[%s3329_s21 + $0xc8] sm:$0xff] }
 0x922   :  { %v1350_v14 = vadd.f32 %v1348_v20, %v1346_v18 }
 0x924   :  { %1351 = vadd.xlane.f32.xlu0 %v1350_v14 }
 0x928   :  { %897 = vmax.xlane.f32.xlu0 %v896_v22  ;;  %v1083_v22 = vld [vmem:[%s3329_s21 + $0xd0] sm:$0xff] }
 0x92c   :  { %875 = vmax.xlane.f32.xlu0 %v874_v24  ;;  %v1084_v24 = vld [vmem:[%s3329_s21 + $0xd8] sm:$0xff] }
 0x9b1   :  { %v1352_v25 = vpop.xlane.xlu0 %1351 }
 0x9b2   :  { %v1353_v5 = vmul.f32 0.00390625, %v1352_v25 }
 0x9b4   :  { %v3115_v6 = vsub.f32 %v1346_v18, %v1353_v5  ;;  %v3117_v26 = vsub.f32 %v1348_v20, %v1353_v5  ;;  %v1081_v18 = vld [vmem:[%s3329_s21 + $0xc0] sm:$0xff]  ;;  %v1867_v20 = vpack.c.bf16 %v1064_v17, %v1063_v13  ;;  %v1873_v5 = vpack.c.bf16 %v1084_v24, %v1083_v22 }
 0x9b5   :  { %v898_v27 = vpop.xlane.xlu0 %897  ;;  %v1869_v14 = vpack.c.bf16 %v1082_v19, %v1081_v18 }
 0x9b6   :  { %v899_v28 = vsub.f32 %v894_v16, %v898_v27  ;;  %v900_v33 = vsub.f32 %v895_v21, %v898_v27  ;;  %v1356_v35 = vmul.f32 %v3115_v6, %v3115_v6  ;;  %v1357_v36 = vmul.f32 %v3117_v26, %v3117_v26  ;;  %v1065_v16 = vld [vmem:[%s3329_s21 + $0x40] sm:$0xff]  ;;  %v1066_v21 = vld [vmem:[%s3329_s21 + $0x48] sm:$0xff]  ;;  %v1067_v27 = vld [vmem:[%s3329_s21 + $0x50] sm:$0xff] }
 0x9b7   :  { %v1871_v25 = vpack.c.bf16 %v1066_v21, %v1065_v16 }
 0x9b8   :  { %v901_v38 = vmul.f32 1.442695, %v899_v28  ;;  %v903_v39 = vmul.f32 1.442695, %v900_v33  ;;  %v1358_v40 = vadd.f32 %v1357_v36, %v1356_v35  ;;  %v1068_v28 = vld [vmem:[%s3329_s21 + $0x58] sm:$0xff]  ;;  %v1085_v33 = vld [vmem:[%s3329_s21 + $0xe0] sm:$0xff] }
 0x9b9   :  { %v876_v43 = vpop.xlane.xlu0 %875  ;;  %v1086_v35 = vld [vmem:[%s3329_s21 + $0xe8] sm:$0xff]  ;;  %v1875_v36 = vpack.c.bf16 %v1068_v28, %v1067_v27 }
 0x9ba   :  { %1921 = vpow2.f32 %v901_v38  ;;  %1359 = vadd.xlane.f32.xlu1 %v1358_v40  ;;  %vm877_vm7 = vcmp.eq.f32.partialorder %v2863_v45, %v876_v43  ;;  %vm878_vm8 = vcmp.eq.f32.partialorder %v2867_v59, %v876_v43  ;;  %v1074_v45 = vld [vmem:[%s3329_s21 + $0x88] sm:$0xff]  ;;  %v1057_v59 = vld [vmem:[%s3329_s21] sm:$0xff]  ;;  %v1877_v38 = vpack.c.bf16 %v1086_v35, %v1085_v33  ;;  %v1071_v43 = vld [vmem:[%s3329_s21 + $0x70] sm:$0xff] }
 0x9bb   :  { %1923 = vpow2.f32 %v903_v39  ;;  %v879_v55 = vsel %vm877_vm7, %v3134_v47, 256.0  ;;  %v880_v52 = vsel %vm878_vm8, %v3136_v48, 256.0  ;;  %v1853_v29 = vpack.c.bf16 %v1074_v45, %v1073_v56  ;;  %v1069_v39 = vld [vmem:[%s3329_s21 + $0x60] sm:$0xff]  ;;  %v1070_v40 = vld [vmem:[%s3329_s21 + $0x68] sm:$0xff] }
 0x9bc   :  { %v881_v53 = vmin.f32 %v879_v55, %v880_v52  ;;  %v1855_v61 = vpack.c.bf16 %v1058_v58, %v1057_v59  ;;  %v1879_v42 = vpack.c.bf16 %v1070_v40, %v1069_v39 }
 0x9bd   :  { %1854 = vmatprep.subr.bf16.mxu1 %v1853_v29 }
 0x9be   :  { %947 = vmax.xlane.f32.xlu1 %v946_v49  ;;  %1856 = vmatpush3.bf16.msra.mxu1 %v1855_v61  ;;  %v1088_v49 = vld [vmem:[%s3329_s21 + $0xf8] sm:$0xff]  ;;  %v1056_v61 = vld [vmem:[%s3328_s20] sm:$0x3] }
 0x9bf   :  { %1858 = vmatprep.subr.bf16.mxu1 %v1857_v62 }
 0x9c2   :  { %925 = vmax.xlane.f32.xlu1 %v924_v50  ;;  %1860 = vmatpush3.bf16.msra.mxu1 %v1859_v3  ;;  %v1881_v50 = vpack.c.bf16 %v1088_v49, %v1087_v46  ;;  %v1383_v3 = vrot.slane %v1056_v61, %v2194_v32 }
 0x9c3   :  { %1862 = vmatprep.subr.bf16.mxu1 %v1861_v4  ;;  %v1387_v4 = vrot.slane %v1056_v61, %v2200_v34 }
 0x9c4   :  { %v3138_v51 = vpop.eup %1921 }
 0x9c5   :  { %v3142_v30 = vpop.eup %1923 }
 0x9c6   :  { %v905_v54 = vadd.f32 %v3142_v30, %v3138_v51  ;;  %1864 = vmatpush3.bf16.msra.mxu1 %v1863_v11 }
 0x9c7   :  { %1866 = vmatprep.subr.bf16.mxu1 %v1865_v12 }
 0x9c8   :  { %906 = vadd.xlane.f32.xlu0 %v905_v54  ;;  %v1072_v54 = vld [vmem:[%s3329_s21 + $0x78] sm:$0xff] }
 0x9c9   :  { %v1883_v55 = vpack.c.bf16 %v1072_v54, %v1071_v43 }
 0x9ca   :  { %1868 = vmatpush3.bf16.msra.mxu1 %v1867_v20 }
 0x9cb   :  { %1870 = vmatprep.subr.bf16.mxu1 %v1869_v14 }
 0x9cc   :  { %882 = vmin.xlane.f32.xlu0 %v881_v53 }
 0x9ce   :  { %1872 = vmatpush3.bf16.msra.mxu1 %v1871_v25 }
 0x9cf   :  { %1874 = vmatprep.subr.bf16.mxu1 %v1873_v5 }
 0x9d2   :  { %1876 = vmatpush3.bf16.msra.mxu1 %v1875_v36 }
 0x9d3   :  { %1878 = vmatprep.subr.bf16.mxu1 %v1877_v38 }
 0x9d6   :  { %1880 = vmatpush3.bf16.msra.mxu1 %v1879_v42 }
 0x9d7   :  { %1882 = vmatprep.subr.bf16.mxu1 %v1881_v50 }
 0x9da   :  { %1884 = vmatpush3.bf16.msra.mxu1 %v1883_v55 }
 0xa47   :  { %v1360_v52 = vpop.xlane.xlu1 %1359 }
 0xa48   :  { %v1361_v53 = vmul.f32 0.00390625, %v1360_v52 }
 0xa4a   :  { %v1362_v56 = vadd.f32 1e-05, %v1361_v53 }
 0xa4b   :  { %v948_v45 = vpop.xlane.xlu1 %947 }
 0xa4c   :  { %1925 = vrsqrt.f32 %v1362_v56  ;;  %v949_v59 = vsub.f32 %v3124_v37, %v948_v45  ;;  %v950_v29 = vsub.f32 %v3127_v41, %v948_v45 }
 0xa4e   :  { %v951_v58 = vmul.f32 1.442695, %v949_v59  ;;  %v953_v31 = vmul.f32 1.442695, %v950_v29 }
 0xa4f   :  { %v926_v1 = vpop.xlane.xlu1 %925 }
 0xa50   :  { %1927 = vpow2.f32 %v951_v58  ;;  %vm927_vm9 = vcmp.eq.f32.partialorder %v2865_v57, %v926_v1  ;;  %vm928_vm10 = vcmp.eq.f32.partialorder %v2869_v60, %v926_v1 }
 0xa51   :  { %1929 = vpow2.f32 %v953_v31  ;;  %v929_v18 = vsel %vm927_vm9, %v3134_v47, 256.0  ;;  %v930_v57 = vsel %vm928_vm10, %v3136_v48, 256.0 }
 0xa52   :  { %v931_v16 = vmin.f32 %v929_v18, %v930_v57 }
 0xa55   :  { %v907_v62 = vpop.xlane.xlu0 %906 }
 0xa56   :  { %v1926_v37 = vpop.eup %1925  ;;  %1931 = vrcp.f32 %v907_v62 }
 0xa57   :  { %v1364_v41 = vmul.f32 %v1926_v37, %v3115_v6  ;;  %v1365_v2 = vmul.f32 %v1926_v37, %v3117_v26 }
 0xa59   :  { %v883_v7 = vpop.xlane.xlu0 %882  ;;  %v1378_v8 = vmul.f32 %v1374_v0, %v1365_v2  ;;  %v1377_v9 = vmul.f32 %v1370_v63, %v1364_v41 }
 0xa5a   :  { %v3258_v10 = vpop.eup %1927  ;;  %v884_v11 = vsub.f32 %v883_v7, %v3134_v47  ;;  %v885_v6 = vsub.f32 %v883_v7, %v3136_v48 }
 0xa5b   :  { %v3264_v12 = vpop.eup %1929  ;;  %v3266_v26 = vadd.f32 %v1387_v4, %v1378_v8  ;;  %v3268_v32 = vadd.f32 %v1383_v3, %v1377_v9 }
 0xa5c   :  { %v886_v34 = vand.u32 2147483647, %v884_v11  ;;  %v887_v13 = vand.u32 2147483647, %v885_v6  ;;  %v955_v17 = vadd.f32 %v3264_v12, %v3258_v10 }
 0xa5d   :  { %v1395_v60 = vmul.f32 0.70710677, %v3266_v26  ;;  %v1394_v19 = vmul.f32 0.70710677, %v3268_v32  ;;  %v1392_v57 = vmul.f32 0.5, %v3268_v32 }
 0xa5e   :  { %956 = vadd.xlane.f32.xlu1 %v955_v17  ;;  %vm888_vm11 = vcmp.le.f32.partialorder %v886_v34, 20.0  ;;  %vm889_vm12 = vcmp.le.f32.partialorder %v887_v13, 20.0  ;;  %v1393_v17 = vmul.f32 0.5, %v3266_v26 }
 0xa5f   :  { %v1401_v20 = vand.u32 2147483647, %v1395_v60  ;;  %v1400_v21 = vand.u32 2147483647, %v1394_v19  ;;  %v1540_v5 = vsel %vm888_vm11, 1.0, %v1997_v15  ;;  %v1541_v27 = vsel %vm889_vm12, 1.0, %v1997_v15 }
 0xa60   :  { %v1932_v14 = vpop.eup %1931  ;;  %vm1397_vm13 = vcmp.ge.f32.partialorder %v1395_v60, 0.0  ;;  %vm1396_vm14 = vcmp.ge.f32.partialorder %v1394_v19, 0.0 }
 0xa61   :  { %v909_v22 = vmul.f32 %v1932_v14, %v3138_v51  ;;  %v910_v24 = vmul.f32 %v1932_v14, %v3142_v30  ;;  %v1403_v25 = vmul.f32 0.3275911, %v1401_v20  ;;  %v1402_v28 = vmul.f32 0.3275911, %v1400_v21 }
 0xa62   :  { %932 = vmin.xlane.f32.xlu1 %v931_v16  ;;  %v1429_v51 = vsub.f32 0.0, %v1401_v20  ;;  %v1428_v30 = vsub.f32 0.0, %v1400_v21  ;;  %v1399_v9 = vsel %vm1397_vm13, 1.0, %v1998_v23  ;;  %v1398_v34 = vsel %vm1396_vm14, 1.0, %v1998_v23 }
 0xa63   :  { %v3280_v33 = vmul.f32 %v1540_v5, %v909_v22  ;;  %v3282_v35 = vmul.f32 %v1541_v27, %v910_v24  ;;  %v1405_v36 = vadd.f32 1.0, %v1403_v25  ;;  %v1404_v38 = vadd.f32 1.0, %v1402_v28 }
 0xa64   :  { %v1431_v46 = vmul.f32 %v1429_v51, %v1401_v20  ;;  %v1430_v50 = vmul.f32 %v1428_v30, %v1400_v21 }
 0xa65   :  { %v913_v39 = vadd.f32 %v3282_v35, %v3280_v33  ;;  %1933 = vrcp.f32 %v1405_v36 }
 0xa66   :  { %1935 = vrcp.f32 %v1404_v38  ;;  %v1434_v55 = vmul.f32 1.442695, %v1431_v46  ;;  %v1432_v56 = vmul.f32 1.442695, %v1430_v50 }
 0xa67   :  { %914 = vadd.xlane.f32.xlu0 %v913_v39 }
 0xa68   :  { %1937 = vpow2.f32 %v1434_v55 }
 0xa69   :  { %1939 = vpow2.f32 %v1432_v56 }
 0xa6f   :  { %v1934_v40 = vpop.eup %1933 }
 0xa70   :  { %v1936_v49 = vpop.eup %1935  ;;  %v1411_v42 = vmul.f32 1.0614054, %v1934_v40 }
 0xa71   :  { %v1410_v43 = vmul.f32 1.0614054, %v1936_v49 }
 0xa72   :  { %v1413_v54 = vadd.f32 -1.4531521, %v1411_v42  ;;  %v1938_v1 = vpop.eup %1937  ;;  %v1545_v42 = vld [vmem:[#allocation2] ss:$0 sm:$0xff] }
 0xa73   :  { %v1412_v52 = vadd.f32 -1.4531521, %v1410_v43  ;;  %v1940_v3 = vpop.eup %1939 }
 0xa74   :  { %v1415_v53 = vmul.f32 %v1934_v40, %v1413_v54 }
 0xa75   :  { %v1414_v45 = vmul.f32 %v1936_v49, %v1412_v52 }
 0xa76   :  { %v1417_v59 = vadd.f32 1.4214138, %v1415_v53 }
 0xa77   :  { %v1416_v29 = vadd.f32 1.4214138, %v1414_v45 }
 0xa78   :  { %v1419_v58 = vmul.f32 %v1934_v40, %v1417_v59 }
 0xa79   :  { %v1418_v31 = vmul.f32 %v1936_v49, %v1416_v29 }
 0xa7a   :  { %v1421_v44 = vadd.f32 -0.28449672, %v1419_v58 }
 0xa7b   :  { %v1420_v61 = vadd.f32 -0.28449672, %v1418_v31 }
 0xa7c   :  { %v1423_v62 = vmul.f32 %v1934_v40, %v1421_v44 }
 0xa7d   :  { %v1422_v63 = vmul.f32 %v1936_v49, %v1420_v61 }
 0xa7e   :  { %v1425_v0 = vadd.f32 0.2548296, %v1423_v62 }
 0xa7f   :  { %v1424_v37 = vadd.f32 0.2548296, %v1422_v63 }
 0xa80   :  { %v1427_v41 = vmul.f32 %v1934_v40, %v1425_v0 }
 0xa81   :  { %v1426_v2 = vmul.f32 %v1936_v49, %v1424_v37 }
 0xa82   :  { %v1437_v4 = vmul.f32 %v1938_v1, %v1427_v41 }
 0xa83   :  { %v1436_v7 = vmul.f32 %v1940_v3, %v1426_v2 }
 0xa84   :  { %v1439_v8 = vsub.f32 1.0, %v1437_v4 }
 0xa85   :  { %v1438_v11 = vsub.f32 1.0, %v1436_v7 }
 0xa86   :  { %v1441_v6 = vmul.f32 %v1439_v8, %v1399_v9 }
 0xa87   :  { %v1440_v13 = vmul.f32 %v1438_v11, %v1398_v34 }
 0xa88   :  { %v1443_v18 = vadd.f32 1.0, %v1441_v6 }
 0xa89   :  { %v1442_v20 = vadd.f32 1.0, %v1440_v13 }
 0xa8a   :  { %v1445_v14 = vmul.f32 %v1443_v18, %v1393_v17 }
 0xa8b   :  { %v1444_v16 = vmul.f32 %v1442_v20, %v1392_v57 }
 0xa8c   :  { %1516 = vmatprep.mubr.f32.mxu1 %v1445_v14 }
 0xa8d   :  { %1517 = vmatmul.mubr.f32.vlgmr.msra.gmra.mrb[4].mxu1 %v1444_v16 }
 0xaeb   :  { %v957_v60 = vpop.xlane.xlu1 %956 }
 0xaec   :  { %1941 = vrcp.f32 %v957_v60 }
 0xaef   :  { %v933_v19 = vpop.xlane.xlu1 %932 }
 0xaf0   :  { %v934_v21 = vsub.f32 %v933_v19, %v3134_v47  ;;  %v935_v22 = vsub.f32 %v933_v19, %v3136_v48 }
 0xaf2   :  { %v936_v24 = vand.u32 2147483647, %v934_v21  ;;  %v937_v23 = vand.u32 2147483647, %v935_v22 }
 0xaf4   :  { %v915_v25 = vpop.xlane.xlu0 %914  ;;  %vm938_vm15 = vcmp.le.f32.partialorder %v936_v24, 20.0  ;;  %vm939_vm0 = vcmp.le.f32.partialorder %v937_v23, 20.0 }
 0xaf5   :  { %1943 = vrcp.f32 %v915_v25  ;;  %v1542_v27 = vsel %vm938_vm15, 1.0, %v1997_v15  ;;  %v1543_v28 = vsel %vm939_vm0, 1.0, %v1997_v15 }
 0xaf6   :  { %v1942_v26 = vpop.eup %1941 }
 0xaf7   :  { %v959_v32 = vmul.f32 %v1942_v26, %v3258_v10  ;;  %v960_v5 = vmul.f32 %v1942_v26, %v3264_v12 }
 0xaf9   :  { %v961_v36 = vmul.f32 %v1542_v27, %v959_v32  ;;  %v962_v38 = vmul.f32 %v1543_v28, %v960_v5 }
 0xafb   :  { %v963_v39 = vadd.f32 %v962_v38, %v961_v36 }
 0xafd   :  { %964 = vadd.xlane.f32.xlu1 %v963_v39 }
 0xaff   :  { %v1944_v51 = vpop.eup %1943 }
 0xb00   :  { %v917_v30 = vmul.f32 %v1944_v51, %v3280_v33  ;;  %v918_v40 = vmul.f32 %v1944_v51, %v3282_v35 }
 0xb02   :  { %v919_v46 = vmul.f32 %v917_v30, %v3134_v47  ;;  %v920_v49 = vmul.f32 %v918_v40, %v3136_v48 }
 0xb04   :  { %v921_v10 = vadd.f32 %v920_v49, %v919_v46 }
 0xb06   :  { %922 = vadd.xlane.f32.xlu0 %v921_v10 }
 0xb60   :  { %v1578_v12 = vpop.f32.mrb[4].mxu1 }
 0xb61   :  { %v1579_v50 = vpop.f32.mrb[5].mxu1 }
 0xb62   :  { %v1580_v43 = vadd.f32 %v1579_v50, %v1578_v12 }
 0xb64   :  { %v1519_v15 = vadd.f32 %v1580_v43, %v1545_v42 }
 0xb66   :  { %1522 = vst.msk [vmem:[%s3333_s25] sm:$0xff] %vm974_vm1, %v1519_v15 }
 0xb8a   :  { %v965_v54 = vpop.xlane.xlu1 %964 }
 0xb8b   :  { %1945 = vrcp.f32 %v965_v54 }
 0xb93   :  { %v923_v45 = vpop.xlane.xlu0 %922 }
 0xb95   :  { %v1946_v33 = vpop.eup %1945 }
 0xb96   :  { %v967_v35 = vmul.f32 %v1946_v33, %v961_v36  ;;  %v968_v55 = vmul.f32 %v1946_v33, %v962_v38 }
 0xb98   :  { %v969_v52 = vmul.f32 %v967_v35, %v3134_v47  ;;  %v970_v53 = vmul.f32 %v968_v55, %v3136_v48 }
 0xb9a   :  { %v971_v56 = vadd.f32 %v970_v53, %v969_v52 }
 0xb9c   :  { %972 = vadd.xlane.f32.xlu1 %v971_v56 }
 0xc29   :  { %v973_v59 = vpop.xlane.xlu1 %972 }
 0xc2a   :  { %v975_v29 = vsel %vm974_vm1, %v923_v45, %v973_v59 }
 0xc2b   :  { %v976_v58 = vadd.f32 0.5, %v975_v29 }
 0xc2d   :  { %978 = vst.msk [vmem:[%s3331_s23] sm:$0xff] %vm977_vm2, %v976_v58 }
 0xc2e   :  { %1535 = vsyncpa [#allocation4], 1 }
 0xc2f   :  { %1536 = vsyncpa [#allocation6], 1 }

</bundles_post_ra>
